<compile_context>
chip_gen: v6e
topology: v6e:2x2x1
jax: 0.10.0
libtpu: 0.0.40
codegen_flags: <defaults>
</compile_context>

<pallas_src>
import functools
import math

import numpy as np
import jax
import jax.numpy as jnp
from jax import lax
from jax.experimental import pallas as pl
from jax.experimental.pallas import tpu as pltpu

# 32 MiB is safe on every generation (v7x: 64 MiB physical / 32 MiB scoped default;
# v5e's scoped default is only 16 MiB).  On v6e with large shapes this can be raised
# to 64-96 MiB together with larger tiles.
VMEM_LIMIT_BYTES = 32 * 1024 * 1024


def cube_root(n):
    return round(math.pow(n, 1.0 / 3.0))


def _round_up(x, m):
    return (x + m - 1) // m * m


# --------------------------- tiled MXU matmul -------------------------------
# Fused epilogue: bias add + (optionally) per-output-channel sum / sum-of-squares so
# BatchNorm statistics need no extra HBM passes over the (O, B*S) activation.

def _matmul_kernel(a_ref, b_ref, bias_ref, o_ref, *rest, with_stats):
    if with_stats:
        sum_ref, ssq_ref, acc_ref = rest
    else:
        (acc_ref,) = rest

    @pl.when(pl.program_id(2) == 0)
    def _():
        acc_ref[...] = jnp.zeros_like(acc_ref)

    acc_ref[...] += jnp.dot(a_ref[...], b_ref[...],
                            preferred_element_type=jnp.float32)

    @pl.when(pl.program_id(2) == pl.num_programs(2) - 1)
    def _():
        acc = acc_ref[...]
        o_ref[...] = (acc + bias_ref[...]).astype(o_ref.dtype)
        if with_stats:
            # Pre-bias row statistics (bias, if any, is folded back in host-side).
            sum_ref[...] = jnp.sum(acc, axis=1, keepdims=True)[None]
            ssq_ref[...] = jnp.sum(acc * acc, axis=1, keepdims=True)[None]


def pallas_matmul(a, b, bias=None, *, want_stats=False, tm=256, tn=512, tk=512,
                  operand_dtype=jnp.bfloat16, out_dtype=jnp.float32):
    """(M,K)@(K,N) on the MXU with f32 accumulation, fused bias + row statistics."""
    M, K = a.shape
    K2, N = b.shape
    assert K == K2

    # M (output channels) is small; 16-row blocks keep the bf16 (16,128) sublane tile.
    tm = min(tm, _round_up(M, 16))
    # Full-extent K block when it fits -> no pad copy of the big (K, B*S) im2col
    # matrix (a full-extent block is legal even when K is not a multiple of 8/128).
    if K <= tk:
        tk = K
    # Lane (N) axis: aim for >= 2 tiles so both v7x TensorCores get work.
    if N <= 128:
        tn = N
    else:
        tn = min(tn, _round_up(N, 128), max(128, _round_up(pl.cdiv(N, 2), 128)))

    Mp, Kp, Np = _round_up(M, tm), _round_up(K, tk), _round_up(N, tn)

    a_p = a.astype(operand_dtype)
    b_p = b.astype(operand_dtype)
    if (Mp, Kp) != (M, K):
        a_p = jnp.pad(a_p, ((0, Mp - M), (0, Kp - K)))
    if (Kp, Np) != (K, N):
        b_p = jnp.pad(b_p, ((0, Kp - K), (0, Np - N)))

    if bias is None:
        bias_col = jnp.zeros((Mp, 1), jnp.float32)
    else:
        bias_col = jnp.pad(bias.astype(jnp.float32), (0, Mp - M)).reshape(Mp, 1)

    gm, gn, gk = Mp // tm, Np // tn, Kp // tk

    out_shapes = [jax.ShapeDtypeStruct((Mp, Np), out_dtype)]
    out_specs = [pl.BlockSpec((tm, tn), lambda i, j, k: (i, j))]
    if want_stats:
        out_shapes += [jax.ShapeDtypeStruct((gn, Mp, 1), jnp.float32)] * 2
        out_specs += [pl.BlockSpec((1, tm, 1), lambda i, j, k: (j, i, 0))] * 2

    res = pl.pallas_call(
        functools.partial(_matmul_kernel, with_stats=want_stats),
        out_shape=tuple(out_shapes),
        grid=(gm, gn, gk),
        in_specs=[pl.BlockSpec((tm, tk), lambda i, j, k: (i, k)),
                  pl.BlockSpec((tk, tn), lambda i, j, k: (k, j)),
                  pl.BlockSpec((tm, 1), lambda i, j, k: (i, 0))],
        out_specs=tuple(out_specs),
        scratch_shapes=[pltpu.VMEM((tm, tn), jnp.float32)],
        compiler_params=pltpu.CompilerParams(
            dimension_semantics=("parallel", "parallel", "arbitrary"),
            vmem_limit_bytes=VMEM_LIMIT_BYTES),
    )(a_p, b_p, bias_col)

    out = res[0][:M, :N]
    if want_stats:
        row_sum = jnp.sum(res[1], axis=0)[:M, 0]
        row_ssq = jnp.sum(res[2], axis=0)[:M, 0]
        return out, row_sum, row_ssq
    return out


# -------------------- deformable trilinear sampling kernel ------------------

def _corner_terms(px, py, pz, H, W, D):
    """The 6 corner weights + clamped int32 flat indices used by the reference."""
    HWD = H * W * D
    qx_lt = jnp.floor(px); qy_lt = jnp.floor(py); qz_lt = jnp.floor(pz)
    qx_rb = qx_lt + 1.0;   qy_rb = qy_lt + 1.0;   qz_rb = qz_lt + 1.0

    qx_lt = jnp.clip(qx_lt, 0.0, H - 1.0); qx_rb = jnp.clip(qx_rb, 0.0, H - 1.0)
    qy_lt = jnp.clip(qy_lt, 0.0, W - 1.0); qy_rb = jnp.clip(qy_rb, 0.0, W - 1.0)
    qz_lt = jnp.clip(qz_lt, 0.0, D - 1.0); qz_rb = jnp.clip(qz_rb, 0.0, D - 1.0)

    pxc = jnp.clip(px, 0.0, H - 1.0)
    pyc = jnp.clip(py, 0.0, W - 1.0)
    pzc = jnp.clip(pz, 0.0, D - 1.0)

    # Exactly the 6 terms of the reference (it does not use all 8 trilinear corners).
    g_lt = (1 + (qx_lt - pxc)) * (1 + (qy_lt - pyc)) * (1 + (qz_lt - pzc))
    g_rb = (1 - (qx_rb - pxc)) * (1 - (qy_rb - pyc)) * (1 - (qz_rb - pzc))
    g_lb = (1 + (qx_lt - pxc)) * (1 - (qy_rb - pyc)) * (1 + (qz_lt - pzc))
    g_rt = (1 - (qx_rb - pxc)) * (1 + (qy_lt - pyc)) * (1 + (qz_lt - pzc))
    g_lf = (1 + (qx_lt - pxc)) * (1 + (qy_lt - pyc)) * (1 - (qz_rb - pzc))
    g_rf = (1 - (qx_rb - pxc)) * (1 - (qy_rb - pyc)) * (1 - (qz_lt - pzc))

    corners = [
        (g_lt, qx_lt, qy_lt, qz_lt),
        (g_rb, qx_rb, qy_rb, qz_rb),
        (g_lb, qx_lt, qy_rb, qz_lt),
        (g_rt, qx_rb, qy_lt, qz_lt),
        (g_lf, qx_lt, qy_lt, qz_rb),
        (g_rf, qx_rb, qy_rb, qz_lt),
    ]
    out = []
    for g, qx, qy, qz in corners:
        idx = (qx.astype(jnp.int32) * (W * D)
               + qy.astype(jnp.int32) * D
               + qz.astype(jnp.int32))
        idx = jnp.clip(idx, 0, HWD - 1)
        out.append((g, idx))
    return out


def _interp_kernel(mask_ref, x_ref, p_ref, o_ref, g_ref, idx_ref, *, H, W, D, th):
    # x_ref: (1, C, th)   p_ref: (1, 3, tm)   o_ref: (1, C, tm) (accumulator over k)
    # g_ref/idx_ref: (6, tm) VMEM scratch with corner weights / flat indices,
    # computed once per M tile (k == 0) and reused for every HWD tile.
    b, j, k = pl.program_id(0), pl.program_id(1), pl.program_id(2)
    tm = p_ref.shape[-1]

    @pl.when(k == 0)
    def _():
        o_ref[...] = jnp.zeros_like(o_ref)
        p = p_ref[0]                                     # (3, tm)
        terms = _corner_terms(p[0:1, :], p[1:2, :], p[2:3, :], H, W, D)
        g_ref[...] = jnp.concatenate([g for g, _ in terms], axis=0)
        idx_ref[...] = jnp.concatenate([i for _, i in terms], axis=0)

    # Skip HWD tiles that no sample of this M tile touches (mask precomputed on the
    # host into SMEM via scalar prefetch; cheap scalar predicate).
    @pl.when(mask_ref[b, j, k] > 0)
    def _():
        base = k * th
        x_tile = x_ref[0]                                # (C, th) f32
        rel = idx_ref[...] - base                        # (6, tm) tile-local indices
        g_all = g_ref[...]                               # (6, tm) f32
        # One-hot scatter of the 6 corner weights into (th, tm), then one MXU matmul
        # gathers/combines them against the x tile.  A (th, 1) iota is compared
        # against the (1, tm) indices -- no materialized (th, tm) iota temporary.
        iota = lax.broadcasted_iota(jnp.int32, (th, 1), 0)
        wmat = jnp.zeros((th, tm), jnp.float32)
        for c in range(6):
            wmat = wmat + jnp.where(iota == rel[c:c + 1, :], g_all[c:c + 1, :], 0.0)
        # Kept f32: the dot has only C (=4..8) output rows so the MXU is idle either
        # way (the VALU one-hot build dominates), and f32 keeps the gather emulation
        # numerically exact vs. the reference.
        o_ref[...] += jnp.dot(x_tile, wmat,
                              preferred_element_type=jnp.float32)[None]


def _hwd_tile_mask(p_p, H, W, D, n_j, tm, n_k, th):
    """(B, n_j, n_k) int32: 1 iff some corner index of M-tile j lands in HWD-tile k."""
    B = p_p.shape[0]
    fx, fy, fz = jnp.floor(p_p[:, 0]), jnp.floor(p_p[:, 1]), jnp.floor(p_p[:, 2])

    def flat(qx, qy, qz):
        qx = jnp.clip(qx, 0.0, H - 1.0)
        qy = jnp.clip(qy, 0.0, W - 1.0)
        qz = jnp.clip(qz, 0.0, D - 1.0)
        return (qx.astype(jnp.int32) * (W * D) + qy.astype(jnp.int32) * D
                + qz.astype(jnp.int32))

    lo = flat(fx, fy, fz).reshape(B, n_j, tm).min(axis=-1)            # min corner
    hi = flat(fx + 1, fy + 1, fz + 1).reshape(B, n_j, tm).max(axis=-1)  # max corner
    start = jnp.arange(n_k, dtype=jnp.int32) * th
    mask = (hi[..., None] >= start) & (lo[..., None] < start + th)
    return mask.astype(jnp.int32)


def pallas_interp(x_flat, p_all, H, W, D, *, tile_m=512, tile_hwd=512):
    """x_flat: (B, C, HWD), p_all: (B, 3, M) -> (B, C, M) sampled features."""
    B, C, HWD = x_flat.shape
    M = p_all.shape[-1]
    tm = min(tile_m, _round_up(M, 128))
    th = min(tile_hwd, _round_up(HWD, 128))
    Mp, HWDp = _round_up(M, tm), _round_up(HWD, th)
    n_j, n_k = Mp // tm, HWDp // th

    x_p = x_flat.astype(jnp.float32)
    if HWDp != HWD:
        x_p = jnp.pad(x_p, ((0, 0), (0, 0), (0, HWDp - HWD)))
    p_p = p_all.astype(jnp.float32)
    if Mp != M:
        p_p = jnp.pad(p_p, ((0, 0), (0, 0), (0, Mp - M)))

    mask = _hwd_tile_mask(p_p, H, W, D, n_j, tm, n_k, th)

    kern = functools.partial(_interp_kernel, H=H, W=W, D=D, th=th)
    out = pl.pallas_call(
        kern,
        out_shape=jax.ShapeDtypeStruct((B, C, Mp), jnp.float32),
        grid_spec=pltpu.PrefetchScalarGridSpec(
            num_scalar_prefetch=1,
            grid=(B, n_j, n_k),
            in_specs=[pl.BlockSpec((1, C, th), lambda b, j, k, m: (b, 0, k)),
                      pl.BlockSpec((1, 3, tm), lambda b, j, k, m: (b, 0, j))],
            out_specs=pl.BlockSpec((1, C, tm), lambda b, j, k, m: (b, 0, j)),
            scratch_shapes=[pltpu.VMEM((6, tm), jnp.float32),
                            pltpu.VMEM((6, tm), jnp.int32)]),
        compiler_params=pltpu.CompilerParams(
            dimension_semantics=("parallel", "parallel", "arbitrary"),
            vmem_limit_bytes=VMEM_LIMIT_BYTES),
    )(mask, x_p, p_p)
    return out[:, :, :M]


# --------------------------- BN + SiLU kernel --------------------------------

def _bn_silu_kernel(y_ref, scale_ref, shift_ref, o_ref):
    y = y_ref[...] * scale_ref[...] + shift_ref[...]
    # SiLU: the reciprocal goes to the EUP slot (free next to the VPU work).
    o_ref[...] = y * pl.reciprocal(1.0 + jnp.exp(-y), approx=True)


def pallas_bn_silu(y_t, scale, shift, *, tile=2048):
    """y_t: (O, R) channel-major; scale/shift: (O,).  Lane-dense, row-tiled."""
    O, R = y_t.shape
    if R > 256:
        tile = min(tile, max(128, _round_up(pl.cdiv(R, 2), 128)))  # >=2 tiles (v7x)
    else:
        tile = min(tile, _round_up(R, 128))
    Rp = _round_up(R, tile)
    y_p = y_t.astype(jnp.float32)
    if Rp != R:
        y_p = jnp.pad(y_p, ((0, 0), (0, Rp - R)))
    out = pl.pallas_call(
        _bn_silu_kernel,
        out_shape=jax.ShapeDtypeStruct((O, Rp), jnp.float32),
        grid=(Rp // tile,),
        in_specs=[pl.BlockSpec((O, tile), lambda i: (0, i)),
                  pl.BlockSpec((O, 1), lambda i: (0, 0)),
                  pl.BlockSpec((O, 1), lambda i: (0, 0))],
        out_specs=pl.BlockSpec((O, tile), lambda i: (0, i)),
        compiler_params=pltpu.CompilerParams(
            dimension_semantics=("parallel",),
            vmem_limit_bytes=VMEM_LIMIT_BYTES),
    )(y_p, scale.reshape(O, 1).astype(jnp.float32),
      shift.reshape(O, 1).astype(jnp.float32))
    return out[:, :R]


# ------------------------------ glue (plain JAX) -----------------------------

def _im2col_3d_T(x, ksize=3, pad=1, stride=1, dtype=jnp.bfloat16):
    """x: (B,C,H,W,D) -> ((C*k^3, B*Ho*Wo*Do), (Ho,Wo,Do)).  Lane axis = B*S.

    The small input is transposed to channel-major BEFORE the 27x patch expansion,
    so the expanded cols tensor never makes an extra HBM round-trip for a transpose.
    """
    B, C, H, W, D = x.shape
    xt = jnp.transpose(x, (1, 0, 2, 3, 4)).astype(dtype)        # (C,B,H,W,D)
    xp = jnp.pad(xt, ((0, 0), (0, 0), (pad, pad), (pad, pad), (pad, pad)))
    Ho = (H + 2 * pad - ksize) // stride + 1
    Wo = (W + 2 * pad - ksize) // stride + 1
    Do = (D + 2 * pad - ksize) // stride + 1
    patches = []
    for kh in range(ksize):
        for kw in range(ksize):
            for kd in range(ksize):
                patches.append(xp[:, :,
                                  kh:kh + Ho * stride:stride,
                                  kw:kw + Wo * stride:stride,
                                  kd:kd + Do * stride:stride])
    cols = jnp.stack(patches, axis=1)            # (C, k^3, B, Ho, Wo, Do)
    K = C * ksize ** 3
    return cols.reshape(K, B * Ho * Wo * Do), (Ho, Wo, Do)


def conv3d_t(x, weight, bias=None, stride=1, pad=1, *, want_stats=False,
             operand_dtype=jnp.bfloat16):
    """Conv3d via im2col + tiled Pallas matmul; returns channel-major (O,B,Ho,Wo,Do).

    want_stats=True additionally returns per-channel (pre-bias) sum / sum-of-squares
    over the B*spatial axis straight from the matmul epilogue."""
    O = weight.shape[0]
    k = weight.shape[2]
    colsT, (Ho, Wo, Do) = _im2col_3d_T(x, ksize=k, pad=pad, stride=stride,
                                       dtype=operand_dtype)
    w2 = weight.reshape(O, -1)                   # (O, C*k^3)
    B = x.shape[0]
    if want_stats:
        out_t, rs, rssq = pallas_matmul(w2, colsT, bias, want_stats=True,
                                        operand_dtype=operand_dtype)
        return out_t.reshape(O, B, Ho, Wo, Do), rs, rssq
    out_t = pallas_matmul(w2, colsT, bias, operand_dtype=operand_dtype)
    return out_t.reshape(O, B, Ho, Wo, Do)


def get_p_n(num_param):
    base_int = round(num_param ** (1.0 / 3.0))
    x_count = base_int
    y_count = base_int
    z_count = num_param // base_int ** 2
    remaining = num_param % base_int ** 2
    gx, gy, gz = np.meshgrid(np.arange(0, z_count), np.arange(0, y_count),
                             np.arange(0, x_count), indexing='xy')
    p_n_x, p_n_y, p_n_z = gx.flatten(), gy.flatten(), gz.flatten()
    if remaining > 0:
        extra_y_count = remaining // x_count
        extra_x_count = remaining % x_count
        if extra_y_count > 0:
            mx, my, mz = np.meshgrid(np.arange(z_count, z_count + 1),
                                     np.arange(0, extra_y_count),
                                     np.arange(0, x_count), indexing='xy')
            p_n_x = np.concatenate([p_n_x, mx.flatten()])
            p_n_y = np.concatenate([p_n_y, my.flatten()])
            p_n_z = np.concatenate([p_n_z, mz.flatten()])
        if extra_x_count > 0:
            mx, my, mz = np.meshgrid(np.arange(z_count, z_count + 1),
                                     np.arange(extra_y_count, extra_y_count + 1),
                                     np.arange(0, extra_x_count), indexing='xy')
            p_n_x = np.concatenate([p_n_x, mx.flatten()])
            p_n_y = np.concatenate([p_n_y, my.flatten()])
            p_n_z = np.concatenate([p_n_z, mz.flatten()])
    p_n = np.concatenate([p_n_x, p_n_y, p_n_z], 0).astype(np.float32)
    return p_n.reshape(1, 3 * num_param, 1, 1, 1)


def get_p_0(h, w, d, N, stride):
    gx, gy, gz = np.meshgrid(np.arange(0, h * stride, stride),
                             np.arange(0, w * stride, stride),
                             np.arange(0, d * stride, stride), indexing='xy')
    p0x = np.tile(gx.flatten().reshape(1, 1, h, w, d), (1, N, 1, 1, 1))
    p0y = np.tile(gy.flatten().reshape(1, 1, h, w, d), (1, N, 1, 1, 1))
    p0z = np.tile(gz.flatten().reshape(1, 1, h, w, d), (1, N, 1, 1, 1))
    return np.concatenate([p0x, p0y, p0z], 1).astype(np.float32)


def akconv_forward(x, params, num_param, stride=1):
    # x: (B, inc, H, W, D)
    B, C, H, W, D = x.shape
    N = num_param
    n3 = cube_root(N)
    assert n3 ** 3 == N, "num_param must be a perfect cube (as in _reshape_x_offset)"

    # offset branch: p_conv (k=3, pad=1, stride=stride) -> channel-major (3N,B,h,w,d).
    # Kept f32 (small matmul) so sampling coordinates don't lose precision to bf16.
    off_t = conv3d_t(x, params['p_w'], params['p_b'], stride=stride, pad=1,
                     operand_dtype=jnp.float32)
    _, _, h, w, d = off_t.shape

    # sampling positions p = p_0 + p_n + offset, kept channel-major
    p0 = jnp.asarray(get_p_0(h, w, d, N, stride))[0][:, None]   # (3N,1,h,w,d)
    pn = jnp.asarray(get_p_n(N))[0][:, None]                    # (3N,1,1,1,1)
    p_t = off_t + p0 + pn                                       # (3N,B,h,w,d)

    # Reorder sampling columns so the interp kernel's M axis is already in the fused
    # _reshape_x_offset order (h, n0, w, n1, d, n2): no big transpose afterwards.
    M = h * n3 * w * n3 * d * n3
    p_r = p_t.reshape(3, n3, n3, n3, B, h, w, d)
    p_all = jnp.transpose(p_r, (4, 0, 5, 1, 6, 2, 7, 3)).reshape(B, 3, M)

    # deformable sampling (Pallas kernel), output already in fused spatial order
    x_flat = x.reshape(B, C, H * W * D)
    x_off = pallas_interp(x_flat, p_all, H, W, D)               # (B, C, M)
    x_off = x_off.reshape(B, C, h * n3, w * n3, d * n3)

    # Conv3d(k=3, pad=1, stride=2, bias=None); per-channel sum / sum-of-squares come
    # out of the matmul epilogue (no extra HBM passes for BatchNorm statistics).
    y_t, rsum, rssq = conv3d_t(x_off, params['c_w'], None, stride=2, pad=1,
                               want_stats=True)                  # (O, B, h', w', d')
    O, Bn, Ho, Wo, Do = y_t.shape
    cnt = Bn * Ho * Wo * Do
    mean = rsum / cnt
    var = rssq / cnt - mean * mean        # biased batch variance (training-mode BN)
    eps = 1e-5
    scale = params['bn_g'] / jnp.sqrt(var + eps)
    shift = params['bn_b'] - mean * scale
    y2 = y_t.reshape(O, -1)                                      # (O, B*S) lane-dense
    out = pallas_bn_silu(y2, scale, shift)                       # (O, B*S)
    return out.reshape(O, Bn, Ho, Wo, Do).transpose(1, 0, 2, 3, 4)   # NCDHW
    # TODO(synk): BatchNorm3d running-stat updates and the _set_lr backward hook are
    # training-time bookkeeping with no forward-pass equivalent.


def interp_ref(x_flat, p_all, H, W, D):
    """Pure-JAX gather reference for the interpolation kernel (sanity check)."""
    B, C, _ = x_flat.shape
    px, py, pz = p_all[:, 0], p_all[:, 1], p_all[:, 2]            # (B, M)
    M = px.shape[-1]
    out = jnp.zeros((B, C, M), jnp.float32)
    for g, idx in _corner_terms(px, py, pz, H, W, D):
        idx_b = jnp.broadcast_to(idx[:, None, :], (B, C, M))
        vals = jnp.take_along_axis(x_flat, idx_b, axis=2)
        out = out + g[:, None, :] * vals
    return out


if __name__ == "__main__":
    B, inc, outc, num_param = 2, 4, 8, 8          # num_param must be a perfect cube
    H = W = D = 8
    key = jax.random.PRNGKey(0)
    kx, k1, k2, k3, k4, k5 = jax.random.split(key, 6)

    x = jax.random.normal(kx, (B, inc, H, W, D), jnp.float32)

    # NOTE: the PyTorch module zero-inits p_conv.weight; small non-zero values are
    # used here so the deformable sampling path is actually exercised.
    params = {
        'p_w': 0.05 * jax.random.normal(k1, (3 * num_param, inc, 3, 3, 3), jnp.float32),
        'p_b': 0.1 * jax.random.normal(k2, (3 * num_param,), jnp.float32),
        'c_w': 0.1 * jax.random.normal(k3, (outc, inc, 3, 3, 3), jnp.float32),
        'bn_g': 1.0 + 0.05 * jax.random.normal(k4, (outc,), jnp.float32),
        'bn_b': 0.05 * jax.random.normal(k5, (outc,), jnp.float32),
    }

    fwd = jax.jit(functools.partial(akconv_forward, num_param=num_param, stride=1))
    out = jax.block_until_ready(fwd(x, params))
    assert out.shape == (B, outc, H, W, D), out.shape
    assert bool(jnp.all(jnp.isfinite(out)))

    # sanity 1: tiled bf16 matmul + fused bias + fused row stats
    km1, km2, km3 = jax.random.split(jax.random.PRNGKey(2), 3)
    am = jax.random.normal(km1, (24, 200), jnp.float32)
    bm = jax.random.normal(km2, (200, 384), jnp.float32)
    bv = jax.random.normal(km3, (24,), jnp.float32)
    got_mm, got_s, got_ss = pallas_matmul(am, bm, bv, want_stats=True)
    got_mm = jax.block_until_ready(got_mm)
    want_mm = jnp.dot(am.astype(jnp.bfloat16).astype(jnp.float32),
                      bm.astype(jnp.bfloat16).astype(jnp.float32)) + bv[:, None]
    assert jnp.allclose(got_mm, want_mm, atol=1e-2, rtol=1e-2), \
        float(jnp.max(jnp.abs(got_mm - want_mm)))
    pre_bias = got_mm - bv[:, None]
    assert jnp.allclose(got_s, pre_bias.sum(axis=1), atol=1e-2, rtol=1e-3)
    assert jnp.allclose(got_ss, (pre_bias ** 2).sum(axis=1), atol=1e-1, rtol=1e-3)

    # sanity 2: Pallas interpolation kernel (multi-HWD-tile, masked-skip path) vs
    # pure-JAX gather reference
    kk1, kk2 = jax.random.split(jax.random.PRNGKey(1))
    xf = jax.random.normal(kk1, (B, inc, H * W * D), jnp.float32)
    pa = (H + 1.0) * jax.random.uniform(
        kk2, (B, 3, H * W * D * num_param), jnp.float32) - 0.5
    got = jax.block_until_ready(
        pallas_interp(xf, pa, H, W, D, tile_m=256, tile_hwd=128))
    want = interp_ref(xf, pa, H, W, D)
    assert jnp.allclose(got, want, atol=1e-4, rtol=1e-4), \
        float(jnp.max(jnp.abs(got - want)))

    print("KERNEL_OK")
</pallas_src>

<mosaic_0001>
module attributes {stable_mosaic.version = 11 : i64} {
  func.func @_matmul_kernel(%arg0: i32, %arg1: i32, %arg2: i32, %arg3: memref<32x108xf32, #tpu.memory_space<vmem>>, %arg4: memref<108x512xf32, #tpu.memory_space<vmem>>, %arg5: memref<32x1xf32, #tpu.memory_space<vmem>>, %arg6: memref<32x512xf32, #tpu.memory_space<vmem>>, %arg7: memref<32x512xf32, #tpu.memory_space<vmem>>) attributes {dimension_semantics = [#tpu.dimension_semantics<parallel>, #tpu.dimension_semantics<parallel>, #tpu.dimension_semantics<arbitrary>], iteration_bounds = array<i64: 1, 2, 1>, scalar_prefetch = 0 : i64, scratch_operands = 1 : i64, tpu.core_type = #tpu.core_type<tc>, window_params = [{transform_indices = @transform_0, window_bounds = array<i64: 32, 108>}, {transform_indices = @transform_1, window_bounds = array<i64: 108, 512>}, {transform_indices = @transform_2, window_bounds = array<i64: 32, 1>}, {transform_indices = @transform_3, window_bounds = array<i64: 32, 512>}]} {
    %c0_i32 = arith.constant 0 : i32
    %0 = arith.cmpi eq, %arg2, %c0_i32 : i32
    %1 = arith.extui %0 : i1 to i32
    %c0_i32_0 = arith.constant 0 : i32
    %2 = arith.cmpi ne, %1, %c0_i32_0 : i32
    scf.if %2 {
      %cst_10 = arith.constant 0.000000e+00 : f32
      %12 = vector.broadcast %cst_10 : f32 to vector<32x512xf32>
      %c0_11 = arith.constant 0 : index
      %c0_12 = arith.constant 0 : index
      %13 = vector.load %arg7[%c0_11, %c0_12] : memref<32x512xf32, #tpu.memory_space<vmem>>, vector<32x512xf32>
      tpu.vector_store %arg7[%c0_11, %c0_12], %12 {strides = array<i32>} : memref<32x512xf32, #tpu.memory_space<vmem>>, vector<32x512xf32>,
    } else {
    }
    %c0 = arith.constant 0 : index
    %c0_1 = arith.constant 0 : index
    %3 = vector.load %arg7[%c0, %c0_1] : memref<32x512xf32, #tpu.memory_space<vmem>>, vector<32x512xf32>
    %c0_2 = arith.constant 0 : index
    %c0_3 = arith.constant 0 : index
    %4 = vector.load %arg3[%c0_2, %c0_3] : memref<32x108xf32, #tpu.memory_space<vmem>>, vector<32x108xf32>
    %c0_4 = arith.constant 0 : index
    %c0_5 = arith.constant 0 : index
    %5 = vector.load %arg4[%c0_4, %c0_5] : memref<108x512xf32, #tpu.memory_space<vmem>>, vector<108x512xf32>
    %cst = arith.constant dense<0.000000e+00> : vector<32x512xf32>
    %6 = tpu.matmul %4, %5, %cst {dimension_numbers = #tpu.dot_dimension_numbers<[1], [0], [0], [1], [0, 0, 1, 1], [], []>} : vector<32x108xf32>, vector<108x512xf32>, vector<32x512xf32> -> vector<32x512xf32>
    %7 = arith.addf %3, %6 : vector<32x512xf32>
    %c0_6 = arith.constant 0 : index
    %c0_7 = arith.constant 0 : index
    %8 = vector.load %arg7[%c0_6, %c0_7] : memref<32x512xf32, #tpu.memory_space<vmem>>, vector<32x512xf32>
    tpu.vector_store %arg7[%c0_6, %c0_7], %7 {strides = array<i32>} : memref<32x512xf32, #tpu.memory_space<vmem>>, vector<32x512xf32>,
    %c0_i32_8 = arith.constant 0 : i32
    %9 = arith.cmpi eq, %arg2, %c0_i32_8 : i32
    %10 = arith.extui %9 : i1 to i32
    %c0_i32_9 = arith.constant 0 : i32
    %11 = arith.cmpi ne, %10, %c0_i32_9 : i32
    scf.if %11 {
      %c0_10 = arith.constant 0 : index
      %c0_11 = arith.constant 0 : index
      %12 = vector.load %arg7[%c0_10, %c0_11] : memref<32x512xf32, #tpu.memory_space<vmem>>, vector<32x512xf32>
      %c0_12 = arith.constant 0 : index
      %c0_13 = arith.constant 0 : index
      %13 = vector.load %arg5[%c0_12, %c0_13] : memref<32x1xf32, #tpu.memory_space<vmem>>, vector<32x1xf32>
      %14 = vector.broadcast %13 : vector<32x1xf32> to vector<32x512xf32>
      %15 = arith.addf %12, %14 : vector<32x512xf32>
      %c0_14 = arith.constant 0 : index
      %c0_15 = arith.constant 0 : index
      %16 = vector.load %arg6[%c0_14, %c0_15] : memref<32x512xf32, #tpu.memory_space<vmem>>, vector<32x512xf32>
      tpu.vector_store %arg6[%c0_14, %c0_15], %15 {strides = array<i32>} : memref<32x512xf32, #tpu.memory_space<vmem>>, vector<32x512xf32>,
    } else {
    }
    return
  }
  func.func @transform_0(%arg0: i32, %arg1: i32, %arg2: i32) -> (i32, i32) {
    %c0_i32 = arith.constant 0 : i32
    return %arg0, %arg2 : i32, i32
  }
  func.func @transform_1(%arg0: i32, %arg1: i32, %arg2: i32) -> (i32, i32) {
    %c0_i32 = arith.constant 0 : i32
    return %arg2, %arg1 : i32, i32
  }
  func.func @transform_2(%arg0: i32, %arg1: i32, %arg2: i32) -> (i32, i32) {
    %c0_i32 = arith.constant 0 : i32
    %c0_i32_0 = arith.constant 0 : i32
    return %arg0, %c0_i32 : i32, i32
  }
  func.func @transform_3(%arg0: i32, %arg1: i32, %arg2: i32) -> (i32, i32) {
    %c0_i32 = arith.constant 0 : i32
    return %arg0, %arg1 : i32, i32
  }
}

module attributes {stable_mosaic.version = 11 : i64} {
  func.func @_interp_kernel(%arg0: i32, %arg1: i32, %arg2: i32, %arg3: memref<2x8x1xi32, #tpu.memory_space<smem>>, %arg4: memref<1x4x512xf32, #tpu.memory_space<vmem>>, %arg5: memref<1x3x512xf32, #tpu.memory_space<vmem>>, %arg6: memref<1x4x512xf32, #tpu.memory_space<vmem>>, %arg7: memref<6x512xf32, #tpu.memory_space<vmem>>, %arg8: memref<6x512xi32, #tpu.memory_space<vmem>>) attributes {dimension_semantics = [#tpu.dimension_semantics<parallel>, #tpu.dimension_semantics<parallel>, #tpu.dimension_semantics<arbitrary>], iteration_bounds = array<i64: 2, 8, 1>, scalar_prefetch = 1 : i64, scratch_operands = 2 : i64, tpu.core_type = #tpu.core_type<tc>, window_params = [{transform_indices = @transform_0, window_bounds = array<i64: 1, 4, 512>}, {transform_indices = @transform_1, window_bounds = array<i64: 1, 3, 512>}, {transform_indices = @transform_2, window_bounds = array<i64: 1, 4, 512>}]} {
    %c0_i32 = arith.constant 0 : i32
    %0 = arith.cmpi eq, %arg2, %c0_i32 : i32
    %1 = arith.extui %0 : i1 to i32
    %c0_i32_0 = arith.constant 0 : i32
    %2 = arith.cmpi ne, %1, %c0_i32_0 : i32
    scf.if %2 {
      %cst = arith.constant 0.000000e+00 : f32
      %10 = vector.broadcast %cst : f32 to vector<1x4x512xf32>
      %c0 = arith.constant 0 : index
      %c0_3 = arith.constant 0 : index
      %c0_4 = arith.constant 0 : index
      %11 = vector.load %arg6[%c0, %c0_3, %c0_4] : memref<1x4x512xf32, #tpu.memory_space<vmem>>, vector<1x4x512xf32>
      tpu.vector_store %arg6[%c0, %c0_3, %c0_4], %10 {strides = array<i32>} : memref<1x4x512xf32, #tpu.memory_space<vmem>>, vector<1x4x512xf32>,
      %c0_5 = arith.constant 0 : index
      %c0_6 = arith.constant 0 : index
      %c0_7 = arith.constant 0 : index
      %12 = vector.load %arg5[%c0_5, %c0_6, %c0_7] : memref<1x3x512xf32, #tpu.memory_space<vmem>>, vector<1x3x512xf32>
      %13 = vector.shape_cast %12 : vector<1x3x512xf32> to vector<3x512xf32>
      %14 = vector.extract_strided_slice %13 {offsets = [0, 0], sizes = [1, 512], strides = [1, 1]} : vector<3x512xf32> to vector<1x512xf32>
      %15 = vector.extract_strided_slice %13 {offsets = [1, 0], sizes = [1, 512], strides = [1, 1]} : vector<3x512xf32> to vector<1x512xf32>
      %16 = vector.extract_strided_slice %13 {offsets = [2, 0], sizes = [1, 512], strides = [1, 1]} : vector<3x512xf32> to vector<1x512xf32>
      %17 = math.floor %14 : vector<1x512xf32>
      %18 = math.floor %15 : vector<1x512xf32>
      %19 = math.floor %16 : vector<1x512xf32>
      %cst_8 = arith.constant 1.000000e+00 : f32
      %20 = vector.broadcast %cst_8 : f32 to vector<1x512xf32>
      %21 = arith.addf %17, %20 : vector<1x512xf32>
      %cst_9 = arith.constant 1.000000e+00 : f32
      %22 = vector.broadcast %cst_9 : f32 to vector<1x512xf32>
      %23 = arith.addf %18, %22 : vector<1x512xf32>
      %cst_10 = arith.constant 1.000000e+00 : f32
      %24 = vector.broadcast %cst_10 : f32 to vector<1x512xf32>
      %25 = arith.addf %19, %24 : vector<1x512xf32>
      %cst_11 = arith.constant 0.000000e+00 : f32
      %cst_12 = arith.constant 7.000000e+00 : f32
      %26 = vector.broadcast %cst_11 : f32 to vector<1x512xf32>
      %27 = arith.maximumf %26, %17 : vector<1x512xf32>
      %28 = vector.broadcast %cst_12 : f32 to vector<1x512xf32>
      %29 = arith.minimumf %28, %27 : vector<1x512xf32>
      %cst_13 = arith.constant 0.000000e+00 : f32
      %cst_14 = arith.constant 7.000000e+00 : f32
      %30 = vector.broadcast %cst_13 : f32 to vector<1x512xf32>
      %31 = arith.maximumf %30, %21 : vector<1x512xf32>
      %32 = vector.broadcast %cst_14 : f32 to vector<1x512xf32>
      %33 = arith.minimumf %32, %31 : vector<1x512xf32>
      %cst_15 = arith.constant 0.000000e+00 : f32
      %cst_16 = arith.constant 7.000000e+00 : f32
      %34 = vector.broadcast %cst_15 : f32 to vector<1x512xf32>
      %35 = arith.maximumf %34, %18 : vector<1x512xf32>
      %36 = vector.broadcast %cst_16 : f32 to vector<1x512xf32>
      %37 = arith.minimumf %36, %35 : vector<1x512xf32>
      %cst_17 = arith.constant 0.000000e+00 : f32
      %cst_18 = arith.constant 7.000000e+00 : f32
      %38 = vector.broadcast %cst_17 : f32 to vector<1x512xf32>
      %39 = arith.maximumf %38, %23 : vector<1x512xf32>
      %40 = vector.broadcast %cst_18 : f32 to vector<1x512xf32>
      %41 = arith.minimumf %40, %39 : vector<1x512xf32>
      %cst_19 = arith.constant 0.000000e+00 : f32
      %cst_20 = arith.constant 7.000000e+00 : f32
      %42 = vector.broadcast %cst_19 : f32 to vector<1x512xf32>
      %43 = arith.maximumf %42, %19 : vector<1x512xf32>
      %44 = vector.broadcast %cst_20 : f32 to vector<1x512xf32>
      %45 = arith.minimumf %44, %43 : vector<1x512xf32>
      %cst_21 = arith.constant 0.000000e+00 : f32
      %cst_22 = arith.constant 7.000000e+00 : f32
      %46 = vector.broadcast %cst_21 : f32 to vector<1x512xf32>
      %47 = arith.maximumf %46, %25 : vector<1x512xf32>
      %48 = vector.broadcast %cst_22 : f32 to vector<1x512xf32>
      %49 = arith.minimumf %48, %47 : vector<1x512xf32>
      %cst_23 = arith.constant 0.000000e+00 : f32
      %cst_24 = arith.constant 7.000000e+00 : f32
      %50 = vector.broadcast %cst_23 : f32 to vector<1x512xf32>
      %51 = arith.maximumf %50, %14 : vector<1x512xf32>
      %52 = vector.broadcast %cst_24 : f32 to vector<1x512xf32>
      %53 = arith.minimumf %52, %51 : vector<1x512xf32>
      %cst_25 = arith.constant 0.000000e+00 : f32
      %cst_26 = arith.constant 7.000000e+00 : f32
      %54 = vector.broadcast %cst_25 : f32 to vector<1x512xf32>
      %55 = arith.maximumf %54, %15 : vector<1x512xf32>
      %56 = vector.broadcast %cst_26 : f32 to vector<1x512xf32>
      %57 = arith.minimumf %56, %55 : vector<1x512xf32>
      %cst_27 = arith.constant 0.000000e+00 : f32
      %cst_28 = arith.constant 7.000000e+00 : f32
      %58 = vector.broadcast %cst_27 : f32 to vector<1x512xf32>
      %59 = arith.maximumf %58, %16 : vector<1x512xf32>
      %60 = vector.broadcast %cst_28 : f32 to vector<1x512xf32>
      %61 = arith.minimumf %60, %59 : vector<1x512xf32>
      %62 = arith.subf %29, %53 : vector<1x512xf32>
      %cst_29 = arith.constant 1.000000e+00 : f32
      %63 = vector.broadcast %cst_29 : f32 to vector<1x512xf32>
      %64 = arith.addf %63, %62 : vector<1x512xf32>
      %65 = arith.subf %37, %57 : vector<1x512xf32>
      %cst_30 = arith.constant 1.000000e+00 : f32
      %66 = vector.broadcast %cst_30 : f32 to vector<1x512xf32>
      %67 = arith.addf %66, %65 : vector<1x512xf32>
      %68 = arith.mulf %64, %67 : vector<1x512xf32>
      %69 = arith.subf %45, %61 : vector<1x512xf32>
      %cst_31 = arith.constant 1.000000e+00 : f32
      %70 = vector.broadcast %cst_31 : f32 to vector<1x512xf32>
      %71 = arith.addf %70, %69 : vector<1x512xf32>
      %72 = arith.mulf %68, %71 : vector<1x512xf32>
      %73 = arith.subf %33, %53 : vector<1x512xf32>
      %cst_32 = arith.constant 1.000000e+00 : f32
      %74 = vector.broadcast %cst_32 : f32 to vector<1x512xf32>
      %75 = arith.subf %74, %73 : vector<1x512xf32>
      %76 = arith.subf %41, %57 : vector<1x512xf32>
      %cst_33 = arith.constant 1.000000e+00 : f32
      %77 = vector.broadcast %cst_33 : f32 to vector<1x512xf32>
      %78 = arith.subf %77, %76 : vector<1x512xf32>
      %79 = arith.mulf %75, %78 : vector<1x512xf32>
      %80 = arith.subf %49, %61 : vector<1x512xf32>
      %cst_34 = arith.constant 1.000000e+00 : f32
      %81 = vector.broadcast %cst_34 : f32 to vector<1x512xf32>
      %82 = arith.subf %81, %80 : vector<1x512xf32>
      %83 = arith.mulf %79, %82 : vector<1x512xf32>
      %84 = arith.subf %29, %53 : vector<1x512xf32>
      %cst_35 = arith.constant 1.000000e+00 : f32
      %85 = vector.broadcast %cst_35 : f32 to vector<1x512xf32>
      %86 = arith.addf %85, %84 : vector<1x512xf32>
      %87 = arith.subf %41, %57 : vector<1x512xf32>
      %cst_36 = arith.constant 1.000000e+00 : f32
      %88 = vector.broadcast %cst_36 : f32 to vector<1x512xf32>
      %89 = arith.subf %88, %87 : vector<1x512xf32>
      %90 = arith.mulf %86, %89 : vector<1x512xf32>
      %91 = arith.subf %45, %61 : vector<1x512xf32>
      %cst_37 = arith.constant 1.000000e+00 : f32
      %92 = vector.broadcast %cst_37 : f32 to vector<1x512xf32>
      %93 = arith.addf %92, %91 : vector<1x512xf32>
      %94 = arith.mulf %90, %93 : vector<1x512xf32>
      %95 = arith.subf %33, %53 : vector<1x512xf32>
      %cst_38 = arith.constant 1.000000e+00 : f32
      %96 = vector.broadcast %cst_38 : f32 to vector<1x512xf32>
      %97 = arith.subf %96, %95 : vector<1x512xf32>
      %98 = arith.subf %37, %57 : vector<1x512xf32>
      %cst_39 = arith.constant 1.000000e+00 : f32
      %99 = vector.broadcast %cst_39 : f32 to vector<1x512xf32>
      %100 = arith.addf %99, %98 : vector<1x512xf32>
      %101 = arith.mulf %97, %100 : vector<1x512xf32>
      %102 = arith.subf %45, %61 : vector<1x512xf32>
      %cst_40 = arith.constant 1.000000e+00 : f32
      %103 = vector.broadcast %cst_40 : f32 to vector<1x512xf32>
      %104 = arith.addf %103, %102 : vector<1x512xf32>
      %105 = arith.mulf %101, %104 : vector<1x512xf32>
      %106 = arith.subf %29, %53 : vector<1x512xf32>
      %cst_41 = arith.constant 1.000000e+00 : f32
      %107 = vector.broadcast %cst_41 : f32 to vector<1x512xf32>
      %108 = arith.addf %107, %106 : vector<1x512xf32>
      %109 = arith.subf %37, %57 : vector<1x512xf32>
      %cst_42 = arith.constant 1.000000e+00 : f32
      %110 = vector.broadcast %cst_42 : f32 to vector<1x512xf32>
      %111 = arith.addf %110, %109 : vector<1x512xf32>
      %112 = arith.mulf %108, %111 : vector<1x512xf32>
      %113 = arith.subf %49, %61 : vector<1x512xf32>
      %cst_43 = arith.constant 1.000000e+00 : f32
      %114 = vector.broadcast %cst_43 : f32 to vector<1x512xf32>
      %115 = arith.subf %114, %113 : vector<1x512xf32>
      %116 = arith.mulf %112, %115 : vector<1x512xf32>
      %117 = arith.subf %33, %53 : vector<1x512xf32>
      %cst_44 = arith.constant 1.000000e+00 : f32
      %118 = vector.broadcast %cst_44 : f32 to vector<1x512xf32>
      %119 = arith.subf %118, %117 : vector<1x512xf32>
      %120 = arith.subf %41, %57 : vector<1x512xf32>
      %cst_45 = arith.constant 1.000000e+00 : f32
      %121 = vector.broadcast %cst_45 : f32 to vector<1x512xf32>
      %122 = arith.subf %121, %120 : vector<1x512xf32>
      %123 = arith.mulf %119, %122 : vector<1x512xf32>
      %124 = arith.subf %45, %61 : vector<1x512xf32>
      %cst_46 = arith.constant 1.000000e+00 : f32
      %125 = vector.broadcast %cst_46 : f32 to vector<1x512xf32>
      %126 = arith.subf %125, %124 : vector<1x512xf32>
      %127 = arith.mulf %123, %126 : vector<1x512xf32>
      %128 = arith.fptosi %29 : vector<1x512xf32> to vector<1x512xi32>
      %c64_i32 = arith.constant 64 : i32
      %129 = vector.broadcast %c64_i32 : i32 to vector<1x512xi32>
      %130 = arith.muli %128, %129 : vector<1x512xi32>
      %131 = arith.fptosi %37 : vector<1x512xf32> to vector<1x512xi32>
      %c8_i32 = arith.constant 8 : i32
      %132 = vector.broadcast %c8_i32 : i32 to vector<1x512xi32>
      %133 = arith.muli %131, %132 : vector<1x512xi32>
      %134 = arith.addi %130, %133 : vector<1x512xi32>
      %135 = arith.fptosi %45 : vector<1x512xf32> to vector<1x512xi32>
      %136 = arith.addi %134, %135 : vector<1x512xi32>
      %c0_i32_47 = arith.constant 0 : i32
      %c511_i32 = arith.constant 511 : i32
      %137 = vector.broadcast %c0_i32_47 : i32 to vector<1x512xi32>
      %138 = arith.maxsi %137, %136 : vector<1x512xi32>
      %139 = vector.broadcast %c511_i32 : i32 to vector<1x512xi32>
      %140 = arith.minsi %139, %138 : vector<1x512xi32>
      %141 = arith.fptosi %33 : vector<1x512xf32> to vector<1x512xi32>
      %c64_i32_48 = arith.constant 64 : i32
      %142 = vector.broadcast %c64_i32_48 : i32 to vector<1x512xi32>
      %143 = arith.muli %141, %142 : vector<1x512xi32>
      %144 = arith.fptosi %41 : vector<1x512xf32> to vector<1x512xi32>
      %c8_i32_49 = arith.constant 8 : i32
      %145 = vector.broadcast %c8_i32_49 : i32 to vector<1x512xi32>
      %146 = arith.muli %144, %145 : vector<1x512xi32>
      %147 = arith.addi %143, %146 : vector<1x512xi32>
      %148 = arith.fptosi %49 : vector<1x512xf32> to vector<1x512xi32>
      %149 = arith.addi %147, %148 : vector<1x512xi32>
      %c0_i32_50 = arith.constant 0 : i32
      %c511_i32_51 = arith.constant 511 : i32
      %150 = vector.broadcast %c0_i32_50 : i32 to vector<1x512xi32>
      %151 = arith.maxsi %150, %149 : vector<1x512xi32>
      %152 = vector.broadcast %c511_i32_51 : i32 to vector<1x512xi32>
      %153 = arith.minsi %152, %151 : vector<1x512xi32>
      %154 = arith.fptosi %29 : vector<1x512xf32> to vector<1x512xi32>
      %c64_i32_52 = arith.constant 64 : i32
      %155 = vector.broadcast %c64_i32_52 : i32 to vector<1x512xi32>
      %156 = arith.muli %154, %155 : vector<1x512xi32>
      %157 = arith.fptosi %41 : vector<1x512xf32> to vector<1x512xi32>
      %c8_i32_53 = arith.constant 8 : i32
      %158 = vector.broadcast %c8_i32_53 : i32 to vector<1x512xi32>
      %159 = arith.muli %157, %158 : vector<1x512xi32>
      %160 = arith.addi %156, %159 : vector<1x512xi32>
      %161 = arith.fptosi %45 : vector<1x512xf32> to vector<1x512xi32>
      %162 = arith.addi %160, %161 : vector<1x512xi32>
      %c0_i32_54 = arith.constant 0 : i32
      %c511_i32_55 = arith.constant 511 : i32
      %163 = vector.broadcast %c0_i32_54 : i32 to vector<1x512xi32>
      %164 = arith.maxsi %163, %162 : vector<1x512xi32>
      %165 = vector.broadcast %c511_i32_55 : i32 to vector<1x512xi32>
      %166 = arith.minsi %165, %164 : vector<1x512xi32>
      %167 = arith.fptosi %33 : vector<1x512xf32> to vector<1x512xi32>
      %c64_i32_56 = arith.constant 64 : i32
      %168 = vector.broadcast %c64_i32_56 : i32 to vector<1x512xi32>
      %169 = arith.muli %167, %168 : vector<1x512xi32>
      %170 = arith.fptosi %37 : vector<1x512xf32> to vector<1x512xi32>
      %c8_i32_57 = arith.constant 8 : i32
      %171 = vector.broadcast %c8_i32_57 : i32 to vector<1x512xi32>
      %172 = arith.muli %170, %171 : vector<1x512xi32>
      %173 = arith.addi %169, %172 : vector<1x512xi32>
      %174 = arith.fptosi %45 : vector<1x512xf32> to vector<1x512xi32>
      %175 = arith.addi %173, %174 : vector<1x512xi32>
      %c0_i32_58 = arith.constant 0 : i32
      %c511_i32_59 = arith.constant 511 : i32
      %176 = vector.broadcast %c0_i32_58 : i32 to vector<1x512xi32>
      %177 = arith.maxsi %176, %175 : vector<1x512xi32>
      %178 = vector.broadcast %c511_i32_59 : i32 to vector<1x512xi32>
      %179 = arith.minsi %178, %177 : vector<1x512xi32>
      %180 = arith.fptosi %29 : vector<1x512xf32> to vector<1x512xi32>
      %c64_i32_60 = arith.constant 64 : i32
      %181 = vector.broadcast %c64_i32_60 : i32 to vector<1x512xi32>
      %182 = arith.muli %180, %181 : vector<1x512xi32>
      %183 = arith.fptosi %37 : vector<1x512xf32> to vector<1x512xi32>
      %c8_i32_61 = arith.constant 8 : i32
      %184 = vector.broadcast %c8_i32_61 : i32 to vector<1x512xi32>
      %185 = arith.muli %183, %184 : vector<1x512xi32>
      %186 = arith.addi %182, %185 : vector<1x512xi32>
      %187 = arith.fptosi %49 : vector<1x512xf32> to vector<1x512xi32>
      %188 = arith.addi %186, %187 : vector<1x512xi32>
      %c0_i32_62 = arith.constant 0 : i32
      %c511_i32_63 = arith.constant 511 : i32
      %189 = vector.broadcast %c0_i32_62 : i32 to vector<1x512xi32>
      %190 = arith.maxsi %189, %188 : vector<1x512xi32>
      %191 = vector.broadcast %c511_i32_63 : i32 to vector<1x512xi32>
      %192 = arith.minsi %191, %190 : vector<1x512xi32>
      %193 = arith.fptosi %33 : vector<1x512xf32> to vector<1x512xi32>
      %c64_i32_64 = arith.constant 64 : i32
      %194 = vector.broadcast %c64_i32_64 : i32 to vector<1x512xi32>
      %195 = arith.muli %193, %194 : vector<1x512xi32>
      %196 = arith.fptosi %41 : vector<1x512xf32> to vector<1x512xi32>
      %c8_i32_65 = arith.constant 8 : i32
      %197 = vector.broadcast %c8_i32_65 : i32 to vector<1x512xi32>
      %198 = arith.muli %196, %197 : vector<1x512xi32>
      %199 = arith.addi %195, %198 : vector<1x512xi32>
      %200 = arith.fptosi %45 : vector<1x512xf32> to vector<1x512xi32>
      %201 = arith.addi %199, %200 : vector<1x512xi32>
      %c0_i32_66 = arith.constant 0 : i32
      %c511_i32_67 = arith.constant 511 : i32
      %202 = vector.broadcast %c0_i32_66 : i32 to vector<1x512xi32>
      %203 = arith.maxsi %202, %201 : vector<1x512xi32>
      %204 = vector.broadcast %c511_i32_67 : i32 to vector<1x512xi32>
      %205 = arith.minsi %204, %203 : vector<1x512xi32>
      %206 = tpu.concatenate %72, %83, %94, %105, %116, %127 in 0 : vector<1x512xf32>, vector<1x512xf32>, vector<1x512xf32>, vector<1x512xf32>, vector<1x512xf32>, vector<1x512xf32> -> vector<6x512xf32>
      %c0_68 = arith.constant 0 : index
      %c0_69 = arith.constant 0 : index
      %207 = vector.load %arg7[%c0_68, %c0_69] : memref<6x512xf32, #tpu.memory_space<vmem>>, vector<6x512xf32>
      tpu.vector_store %arg7[%c0_68, %c0_69], %206 {strides = array<i32>} : memref<6x512xf32, #tpu.memory_space<vmem>>, vector<6x512xf32>,
      %208 = tpu.concatenate %140, %153, %166, %179, %192, %205 in 0 : vector<1x512xi32>, vector<1x512xi32>, vector<1x512xi32>, vector<1x512xi32>, vector<1x512xi32>, vector<1x512xi32> -> vector<6x512xi32>
      %c0_70 = arith.constant 0 : index
      %c0_71 = arith.constant 0 : index
      %209 = vector.load %arg8[%c0_70, %c0_71] : memref<6x512xi32, #tpu.memory_space<vmem>>, vector<6x512xi32>
      tpu.vector_store %arg8[%c0_70, %c0_71], %208 {strides = array<i32>} : memref<6x512xi32, #tpu.memory_space<vmem>>, vector<6x512xi32>,
    } else {
    }
    %3 = arith.index_cast %arg0 : i32 to index
    %4 = arith.index_cast %arg1 : i32 to index
    %5 = arith.index_cast %arg2 : i32 to index
    %6 = memref.load %arg3[%3, %4, %5] : memref<2x8x1xi32, #tpu.memory_space<smem>>
    %c0_i32_1 = arith.constant 0 : i32
    %7 = arith.cmpi sgt, %6, %c0_i32_1 : i32
    %8 = arith.extui %7 : i1 to i32
    %c0_i32_2 = arith.constant 0 : i32
    %9 = arith.cmpi ne, %8, %c0_i32_2 : i32
    scf.if %9 {
      %c512_i32 = arith.constant 512 : i32
      %10 = arith.muli %arg2, %c512_i32 : i32
      %c0 = arith.constant 0 : index
      %c0_3 = arith.constant 0 : index
      %c0_4 = arith.constant 0 : index
      %11 = vector.load %arg4[%c0, %c0_3, %c0_4] : memref<1x4x512xf32, #tpu.memory_space<vmem>>, vector<1x4x512xf32>
      %12 = vector.shape_cast %11 : vector<1x4x512xf32> to vector<4x512xf32>
      %c0_5 = arith.constant 0 : index
      %c0_6 = arith.constant 0 : index
      %13 = vector.load %arg8[%c0_5, %c0_6] : memref<6x512xi32, #tpu.memory_space<vmem>>, vector<6x512xi32>
      %14 = vector.broadcast %10 : i32 to vector<6x512xi32>
      %15 = arith.subi %13, %14 : vector<6x512xi32>
      %c0_7 = arith.constant 0 : index
      %c0_8 = arith.constant 0 : index
      %16 = vector.load %arg7[%c0_7, %c0_8] : memref<6x512xf32, #tpu.memory_space<vmem>>, vector<6x512xf32>
      %17 = tpu.iota {dimensions = array<i32: 0>} : vector<512x1xi32>
      %cst = arith.constant 0.000000e+00 : f32
      %18 = vector.broadcast %cst : f32 to vector<512x512xf32>
      %19 = vector.extract_strided_slice %15 {offsets = [0, 0], sizes = [1, 512], strides = [1, 1]} : vector<6x512xi32> to vector<1x512xi32>
      %20 = vector.broadcast %17 : vector<512x1xi32> to vector<512x512xi32>
      %21 = vector.broadcast %19 : vector<1x512xi32> to vector<512x512xi32>
      %22 = arith.cmpi eq, %20, %21 : vector<512x512xi32>
      %23 = vector.extract_strided_slice %16 {offsets = [0, 0], sizes = [1, 512], strides = [1, 1]} : vector<6x512xf32> to vector<1x512xf32>
      %cst_9 = arith.constant 0.000000e+00 : f32
      %24 = vector.shape_cast %23 : vector<1x512xf32> to vector<1x512xf32>
      %25 = vector.broadcast %24 : vector<1x512xf32> to vector<512x512xf32>
      %26 = vector.broadcast %cst_9 : f32 to vector<512x512xf32>
      %27 = arith.select %22, %25, %26 : vector<512x512xi1>, vector<512x512xf32>
      %28 = arith.addf %18, %27 : vector<512x512xf32>
      %29 = vector.extract_strided_slice %15 {offsets = [1, 0], sizes = [1, 512], strides = [1, 1]} : vector<6x512xi32> to vector<1x512xi32>
      %30 = vector.broadcast %17 : vector<512x1xi32> to vector<512x512xi32>
      %31 = vector.broadcast %29 : vector<1x512xi32> to vector<512x512xi32>
      %32 = arith.cmpi eq, %30, %31 : vector<512x512xi32>
      %33 = vector.extract_strided_slice %16 {offsets = [1, 0], sizes = [1, 512], strides = [1, 1]} : vector<6x512xf32> to vector<1x512xf32>
      %cst_10 = arith.constant 0.000000e+00 : f32
      %34 = vector.shape_cast %33 : vector<1x512xf32> to vector<1x512xf32>
      %35 = vector.broadcast %34 : vector<1x512xf32> to vector<512x512xf32>
      %36 = vector.broadcast %cst_10 : f32 to vector<512x512xf32>
      %37 = arith.select %32, %35, %36 : vector<512x512xi1>, vector<512x512xf32>
      %38 = arith.addf %28, %37 : vector<512x512xf32>
      %39 = vector.extract_strided_slice %15 {offsets = [2, 0], sizes = [1, 512], strides = [1, 1]} : vector<6x512xi32> to vector<1x512xi32>
      %40 = vector.broadcast %17 : vector<512x1xi32> to vector<512x512xi32>
      %41 = vector.broadcast %39 : vector<1x512xi32> to vector<512x512xi32>
      %42 = arith.cmpi eq, %40, %41 : vector<512x512xi32>
      %43 = vector.extract_strided_slice %16 {offsets = [2, 0], sizes = [1, 512], strides = [1, 1]} : vector<6x512xf32> to vector<1x512xf32>
      %cst_11 = arith.constant 0.000000e+00 : f32
      %44 = vector.shape_cast %43 : vector<1x512xf32> to vector<1x512xf32>
      %45 = vector.broadcast %44 : vector<1x512xf32> to vector<512x512xf32>
      %46 = vector.broadcast %cst_11 : f32 to vector<512x512xf32>
      %47 = arith.select %42, %45, %46 : vector<512x512xi1>, vector<512x512xf32>
      %48 = arith.addf %38, %47 : vector<512x512xf32>
      %49 = vector.extract_strided_slice %15 {offsets = [3, 0], sizes = [1, 512], strides = [1, 1]} : vector<6x512xi32> to vector<1x512xi32>
      %50 = vector.broadcast %17 : vector<512x1xi32> to vector<512x512xi32>
      %51 = vector.broadcast %49 : vector<1x512xi32> to vector<512x512xi32>
      %52 = arith.cmpi eq, %50, %51 : vector<512x512xi32>
      %53 = vector.extract_strided_slice %16 {offsets = [3, 0], sizes = [1, 512], strides = [1, 1]} : vector<6x512xf32> to vector<1x512xf32>
      %cst_12 = arith.constant 0.000000e+00 : f32
      %54 = vector.shape_cast %53 : vector<1x512xf32> to vector<1x512xf32>
      %55 = vector.broadcast %54 : vector<1x512xf32> to vector<512x512xf32>
      %56 = vector.broadcast %cst_12 : f32 to vector<512x512xf32>
      %57 = arith.select %52, %55, %56 : vector<512x512xi1>, vector<512x512xf32>
      %58 = arith.addf %48, %57 : vector<512x512xf32>
      %59 = vector.extract_strided_slice %15 {offsets = [4, 0], sizes = [1, 512], strides = [1, 1]} : vector<6x512xi32> to vector<1x512xi32>
      %60 = vector.broadcast %17 : vector<512x1xi32> to vector<512x512xi32>
      %61 = vector.broadcast %59 : vector<1x512xi32> to vector<512x512xi32>
      %62 = arith.cmpi eq, %60, %61 : vector<512x512xi32>
      %63 = vector.extract_strided_slice %16 {offsets = [4, 0], sizes = [1, 512], strides = [1, 1]} : vector<6x512xf32> to vector<1x512xf32>
      %cst_13 = arith.constant 0.000000e+00 : f32
      %64 = vector.shape_cast %63 : vector<1x512xf32> to vector<1x512xf32>
      %65 = vector.broadcast %64 : vector<1x512xf32> to vector<512x512xf32>
      %66 = vector.broadcast %cst_13 : f32 to vector<512x512xf32>
      %67 = arith.select %62, %65, %66 : vector<512x512xi1>, vector<512x512xf32>
      %68 = arith.addf %58, %67 : vector<512x512xf32>
      %69 = vector.extract_strided_slice %15 {offsets = [5, 0], sizes = [1, 512], strides = [1, 1]} : vector<6x512xi32> to vector<1x512xi32>
      %70 = vector.broadcast %17 : vector<512x1xi32> to vector<512x512xi32>
      %71 = vector.broadcast %69 : vector<1x512xi32> to vector<512x512xi32>
      %72 = arith.cmpi eq, %70, %71 : vector<512x512xi32>
      %73 = vector.extract_strided_slice %16 {offsets = [5, 0], sizes = [1, 512], strides = [1, 1]} : vector<6x512xf32> to vector<1x512xf32>
      %cst_14 = arith.constant 0.000000e+00 : f32
      %74 = vector.shape_cast %73 : vector<1x512xf32> to vector<1x512xf32>
      %75 = vector.broadcast %74 : vector<1x512xf32> to vector<512x512xf32>
      %76 = vector.broadcast %cst_14 : f32 to vector<512x512xf32>
      %77 = arith.select %72, %75, %76 : vector<512x512xi1>, vector<512x512xf32>
      %78 = arith.addf %68, %77 : vector<512x512xf32>
      %c0_15 = arith.constant 0 : index
      %c0_16 = arith.constant 0 : index
      %c0_17 = arith.constant 0 : index
      %79 = vector.load %arg6[%c0_15, %c0_16, %c0_17] : memref<1x4x512xf32, #tpu.memory_space<vmem>>, vector<1x4x512xf32>
      %cst_18 = arith.constant dense<0.000000e+00> : vector<4x512xf32>
      %80 = tpu.matmul %12, %78, %cst_18 {dimension_numbers = #tpu.dot_dimension_numbers<[1], [0], [0], [1], [0, 0, 1, 1], [], []>} : vector<4x512xf32>, vector<512x512xf32>, vector<4x512xf32> -> vector<4x512xf32>
      %81 = vector.shape_cast %80 : vector<4x512xf32> to vector<1x4x512xf32>
      %82 = arith.addf %79, %81 : vector<1x4x512xf32>
      %c0_19 = arith.constant 0 : index
      %c0_20 = arith.constant 0 : index
      %c0_21 = arith.constant 0 : index
      %83 = vector.load %arg6[%c0_19, %c0_20, %c0_21] : memref<1x4x512xf32, #tpu.memory_space<vmem>>, vector<1x4x512xf32>
      tpu.vector_store %arg6[%c0_19, %c0_20, %c0_21], %82 {strides = array<i32>} : memref<1x4x512xf32, #tpu.memory_space<vmem>>, vector<1x4x512xf32>,
    } else {
    }
    return
  }
  func.func @transform_0(%arg0: i32, %arg1: i32, %arg2: i32, %arg3: memref<2x8x1xi32, #tpu.memory_space<smem>>) -> (i32, i32, i32) {
    %c0_i32 = arith.constant 0 : i32
    %c0_i32_0 = arith.constant 0 : i32
    return %arg0, %c0_i32, %arg2 : i32, i32, i32
  }
  func.func @transform_1(%arg0: i32, %arg1: i32, %arg2: i32, %arg3: memref<2x8x1xi32, #tpu.memory_space<smem>>) -> (i32, i32, i32) {
    %c0_i32 = arith.constant 0 : i32
    %c0_i32_0 = arith.constant 0 : i32
    return %arg0, %c0_i32, %arg1 : i32, i32, i32
  }
  func.func @transform_2(%arg0: i32, %arg1: i32, %arg2: i32, %arg3: memref<2x8x1xi32, #tpu.memory_space<smem>>) -> (i32, i32, i32) {
    %c0_i32 = arith.constant 0 : i32
    %c0_i32_0 = arith.constant 0 : i32
    return %arg0, %c0_i32, %arg1 : i32, i32, i32
  }
}

module attributes {stable_mosaic.version = 11 : i64} {
  func.func @_matmul_kernel(%arg0: i32, %arg1: i32, %arg2: i32, %arg3: memref<16x108xbf16, #tpu.memory_space<vmem>>, %arg4: memref<108x512xbf16, #tpu.memory_space<vmem>>, %arg5: memref<16x1xf32, #tpu.memory_space<vmem>>, %arg6: memref<16x512xf32, #tpu.memory_space<vmem>>, %arg7: memref<1x16x1xf32, #tpu.memory_space<vmem>>, %arg8: memref<1x16x1xf32, #tpu.memory_space<vmem>>, %arg9: memref<16x512xf32, #tpu.memory_space<vmem>>) attributes {dimension_semantics = [#tpu.dimension_semantics<parallel>, #tpu.dimension_semantics<parallel>, #tpu.dimension_semantics<arbitrary>], iteration_bounds = array<i64: 1, 2, 1>, scalar_prefetch = 0 : i64, scratch_operands = 1 : i64, tpu.core_type = #tpu.core_type<tc>, window_params = [{transform_indices = @transform_0, window_bounds = array<i64: 16, 108>}, {transform_indices = @transform_1, window_bounds = array<i64: 108, 512>}, {transform_indices = @transform_2, window_bounds = array<i64: 16, 1>}, {transform_indices = @transform_3, window_bounds = array<i64: 16, 512>}, {transform_indices = @transform_4, window_bounds = array<i64: 1, 16, 1>}, {transform_indices = @transform_5, window_bounds = array<i64: 1, 16, 1>}]} {
    %c0_i32 = arith.constant 0 : i32
    %0 = arith.cmpi eq, %arg2, %c0_i32 : i32
    %1 = arith.extui %0 : i1 to i32
    %c0_i32_0 = arith.constant 0 : i32
    %2 = arith.cmpi ne, %1, %c0_i32_0 : i32
    scf.if %2 {
      %cst_10 = arith.constant 0.000000e+00 : f32
      %12 = vector.broadcast %cst_10 : f32 to vector<16x512xf32>
      %c0_11 = arith.constant 0 : index
      %c0_12 = arith.constant 0 : index
      %13 = vector.load %arg9[%c0_11, %c0_12] : memref<16x512xf32, #tpu.memory_space<vmem>>, vector<16x512xf32>
      tpu.vector_store %arg9[%c0_11, %c0_12], %12 {strides = array<i32>} : memref<16x512xf32, #tpu.memory_space<vmem>>, vector<16x512xf32>,
    } else {
    }
    %c0 = arith.constant 0 : index
    %c0_1 = arith.constant 0 : index
    %3 = vector.load %arg9[%c0, %c0_1] : memref<16x512xf32, #tpu.memory_space<vmem>>, vector<16x512xf32>
    %c0_2 = arith.constant 0 : index
    %c0_3 = arith.constant 0 : index
    %4 = vector.load %arg3[%c0_2, %c0_3] : memref<16x108xbf16, #tpu.memory_space<vmem>>, vector<16x108xbf16>
    %c0_4 = arith.constant 0 : index
    %c0_5 = arith.constant 0 : index
    %5 = vector.load %arg4[%c0_4, %c0_5] : memref<108x512xbf16, #tpu.memory_space<vmem>>, vector<108x512xbf16>
    %cst = arith.constant dense<0.000000e+00> : vector<16x512xf32>
    %6 = tpu.matmul %4, %5, %cst {dimension_numbers = #tpu.dot_dimension_numbers<[1], [0], [0], [1], [0, 0, 1, 1], [], []>} : vector<16x108xbf16>, vector<108x512xbf16>, vector<16x512xf32> -> vector<16x512xf32>
    %7 = arith.addf %3, %6 : vector<16x512xf32>
    %c0_6 = arith.constant 0 : index
    %c0_7 = arith.constant 0 : index
    %8 = vector.load %arg9[%c0_6, %c0_7] : memref<16x512xf32, #tpu.memory_space<vmem>>, vector<16x512xf32>
    tpu.vector_store %arg9[%c0_6, %c0_7], %7 {strides = array<i32>} : memref<16x512xf32, #tpu.memory_space<vmem>>, vector<16x512xf32>,
    %c0_i32_8 = arith.constant 0 : i32
    %9 = arith.cmpi eq, %arg2, %c0_i32_8 : i32
    %10 = arith.extui %9 : i1 to i32
    %c0_i32_9 = arith.constant 0 : i32
    %11 = arith.cmpi ne, %10, %c0_i32_9 : i32
    scf.if %11 {
      %c0_10 = arith.constant 0 : index
      %c0_11 = arith.constant 0 : index
      %12 = vector.load %arg9[%c0_10, %c0_11] : memref<16x512xf32, #tpu.memory_space<vmem>>, vector<16x512xf32>
      %c0_12 = arith.constant 0 : index
      %c0_13 = arith.constant 0 : index
      %13 = vector.load %arg5[%c0_12, %c0_13] : memref<16x1xf32, #tpu.memory_space<vmem>>, vector<16x1xf32>
      %14 = vector.broadcast %13 : vector<16x1xf32> to vector<16x512xf32>
      %15 = arith.addf %12, %14 : vector<16x512xf32>
      %c0_14 = arith.constant 0 : index
      %c0_15 = arith.constant 0 : index
      %16 = vector.load %arg6[%c0_14, %c0_15] : memref<16x512xf32, #tpu.memory_space<vmem>>, vector<16x512xf32>
      tpu.vector_store %arg6[%c0_14, %c0_15], %15 {strides = array<i32>} : memref<16x512xf32, #tpu.memory_space<vmem>>, vector<16x512xf32>,
      %cst_16 = arith.constant dense<0.000000e+00> : vector<16xf32>
      %17 = vector.multi_reduction <add>, %12, %cst_16 [1] : vector<16x512xf32> to vector<16xf32>
      %18 = vector.shape_cast %17 : vector<16xf32> to vector<16x1xf32>
      %19 = vector.shape_cast %18 : vector<16x1xf32> to vector<1x16x1xf32>
      %c0_17 = arith.constant 0 : index
      %c0_18 = arith.constant 0 : index
      %c0_19 = arith.constant 0 : index
      %20 = vector.load %arg7[%c0_17, %c0_18, %c0_19] : memref<1x16x1xf32, #tpu.memory_space<vmem>>, vector<1x16x1xf32>
      tpu.vector_store %arg7[%c0_17, %c0_18, %c0_19], %19 {strides = array<i32>} : memref<1x16x1xf32, #tpu.memory_space<vmem>>, vector<1x16x1xf32>,
      %21 = arith.mulf %12, %12 : vector<16x512xf32>
      %cst_20 = arith.constant dense<0.000000e+00> : vector<16xf32>
      %22 = vector.multi_reduction <add>, %21, %cst_20 [1] : vector<16x512xf32> to vector<16xf32>
      %23 = vector.shape_cast %22 : vector<16xf32> to vector<16x1xf32>
      %24 = vector.shape_cast %23 : vector<16x1xf32> to vector<1x16x1xf32>
      %c0_21 = arith.constant 0 : index
      %c0_22 = arith.constant 0 : index
      %c0_23 = arith.constant 0 : index
      %25 = vector.load %arg8[%c0_21, %c0_22, %c0_23] : memref<1x16x1xf32, #tpu.memory_space<vmem>>, vector<1x16x1xf32>
      tpu.vector_store %arg8[%c0_21, %c0_22, %c0_23], %24 {strides = array<i32>} : memref<1x16x1xf32, #tpu.memory_space<vmem>>, vector<1x16x1xf32>,
    } else {
    }
    return
  }
  func.func @transform_0(%arg0: i32, %arg1: i32, %arg2: i32) -> (i32, i32) {
    %c0_i32 = arith.constant 0 : i32
    return %arg0, %arg2 : i32, i32
  }
  func.func @transform_1(%arg0: i32, %arg1: i32, %arg2: i32) -> (i32, i32) {
    %c0_i32 = arith.constant 0 : i32
    return %arg2, %arg1 : i32, i32
  }
  func.func @transform_2(%arg0: i32, %arg1: i32, %arg2: i32) -> (i32, i32) {
    %c0_i32 = arith.constant 0 : i32
    %c0_i32_0 = arith.constant 0 : i32
    return %arg0, %c0_i32 : i32, i32
  }
  func.func @transform_3(%arg0: i32, %arg1: i32, %arg2: i32) -> (i32, i32) {
    %c0_i32 = arith.constant 0 : i32
    return %arg0, %arg1 : i32, i32
  }
  func.func @transform_4(%arg0: i32, %arg1: i32, %arg2: i32) -> (i32, i32, i32) {
    %c0_i32 = arith.constant 0 : i32
    %c0_i32_0 = arith.constant 0 : i32
    return %arg1, %arg0, %c0_i32 : i32, i32, i32
  }
  func.func @transform_5(%arg0: i32, %arg1: i32, %arg2: i32) -> (i32, i32, i32) {
    %c0_i32 = arith.constant 0 : i32
    %c0_i32_0 = arith.constant 0 : i32
    return %arg1, %arg0, %c0_i32 : i32, i32, i32
  }
}

module attributes {stable_mosaic.version = 11 : i64} {
  func.func @_bn_silu_kernel(%arg0: i32, %arg1: memref<8x512xf32, #tpu.memory_space<vmem>>, %arg2: memref<8x1xf32, #tpu.memory_space<vmem>>, %arg3: memref<8x1xf32, #tpu.memory_space<vmem>>, %arg4: memref<8x512xf32, #tpu.memory_space<vmem>>) attributes {dimension_semantics = [#tpu.dimension_semantics<parallel>], iteration_bounds = array<i64: 2>, scalar_prefetch = 0 : i64, scratch_operands = 0 : i64, tpu.core_type = #tpu.core_type<tc>, window_params = [{transform_indices = @transform_0, window_bounds = array<i64: 8, 512>}, {pipeline_mode = #tpu.pipeline_mode<synchronous>, transform_indices = @transform_1, window_bounds = array<i64: 8, 1>}, {pipeline_mode = #tpu.pipeline_mode<synchronous>, transform_indices = @transform_2, window_bounds = array<i64: 8, 1>}, {transform_indices = @transform_3, window_bounds = array<i64: 8, 512>}]} {
    %c0 = arith.constant 0 : index
    %c0_0 = arith.constant 0 : index
    %0 = vector.load %arg1[%c0, %c0_0] : memref<8x512xf32, #tpu.memory_space<vmem>>, vector<8x512xf32>
    %c0_1 = arith.constant 0 : index
    %c0_2 = arith.constant 0 : index
    %1 = vector.load %arg2[%c0_1, %c0_2] : memref<8x1xf32, #tpu.memory_space<vmem>>, vector<8x1xf32>
    %2 = vector.broadcast %1 : vector<8x1xf32> to vector<8x512xf32>
    %3 = arith.mulf %0, %2 : vector<8x512xf32>
    %c0_3 = arith.constant 0 : index
    %c0_4 = arith.constant 0 : index
    %4 = vector.load %arg3[%c0_3, %c0_4] : memref<8x1xf32, #tpu.memory_space<vmem>>, vector<8x1xf32>
    %5 = vector.broadcast %4 : vector<8x1xf32> to vector<8x512xf32>
    %6 = arith.addf %3, %5 : vector<8x512xf32>
    %cst = arith.constant 0.000000e+00 : f32
    %7 = vector.broadcast %cst : f32 to vector<8x512xf32>
    %8 = arith.subf %7, %6 : vector<8x512xf32>
    %9 = math.exp %8 : vector<8x512xf32>
    %cst_5 = arith.constant 1.000000e+00 : f32
    %10 = vector.broadcast %cst_5 : f32 to vector<8x512xf32>
    %11 = arith.addf %10, %9 : vector<8x512xf32>
    %12 = tpu.reciprocal %11 {approx = true} : vector<8x512xf32> -> vector<8x512xf32>
    %13 = arith.mulf %6, %12 : vector<8x512xf32>
    %c0_6 = arith.constant 0 : index
    %c0_7 = arith.constant 0 : index
    %14 = vector.load %arg4[%c0_6, %c0_7] : memref<8x512xf32, #tpu.memory_space<vmem>>, vector<8x512xf32>
    tpu.vector_store %arg4[%c0_6, %c0_7], %13 {strides = array<i32>} : memref<8x512xf32, #tpu.memory_space<vmem>>, vector<8x512xf32>,
    return
  }
  func.func @transform_0(%arg0: i32) -> (i32, i32) {
    %c0_i32 = arith.constant 0 : i32
    %c0_i32_0 = arith.constant 0 : i32
    return %c0_i32, %arg0 : i32, i32
  }
  func.func @transform_1(%arg0: i32) -> (i32, i32) {
    %c0_i32 = arith.constant 0 : i32
    %c0_i32_0 = arith.constant 0 : i32
    %c0_i32_1 = arith.constant 0 : i32
    return %c0_i32, %c0_i32_0 : i32, i32
  }
  func.func @transform_2(%arg0: i32) -> (i32, i32) {
    %c0_i32 = arith.constant 0 : i32
    %c0_i32_0 = arith.constant 0 : i32
    %c0_i32_1 = arith.constant 0 : i32
    return %c0_i32, %c0_i32_0 : i32, i32
  }
  func.func @transform_3(%arg0: i32) -> (i32, i32) {
    %c0_i32 = arith.constant 0 : i32
    %c0_i32_0 = arith.constant 0 : i32
    return %c0_i32, %arg0 : i32, i32
  }
}

</mosaic_0001>

<bundles_post_ra>
// kernel: akconv_forward.4
= control target key start
LH: loop header
LB: loop body
LE: loop exit
PB: predicated region body
PF: predicated region fallthrough
CT: control target
= control target key end

     0   :  { %s1091_s12 = smov 0   ;;  %s1093_s13 = smov 0   ;;  %s1419_s0 = inlined_call_operand.vmem [shape: f32[32,108], index: 0, kind: input, shape index: {}]   ;;  %s1420_s1 = inlined_call_operand.vmem [shape: f32[108,1024], index: 1, kind: input, shape index: {}]   ;;  %s1421_s2 = inlined_call_operand.vmem [shape: f32[32,1], index: 2, kind: input, shape index: {}]   ;;  %s1422_s3 = inlined_call_operand.vmem [shape: f32[32,1024], index: 3, kind: output, shape index: {}]  }
   0x1   :  { %s1095_s14 = smov 0   ;;  %s1097_s15 = smov 0  }
   0x2   :  { %s1099_s16 = smov 0  }
   0x3 LB: > { %s28_s17 = sadd.s32 1, %s1063_s15  ;;  %s954_s18 = sadd.s32 4294967295, %s1067_s16   ;;  %s1067_s16 = sphi %s1099_s16, %s13_s16   ;;  %s1063_s15 = sphi %s1097_s15, %s1427_s15   ;;  %s1059_s14 = sphi %s1095_s14, %s1426_s14   ;;  %s1055_s13 = sphi %s1093_s13, %s1425_s13   ;;  %s1051_s12 = sphi %s1091_s12, %s1424_s12  }
   0x4   : > { %p30_p0 = scmp.ge.s32.totalorder %s28_s17, 2  ;;  %p76_p1 = scmp.ne.s32.totalorder %s1055_s13, %s1051_s12 }
   0x5   : > { %p77_p2 = scmp.eq.s32.totalorder %s1067_s16, 0  ;;  %p134_p4 = scmp.eq.s32.totalorder %s954_s18, 1 }
   0x6   : > { %s1429_s17 = smov (%p30_p0, %s28_s17), 0  ;;  %s69_s20 = sadd.s32 1, %s1055_s13 }
   0x7   : > { %p78_p3 = por %p77_p2, %p76_p1  ;;  %s65_s19 = ssub.s32 %s1063_s15, %s1429_s17 }
   0x8   : > { %p67_p5 = scmp.eq.s32.totalorder %s65_s19, 0  ;;  %p1126_p6 = por %p134_p4, %p76_p1 }
   0x9   : > { %p959_p7 = scmp.ge.s32.totalorder %s1067_s16, 2 }
   0xa   : > { %s1131_s22 = scalar_select %p67_p5, %s1055_s13, %s69_s20  }
   0xb   : > { %177 = sbr.rel (%p959_p7) target bundleno = 49 (0x31), region = 24 }
  0x10   : > { %180 = sbr.rel (!%p78_p3) target bundleno = 49 (0x31), region = 28  ;;  %s182_s23 = sand.u32 (%p78_p3), 1, %s1055_s13  }
  0x11   : > { %s981_s24 = sshll.u32 (%p78_p3), %s1063_s15, 5  ;;  %s983_s25 = smul.u32 (%p78_p3), 448, %s182_s23 }
  0x12   : > { %s1139_s28 = scalar_lea.vmem (%p78_p3), %s1420_s1, %s981_s24 }
  0x13   : > { %v203_v0 = vld [vmem:[%s1139_s28] sm:$0xff] (%p78_p3)  ;;  %v205_v1 = vld [vmem:[%s1139_s28 + $0x8] sm:$0xff] (%p78_p3)  ;;  %v207_v2 = vld [vmem:[%s1139_s28 + $0x10] sm:$0xff] (%p78_p3)  ;;  %s1147_s29 = scalar_lea.vmem (%p78_p3), [#allocation3], %s983_s25 }
  0x14   : > { %v209_v3 = vld [vmem:[%s1139_s28 + $0x18] sm:$0xff] (%p78_p3)  ;;  %v211_v4 = vld [vmem:[%s1139_s28 + $0x40] sm:$0xff] (%p78_p3)  ;;  %v213_v5 = vld [vmem:[%s1139_s28 + $0x48] sm:$0xff] (%p78_p3)  ;;  %204 = vst [vmem:[%s1147_s29] sm:$0xff] (%p78_p3), %v203_v0 }
  0x15   : > { %206 = vst [vmem:[%s1147_s29 + $0x8] sm:$0xff] %v205_v1  ;;  %208 = vst [vmem:[%s1147_s29 + $0x10] sm:$0xff] %v207_v2  ;;  %v215_v6 = vld [vmem:[%s1139_s28 + $0x50] sm:$0xff]  ;;  %v217_v7 = vld [vmem:[%s1139_s28 + $0x58] sm:$0xff] }
  0x16   : > { %210 = vst [vmem:[%s1147_s29 + $0x18] sm:$0xff] %v209_v3  ;;  %212 = vst [vmem:[%s1147_s29 + $0x20] sm:$0xff] %v211_v4  ;;  %v219_v8 = vld [vmem:[%s1139_s28 + $0x80] sm:$0xff]  ;;  %v221_v9 = vld [vmem:[%s1139_s28 + $0x88] sm:$0xff] }
  0x17   : > { %214 = vst [vmem:[%s1147_s29 + $0x28] sm:$0xff] %v213_v5  ;;  %216 = vst [vmem:[%s1147_s29 + $0x30] sm:$0xff] %v215_v6  ;;  %v223_v10 = vld [vmem:[%s1139_s28 + $0x90] sm:$0xff]  ;;  %v225_v11 = vld [vmem:[%s1139_s28 + $0x98] sm:$0xff] }
  0x18   : > { %218 = vst [vmem:[%s1147_s29 + $0x38] sm:$0xff] %v217_v7  ;;  %220 = vst [vmem:[%s1147_s29 + $0x40] sm:$0xff] %v219_v8  ;;  %v227_v12 = vld [vmem:[%s1139_s28 + $0xc0] sm:$0xff]  ;;  %v229_v13 = vld [vmem:[%s1139_s28 + $0xc8] sm:$0xff] }
  0x19   : > { %222 = vst [vmem:[%s1147_s29 + $0x48] sm:$0xff] %v221_v9  ;;  %224 = vst [vmem:[%s1147_s29 + $0x50] sm:$0xff] %v223_v10  ;;  %v231_v14 = vld [vmem:[%s1139_s28 + $0xd0] sm:$0xff]  ;;  %v233_v15 = vld [vmem:[%s1139_s28 + $0xd8] sm:$0xff] }
  0x1a   : > { %226 = vst [vmem:[%s1147_s29 + $0x58] sm:$0xff] %v225_v11  ;;  %228 = vst [vmem:[%s1147_s29 + $0x60] sm:$0xff] %v227_v12  ;;  %v235_v16 = vld [vmem:[%s1139_s28 + $0x100] sm:$0xff]  ;;  %v237_v17 = vld [vmem:[%s1139_s28 + $0x108] sm:$0xff] }
  0x1b   : > { %230 = vst [vmem:[%s1147_s29 + $0x68] sm:$0xff] %v229_v13  ;;  %232 = vst [vmem:[%s1147_s29 + $0x70] sm:$0xff] %v231_v14  ;;  %v239_v18 = vld [vmem:[%s1139_s28 + $0x110] sm:$0xff]  ;;  %v241_v19 = vld [vmem:[%s1139_s28 + $0x118] sm:$0xff] }
  0x1c   : > { %234 = vst [vmem:[%s1147_s29 + $0x78] sm:$0xff] %v233_v15  ;;  %236 = vst [vmem:[%s1147_s29 + $0x80] sm:$0xff] %v235_v16  ;;  %v243_v20 = vld [vmem:[%s1139_s28 + $0x140] sm:$0xff]  ;;  %v245_v21 = vld [vmem:[%s1139_s28 + $0x148] sm:$0xff] }
  0x1d   : > { %238 = vst [vmem:[%s1147_s29 + $0x88] sm:$0xff] %v237_v17  ;;  %240 = vst [vmem:[%s1147_s29 + $0x90] sm:$0xff] %v239_v18  ;;  %v247_v22 = vld [vmem:[%s1139_s28 + $0x150] sm:$0xff]  ;;  %v249_v23 = vld [vmem:[%s1139_s28 + $0x158] sm:$0xff] }
  0x1e   : > { %242 = vst [vmem:[%s1147_s29 + $0x98] sm:$0xff] %v241_v19  ;;  %244 = vst [vmem:[%s1147_s29 + $0xa0] sm:$0xff] %v243_v20  ;;  %v251_v24 = vld [vmem:[%s1139_s28 + $0x180] sm:$0xff]  ;;  %v253_v25 = vld [vmem:[%s1139_s28 + $0x188] sm:$0xff] }
  0x1f   : > { %246 = vst [vmem:[%s1147_s29 + $0xa8] sm:$0xff] %v245_v21  ;;  %248 = vst [vmem:[%s1147_s29 + $0xb0] sm:$0xff] %v247_v22  ;;  %v255_v26 = vld [vmem:[%s1139_s28 + $0x190] sm:$0xff]  ;;  %v257_v27 = vld [vmem:[%s1139_s28 + $0x198] sm:$0xff] }
  0x20   : > { %250 = vst [vmem:[%s1147_s29 + $0xb8] sm:$0xff] %v249_v23  ;;  %252 = vst [vmem:[%s1147_s29 + $0xc0] sm:$0xff] %v251_v24  ;;  %v259_v28 = vld [vmem:[%s1139_s28 + $0x1c0] sm:$0xff]  ;;  %v261_v29 = vld [vmem:[%s1139_s28 + $0x1c8] sm:$0xff] }
  0x21   : > { %254 = vst [vmem:[%s1147_s29 + $0xc8] sm:$0xff] %v253_v25  ;;  %256 = vst [vmem:[%s1147_s29 + $0xd0] sm:$0xff] %v255_v26  ;;  %v263_v30 = vld [vmem:[%s1139_s28 + $0x1d0] sm:$0xff]  ;;  %v265_v31 = vld [vmem:[%s1139_s28 + $0x1d8] sm:$0xff] }
  0x22   : > { %258 = vst [vmem:[%s1147_s29 + $0xd8] sm:$0xff] %v257_v27  ;;  %260 = vst [vmem:[%s1147_s29 + $0xe0] sm:$0xff] %v259_v28  ;;  %v267_v32 = vld [vmem:[%s1139_s28 + $0x200] sm:$0xff]  ;;  %v269_v33 = vld [vmem:[%s1139_s28 + $0x208] sm:$0xff] }
  0x23   : > { %262 = vst [vmem:[%s1147_s29 + $0xe8] sm:$0xff] %v261_v29  ;;  %264 = vst [vmem:[%s1147_s29 + $0xf0] sm:$0xff] %v263_v30  ;;  %v271_v34 = vld [vmem:[%s1139_s28 + $0x210] sm:$0xff]  ;;  %v273_v35 = vld [vmem:[%s1139_s28 + $0x218] sm:$0xff] }
  0x24   : > { %266 = vst [vmem:[%s1147_s29 + $0xf8] sm:$0xff] %v265_v31  ;;  %268 = vst [vmem:[%s1147_s29 + $0x100] sm:$0xff] %v267_v32  ;;  %v275_v36 = vld [vmem:[%s1139_s28 + $0x240] sm:$0xff]  ;;  %v277_v37 = vld [vmem:[%s1139_s28 + $0x248] sm:$0xff] }
  0x25   : > { %270 = vst [vmem:[%s1147_s29 + $0x108] sm:$0xff] %v269_v33  ;;  %272 = vst [vmem:[%s1147_s29 + $0x110] sm:$0xff] %v271_v34  ;;  %v279_v38 = vld [vmem:[%s1139_s28 + $0x250] sm:$0xff]  ;;  %v281_v39 = vld [vmem:[%s1139_s28 + $0x258] sm:$0xff] }
  0x26   : > { %274 = vst [vmem:[%s1147_s29 + $0x118] sm:$0xff] %v273_v35  ;;  %276 = vst [vmem:[%s1147_s29 + $0x120] sm:$0xff] %v275_v36  ;;  %v283_v40 = vld [vmem:[%s1139_s28 + $0x280] sm:$0xff]  ;;  %v285_v41 = vld [vmem:[%s1139_s28 + $0x288] sm:$0xff] }
  0x27   : > { %278 = vst [vmem:[%s1147_s29 + $0x128] sm:$0xff] %v277_v37  ;;  %280 = vst [vmem:[%s1147_s29 + $0x130] sm:$0xff] %v279_v38  ;;  %v287_v42 = vld [vmem:[%s1139_s28 + $0x290] sm:$0xff]  ;;  %v289_v43 = vld [vmem:[%s1139_s28 + $0x298] sm:$0xff] }
  0x28   : > { %282 = vst [vmem:[%s1147_s29 + $0x138] sm:$0xff] %v281_v39  ;;  %284 = vst [vmem:[%s1147_s29 + $0x140] sm:$0xff] %v283_v40  ;;  %v291_v44 = vld [vmem:[%s1139_s28 + $0x2c0] sm:$0xff]  ;;  %v293_v45 = vld [vmem:[%s1139_s28 + $0x2c8] sm:$0xff] }
  0x29   : > { %286 = vst [vmem:[%s1147_s29 + $0x148] sm:$0xff] %v285_v41  ;;  %288 = vst [vmem:[%s1147_s29 + $0x150] sm:$0xff] %v287_v42  ;;  %v295_v46 = vld [vmem:[%s1139_s28 + $0x2d0] sm:$0xff]  ;;  %v297_v47 = vld [vmem:[%s1139_s28 + $0x2d8] sm:$0xff] }
  0x2a   : > { %290 = vst [vmem:[%s1147_s29 + $0x158] sm:$0xff] %v289_v43  ;;  %292 = vst [vmem:[%s1147_s29 + $0x160] sm:$0xff] %v291_v44  ;;  %v299_v48 = vld [vmem:[%s1139_s28 + $0x300] sm:$0xff]  ;;  %v301_v49 = vld [vmem:[%s1139_s28 + $0x308] sm:$0xff] }
  0x2b   : > { %294 = vst [vmem:[%s1147_s29 + $0x168] sm:$0xff] %v293_v45  ;;  %296 = vst [vmem:[%s1147_s29 + $0x170] sm:$0xff] %v295_v46  ;;  %v303_v50 = vld [vmem:[%s1139_s28 + $0x310] sm:$0xff]  ;;  %v305_v51 = vld [vmem:[%s1139_s28 + $0x318] sm:$0xff] }
  0x2c   : > { %298 = vst [vmem:[%s1147_s29 + $0x178] sm:$0xff] %v297_v47  ;;  %300 = vst [vmem:[%s1147_s29 + $0x180] sm:$0xff] %v299_v48  ;;  %v307_v52 = vld [vmem:[%s1139_s28 + $0x340] sm:$0xff]  ;;  %v309_v53 = vld [vmem:[%s1139_s28 + $0x348] sm:$0xff] }
  0x2d   : > { %302 = vst [vmem:[%s1147_s29 + $0x188] sm:$0xff] %v301_v49  ;;  %304 = vst [vmem:[%s1147_s29 + $0x190] sm:$0xff] %v303_v50  ;;  %v311_v54 = vld [vmem:[%s1139_s28 + $0x350] sm:$0xff]  ;;  %v313_v55 = vld [vmem:[%s1139_s28 + $0x358] sm:$0xff] }
  0x2e   : > { %306 = vst [vmem:[%s1147_s29 + $0x198] sm:$0xff] %v305_v51  ;;  %308 = vst [vmem:[%s1147_s29 + $0x1a0] sm:$0xff] %v307_v52 }
  0x2f   : > { %310 = vst [vmem:[%s1147_s29 + $0x1a8] sm:$0xff] %v309_v53  ;;  %312 = vst [vmem:[%s1147_s29 + $0x1b0] sm:$0xff] %v311_v54 }
  0x30   : > { %314 = vst [vmem:[%s1147_s29 + $0x1b8] sm:$0xff] %v313_v55 }
  0x31 PF: > { %p962_p8 = scmp.ge.s32.totalorder %s1067_s16, 1  ;;  %p319_p9 = scmp.lt.s32.totalorder %s1067_s16, 3 }
  0x33   : > { %p320_p10 = pnand %p962_p8, %p319_p9 }
  0x34   : > { %s326_s30 = sand.u32 (!%p320_p10), 1, %s1051_s12  }
  0x35   : > { %323 = sbr.rel (%p320_p10) target bundleno = 308 (0x134), region = 51 }
  0x36   : > { %s984_s4 = smul.u32 (!%p320_p10), 448, %s326_s30 }
  0x38   : > { %s1268_s9 = scalar_lea.vmem (!%p320_p10), [#allocation3], %s984_s4  ;;  %s963_s4 = sshll.u32 (!%p320_p10), %s326_s30, 7 }
  0x39   : > { %s1364_s5 = scalar_lea.vmem (!%p320_p10), [#allocation4], %s963_s4 }
  0x3a   : > { %v1069_v56 = vmov 0.0   ;;  %v731_v57 = vld [vmem:[%s1421_s2] sm:$0xff]  ;;  %vm489_vm0 = vcmask 1043456   ;;  %v1070_v58 = vmov 0   ;;  %v733_v59 = vld [vmem:[%s1421_s2 + $0x10] sm:$0xff]  ;;  %v469_v0 = vld [vmem:[%s1268_s9 + $0x188] sm:$0xff] }
  0x3b   : > { %566 = vmatprep.mubr.f32.mxu0 %v1069_v56  ;;  %655 = vmatprep.mubr.f32.mxu1 %v1069_v56  ;;  %v473_v60 = vld [vmem:[%s1268_s9 + $0x1a8] sm:$0xf]  ;;  %v475_v61 = vld [vmem:[%s1268_s9 + $0x1b8] sm:$0xf]  ;;  %v472_v62 = vld [vmem:[%s1268_s9 + $0x1a0] sm:$0xf] }
  0x3c   : > { %1027 = vset.pattern.permute.xlu0 %v1070_v58  ;;  %1028 = vset.pattern.permute.xlu1 %v1070_v58  ;;  %v474_v63 = vld [vmem:[%s1268_s9 + $0x1b0] sm:$0xf]  ;;  %v471_v1 = vld [vmem:[%s1268_s9 + $0x198] sm:$0xff]  ;;  %v468_v2 = vld [vmem:[%s1268_s9 + $0x180] sm:$0xff]  ;;  %vm476_vm1 = vcmask 883712   ;;  %s982_s12 = sshll.u32 (%p1126_p6), %s1059_s14, 5 }
  0x3d   : > { %737 = vperm.xlu0 %1027, %v731_v57   ;;  %747 = vperm.xlu1 %1028, %v733_v59   ;;  %v470_v3 = vld [vmem:[%s1268_s9 + $0x190] sm:$0xff]  ;;  %v465_v4 = vld [vmem:[%s1268_s9 + $0x168] sm:$0xff]  ;;  %v467_v5 = vld [vmem:[%s1268_s9 + $0x178] sm:$0xff]  ;;  %s799_s7 = scalar_lea.vmem (%p1126_p6), %s1422_s3, %s982_s12 }
  0x3e   : > { %964 = vmatprep.subr.msk.mxu0 %vm489_vm0, %v473_v60  ;;  %970 = vmatprep.subr.msk.mxu1 %vm489_vm0, %v475_v61  ;;  %v464_v6 = vld [vmem:[%s1268_s9 + $0x160] sm:$0xff]  ;;  %v466_v7 = vld [vmem:[%s1268_s9 + $0x170] sm:$0xff]  ;;  %v461_v8 = vld [vmem:[%s1268_s9 + $0x148] sm:$0xff] }
  0x3f   : > { %965 = vmatpush1.msk.msra.mxu0 %vm489_vm0, %v472_v62  ;;  %971 = vmatpush1.msk.msra.mxu1 %vm489_vm0, %v474_v63  ;;  %v463_v9 = vld [vmem:[%s1268_s9 + $0x158] sm:$0xff]  ;;  %v460_v10 = vld [vmem:[%s1268_s9 + $0x140] sm:$0xff]  ;;  %v462_v11 = vld [vmem:[%s1268_s9 + $0x150] sm:$0xff] }
  0x40   : > { %508 = vmatprep.subr.mxu0 %v469_v0  ;;  %597 = vmatprep.subr.mxu1 %v471_v1  ;;  %v457_v12 = vld [vmem:[%s1268_s9 + $0x128] sm:$0xff]  ;;  %v459_v13 = vld [vmem:[%s1268_s9 + $0x138] sm:$0xff]  ;;  %v456_v14 = vld [vmem:[%s1268_s9 + $0x120] sm:$0xff] }
  0x41   : > { %509 = vmatpush1.msra.mxu0 %v468_v2  ;;  %598 = vmatpush1.msra.mxu1 %v470_v3  ;;  %v458_v15 = vld [vmem:[%s1268_s9 + $0x130] sm:$0xff]  ;;  %v453_v16 = vld [vmem:[%s1268_s9 + $0x108] sm:$0xff]  ;;  %v455_v17 = vld [vmem:[%s1268_s9 + $0x118] sm:$0xff] }
  0x42   : > { %510 = vmatprep.subr.mxu0 %v465_v4  ;;  %599 = vmatprep.subr.mxu1 %v467_v5  ;;  %v452_v18 = vld [vmem:[%s1268_s9 + $0x100] sm:$0xff]  ;;  %v454_v19 = vld [vmem:[%s1268_s9 + $0x110] sm:$0xff]  ;;  %v449_v20 = vld [vmem:[%s1268_s9 + $0xe8] sm:$0xff] }
  0x43   : > { %511 = vmatpush1.msra.mxu0 %v464_v6  ;;  %600 = vmatpush1.msra.mxu1 %v466_v7  ;;  %v451_v21 = vld [vmem:[%s1268_s9 + $0xf8] sm:$0xff]  ;;  %v448_v22 = vld [vmem:[%s1268_s9 + $0xe0] sm:$0xff]  ;;  %v450_v23 = vld [vmem:[%s1268_s9 + $0xf0] sm:$0xff] }
  0x44   : > { %512 = vmatprep.subr.mxu0 %v461_v8  ;;  %601 = vmatprep.subr.mxu1 %v463_v9  ;;  %v445_v24 = vld [vmem:[%s1268_s9 + $0xc8] sm:$0xff]  ;;  %v447_v25 = vld [vmem:[%s1268_s9 + $0xd8] sm:$0xff]  ;;  %v444_v26 = vld [vmem:[%s1268_s9 + $0xc0] sm:$0xff] }
  0x45   : > { %513 = vmatpush1.msra.mxu0 %v460_v10  ;;  %602 = vmatpush1.msra.mxu1 %v462_v11  ;;  %v446_v27 = vld [vmem:[%s1268_s9 + $0xd0] sm:$0xff]  ;;  %v441_v28 = vld [vmem:[%s1268_s9 + $0xa8] sm:$0xff]  ;;  %v443_v29 = vld [vmem:[%s1268_s9 + $0xb8] sm:$0xff] }
  0x46   : > { %514 = vmatprep.subr.mxu0 %v457_v12  ;;  %603 = vmatprep.subr.mxu1 %v459_v13  ;;  %v440_v30 = vld [vmem:[%s1268_s9 + $0xa0] sm:$0xff]  ;;  %v442_v31 = vld [vmem:[%s1268_s9 + $0xb0] sm:$0xff]  ;;  %v437_v32 = vld [vmem:[%s1268_s9 + $0x88] sm:$0xff] }
  0x47   : > { %515 = vmatpush1.msra.mxu0 %v456_v14  ;;  %604 = vmatpush1.msra.mxu1 %v458_v15  ;;  %v439_v33 = vld [vmem:[%s1268_s9 + $0x98] sm:$0xff]  ;;  %v436_v34 = vld [vmem:[%s1268_s9 + $0x80] sm:$0xff]  ;;  %v438_v35 = vld [vmem:[%s1268_s9 + $0x90] sm:$0xff] }
  0x48   : > { %516 = vmatprep.subr.mxu0 %v453_v16  ;;  %605 = vmatprep.subr.mxu1 %v455_v17  ;;  %v433_v36 = vld [vmem:[%s1268_s9 + $0x68] sm:$0xff]  ;;  %v435_v37 = vld [vmem:[%s1268_s9 + $0x78] sm:$0xff]  ;;  %v432_v38 = vld [vmem:[%s1268_s9 + $0x60] sm:$0xff] }
  0x49   : > { %517 = vmatpush1.msra.mxu0 %v452_v18  ;;  %606 = vmatpush1.msra.mxu1 %v454_v19  ;;  %v434_v39 = vld [vmem:[%s1268_s9 + $0x70] sm:$0xff]  ;;  %v429_v40 = vld [vmem:[%s1268_s9 + $0x48] sm:$0xff]  ;;  %v431_v41 = vld [vmem:[%s1268_s9 + $0x58] sm:$0xff] }
  0x4a   : > { %518 = vmatprep.subr.mxu0 %v449_v20  ;;  %607 = vmatprep.subr.mxu1 %v451_v21  ;;  %v428_v42 = vld [vmem:[%s1268_s9 + $0x40] sm:$0xff]  ;;  %v430_v43 = vld [vmem:[%s1268_s9 + $0x50] sm:$0xff]  ;;  %v425_v44 = vld [vmem:[%s1268_s9 + $0x28] sm:$0xff] }
  0x4b   : > { %519 = vmatpush1.msra.mxu0 %v448_v22  ;;  %608 = vmatpush1.msra.mxu1 %v450_v23  ;;  %v427_v45 = vld [vmem:[%s1268_s9 + $0x38] sm:$0xff]  ;;  %v424_v46 = vld [vmem:[%s1268_s9 + $0x20] sm:$0xff]  ;;  %v426_v47 = vld [vmem:[%s1268_s9 + $0x30] sm:$0xff] }
  0x4c   : > { %520 = vmatprep.subr.mxu0 %v445_v24  ;;  %609 = vmatprep.subr.mxu1 %v447_v25  ;;  %v421_v48 = vld [vmem:[%s1268_s9 + $0x8] sm:$0xff]  ;;  %v423_v49 = vld [vmem:[%s1268_s9 + $0x18] sm:$0xff]  ;;  %v420_v50 = vld [vmem:[%s1268_s9] sm:$0xff] }
  0x4d   : > { %521 = vmatpush1.msra.mxu0 %v444_v26  ;;  %610 = vmatpush1.msra.mxu1 %v446_v27  ;;  %v422_v51 = vld [vmem:[%s1268_s9 + $0x10] sm:$0xff]  ;;  %v416_v52 = vld [vmem:[%s1419_s0] sm:$0xff]  ;;  %v732_v53 = vld [vmem:[%s1421_s2 + $0x8] sm:$0xff] }
  0x4e   : > { %522 = vmatprep.subr.mxu0 %v441_v28  ;;  %611 = vmatprep.subr.mxu1 %v443_v29  ;;  %v734_v54 = vld [vmem:[%s1421_s2 + $0x18] sm:$0xff]  ;;  %v417_v55 = vld [vmem:[%s1419_s0 + $0x8] sm:$0xff]  ;;  %v418_v57 = vld [vmem:[%s1419_s0 + $0x10] sm:$0xff] }
  0x4f   : > { %523 = vmatpush1.msra.mxu0 %v440_v30  ;;  %612 = vmatpush1.msra.mxu1 %v442_v31  ;;  %v419_v58 = vld [vmem:[%s1419_s0 + $0x18] sm:$0xff] }
  0x50   : > { %524 = vmatprep.subr.mxu0 %v437_v32  ;;  %613 = vmatprep.subr.mxu1 %v439_v33 }
  0x51   : > { %525 = vmatpush1.msra.mxu0 %v436_v34  ;;  %614 = vmatpush1.msra.mxu1 %v438_v35 }
  0x52   : > { %526 = vmatprep.subr.mxu0 %v433_v36  ;;  %615 = vmatprep.subr.mxu1 %v435_v37 }
  0x53   : > { %527 = vmatpush1.msra.mxu0 %v432_v38  ;;  %616 = vmatpush1.msra.mxu1 %v434_v39 }
  0x54   : > { %528 = vmatprep.subr.mxu0 %v429_v40  ;;  %617 = vmatprep.subr.mxu1 %v431_v41 }
  0x55   : > { %529 = vmatpush1.msra.mxu0 %v428_v42  ;;  %618 = vmatpush1.msra.mxu1 %v430_v43 }
  0x56   : > { %530 = vmatprep.subr.mxu0 %v425_v44  ;;  %619 = vmatprep.subr.mxu1 %v427_v45 }
  0x57   : > { %531 = vmatpush1.msra.mxu0 %v424_v46  ;;  %620 = vmatpush1.msra.mxu1 %v426_v47 }
  0x58   : > { %532 = vmatprep.subr.mxu0 %v421_v48  ;;  %621 = vmatprep.subr.mxu1 %v423_v49 }
  0x59   : > { %533 = vmatpush1.msra.mxu0 %v420_v50  ;;  %622 = vmatpush1.msra.mxu1 %v422_v51 }
  0x5a   : > { %966 = vmatmul.mubr.msk.f32.vlgmr.msra.gmra.mxu0 %vm476_vm1, %v416_v52  ;;  %972 = vmatmul.mubr.msk.f32.vlgmr.msra.gmra.mxu1 %vm476_vm1, %v416_v52 }
  0x5b   : > { %572 = vmatprep.mubr.f32.mxu0 %v1069_v56  ;;  %661 = vmatprep.mubr.f32.mxu1 %v1069_v56 }
  0x5c   : > { %742 = vperm.xlu0 %1027, %v732_v53   ;;  %752 = vperm.xlu1 %1028, %v734_v54  }
  0x5e   : > { %967 = vmatmul.mubr.msk.f32.gmra.mxu0 %vm476_vm1, %v417_v55  ;;  %973 = vmatmul.mubr.msk.f32.gmra.mxu1 %vm476_vm1, %v417_v55 }
  0x5f   : > { %578 = vmatprep.mubr.f32.mxu0 %v1069_v56  ;;  %667 = vmatprep.mubr.f32.mxu1 %v1069_v56 }
  0x62   : > { %968 = vmatmul.mubr.msk.f32.gmra.mxu0 %vm476_vm1, %v418_v57  ;;  %974 = vmatmul.mubr.msk.f32.gmra.mxu1 %vm476_vm1, %v418_v57 }
  0x63   : > { %584 = vmatprep.mubr.f32.mxu0 %v1069_v56  ;;  %673 = vmatprep.mubr.f32.mxu1 %v1069_v56 }
  0x66   : > { %969 = vmatmul.mubr.msk.f32.gmra.mxu0 %vm476_vm1, %v419_v58  ;;  %975 = vmatmul.mubr.msk.f32.gmra.mxu1 %vm476_vm1, %v419_v58 }
  0xb8   : > { %v738_v59 = vpop.permute.xlu0 %737  ;;  %v748_v8 = vpop.permute.xlu1 %747 }
  0xd7   : > { %v743_v0 = vpop.permute.xlu0 %742  ;;  %v753_v19 = vpop.permute.xlu1 %752 }
 0x11a   : > { %v568_v60 = vpop.f32.mrf.mxu0  ;;  %v657_v61 = vpop.f32.mrf.mxu1 }
 0x11b   : > { %v755_v62 = vadd.f32 %v738_v59, %v568_v60  ;;  %v757_v63 = vadd.f32 %v738_v59, %v657_v61 }
 0x11c   : > { %v570_v1 = vpop.f32.mrf.mxu0  ;;  %v659_v2 = vpop.f32.mrf.mxu1 }
 0x11d   : > { %771 = vst [vmem:[%s1364_s5] sm:$0xff] %v755_v62  ;;  %773 = vst [vmem:[%s1364_s5 + $0x10] sm:$0xff] %v757_v63  ;;  %v756_v56 = vadd.f32 %v738_v59, %v570_v1  ;;  %v758_v3 = vadd.f32 %v738_v59, %v659_v2 }
 0x11e   : > { %v574_v4 = vpop.f32.mrf.mxu0  ;;  %v663_v5 = vpop.f32.mrf.mxu1 }
 0x11f   : > { %772 = vst [vmem:[%s1364_s5 + $0x8] sm:$0xff] %v756_v56  ;;  %774 = vst [vmem:[%s1364_s5 + $0x18] sm:$0xff] %v758_v3  ;;  %v759_v6 = vadd.f32 %v743_v0, %v574_v4  ;;  %v761_v7 = vadd.f32 %v743_v0, %v663_v5 }
 0x120   : > { %v576_v9 = vpop.f32.mrf.mxu0  ;;  %v665_v10 = vpop.f32.mrf.mxu1 }
 0x121   : > { %775 = vst [vmem:[%s1364_s5 + $0x20] sm:$0xff] %v759_v6  ;;  %777 = vst [vmem:[%s1364_s5 + $0x30] sm:$0xff] %v761_v7  ;;  %v760_v11 = vadd.f32 %v743_v0, %v576_v9  ;;  %v762_v12 = vadd.f32 %v743_v0, %v665_v10 }
 0x122   : > { %v580_v13 = vpop.f32.mrf.mxu0  ;;  %v669_v14 = vpop.f32.mrf.mxu1 }
 0x123   : > { %776 = vst [vmem:[%s1364_s5 + $0x28] sm:$0xff] %v760_v11  ;;  %778 = vst [vmem:[%s1364_s5 + $0x38] sm:$0xff] %v762_v12  ;;  %v763_v15 = vadd.f32 %v748_v8, %v580_v13  ;;  %v765_v16 = vadd.f32 %v748_v8, %v669_v14 }
 0x124   : > { %v582_v17 = vpop.f32.mrf.mxu0  ;;  %v671_v18 = vpop.f32.mrf.mxu1  ;;  %v812_v30 = vld [vmem:[%s1364_s5] sm:$0xff] (%p1126_p6)  ;;  %v816_v32 = vld [vmem:[%s1364_s5 + $0x10] sm:$0xff] (%p1126_p6) }
 0x125   : > { %779 = vst [vmem:[%s1364_s5 + $0x40] sm:$0xff] %v763_v15  ;;  %781 = vst [vmem:[%s1364_s5 + $0x50] sm:$0xff] %v765_v16  ;;  %v764_v20 = vadd.f32 %v748_v8, %v582_v17  ;;  %v766_v21 = vadd.f32 %v748_v8, %v671_v18 }
 0x126   : > { %v586_v22 = vpop.f32.mrf.mxu0  ;;  %v675_v23 = vpop.f32.mrf.mxu1  ;;  %v814_v31 = vld [vmem:[%s1364_s5 + $0x8] sm:$0xff] (%p1126_p6)  ;;  %v818_v33 = vld [vmem:[%s1364_s5 + $0x18] sm:$0xff] (%p1126_p6)  ;;  %813 = vst [vmem:[%s799_s7] sm:$0xff] (%p1126_p6), %v812_v30  ;;  %817 = vst [vmem:[%s799_s7 + $0x10] sm:$0xff] (%p1126_p6), %v816_v32 }
 0x127   : > { %780 = vst [vmem:[%s1364_s5 + $0x48] sm:$0xff] %v764_v20  ;;  %782 = vst [vmem:[%s1364_s5 + $0x58] sm:$0xff] %v766_v21  ;;  %v767_v24 = vadd.f32 %v753_v19, %v586_v22  ;;  %v769_v25 = vadd.f32 %v753_v19, %v675_v23  ;;  %793 = sbr.rel (!%p1126_p6) target bundleno = 308 (0x134), region = 67 }
 0x128   : > { %v588_v26 = vpop.f32.mrf.mxu0  ;;  %v677_v27 = vpop.f32.mrf.mxu1  ;;  %v820_v34 = vld [vmem:[%s1364_s5 + $0x20] sm:$0xff] (%p1126_p6)  ;;  %815 = vst [vmem:[%s799_s7 + $0x8] sm:$0xff] (%p1126_p6), %v814_v31  ;;  %819 = vst [vmem:[%s799_s7 + $0x18] sm:$0xff] (%p1126_p6), %v818_v33  ;;  %v824_v36 = vld [vmem:[%s1364_s5 + $0x30] sm:$0xff] (%p1126_p6) }
 0x129   : > { %783 = vst [vmem:[%s1364_s5 + $0x60] sm:$0xff] %v767_v24  ;;  %785 = vst [vmem:[%s1364_s5 + $0x70] sm:$0xff] %v769_v25  ;;  %v768_v28 = vadd.f32 %v753_v19, %v588_v26  ;;  %v770_v29 = vadd.f32 %v753_v19, %v677_v27 }
 0x12a   : > { %v822_v35 = vld [vmem:[%s1364_s5 + $0x28] sm:$0xff] (%p1126_p6)  ;;  %821 = vst [vmem:[%s799_s7 + $0x40] sm:$0xff] (%p1126_p6), %v820_v34  ;;  %v826_v37 = vld [vmem:[%s1364_s5 + $0x38] sm:$0xff] (%p1126_p6)  ;;  %825 = vst [vmem:[%s799_s7 + $0x50] sm:$0xff] (%p1126_p6), %v824_v36 }
 0x12b   : > { %784 = vst [vmem:[%s1364_s5 + $0x68] sm:$0xff] %v768_v28  ;;  %786 = vst [vmem:[%s1364_s5 + $0x78] sm:$0xff] %v770_v29 }
 0x12c   : > { %823 = vst [vmem:[%s799_s7 + $0x48] sm:$0xff] %v822_v35  ;;  %v828_v38 = vld [vmem:[%s1364_s5 + $0x40] sm:$0xff]  ;;  %827 = vst [vmem:[%s799_s7 + $0x58] sm:$0xff] %v826_v37  ;;  %v832_v40 = vld [vmem:[%s1364_s5 + $0x50] sm:$0xff] }
 0x12d   : > { %829 = vst [vmem:[%s799_s7 + $0x80] sm:$0xff] %v828_v38  ;;  %833 = vst [vmem:[%s799_s7 + $0x90] sm:$0xff] %v832_v40 }
 0x12e   : > { %v830_v39 = vld [vmem:[%s1364_s5 + $0x48] sm:$0xff]  ;;  %v834_v41 = vld [vmem:[%s1364_s5 + $0x58] sm:$0xff] }
 0x12f   : > { %831 = vst [vmem:[%s799_s7 + $0x88] sm:$0xff] %v830_v39  ;;  %835 = vst [vmem:[%s799_s7 + $0x98] sm:$0xff] %v834_v41 }
 0x130   : > { %v836_v42 = vld [vmem:[%s1364_s5 + $0x60] sm:$0xff]  ;;  %v840_v44 = vld [vmem:[%s1364_s5 + $0x70] sm:$0xff] }
 0x131   : > { %837 = vst [vmem:[%s799_s7 + $0xc0] sm:$0xff] %v836_v42  ;;  %841 = vst [vmem:[%s799_s7 + $0xd0] sm:$0xff] %v840_v44 }
 0x132   : > { %v838_v43 = vld [vmem:[%s1364_s5 + $0x68] sm:$0xff]  ;;  %v842_v45 = vld [vmem:[%s1364_s5 + $0x78] sm:$0xff] }
 0x133   : > { %839 = vst [vmem:[%s799_s7 + $0xc8] sm:$0xff] %v838_v43  ;;  %843 = vst [vmem:[%s799_s7 + $0xd8] sm:$0xff] %v842_v45 }
 0x134 PF: > { %s13_s16 = sadd.s32 1, %s1067_s16   ;;  %s1424_s12 = smov %s1055_s13 }
 0x135   : > { %p10_p11 = scmp.ge.s32.totalorder %s13_s16, 4   ;;  %s1425_s13 = smov %s1131_s22 }
 0x136   : > { %s1426_s14 = smov %s1063_s15  ;;  %s1427_s15 = smov %s1429_s17 }
 0x137   :  { %12 = sbr.rel (!%p10_p11) target bundleno = 3 (0x3), region = 127 }

// kernel: akconv_forward.5
= control target key start
LH: loop header
LB: loop body
LE: loop exit
PB: predicated region body
PF: predicated region fallthrough
CT: control target
= control target key end

     0   :  { %s11411_s0 = inlined_call_operand.vmem [shape: s32[2,8,1], index: 0, kind: input, shape index: {}]   ;;  %s11412_s1 = inlined_call_operand.vmem [shape: f32[2,4,512], index: 1, kind: input, shape index: {}]   ;;  %s11413_s2 = inlined_call_operand.vmem [shape: f32[2,3,4096], index: 2, kind: input, shape index: {}]   ;;  %s11414_s3 = inlined_call_operand.vmem [shape: f32[2,4,4096], index: 3, kind: output, shape index: {}]  }
   0x1   :  { %s8_s14 = sshll.u32 %s11411_s0, 4  ;;  %s9_s14 = int_to_ptr.vmem [resolvable:$true] %s8_s14 }
   0x2   :  { %s6085_s15 = scalar_lea.vmem %s9_s14, 256  ;;  %p6090_p1 = scmp.lt.s32.totalorder %s9_s14, %s9_s14 }
   0x3   :  { %p6086_p0 = scmp.ne.s32.totalorder %s9_s14, %s6085_s15  ;;  %p6091_p2 = scmp.lt.s32.totalorder %s6085_s15, %s6085_s15 }
   0x5   :  { %p6092_p3 = por %p6091_p2, %p6090_p1 }
   0x7   :  { %p6093_p4 = pnand %p6092_p3, %p6086_p0 }
   0x9   :  { %6096 = shalt.err (!%p6093_p4)  }
   0xa   :  { %s6139_s16 = smov [#allocation5]  }
   0xb   :  { %11 = dma.vmem_to_smem %s9_s14, 256, %s6139_s16, [#allocation4] }
   0xc   :  { %6117 = dma.done.wait [#allocation4], 256 }
   0xd   :  { %6118 = vsyncadd [#allocation4], 4294967040 }
   0xe   :  { %13 = sfence }
   0xf   :  { %s6164_s17 = smov 0   ;;  %s6166_s18 = smov 0  }
  0x10   :  { %s6168_s19 = smov 0   ;;  %s6170_s0 = smov 0  }
  0x11   :  { %s6172_s20 = smov 0  }
  0x12 LB: > { %s34_s21 = sadd.s32 1, %s6129_s19  ;;  %s38_s22 = sadd.s32 1, %s6133_s0  ;;  %s6137_s20 = sphi %s6172_s20, %s19_s20   ;;  %s6133_s0 = sphi %s6170_s0, %s11598_s0   ;;  %s6129_s19 = sphi %s6168_s19, %s11597_s19   ;;  %s6125_s18 = sphi %s6166_s18, %s11596_s18   ;;  %s6121_s17 = sphi %s6164_s17, %s11595_s17  }
  0x13   : > { %p36_p5 = scmp.ge.s32.totalorder %s34_s21, 8  ;;  %p6014_p6 = scmp.ge.s32.totalorder %s6137_s20, 1 }
  0x14   : > { %p164_p7 = scmp.lt.s32.totalorder %s6137_s20, 17 }
  0x15   : > { %s11600_s21 = smov (%p36_p5, %s34_s21), 0  ;;  %s11602_s22 = smov (!%p36_p5, %s38_s22), %s6133_s0 }
  0x16   : > { %p165_p8 = pnand %p6014_p6, %p164_p7  ;;  %p40_p9 = scmp.ge.s32.totalorder %s11602_s22, 2 }
  0x17   : > { %p204_p10 = scmp.lt.s32.totalorder (!%p165_p8), %s6125_s18, 1  ;;  %s6017_s23 = sshll.u32 (!%p165_p8), %s6121_s17, 2 }
  0x18   : > { %s11604_s22 = smov (%p40_p9, %s11602_s22), 0  ;;  %168 = sbr.rel (%p165_p8) target bundleno = 1432 (0x598), region = 28 }
  0x19   : > { %p216_p11 = scmp.lt.s32.totalorder (!%p165_p8), %s6017_s23, 31  ;;  %s6025_s24 = sshll.u32 (!%p165_p8), %s6125_s18, 3 }
  0x1a   : > { %s704_s5 = sadd.s32 (!%p165_p8), %s6121_s17, %s6025_s24 }
  0x1b   : > { %s6026_s12 = sshll.u32 (!%p165_p8), %s704_s5, 7 }
  0x1c   : > { %s6209_s13 = sld [smem:[#allocation5 + %s6026_s12]] (!%p165_p8) }
  0x1d   : > { %s11606_s18 = smov (!%p204_p10, %s6125_s18), 1  ;;  %s11608_s23 = smov (!%p216_p11, %s6017_s23), 31  ;;  %v6140_v0 = vmov 0.0   ;;  %v421_v3 = vlaneseq  ;;  %vm551_vm0 = vcmask 1040384   ;;  %vm556_vm1 = vcmask 1041408  }
  0x1e   : > { %s6030_s25 = sshll.u32 %s11606_s18, 4  ;;  %s6018_s26 = sshll.u32 %s11606_s18, 5  ;;  %vm561_vm2 = vcmask 1042432   ;;  %vm566_vm3 = vcmask 1043456   ;;  %vm571_vm4 = vcmask 1044480  }
  0x1f   : > { %s6197_s29 = scalar_lea.vmem %s11412_s1, %s6030_s25  ;;  %s219_s30 = sadd.s32 %s6018_s26, %s11608_s23  ;;  %v6211_v14 = vshrl.u32 %v421_v3, 7 }
  0x20   : > { %s6019_s4 = sshll.u32 %s219_s30, 2 }
  0x21   : > { %s221_s8 = scalar_lea.vmem %s11413_s2, %s6019_s4  ;;  %s6205_s11 = scalar_lea.vmem %s11414_s3, %s6019_s4  ;;  %v6216_v25 = vsub.s32 0, %v6211_v14  ;;  %v6219_v26 = vsub.s32 4, %v6211_v14 }
  0x22   : > { %237 = vst [vmem:[%s6205_s11] sm:$0xff] %v6140_v0  ;;  %v239_v1 = vld [vmem:[%s221_s8] sm:$0x77]  ;;  %v240_v2 = vld [vmem:[%s221_s8 + $0x8] sm:$0x77]  ;;  %238 = vst [vmem:[%s6205_s11 + $0x8] sm:$0xff] %v6140_v0  ;;  %p6027_p12 = scmp.le.s32.totalorder %s6209_s13, 0 }
  0x23   : > { %v241_v4 = vfloor.f32 %v239_v1  ;;  %v242_v5 = vfloor.f32 %v240_v2  ;;  %v253_v6 = vmax.f32 %v239_v1, 0.0  ;;  %v254_v7 = vmax.f32 %v240_v2, 0.0 }
  0x25   : > { %v243_v8 = vadd.f32 1.0, %v241_v4  ;;  %v244_v9 = vadd.f32 1.0, %v242_v5  ;;  %v245_v10 = vmax.f32 %v241_v4, 0.0  ;;  %v246_v11 = vmax.f32 %v242_v5, 0.0 }
  0x26   : > { %v255_v12 = vmin.f32 %v253_v6, 7.0  ;;  %v256_v13 = vmin.f32 %v254_v7, 7.0 }
  0x27   : > { %v247_v15 = vmin.f32 %v245_v10, 7.0  ;;  %v248_v16 = vmin.f32 %v246_v11, 7.0  ;;  %v249_v17 = vmax.f32 %v243_v8, 0.0  ;;  %v250_v18 = vmax.f32 %v244_v9, 0.0 }
  0x29   : > { %v251_v19 = vmin.f32 %v249_v17, 7.0  ;;  %v252_v20 = vmin.f32 %v250_v18, 7.0  ;;  %v257_v21 = vsub.f32 %v247_v15, %v255_v12  ;;  %v6213_v22 = vsub.f32 %v248_v16, %v256_v13 }
  0x2a   : > { %v6031_v23 = vtrunc.f32 %v247_v15  ;;  %v6033_v24 = vtrunc.f32 %v248_v16 }
  0x2b   : > { %v259_v27 = vadd.f32 1.0, %v257_v21  ;;  %v6222_v28 = vadd.f32 1.0, %v6213_v22  ;;  %v279_v29 = vsub.f32 %v251_v19, %v255_v12  ;;  %v280_v30 = vsub.f32 %v252_v20, %v256_v13 }
  0x2c   : > { %v6224_v31 = vcvt.f32.s32 %v6031_v23  ;;  %v6226_v32 = vcvt.f32.s32 %v6033_v24  ;;  %v6035_v33 = vtrunc.f32 %v251_v19  ;;  %v6037_v34 = vtrunc.f32 %v252_v20 }
  0x2d   : > { %v281_v35 = vsub.f32 1.0, %v279_v29  ;;  %v6228_v36 = vsub.f32 1.0, %v280_v30  ;;  %v263_v37 = vrot.slane %v259_v27, 5  ;;  %v271_v38 = vrot.slane %v259_v27, 6 }
  0x2e   : > { %v325_v39 = vmul.u32 64, %v6224_v31  ;;  %v326_v40 = vmul.u32 64, %v6226_v32  ;;  %v335_v41 = vrot.slane %v6224_v31, 6  ;;  %v337_v42 = vrot.slane %v6226_v32, 6 }
  0x2f   : > { %v327_v43 = vmul.u32 8, %v6224_v31  ;;  %v328_v44 = vmul.u32 8, %v6226_v32  ;;  %v6236_v45 = vcvt.f32.s32 %v6035_v33  ;;  %v6238_v46 = vcvt.f32.s32 %v6037_v34 }
  0x30   : > { %v6240_v47 = vrot.slane %v335_v41, 4  ;;  %v6242_v48 = vrot.slane %v337_v42, 4  ;;  %v264_v49 = vrot.slane %v263_v37, 4  ;;  %v272_v50 = vrot.slane %v271_v38, 4 }
  0x31   : > { %v6244_v51 = vrot.slane %v327_v43, 5  ;;  %v6246_v52 = vrot.slane %v328_v44, 5  ;;  %v285_v53 = vrot.slane %v281_v35, 5  ;;  %v293_v54 = vrot.slane %v281_v35, 6 }
  0x32   : > { %v269_v55 = vmul.f32 %v264_v49, %v259_v27  ;;  %v305_v56 = vmul.f32 %v281_v35, %v264_v49  ;;  %v311_v57 = vsub.f32 1.0, %v257_v21  ;;  %v265_v58 = vrot.slane %v6222_v28, 5 }
  0x33   : > { %v286_v59 = vrot.slane %v285_v53, 4  ;;  %v294_v60 = vrot.slane %v293_v54, 4  ;;  %v273_v61 = vrot.slane %v6222_v28, 6  ;;  %v287_v62 = vrot.slane %v6228_v36, 5 }
  0x34   : > { %v277_v63 = vmul.f32 %v272_v50, %v269_v55  ;;  %v307_v0 = vmul.f32 %v305_v56, %v272_v50  ;;  %v6023_v1 = vrot.slane %v311_v57, 10  ;;  %v266_v2 = vrot.slane %v265_v58, 4 }
  0x35   : > { %v291_v3 = vmul.f32 %v286_v59, %v281_v35  ;;  %v301_v4 = vmul.f32 %v286_v59, %v259_v27  ;;  %v309_v5 = vmul.f32 %v294_v60, %v269_v55  ;;  %v274_v6 = vrot.slane %v273_v61, 4 }
  0x36   : > { %v424_v7 = vrot.slane %v277_v63, %v6216_v25  ;;  %v490_v8 = vrot.slane %v307_v0, %v6216_v25  ;;  %v428_v9 = vrot.slane %v277_v63, %v6219_v26  ;;  %v494_v10 = vrot.slane %v307_v0, %v6219_v26 }
  0x37   : > { %v299_v11 = vmul.f32 %v294_v60, %v291_v3  ;;  %v303_v12 = vmul.f32 %v301_v4, %v272_v50  ;;  %v321_v13 = vmul.f32 %v6023_v1, %v291_v3  ;;  %v512_v15 = vrot.slane %v309_v5, %v6216_v25 }
  0x38   : > { %v516_v16 = vrot.slane %v309_v5, %v6219_v26  ;;  %v270_v17 = vmul.f32 %v266_v2, %v6222_v28  ;;  %v288_v18 = vrot.slane %v287_v62, 4  ;;  %v295_v19 = vrot.slane %v6228_v36, 6 }
  0x39   : > { %v446_v20 = vrot.slane %v299_v11, %v6216_v25  ;;  %v450_v21 = vrot.slane %v299_v11, %v6219_v26  ;;  %v468_v23 = vrot.slane %v303_v12, %v6216_v25  ;;  %v534_v24 = vrot.slane %v321_v13, %v6216_v25 }
  0x3a   : > { %v472_v27 = vrot.slane %v303_v12, %v6219_v26  ;;  %v538_v29 = vrot.slane %v321_v13, %v6219_v26  ;;  %v278_v30 = vmul.f32 %v274_v6, %v270_v17  ;;  %v292_v33 = vmul.f32 %v288_v18, %v6228_v36 }
  0x3b   : > { %v552_v34 = vsel %vm551_vm0, %v424_v7, %v446_v20  ;;  %v553_v35 = vsel %vm551_vm0, %v428_v9, %v450_v21  ;;  %v296_v37 = vrot.slane %v295_v19, 4  ;;  %v302_v38 = vmul.f32 %v288_v18, %v6222_v28 }
  0x3c   : > { %v557_v41 = vsel %vm556_vm1, %v552_v34, %v468_v23  ;;  %v558_v42 = vsel %vm556_vm1, %v553_v35, %v472_v27  ;;  %v306_v43 = vmul.f32 %v6228_v36, %v266_v2  ;;  %v312_v44 = vsub.f32 1.0, %v6213_v22 }
  0x3d   : > { %v562_v49 = vsel %vm561_vm2, %v557_v41, %v490_v8  ;;  %v563_v50 = vsel %vm561_vm2, %v558_v42, %v494_v10  ;;  %v300_v53 = vmul.f32 %v296_v37, %v292_v33  ;;  %v304_v54 = vmul.f32 %v302_v38, %v274_v6 }
  0x3e   : > { %v567_v55 = vsel %vm566_vm3, %v562_v49, %v512_v15  ;;  %v568_v56 = vsel %vm566_vm3, %v563_v50, %v516_v16  ;;  %v308_v57 = vmul.f32 %v306_v43, %v274_v6  ;;  %v310_v28 = vmul.f32 %v296_v37, %v270_v17 }
  0x3f   : > { %v572_v58 = vsel %vm571_vm4, %v567_v55, %v534_v24  ;;  %v573_v59 = vsel %vm571_vm4, %v568_v56, %v538_v29  ;;  %v6024_v60 = vrot.slane %v312_v44, 10  ;;  %v432_v36 = vrot.slane %v278_v30, %v6216_v25 }
  0x40   : > { %576 = vst [vmem:[#allocation2 + $0x10] sm:$0x3f] %v572_v58  ;;  %577 = vst [vmem:[#allocation2] sm:$0x3f] %v573_v59  ;;  %v454_v22 = vrot.slane %v300_v53, %v6216_v25  ;;  %v458_v61 = vrot.slane %v300_v53, %v6219_v26  ;;  %v476_v62 = vrot.slane %v304_v54, %v6216_v25  ;;  %v330_v7 = vrot.slane %v6244_v51, 4 }
  0x41   : > { %v498_v63 = vrot.slane %v308_v57, %v6216_v25  ;;  %v322_v0 = vmul.f32 %v6024_v60, %v292_v33  ;;  %v520_v1 = vrot.slane %v310_v28, %v6216_v25  ;;  %v436_v2 = vrot.slane %v278_v30, %v6219_v26 }
  0x42   : > { %v480_v3 = vrot.slane %v304_v54, %v6219_v26  ;;  %v554_v4 = vsel %vm551_vm0, %v432_v36, %v454_v22  ;;  %v502_v5 = vrot.slane %v308_v57, %v6219_v26  ;;  %v524_v6 = vrot.slane %v310_v28, %v6219_v26 }
  0x43   : > { %v542_v8 = vrot.slane %v322_v0, %v6216_v25  ;;  %v559_v9 = vsel %vm556_vm1, %v554_v4, %v476_v62  ;;  %v546_v10 = vrot.slane %v322_v0, %v6219_v26  ;;  %v555_v11 = vsel %vm551_vm0, %v436_v2, %v458_v61 }
  0x44   : > { %v564_v12 = vsel %vm561_vm2, %v559_v9, %v498_v63  ;;  %v560_v13 = vsel %vm556_vm1, %v555_v11, %v480_v3  ;;  %v333_v15 = vadd.s32 %v330_v7, %v325_v39  ;;  %v351_v16 = vmul.u32 64, %v6236_v45 }
  0x45   : > { %v569_v17 = vsel %vm566_vm3, %v564_v12, %v520_v1  ;;  %v565_v51 = vsel %vm561_vm2, %v560_v13, %v502_v5  ;;  %v353_v18 = vmul.u32 8, %v6236_v45  ;;  %v361_v19 = vrot.slane %v6236_v45, 6 }
  0x46   : > { %v574_v20 = vsel %vm571_vm4, %v569_v17, %v542_v8  ;;  %v570_v21 = vsel %vm566_vm3, %v565_v51, %v524_v6  ;;  %v339_v23 = vadd.s32 %v6240_v47, %v333_v15  ;;  %v387_v24 = vadd.s32 %v351_v16, %v330_v7 }
  0x47   : > { %578 = vst [vmem:[#allocation2 + $0x18] sm:$0x3f] %v574_v20  ;;  %v575_v27 = vsel %vm571_vm4, %v570_v21, %v546_v10  ;;  %v355_v29 = vrot.slane %v353_v18, 5  ;;  %v362_v30 = vrot.slane %v361_v19, 4  ;;  %v332_v33 = vrot.slane %v6246_v52, 4 }
  0x48   : > { %579 = vst [vmem:[#allocation2 + $0x8] sm:$0x3f] %v575_v27  ;;  %vm341_vm5 = vcmp.gt.s32.totalorder %v339_v23, 0  ;;  %v389_v34 = vadd.s32 %v387_v24, %v6240_v47  ;;  %v352_v45 = vmul.u32 64, %v6238_v46  ;;  %v354_v35 = vmul.u32 8, %v6238_v46 }
  0x49   : > { %v342_v37 = vsel %vm341_vm5, %v339_v23, 0  ;;  %v356_v38 = vrot.slane %v355_v29, 4  ;;  %v399_v41 = vadd.s32 %v362_v30, %v333_v15  ;;  %v334_v42 = vadd.s32 %v332_v33, %v326_v40 }
  0x4a   : > { %vm345_vm6 = vcmp.lt.s32.totalorder %v342_v37, 511  ;;  %vm391_vm7 = vcmp.gt.s32.totalorder %v389_v34, 0  ;;  %v357_v43 = vrot.slane %v354_v35, 5  ;;  %v363_v44 = vrot.slane %v6238_v46, 6 }
  0x4b   : > { %v346_v49 = vsel %vm345_vm6, %v342_v37, 511  ;;  %v359_v50 = vadd.s32 %v356_v38, %v351_v16  ;;  %v375_v53 = vadd.s32 %v356_v38, %v325_v39  ;;  %v392_v54 = vsel %vm391_vm7, %v389_v34, 0 }
  0x4c   : > { %vm395_vm8 = vcmp.lt.s32.totalorder %v392_v54, 511  ;;  %vm401_vm9 = vcmp.gt.s32.totalorder %v399_v41, 0  ;;  %v583_v55 = vrot.slane %v346_v49, %v6216_v25  ;;  %v587_v56 = vrot.slane %v346_v49, %v6219_v26 }
  0x4d   : > { %v365_v57 = vadd.s32 %v362_v30, %v359_v50  ;;  %v377_v28 = vadd.s32 %v375_v53, %v6240_v47  ;;  %v396_v58 = vsel %vm395_vm8, %v392_v54, 511  ;;  %v402_v59 = vsel %vm401_vm9, %v399_v41, 0 }
  0x4e   : > { %vm405_vm10 = vcmp.lt.s32.totalorder %v402_v59, 511  ;;  %v409_v60 = vadd.s32 %v359_v50, %v6240_v47  ;;  %v631_v36 = vrot.slane %v396_v58, %v6216_v25  ;;  %v635_v31 = vrot.slane %v396_v58, %v6219_v26 }
  0x4f   : > { %vm367_vm11 = vcmp.gt.s32.totalorder %v365_v57, 0  ;;  %vm379_vm12 = vcmp.gt.s32.totalorder %v377_v28, 0  ;;  %v406_v39 = vsel %vm405_vm10, %v402_v59, 511  ;;  %v340_v22 = vadd.s32 %v6242_v48, %v334_v42 }
  0x50   : > { %v368_v61 = vsel %vm367_vm11, %v365_v57, 0  ;;  %v380_v62 = vsel %vm379_vm12, %v377_v28, 0  ;;  %vm411_vm13 = vcmp.gt.s32.totalorder %v409_v60, 0  ;;  %v647_v63 = vrot.slane %v406_v39, %v6216_v25 }
  0x51   : > { %vm371_vm14 = vcmp.lt.s32.totalorder %v368_v61, 511  ;;  %vm383_vm15 = vcmp.lt.s32.totalorder %v380_v62, 511  ;;  %v412_v0 = vsel %vm411_vm13, %v409_v60, 0  ;;  %v651_v1 = vrot.slane %v406_v39, %v6219_v26 }
  0x52   : > { %v372_v47 = vsel %vm371_vm14, %v368_v61, 511  ;;  %v384_v2 = vsel %vm383_vm15, %v380_v62, 511  ;;  %vm415_vm5 = vcmp.lt.s32.totalorder %v412_v0, 511  ;;  %vm343_vm6 = vcmp.gt.s32.totalorder %v340_v22, 0 }
  0x53   : > { %v416_v3 = vsel %vm415_vm5, %v412_v0, 511  ;;  %v599_v4 = vrot.slane %v372_v47, %v6216_v25  ;;  %v615_v5 = vrot.slane %v384_v2, %v6216_v25  ;;  %v603_v6 = vrot.slane %v372_v47, %v6219_v26 }
  0x54   : > { %v663_v7 = vrot.slane %v416_v3, %v6216_v25  ;;  %v619_v8 = vrot.slane %v384_v2, %v6219_v26  ;;  %v667_v9 = vrot.slane %v416_v3, %v6219_v26  ;;  %v344_v10 = vsel %vm343_vm6, %v340_v22, 0 }
  0x55   : > { %v676_v11 = vsel %vm551_vm0, %v583_v55, %v599_v4  ;;  %v677_v12 = vsel %vm551_vm0, %v587_v56, %v603_v6  ;;  %vm347_vm7 = vcmp.lt.s32.totalorder %v344_v10, 511  ;;  %v358_v13 = vrot.slane %v357_v43, 4 }
  0x56   : > { %v680_v15 = vsel %vm556_vm1, %v676_v11, %v615_v5  ;;  %v681_v16 = vsel %vm556_vm1, %v677_v12, %v619_v8  ;;  %v348_v17 = vsel %vm347_vm7, %v344_v10, 511  ;;  %v364_v51 = vrot.slane %v363_v44, 4 }
  0x57   : > { %v684_v18 = vsel %vm561_vm2, %v680_v15, %v631_v36  ;;  %v685_v19 = vsel %vm561_vm2, %v681_v16, %v635_v31  ;;  %v360_v20 = vadd.s32 %v358_v13, %v352_v45  ;;  %v376_v21 = vadd.s32 %v358_v13, %v326_v40 }
  0x58   : > { %v688_v23 = vsel %vm566_vm3, %v684_v18, %v647_v63  ;;  %v689_v24 = vsel %vm566_vm3, %v685_v19, %v651_v1  ;;  %v388_v27 = vadd.s32 %v352_v45, %v332_v33  ;;  %v400_v29 = vadd.s32 %v364_v51, %v334_v42 }
  0x59   : > { %v692_v30 = vsel %vm571_vm4, %v688_v23, %v663_v7  ;;  %v693_v34 = vsel %vm571_vm4, %v689_v24, %v667_v9  ;;  %v366_v35 = vadd.s32 %v364_v51, %v360_v20  ;;  %v378_v37 = vadd.s32 %v376_v21, %v6242_v48 }
  0x5a   : > { %696 = vst [vmem:[#allocation3] sm:$0x3f] %v692_v30  ;;  %697 = vst [vmem:[#allocation3 + $0x18] sm:$0x3f] %v693_v34  ;;  %v390_v32 = vadd.s32 %v388_v27, %v6242_v48  ;;  %vm403_vm8 = vcmp.gt.s32.totalorder %v400_v29, 0  ;;  %v410_v40 = vadd.s32 %v360_v20, %v6242_v48  ;;  %v591_v52 = vrot.slane %v348_v17, %v6216_v25 }
  0x5b   : > { %vm369_vm9 = vcmp.gt.s32.totalorder %v366_v35, 0  ;;  %vm381_vm10 = vcmp.gt.s32.totalorder %v378_v37, 0  ;;  %v404_v46 = vsel %vm403_vm8, %v400_v29, 0  ;;  %v595_v33 = vrot.slane %v348_v17, %v6219_v26 }
  0x5c   : > { %v370_v45 = vsel %vm369_vm9, %v366_v35, 0  ;;  %v382_v38 = vsel %vm381_vm10, %v378_v37, 0  ;;  %vm393_vm11 = vcmp.gt.s32.totalorder %v390_v32, 0  ;;  %vm407_vm12 = vcmp.lt.s32.totalorder %v404_v46, 511 }
  0x5d   : > { %vm373_vm13 = vcmp.lt.s32.totalorder %v370_v45, 511  ;;  %vm385_vm14 = vcmp.lt.s32.totalorder %v382_v38, 511  ;;  %v394_v41 = vsel %vm393_vm11, %v390_v32, 0  ;;  %v408_v42 = vsel %vm407_vm12, %v404_v46, 511 }
  0x5e   : > { %v374_v43 = vsel %vm373_vm13, %v370_v45, 511  ;;  %v386_v44 = vsel %vm385_vm14, %v382_v38, 511  ;;  %vm397_vm15 = vcmp.lt.s32.totalorder %v394_v41, 511  ;;  %vm413_vm5 = vcmp.gt.s32.totalorder %v410_v40, 0 }
  0x5f   : > { %v398_v48 = vsel %vm397_vm15, %v394_v41, 511  ;;  %v414_v49 = vsel %vm413_vm5, %v410_v40, 0  ;;  %v607_v50 = vrot.slane %v374_v43, %v6216_v25  ;;  %v623_v53 = vrot.slane %v386_v44, %v6216_v25 }
  0x60   : > { %vm417_vm6 = vcmp.lt.s32.totalorder %v414_v49, 511  ;;  %v639_v54 = vrot.slane %v398_v48, %v6216_v25  ;;  %v655_v55 = vrot.slane %v408_v42, %v6216_v25  ;;  %v611_v56 = vrot.slane %v374_v43, %v6219_v26 }
  0x61   : > { %v418_v57 = vsel %vm417_vm6, %v414_v49, 511  ;;  %v678_v28 = vsel %vm551_vm0, %v591_v52, %v607_v50  ;;  %v627_v58 = vrot.slane %v386_v44, %v6219_v26  ;;  %v643_v59 = vrot.slane %v398_v48, %v6219_v26 }
  0x62   : > { %v671_v60 = vrot.slane %v418_v57, %v6216_v25  ;;  %v682_v36 = vsel %vm556_vm1, %v678_v28, %v623_v53  ;;  %v659_v31 = vrot.slane %v408_v42, %v6219_v26  ;;  %v675_v22 = vrot.slane %v418_v57, %v6219_v26 }
  0x63   : > { %v686_v39 = vsel %vm561_vm2, %v682_v36, %v639_v54  ;;  %v679_v61 = vsel %vm551_vm0, %v595_v33, %v611_v56 }
  0x64   : > { %v690_v62 = vsel %vm566_vm3, %v686_v39, %v655_v55  ;;  %v683_v63 = vsel %vm556_vm1, %v679_v61, %v627_v58  ;;  %713 = sbr.rel (%p6027_p12) target bundleno = 1432 (0x598), region = 36 }
  0x65   : > { %v694_v0 = vsel %vm571_vm4, %v690_v62, %v671_v60  ;;  %v687_v1 = vsel %vm561_vm2, %v683_v63, %v643_v59 }
  0x66   : > { %698 = vst [vmem:[#allocation3 + $0x8] sm:$0x3f] %v694_v0  ;;  %v691_v47 = vsel %vm566_vm3, %v687_v1, %v659_v31 }
  0x67   : > { %v695_v2 = vsel %vm571_vm4, %v691_v47, %v675_v22 }
  0x68   : > { %699 = vst [vmem:[#allocation3 + $0x10] sm:$0x3f] %v695_v2 }
  0x69   : > { %v718_v3 = vld [vmem:[#allocation3 + $0x18] sm:$0x3f]  ;;  %v727_v4 = vld [vmem:[#allocation2] sm:$0x3f]  ;;  %v6379_v5 = vadd.s32 120, %v6211_v14  ;;  %v6382_v6 = vsub.s32 1, %v6211_v14 }
  0x6a   : > { %v6385_v7 = vrot.slane %v718_v3, %v6216_v25  ;;  %v6388_v8 = vrot.slane %v727_v4, %v6216_v25  ;;  %v6391_v9 = vsub.s32 2, %v6211_v14  ;;  %v6394_v10 = vsub.s32 3, %v6211_v14  ;;  %v717_v20 = vld [vmem:[#allocation3] sm:$0x3f]  ;;  %v726_v21 = vld [vmem:[#allocation2 + $0x10] sm:$0x3f] }
  0x6b   : > { %v6397_v11 = vrot.slane %v718_v3, %v6382_v6  ;;  %v6400_v12 = vrot.slane %v727_v4, %v6382_v6  ;;  %v6403_v13 = vrot.slane %v718_v3, %v6219_v26  ;;  %v6406_v15 = vrot.slane %v727_v4, %v6219_v26 }
  0x6c   : > { %vm872_vm0 = vcmp.eq.s32.totalorder %v6379_v5, %v6385_v7  ;;  %v6411_v16 = vrot.slane %v718_v3, %v6391_v9  ;;  %v6414_v17 = vrot.slane %v727_v4, %v6391_v9  ;;  %v6417_v51 = vrot.slane %v718_v3, %v6394_v10 }
  0x6d   : > { %v1144_v18 = vsel %vm872_vm0, %v6388_v8, 0.0  ;;  %vm1672_vm1 = vcmp.eq.s32.totalorder %v6379_v5, %v6397_v11  ;;  %v6423_v19 = vrot.slane %v727_v4, %v6394_v10  ;;  %vm4072_vm2 = vcmp.eq.s32.totalorder %v6379_v5, %v6403_v13 }
  0x6e   : > { %v1944_v23 = vsel %vm1672_vm1, %v6400_v12, 0.0  ;;  %vm2472_vm3 = vcmp.eq.s32.totalorder %v6379_v5, %v6411_v16  ;;  %vm3272_vm4 = vcmp.eq.s32.totalorder %v6379_v5, %v6417_v51  ;;  %v4344_v24 = vsel %vm4072_vm2, %v6406_v15, 0.0 }
  0x6f   : > { %v2200_v27 = vadd.f32 %v1944_v23, %v1144_v18  ;;  %v2744_v29 = vsel %vm2472_vm3, %v6414_v17, 0.0  ;;  %v3544_v30 = vsel %vm3272_vm4, %v6423_v19, 0.0  ;;  %v6436_v34 = vsub.s32 5, %v6211_v14 }
  0x70   : > { %v6439_v35 = vadd.s32 376, %v6211_v14  ;;  %v6442_v37 = vrot.slane %v717_v20, %v6216_v25  ;;  %v6445_v32 = vrot.slane %v726_v21, %v6216_v25  ;;  %v6448_v40 = vrot.slane %v717_v20, %v6382_v6 }
  0x71   : > { %v3000_v52 = vadd.f32 %v2744_v29, %v2200_v27  ;;  %v6451_v46 = vrot.slane %v718_v3, %v6436_v34  ;;  %v6454_v33 = vrot.slane %v727_v4, %v6436_v34  ;;  %v6457_v45 = vrot.slane %v726_v21, %v6382_v6 }
  0x72   : > { %vm1000_vm7 = vcmp.eq.s32.totalorder %v6439_v35, %v6385_v7  ;;  %vm1800_vm8 = vcmp.eq.s32.totalorder %v6439_v35, %v6397_v11  ;;  %vm2600_vm9 = vcmp.eq.s32.totalorder %v6439_v35, %v6411_v16  ;;  %vm3400_vm10 = vcmp.eq.s32.totalorder %v6439_v35, %v6417_v51 }
  0x73   : > { %v3800_v38 = vadd.f32 %v3544_v30, %v3000_v52  ;;  %vm4872_vm11 = vcmp.eq.s32.totalorder %v6379_v5, %v6451_v46  ;;  %v1272_v41 = vsel %vm1000_vm7, %v6388_v8, 0.0  ;;  %v2072_v42 = vsel %vm1800_vm8, %v6400_v12, 0.0 }
  0x74   : > { %v5144_v43 = vsel %vm4872_vm11, %v6454_v33, 0.0  ;;  %v2328_v44 = vadd.f32 %v2072_v42, %v1272_v41  ;;  %v2872_v48 = vsel %vm2600_vm9, %v6414_v17, 0.0  ;;  %v3672_v49 = vsel %vm3400_vm10, %v6423_v19, 0.0 }
  0x75   : > { %v4600_v50 = vadd.f32 %v4344_v24, %v3800_v38  ;;  %vm4200_vm12 = vcmp.eq.s32.totalorder %v6439_v35, %v6403_v13  ;;  %vm5000_vm13 = vcmp.eq.s32.totalorder %v6439_v35, %v6451_v46  ;;  %vm871_vm14 = vcmp.eq.s32.totalorder %v6379_v5, %v6442_v37 }
  0x76   : > { %v3128_v53 = vadd.f32 %v2872_v48, %v2328_v44  ;;  %v4472_v54 = vsel %vm4200_vm12, %v6406_v15, 0.0  ;;  %v5272_v55 = vsel %vm5000_vm13, %v6454_v33, 0.0  ;;  %v1143_v56 = vsel %vm871_vm14, %v6445_v32, 0.0 }
  0x77   : > { %v5400_v57 = vadd.f32 %v5144_v43, %v4600_v50  ;;  %vm1671_vm15 = vcmp.eq.s32.totalorder %v6379_v5, %v6448_v40  ;;  %v6486_v28 = vrot.slane %v717_v20, %v6391_v9  ;;  %v6489_v58 = vrot.slane %v726_v21, %v6391_v9 }
  0x78   : > { %v3928_v59 = vadd.f32 %v3672_v49, %v3128_v53  ;;  %v1943_v60 = vsel %vm1671_vm15, %v6457_v45, 0.0  ;;  %v6493_v36 = vrot.slane %v717_v20, %v6394_v10  ;;  %v6496_v31 = vrot.slane %v726_v21, %v6394_v10 }
  0x79   : > { %5603 = vmatprep.subr.mxu0 %v5400_v57  ;;  %v2199_v39 = vadd.f32 %v1943_v60, %v1143_v56  ;;  %vm2471_vm5 = vcmp.eq.s32.totalorder %v6379_v5, %v6486_v28  ;;  %v6501_v22 = vrot.slane %v717_v20, %v6219_v26  ;;  %v6504_v61 = vrot.slane %v726_v21, %v6219_v26 }
  0x7a   : > { %v4728_v62 = vadd.f32 %v4472_v54, %v3928_v59  ;;  %v2743_v63 = vsel %vm2471_vm5, %v6489_v58, 0.0  ;;  %vm3271_vm6 = vcmp.eq.s32.totalorder %v6379_v5, %v6493_v36  ;;  %v6510_v0 = vrot.slane %v717_v20, %v6436_v34 }
  0x7b   : > { %v2999_v1 = vadd.f32 %v2743_v63, %v2199_v39  ;;  %v3543_v47 = vsel %vm3271_vm6, %v6496_v31, 0.0  ;;  %vm4071_vm0 = vcmp.eq.s32.totalorder %v6379_v5, %v6501_v22  ;;  %v6516_v2 = vrot.slane %v726_v21, %v6436_v34 }
  0x7c   : > { %v5528_v3 = vadd.f32 %v5272_v55, %v4728_v62  ;;  %v4343_v4 = vsel %vm4071_vm0, %v6504_v61, 0.0  ;;  %vm4871_vm1 = vcmp.eq.s32.totalorder %v6379_v5, %v6510_v0  ;;  %vm999_vm2 = vcmp.eq.s32.totalorder %v6439_v35, %v6442_v37 }
  0x7d   : > { %v3799_v18 = vadd.f32 %v3543_v47, %v2999_v1  ;;  %v5143_v20 = vsel %vm4871_vm1, %v6516_v2, 0.0  ;;  %v1271_v23 = vsel %vm999_vm2, %v6445_v32, 0.0  ;;  %vm1799_vm3 = vcmp.eq.s32.totalorder %v6439_v35, %v6448_v40 }
  0x7e   : > { %5674 = vmatprep.subr.mxu1 %v5528_v3  ;;  %v2071_v21 = vsel %vm1799_vm3, %v6457_v45, 0.0  ;;  %vm2599_vm4 = vcmp.eq.s32.totalorder %v6439_v35, %v6486_v28  ;;  %vm3399_vm7 = vcmp.eq.s32.totalorder %v6439_v35, %v6493_v36  ;;  %vm4199_vm8 = vcmp.eq.s32.totalorder %v6439_v35, %v6501_v22 }
  0x7f   : > { %v4599_v24 = vadd.f32 %v4343_v4, %v3799_v18  ;;  %v2327_v27 = vadd.f32 %v2071_v21, %v1271_v23  ;;  %v2871_v29 = vsel %vm2599_vm4, %v6489_v58, 0.0  ;;  %v3671_v30 = vsel %vm3399_vm7, %v6496_v31, 0.0 }
  0x80   : > { %v4471_v52 = vsel %vm4199_vm8, %v6504_v61, 0.0  ;;  %vm4999_vm9 = vcmp.eq.s32.totalorder %v6439_v35, %v6510_v0  ;;  %v6540_v38 = vadd.s32 112, %v6211_v14  ;;  %v6543_v41 = vadd.s32 368, %v6211_v14 }
  0x81   : > { %v5399_v42 = vadd.f32 %v5143_v20, %v4599_v24  ;;  %v3127_v43 = vadd.f32 %v2871_v29, %v2327_v27  ;;  %v5271_v44 = vsel %vm4999_vm9, %v6516_v2, 0.0  ;;  %v6547_v48 = vadd.s32 104, %v6211_v14 }
  0x82   : > { %vm868_vm10 = vcmp.eq.s32.totalorder %v6540_v38, %v6385_v7  ;;  %vm1668_vm11 = vcmp.eq.s32.totalorder %v6540_v38, %v6397_v11  ;;  %vm2468_vm12 = vcmp.eq.s32.totalorder %v6540_v38, %v6411_v16  ;;  %vm3268_vm13 = vcmp.eq.s32.totalorder %v6540_v38, %v6417_v51 }
  0x83   : > { %5604 = vmatpush1.msra.mxu0 %v5399_v42  ;;  %v3927_v49 = vadd.f32 %v3671_v30, %v3127_v43  ;;  %v1140_v50 = vsel %vm868_vm10, %v6388_v8, 0.0  ;;  %v1940_v53 = vsel %vm1668_vm11, %v6400_v12, 0.0  ;;  %v2740_v54 = vsel %vm2468_vm12, %v6414_v17, 0.0 }
  0x84   : > { %v2196_v55 = vadd.f32 %v1940_v53, %v1140_v50  ;;  %v3540_v56 = vsel %vm3268_vm13, %v6423_v19, 0.0  ;;  %vm4068_vm14 = vcmp.eq.s32.totalorder %v6540_v38, %v6403_v13  ;;  %vm4868_vm15 = vcmp.eq.s32.totalorder %v6540_v38, %v6451_v46 }
  0x85   : > { %v4727_v57 = vadd.f32 %v4471_v52, %v3927_v49  ;;  %v4340_v59 = vsel %vm4068_vm14, %v6406_v15, 0.0  ;;  %v5140_v60 = vsel %vm4868_vm15, %v6454_v33, 0.0  ;;  %vm996_vm5 = vcmp.eq.s32.totalorder %v6543_v41, %v6385_v7 }
  0x86   : > { %v2996_v39 = vadd.f32 %v2740_v54, %v2196_v55  ;;  %v1268_v62 = vsel %vm996_vm5, %v6388_v8, 0.0  ;;  %vm1796_vm6 = vcmp.eq.s32.totalorder %v6543_v41, %v6397_v11  ;;  %vm2596_vm0 = vcmp.eq.s32.totalorder %v6543_v41, %v6411_v16 }
  0x87   : > { %v5527_v63 = vadd.f32 %v5271_v44, %v4727_v57  ;;  %v2068_v1 = vsel %vm1796_vm6, %v6400_v12, 0.0  ;;  %v2868_v47 = vsel %vm2596_vm0, %v6414_v17, 0.0  ;;  %vm3396_vm1 = vcmp.eq.s32.totalorder %v6543_v41, %v6417_v51 }
  0x88   : > { %v3796_v3 = vadd.f32 %v3540_v56, %v2996_v39  ;;  %v2324_v4 = vadd.f32 %v2068_v1, %v1268_v62  ;;  %v3668_v18 = vsel %vm3396_vm1, %v6423_v19, 0.0  ;;  %vm4196_vm2 = vcmp.eq.s32.totalorder %v6543_v41, %v6403_v13 }
  0x89   : > { %5675 = vmatpush1.msra.mxu1 %v5527_v63  ;;  %v4468_v20 = vsel %vm4196_vm2, %v6406_v15, 0.0  ;;  %vm4996_vm3 = vcmp.eq.s32.totalorder %v6543_v41, %v6451_v46  ;;  %vm867_vm4 = vcmp.eq.s32.totalorder %v6540_v38, %v6442_v37  ;;  %vm1667_vm7 = vcmp.eq.s32.totalorder %v6540_v38, %v6448_v40 }
  0x8a   : > { %v4596_v23 = vadd.f32 %v4340_v59, %v3796_v3  ;;  %v3124_v21 = vadd.f32 %v2868_v47, %v2324_v4  ;;  %v5268_v24 = vsel %vm4996_vm3, %v6454_v33, 0.0  ;;  %v1139_v27 = vsel %vm867_vm4, %v6445_v32, 0.0 }
  0x8b   : > { %v1939_v29 = vsel %vm1667_vm7, %v6457_v45, 0.0  ;;  %vm2467_vm8 = vcmp.eq.s32.totalorder %v6540_v38, %v6486_v28  ;;  %vm3267_vm9 = vcmp.eq.s32.totalorder %v6540_v38, %v6493_v36  ;;  %vm4067_vm10 = vcmp.eq.s32.totalorder %v6540_v38, %v6501_v22 }
  0x8c   : > { %v5396_v30 = vadd.f32 %v5140_v60, %v4596_v23  ;;  %v3924_v52 = vadd.f32 %v3668_v18, %v3124_v21  ;;  %v2195_v42 = vadd.f32 %v1939_v29, %v1139_v27  ;;  %v2739_v43 = vsel %vm2467_vm8, %v6489_v58, 0.0 }
  0x8d   : > { %v3539_v44 = vsel %vm3267_vm9, %v6496_v31, 0.0  ;;  %v4339_v49 = vsel %vm4067_vm10, %v6504_v61, 0.0  ;;  %vm4867_vm11 = vcmp.eq.s32.totalorder %v6540_v38, %v6510_v0  ;;  %vm995_vm12 = vcmp.eq.s32.totalorder %v6543_v41, %v6442_v37 }
  0x8e   : > { %5605 = vmatprep.subr.mxu0 %v5396_v30  ;;  %v4724_v50 = vadd.f32 %v4468_v20, %v3924_v52  ;;  %v2995_v53 = vadd.f32 %v2739_v43, %v2195_v42  ;;  %v5139_v54 = vsel %vm4867_vm11, %v6516_v2, 0.0  ;;  %v1267_v55 = vsel %vm995_vm12, %v6445_v32, 0.0 }
  0x8f   : > { %vm1795_vm13 = vcmp.eq.s32.totalorder %v6543_v41, %v6448_v40  ;;  %vm2595_vm14 = vcmp.eq.s32.totalorder %v6543_v41, %v6486_v28  ;;  %vm3395_vm15 = vcmp.eq.s32.totalorder %v6543_v41, %v6493_v36  ;;  %vm4195_vm5 = vcmp.eq.s32.totalorder %v6543_v41, %v6501_v22 }
  0x90   : > { %v5524_v56 = vadd.f32 %v5268_v24, %v4724_v50  ;;  %v3795_v57 = vadd.f32 %v3539_v44, %v2995_v53  ;;  %v2067_v59 = vsel %vm1795_vm13, %v6457_v45, 0.0  ;;  %v2867_v60 = vsel %vm2595_vm14, %v6489_v58, 0.0 }
  0x91   : > { %v2323_v39 = vadd.f32 %v2067_v59, %v1267_v55  ;;  %v3667_v62 = vsel %vm3395_vm15, %v6496_v31, 0.0  ;;  %v4467_v63 = vsel %vm4195_vm5, %v6504_v61, 0.0  ;;  %vm4995_vm6 = vcmp.eq.s32.totalorder %v6543_v41, %v6510_v0 }
  0x92   : > { %5676 = vmatprep.subr.mxu1 %v5524_v56  ;;  %v4595_v1 = vadd.f32 %v4339_v49, %v3795_v57  ;;  %v5267_v47 = vsel %vm4995_vm6, %v6516_v2, 0.0  ;;  %vm864_vm0 = vcmp.eq.s32.totalorder %v6547_v48, %v6385_v7  ;;  %vm1664_vm1 = vcmp.eq.s32.totalorder %v6547_v48, %v6397_v11 }
  0x93   : > { %v3123_v3 = vadd.f32 %v2867_v60, %v2323_v39  ;;  %v1136_v4 = vsel %vm864_vm0, %v6388_v8, 0.0  ;;  %v1936_v18 = vsel %vm1664_vm1, %v6400_v12, 0.0  ;;  %vm2464_vm2 = vcmp.eq.s32.totalorder %v6547_v48, %v6411_v16 }
  0x94   : > { %v5395_v20 = vadd.f32 %v5139_v54, %v4595_v1  ;;  %v2192_v23 = vadd.f32 %v1936_v18, %v1136_v4  ;;  %v2736_v21 = vsel %vm2464_vm2, %v6414_v17, 0.0  ;;  %vm3264_vm3 = vcmp.eq.s32.totalorder %v6547_v48, %v6417_v51 }
  0x95   : > { %v3923_v24 = vadd.f32 %v3667_v62, %v3123_v3  ;;  %v3536_v27 = vsel %vm3264_vm3, %v6423_v19, 0.0  ;;  %vm4064_vm4 = vcmp.eq.s32.totalorder %v6547_v48, %v6403_v13  ;;  %vm4864_vm7 = vcmp.eq.s32.totalorder %v6547_v48, %v6451_v46 }
  0x96   : > { %5606 = vmatpush1.msra.mxu0 %v5395_v20  ;;  %v2992_v29 = vadd.f32 %v2736_v21, %v2192_v23  ;;  %v4336_v30 = vsel %vm4064_vm4, %v6406_v15, 0.0  ;;  %v5136_v52 = vsel %vm4864_vm7, %v6454_v33, 0.0  ;;  %v6640_v42 = vadd.s32 360, %v6211_v14 }
  0x97   : > { %v4723_v43 = vadd.f32 %v4467_v63, %v3923_v24  ;;  %vm863_vm8 = vcmp.eq.s32.totalorder %v6547_v48, %v6442_v37  ;;  %vm1663_vm9 = vcmp.eq.s32.totalorder %v6547_v48, %v6448_v40  ;;  %vm2463_vm10 = vcmp.eq.s32.totalorder %v6547_v48, %v6486_v28 }
  0x98   : > { %v3792_v44 = vadd.f32 %v3536_v27, %v2992_v29  ;;  %vm992_vm11 = vcmp.eq.s32.totalorder %v6640_v42, %v6385_v7  ;;  %vm1792_vm12 = vcmp.eq.s32.totalorder %v6640_v42, %v6397_v11  ;;  %vm2592_vm13 = vcmp.eq.s32.totalorder %v6640_v42, %v6411_v16 }
  0x99   : > { %v5523_v49 = vadd.f32 %v5267_v47, %v4723_v43  ;;  %v1264_v50 = vsel %vm992_vm11, %v6388_v8, 0.0  ;;  %v2064_v53 = vsel %vm1792_vm12, %v6400_v12, 0.0  ;;  %v2864_v54 = vsel %vm2592_vm13, %v6414_v17, 0.0 }
  0x9a   : > { %v4592_v55 = vadd.f32 %v4336_v30, %v3792_v44  ;;  %v2320_v56 = vadd.f32 %v2064_v53, %v1264_v50  ;;  %vm3392_vm14 = vcmp.eq.s32.totalorder %v6640_v42, %v6417_v51  ;;  %vm4192_vm15 = vcmp.eq.s32.totalorder %v6640_v42, %v6403_v13 }
  0x9b   : > { %5677 = vmatpush1.msra.mxu1 %v5523_v49  ;;  %v3664_v57 = vsel %vm3392_vm14, %v6423_v19, 0.0  ;;  %v4464_v59 = vsel %vm4192_vm15, %v6406_v15, 0.0  ;;  %vm4992_vm5 = vcmp.eq.s32.totalorder %v6640_v42, %v6451_v46  ;;  %v1135_v60 = vsel %vm863_vm8, %v6445_v32, 0.0 }
  0x9c   : > { %v5392_v39 = vadd.f32 %v5136_v52, %v4592_v55  ;;  %v3120_v62 = vadd.f32 %v2864_v54, %v2320_v56  ;;  %v5264_v63 = vsel %vm4992_vm5, %v6454_v33, 0.0  ;;  %v1935_v1 = vsel %vm1663_vm9, %v6457_v45, 0.0 }
  0x9d   : > { %v2191_v47 = vadd.f32 %v1935_v1, %v1135_v60  ;;  %v2735_v3 = vsel %vm2463_vm10, %v6489_v58, 0.0  ;;  %vm3263_vm6 = vcmp.eq.s32.totalorder %v6547_v48, %v6493_v36  ;;  %vm4063_vm0 = vcmp.eq.s32.totalorder %v6547_v48, %v6501_v22 }
  0x9e   : > { %5607 = vmatprep.subr.mxu0 %v5392_v39  ;;  %v3920_v4 = vadd.f32 %v3664_v57, %v3120_v62  ;;  %v3535_v18 = vsel %vm3263_vm6, %v6496_v31, 0.0  ;;  %v4335_v20 = vsel %vm4063_vm0, %v6504_v61, 0.0  ;;  %vm4863_vm1 = vcmp.eq.s32.totalorder %v6547_v48, %v6510_v0 }
  0x9f   : > { %v2991_v23 = vadd.f32 %v2735_v3, %v2191_v47  ;;  %v5135_v21 = vsel %vm4863_vm1, %v6516_v2, 0.0  ;;  %vm991_vm2 = vcmp.eq.s32.totalorder %v6640_v42, %v6442_v37  ;;  %vm1791_vm3 = vcmp.eq.s32.totalorder %v6640_v42, %v6448_v40 }
  0xa0   : > { %v4720_v24 = vadd.f32 %v4464_v59, %v3920_v4  ;;  %v1263_v27 = vsel %vm991_vm2, %v6445_v32, 0.0  ;;  %v2063_v29 = vsel %vm1791_vm3, %v6457_v45, 0.0  ;;  %vm2591_vm4 = vcmp.eq.s32.totalorder %v6640_v42, %v6486_v28 }
  0xa1   : > { %v3791_v30 = vadd.f32 %v3535_v18, %v2991_v23  ;;  %v2319_v52 = vadd.f32 %v2063_v29, %v1263_v27  ;;  %v2863_v43 = vsel %vm2591_vm4, %v6489_v58, 0.0  ;;  %vm3391_vm7 = vcmp.eq.s32.totalorder %v6640_v42, %v6493_v36 }
  0xa2   : > { %v5520_v44 = vadd.f32 %v5264_v63, %v4720_v24  ;;  %v3663_v49 = vsel %vm3391_vm7, %v6496_v31, 0.0  ;;  %vm4191_vm8 = vcmp.eq.s32.totalorder %v6640_v42, %v6501_v22  ;;  %vm4991_vm9 = vcmp.eq.s32.totalorder %v6640_v42, %v6510_v0 }
  0xa3   : > { %v4591_v50 = vadd.f32 %v4335_v20, %v3791_v30  ;;  %v3119_v53 = vadd.f32 %v2863_v43, %v2319_v52  ;;  %v4463_v54 = vsel %vm4191_vm8, %v6504_v61, 0.0  ;;  %v5263_v55 = vsel %vm4991_vm9, %v6516_v2, 0.0 }
  0xa4   : > { %5678 = vmatprep.subr.mxu1 %v5520_v44  ;;  %v6706_v56 = vadd.s32 96, %v6211_v14  ;;  %v6709_v57 = vadd.s32 352, %v6211_v14  ;;  %v6712_v59 = vadd.s32 88, %v6211_v14  ;;  %v6715_v60 = vadd.s32 344, %v6211_v14 }
  0xa5   : > { %v5391_v39 = vadd.f32 %v5135_v21, %v4591_v50  ;;  %v3919_v62 = vadd.f32 %v3663_v49, %v3119_v53  ;;  %v6718_v63 = vadd.s32 80, %v6211_v14  ;;  %v6721_v1 = vadd.s32 336, %v6211_v14 }
  0xa6   : > { %vm860_vm10 = vcmp.eq.s32.totalorder %v6706_v56, %v6385_v7  ;;  %vm1660_vm11 = vcmp.eq.s32.totalorder %v6706_v56, %v6397_v11  ;;  %vm2460_vm12 = vcmp.eq.s32.totalorder %v6706_v56, %v6411_v16  ;;  %vm3260_vm13 = vcmp.eq.s32.totalorder %v6706_v56, %v6417_v51 }
  0xa7   : > { %5608 = vmatpush1.msra.mxu0 %v5391_v39  ;;  %v4719_v47 = vadd.f32 %v4463_v54, %v3919_v62  ;;  %v1132_v3 = vsel %vm860_vm10, %v6388_v8, 0.0  ;;  %v1932_v4 = vsel %vm1660_vm11, %v6400_v12, 0.0  ;;  %v2732_v18 = vsel %vm2460_vm12, %v6414_v17, 0.0 }
  0xa8   : > { %v2188_v20 = vadd.f32 %v1932_v4, %v1132_v3  ;;  %v3532_v23 = vsel %vm3260_vm13, %v6423_v19, 0.0  ;;  %vm4060_vm14 = vcmp.eq.s32.totalorder %v6706_v56, %v6403_v13  ;;  %vm4860_vm15 = vcmp.eq.s32.totalorder %v6706_v56, %v6451_v46 }
  0xa9   : > { %v5519_v21 = vadd.f32 %v5263_v55, %v4719_v47  ;;  %v4332_v24 = vsel %vm4060_vm14, %v6406_v15, 0.0  ;;  %v5132_v27 = vsel %vm4860_vm15, %v6454_v33, 0.0  ;;  %vm988_vm5 = vcmp.eq.s32.totalorder %v6709_v57, %v6385_v7 }
  0xaa   : > { %v2988_v29 = vadd.f32 %v2732_v18, %v2188_v20  ;;  %v1260_v30 = vsel %vm988_vm5, %v6388_v8, 0.0  ;;  %vm1788_vm6 = vcmp.eq.s32.totalorder %v6709_v57, %v6397_v11  ;;  %vm2588_vm0 = vcmp.eq.s32.totalorder %v6709_v57, %v6411_v16 }
  0xab   : > { %5679 = vmatpush1.msra.mxu1 %v5519_v21  ;;  %v2060_v52 = vsel %vm1788_vm6, %v6400_v12, 0.0  ;;  %v2860_v43 = vsel %vm2588_vm0, %v6414_v17, 0.0  ;;  %vm3388_vm1 = vcmp.eq.s32.totalorder %v6709_v57, %v6417_v51  ;;  %vm4188_vm2 = vcmp.eq.s32.totalorder %v6709_v57, %v6403_v13 }
  0xac   : > { %v3788_v44 = vadd.f32 %v3532_v23, %v2988_v29  ;;  %v2316_v49 = vadd.f32 %v2060_v52, %v1260_v30  ;;  %v3660_v50 = vsel %vm3388_vm1, %v6423_v19, 0.0  ;;  %v4460_v53 = vsel %vm4188_vm2, %v6406_v15, 0.0 }
  0xad   : > { %vm4988_vm3 = vcmp.eq.s32.totalorder %v6709_v57, %v6451_v46  ;;  %vm859_vm4 = vcmp.eq.s32.totalorder %v6706_v56, %v6442_v37  ;;  %vm1659_vm7 = vcmp.eq.s32.totalorder %v6706_v56, %v6448_v40  ;;  %vm2459_vm8 = vcmp.eq.s32.totalorder %v6706_v56, %v6486_v28 }
  0xae   : > { %v4588_v54 = vadd.f32 %v4332_v24, %v3788_v44  ;;  %v3116_v55 = vadd.f32 %v2860_v43, %v2316_v49  ;;  %v5260_v39 = vsel %vm4988_vm3, %v6454_v33, 0.0  ;;  %v1131_v62 = vsel %vm859_vm4, %v6445_v32, 0.0 }
  0xaf   : > { %v1931_v47 = vsel %vm1659_vm7, %v6457_v45, 0.0  ;;  %v2731_v3 = vsel %vm2459_vm8, %v6489_v58, 0.0  ;;  %vm3259_vm9 = vcmp.eq.s32.totalorder %v6706_v56, %v6493_v36  ;;  %vm4059_vm10 = vcmp.eq.s32.totalorder %v6706_v56, %v6501_v22 }
  0xb0   : > { %v5388_v4 = vadd.f32 %v5132_v27, %v4588_v54  ;;  %v3916_v18 = vadd.f32 %v3660_v50, %v3116_v55  ;;  %v2187_v20 = vadd.f32 %v1931_v47, %v1131_v62  ;;  %v3531_v23 = vsel %vm3259_vm9, %v6496_v31, 0.0 }
  0xb1   : > { %v4331_v21 = vsel %vm4059_vm10, %v6504_v61, 0.0  ;;  %vm4859_vm11 = vcmp.eq.s32.totalorder %v6706_v56, %v6510_v0  ;;  %vm987_vm12 = vcmp.eq.s32.totalorder %v6709_v57, %v6442_v37  ;;  %vm1787_vm13 = vcmp.eq.s32.totalorder %v6709_v57, %v6448_v40 }
  0xb2   : > { %5609 = vmatprep.subr.mxu0 %v5388_v4  ;;  %v4716_v24 = vadd.f32 %v4460_v53, %v3916_v18  ;;  %v2987_v29 = vadd.f32 %v2731_v3, %v2187_v20  ;;  %v5131_v27 = vsel %vm4859_vm11, %v6516_v2, 0.0  ;;  %v1259_v30 = vsel %vm987_vm12, %v6445_v32, 0.0 }
  0xb3   : > { %v2059_v52 = vsel %vm1787_vm13, %v6457_v45, 0.0  ;;  %vm2587_vm14 = vcmp.eq.s32.totalorder %v6709_v57, %v6486_v28  ;;  %vm3387_vm15 = vcmp.eq.s32.totalorder %v6709_v57, %v6493_v36  ;;  %vm4187_vm5 = vcmp.eq.s32.totalorder %v6709_v57, %v6501_v22 }
  0xb4   : > { %v5516_v43 = vadd.f32 %v5260_v39, %v4716_v24  ;;  %v3787_v44 = vadd.f32 %v3531_v23, %v2987_v29  ;;  %v2315_v49 = vadd.f32 %v2059_v52, %v1259_v30  ;;  %v2859_v50 = vsel %vm2587_vm14, %v6489_v58, 0.0 }
  0xb5   : > { %v3659_v53 = vsel %vm3387_vm15, %v6496_v31, 0.0  ;;  %v4459_v54 = vsel %vm4187_vm5, %v6504_v61, 0.0  ;;  %vm4987_vm6 = vcmp.eq.s32.totalorder %v6709_v57, %v6510_v0  ;;  %vm856_vm0 = vcmp.eq.s32.totalorder %v6712_v59, %v6385_v7 }
  0xb6   : > { %5680 = vmatprep.subr.mxu1 %v5516_v43  ;;  %v4587_v55 = vadd.f32 %v4331_v21, %v3787_v44  ;;  %v3115_v62 = vadd.f32 %v2859_v50, %v2315_v49  ;;  %v5259_v47 = vsel %vm4987_vm6, %v6516_v2, 0.0  ;;  %v1128_v39 = vsel %vm856_vm0, %v6388_v8, 0.0 }
  0xb7   : > { %vm1656_vm1 = vcmp.eq.s32.totalorder %v6712_v59, %v6397_v11  ;;  %vm2456_vm2 = vcmp.eq.s32.totalorder %v6712_v59, %v6411_v16  ;;  %vm3256_vm3 = vcmp.eq.s32.totalorder %v6712_v59, %v6417_v51  ;;  %vm4056_vm4 = vcmp.eq.s32.totalorder %v6712_v59, %v6403_v13 }
  0xb8   : > { %v5387_v3 = vadd.f32 %v5131_v27, %v4587_v55  ;;  %v3915_v4 = vadd.f32 %v3659_v53, %v3115_v62  ;;  %v1928_v18 = vsel %vm1656_vm1, %v6400_v12, 0.0  ;;  %v2728_v20 = vsel %vm2456_vm2, %v6414_v17, 0.0 }
  0xb9   : > { %v2184_v23 = vadd.f32 %v1928_v18, %v1128_v39  ;;  %v3528_v21 = vsel %vm3256_vm3, %v6423_v19, 0.0  ;;  %v4328_v24 = vsel %vm4056_vm4, %v6406_v15, 0.0  ;;  %vm4856_vm7 = vcmp.eq.s32.totalorder %v6712_v59, %v6451_v46 }
  0xba   : > { %5610 = vmatpush1.msra.mxu0 %v5387_v3  ;;  %v4715_v29 = vadd.f32 %v4459_v54, %v3915_v4  ;;  %v5128_v30 = vsel %vm4856_vm7, %v6454_v33, 0.0  ;;  %vm984_vm8 = vcmp.eq.s32.totalorder %v6715_v60, %v6385_v7  ;;  %vm1784_vm9 = vcmp.eq.s32.totalorder %v6715_v60, %v6397_v11 }
  0xbb   : > { %v2984_v27 = vadd.f32 %v2728_v20, %v2184_v23  ;;  %v1256_v52 = vsel %vm984_vm8, %v6388_v8, 0.0  ;;  %v2056_v43 = vsel %vm1784_vm9, %v6400_v12, 0.0  ;;  %vm2584_vm10 = vcmp.eq.s32.totalorder %v6715_v60, %v6411_v16 }
  0xbc   : > { %v5515_v44 = vadd.f32 %v5259_v47, %v4715_v29  ;;  %v2312_v49 = vadd.f32 %v2056_v43, %v1256_v52  ;;  %v2856_v50 = vsel %vm2584_vm10, %v6414_v17, 0.0  ;;  %vm3384_vm11 = vcmp.eq.s32.totalorder %v6715_v60, %v6417_v51 }
  0xbd   : > { %v3784_v53 = vadd.f32 %v3528_v21, %v2984_v27  ;;  %v3656_v54 = vsel %vm3384_vm11, %v6423_v19, 0.0  ;;  %vm4184_vm12 = vcmp.eq.s32.totalorder %v6715_v60, %v6403_v13  ;;  %vm4984_vm13 = vcmp.eq.s32.totalorder %v6715_v60, %v6451_v46 }
  0xbe   : > { %5681 = vmatpush1.msra.mxu1 %v5515_v44  ;;  %v3112_v55 = vadd.f32 %v2856_v50, %v2312_v49  ;;  %v4456_v62 = vsel %vm4184_vm12, %v6406_v15, 0.0  ;;  %v5256_v47 = vsel %vm4984_vm13, %v6454_v33, 0.0  ;;  %vm855_vm14 = vcmp.eq.s32.totalorder %v6712_v59, %v6442_v37 }
  0xbf   : > { %v4584_v39 = vadd.f32 %v4328_v24, %v3784_v53  ;;  %v1127_v3 = vsel %vm855_vm14, %v6445_v32, 0.0  ;;  %vm1655_vm15 = vcmp.eq.s32.totalorder %v6712_v59, %v6448_v40  ;;  %vm2455_vm5 = vcmp.eq.s32.totalorder %v6712_v59, %v6486_v28 }
  0xc0   : > { %v3912_v4 = vadd.f32 %v3656_v54, %v3112_v55  ;;  %v1927_v18 = vsel %vm1655_vm15, %v6457_v45, 0.0  ;;  %v2727_v20 = vsel %vm2455_vm5, %v6489_v58, 0.0  ;;  %vm3255_vm6 = vcmp.eq.s32.totalorder %v6712_v59, %v6493_v36 }
  0xc1   : > { %v5384_v23 = vadd.f32 %v5128_v30, %v4584_v39  ;;  %v2183_v21 = vadd.f32 %v1927_v18, %v1127_v3  ;;  %v3527_v24 = vsel %vm3255_vm6, %v6496_v31, 0.0  ;;  %vm4055_vm0 = vcmp.eq.s32.totalorder %v6712_v59, %v6501_v22 }
  0xc2   : > { %v4712_v29 = vadd.f32 %v4456_v62, %v3912_v4  ;;  %v4327_v27 = vsel %vm4055_vm0, %v6504_v61, 0.0  ;;  %vm4855_vm1 = vcmp.eq.s32.totalorder %v6712_v59, %v6510_v0  ;;  %vm983_vm2 = vcmp.eq.s32.totalorder %v6715_v60, %v6442_v37 }
  0xc3   : > { %5611 = vmatprep.subr.mxu0 %v5384_v23  ;;  %v2983_v52 = vadd.f32 %v2727_v20, %v2183_v21  ;;  %v5127_v43 = vsel %vm4855_vm1, %v6516_v2, 0.0  ;;  %v1255_v30 = vsel %vm983_vm2, %v6445_v32, 0.0  ;;  %vm1783_vm3 = vcmp.eq.s32.totalorder %v6715_v60, %v6448_v40 }
  0xc4   : > { %v5512_v44 = vadd.f32 %v5256_v47, %v4712_v29  ;;  %v2055_v49 = vsel %vm1783_vm3, %v6457_v45, 0.0  ;;  %vm2583_vm4 = vcmp.eq.s32.totalorder %v6715_v60, %v6486_v28  ;;  %vm3383_vm7 = vcmp.eq.s32.totalorder %v6715_v60, %v6493_v36 }
  0xc5   : > { %v3783_v50 = vadd.f32 %v3527_v24, %v2983_v52  ;;  %v2311_v53 = vadd.f32 %v2055_v49, %v1255_v30  ;;  %v2855_v54 = vsel %vm2583_vm4, %v6489_v58, 0.0  ;;  %v3655_v55 = vsel %vm3383_vm7, %v6496_v31, 0.0 }
  0xc6   : > { %5682 = vmatprep.subr.mxu1 %v5512_v44  ;;  %vm4183_vm8 = vcmp.eq.s32.totalorder %v6715_v60, %v6501_v22  ;;  %vm4983_vm9 = vcmp.eq.s32.totalorder %v6715_v60, %v6510_v0  ;;  %vm852_vm10 = vcmp.eq.s32.totalorder %v6718_v63, %v6385_v7  ;;  %vm1652_vm11 = vcmp.eq.s32.totalorder %v6718_v63, %v6397_v11 }
  0xc7   : > { %v4583_v62 = vadd.f32 %v4327_v27, %v3783_v50  ;;  %v3111_v47 = vadd.f32 %v2855_v54, %v2311_v53  ;;  %v4455_v39 = vsel %vm4183_vm8, %v6504_v61, 0.0  ;;  %v5255_v3 = vsel %vm4983_vm9, %v6516_v2, 0.0 }
  0xc8   : > { %v1124_v4 = vsel %vm852_vm10, %v6388_v8, 0.0  ;;  %v1924_v18 = vsel %vm1652_vm11, %v6400_v12, 0.0  ;;  %vm2452_vm12 = vcmp.eq.s32.totalorder %v6718_v63, %v6411_v16  ;;  %vm3252_vm13 = vcmp.eq.s32.totalorder %v6718_v63, %v6417_v51 }
  0xc9   : > { %v5383_v20 = vadd.f32 %v5127_v43, %v4583_v62  ;;  %v3911_v23 = vadd.f32 %v3655_v55, %v3111_v47  ;;  %v2180_v21 = vadd.f32 %v1924_v18, %v1124_v4  ;;  %v2724_v24 = vsel %vm2452_vm12, %v6414_v17, 0.0 }
  0xca   : > { %v3524_v29 = vsel %vm3252_vm13, %v6423_v19, 0.0  ;;  %vm4052_vm14 = vcmp.eq.s32.totalorder %v6718_v63, %v6403_v13  ;;  %vm4852_vm15 = vcmp.eq.s32.totalorder %v6718_v63, %v6451_v46  ;;  %vm980_vm5 = vcmp.eq.s32.totalorder %v6721_v1, %v6385_v7 }
  0xcb   : > { %5612 = vmatpush1.msra.mxu0 %v5383_v20  ;;  %v4711_v27 = vadd.f32 %v4455_v39, %v3911_v23  ;;  %v2980_v52 = vadd.f32 %v2724_v24, %v2180_v21  ;;  %v4324_v43 = vsel %vm4052_vm14, %v6406_v15, 0.0  ;;  %v5124_v30 = vsel %vm4852_vm15, %v6454_v33, 0.0 }
  0xcc   : > { %v1252_v44 = vsel %vm980_vm5, %v6388_v8, 0.0  ;;  %vm1780_vm6 = vcmp.eq.s32.totalorder %v6721_v1, %v6397_v11  ;;  %vm2580_vm0 = vcmp.eq.s32.totalorder %v6721_v1, %v6411_v16  ;;  %vm3380_vm1 = vcmp.eq.s32.totalorder %v6721_v1, %v6417_v51 }
  0xcd   : > { %v5511_v49 = vadd.f32 %v5255_v3, %v4711_v27  ;;  %v3780_v50 = vadd.f32 %v3524_v29, %v2980_v52  ;;  %v2052_v53 = vsel %vm1780_vm6, %v6400_v12, 0.0  ;;  %v2852_v54 = vsel %vm2580_vm0, %v6414_v17, 0.0 }
  0xce   : > { %v2308_v55 = vadd.f32 %v2052_v53, %v1252_v44  ;;  %v3652_v62 = vsel %vm3380_vm1, %v6423_v19, 0.0  ;;  %vm4180_vm2 = vcmp.eq.s32.totalorder %v6721_v1, %v6403_v13  ;;  %vm4980_vm3 = vcmp.eq.s32.totalorder %v6721_v1, %v6451_v46 }
  0xcf   : > { %5683 = vmatpush1.msra.mxu1 %v5511_v49  ;;  %v4580_v47 = vadd.f32 %v4324_v43, %v3780_v50  ;;  %v4452_v39 = vsel %vm4180_vm2, %v6406_v15, 0.0  ;;  %v5252_v3 = vsel %vm4980_vm3, %v6454_v33, 0.0  ;;  %vm851_vm4 = vcmp.eq.s32.totalorder %v6718_v63, %v6442_v37 }
  0xd0   : > { %v3108_v4 = vadd.f32 %v2852_v54, %v2308_v55  ;;  %v1123_v18 = vsel %vm851_vm4, %v6445_v32, 0.0  ;;  %vm1651_vm7 = vcmp.eq.s32.totalorder %v6718_v63, %v6448_v40  ;;  %vm2451_vm8 = vcmp.eq.s32.totalorder %v6718_v63, %v6486_v28 }
  0xd1   : > { %v5380_v20 = vadd.f32 %v5124_v30, %v4580_v47  ;;  %v1923_v23 = vsel %vm1651_vm7, %v6457_v45, 0.0  ;;  %v2723_v21 = vsel %vm2451_vm8, %v6489_v58, 0.0  ;;  %vm3251_vm9 = vcmp.eq.s32.totalorder %v6718_v63, %v6493_v36 }
  0xd2   : > { %v3908_v24 = vadd.f32 %v3652_v62, %v3108_v4  ;;  %v2179_v29 = vadd.f32 %v1923_v23, %v1123_v18  ;;  %v3523_v27 = vsel %vm3251_vm9, %v6496_v31, 0.0  ;;  %vm4051_vm10 = vcmp.eq.s32.totalorder %v6718_v63, %v6501_v22 }
  0xd3   : > { %5613 = vmatprep.subr.mxu0 %v5380_v20  ;;  %v4323_v52 = vsel %vm4051_vm10, %v6504_v61, 0.0  ;;  %vm4851_vm11 = vcmp.eq.s32.totalorder %v6718_v63, %v6510_v0  ;;  %vm979_vm12 = vcmp.eq.s32.totalorder %v6721_v1, %v6442_v37  ;;  %vm1779_vm13 = vcmp.eq.s32.totalorder %v6721_v1, %v6448_v40 }
  0xd4   : > { %v4708_v43 = vadd.f32 %v4452_v39, %v3908_v24  ;;  %v2979_v30 = vadd.f32 %v2723_v21, %v2179_v29  ;;  %v5123_v44 = vsel %vm4851_vm11, %v6516_v2, 0.0  ;;  %v1251_v49 = vsel %vm979_vm12, %v6445_v32, 0.0 }
  0xd5   : > { %v2051_v50 = vsel %vm1779_vm13, %v6457_v45, 0.0  ;;  %vm2579_vm14 = vcmp.eq.s32.totalorder %v6721_v1, %v6486_v28  ;;  %vm3379_vm15 = vcmp.eq.s32.totalorder %v6721_v1, %v6493_v36  ;;  %vm4179_vm5 = vcmp.eq.s32.totalorder %v6721_v1, %v6501_v22 }
  0xd6   : > { %v5508_v53 = vadd.f32 %v5252_v3, %v4708_v43  ;;  %v3779_v54 = vadd.f32 %v3523_v27, %v2979_v30  ;;  %v2307_v55 = vadd.f32 %v2051_v50, %v1251_v49  ;;  %v2851_v62 = vsel %vm2579_vm14, %v6489_v58, 0.0 }
  0xd7   : > { %v3651_v47 = vsel %vm3379_vm15, %v6496_v31, 0.0  ;;  %v4451_v39 = vsel %vm4179_vm5, %v6504_v61, 0.0  ;;  %vm4979_vm6 = vcmp.eq.s32.totalorder %v6721_v1, %v6510_v0  ;;  %v6939_v4 = vadd.s32 72, %v6211_v14 }
  0xd8   : > { %5684 = vmatprep.subr.mxu1 %v5508_v53  ;;  %v4579_v18 = vadd.f32 %v4323_v52, %v3779_v54  ;;  %v3107_v20 = vadd.f32 %v2851_v62, %v2307_v55  ;;  %v5251_v23 = vsel %vm4979_vm6, %v6516_v2, 0.0  ;;  %v6943_v3 = vadd.s32 328, %v6211_v14 }
  0xd9   : > { %vm848_vm0 = vcmp.eq.s32.totalorder %v6939_v4, %v6385_v7  ;;  %vm1648_vm1 = vcmp.eq.s32.totalorder %v6939_v4, %v6397_v11  ;;  %vm2448_vm2 = vcmp.eq.s32.totalorder %v6939_v4, %v6411_v16  ;;  %vm3248_vm3 = vcmp.eq.s32.totalorder %v6939_v4, %v6417_v51 }
  0xda   : > { %11505 = vst [vmem:[#allocation7_spill] sm:$0xff] %v6943_v3  ;;  %v5379_v21 = vadd.f32 %v5123_v44, %v4579_v18  ;;  %v3907_v24 = vadd.f32 %v3651_v47, %v3107_v20  ;;  %v1120_v29 = vsel %vm848_vm0, %v6388_v8, 0.0  ;;  %v1920_v27 = vsel %vm1648_vm1, %v6400_v12, 0.0 }
  0xdb   : > { %v2176_v52 = vadd.f32 %v1920_v27, %v1120_v29  ;;  %v2720_v43 = vsel %vm2448_vm2, %v6414_v17, 0.0  ;;  %v3520_v30 = vsel %vm3248_vm3, %v6423_v19, 0.0  ;;  %vm4048_vm4 = vcmp.eq.s32.totalorder %v6939_v4, %v6403_v13 }
  0xdc   : > { %5614 = vmatpush1.msra.mxu0 %v5379_v21  ;;  %v4707_v49 = vadd.f32 %v4451_v39, %v3907_v24  ;;  %v4320_v50 = vsel %vm4048_vm4, %v6406_v15, 0.0  ;;  %vm4848_vm7 = vcmp.eq.s32.totalorder %v6939_v4, %v6451_v46  ;;  %vm976_vm8 = vcmp.eq.s32.totalorder %v6943_v3, %v6385_v7 }
  0xdd   : > { %v2976_v44 = vadd.f32 %v2720_v43, %v2176_v52  ;;  %v5120_v53 = vsel %vm4848_vm7, %v6454_v33, 0.0  ;;  %v1248_v54 = vsel %vm976_vm8, %v6388_v8, 0.0  ;;  %vm1776_vm9 = vcmp.eq.s32.totalorder %v6943_v3, %v6397_v11 }
  0xde   : > { %v5507_v55 = vadd.f32 %v5251_v23, %v4707_v49  ;;  %v2048_v62 = vsel %vm1776_vm9, %v6400_v12, 0.0  ;;  %vm2576_vm10 = vcmp.eq.s32.totalorder %v6943_v3, %v6411_v16  ;;  %vm3376_vm11 = vcmp.eq.s32.totalorder %v6943_v3, %v6417_v51 }
  0xdf   : > { %v3776_v47 = vadd.f32 %v3520_v30, %v2976_v44  ;;  %v2304_v39 = vadd.f32 %v2048_v62, %v1248_v54  ;;  %v2848_v18 = vsel %vm2576_vm10, %v6414_v17, 0.0  ;;  %v3648_v20 = vsel %vm3376_vm11, %v6423_v19, 0.0 }
  0xe0   : > { %5685 = vmatpush1.msra.mxu1 %v5507_v55  ;;  %vm4176_vm12 = vcmp.eq.s32.totalorder %v6943_v3, %v6403_v13  ;;  %vm4976_vm13 = vcmp.eq.s32.totalorder %v6943_v3, %v6451_v46  ;;  %vm847_vm14 = vcmp.eq.s32.totalorder %v6939_v4, %v6442_v37  ;;  %vm1647_vm15 = vcmp.eq.s32.totalorder %v6939_v4, %v6448_v40 }
  0xe1   : > { %v4576_v23 = vadd.f32 %v4320_v50, %v3776_v47  ;;  %v3104_v21 = vadd.f32 %v2848_v18, %v2304_v39  ;;  %v4448_v24 = vsel %vm4176_vm12, %v6406_v15, 0.0  ;;  %v5248_v29 = vsel %vm4976_vm13, %v6454_v33, 0.0 }
  0xe2   : > { %v1119_v27 = vsel %vm847_vm14, %v6445_v32, 0.0  ;;  %v1919_v52 = vsel %vm1647_vm15, %v6457_v45, 0.0  ;;  %vm2447_vm5 = vcmp.eq.s32.totalorder %v6939_v4, %v6486_v28  ;;  %vm3247_vm6 = vcmp.eq.s32.totalorder %v6939_v4, %v6493_v36 }
  0xe3   : > { %v5376_v43 = vadd.f32 %v5120_v53, %v4576_v23  ;;  %v3904_v30 = vadd.f32 %v3648_v20, %v3104_v21  ;;  %v2175_v49 = vadd.f32 %v1919_v52, %v1119_v27  ;;  %v2719_v50 = vsel %vm2447_vm5, %v6489_v58, 0.0 }
  0xe4   : > { %v3519_v44 = vsel %vm3247_vm6, %v6496_v31, 0.0  ;;  %vm4047_vm0 = vcmp.eq.s32.totalorder %v6939_v4, %v6501_v22  ;;  %vm4847_vm1 = vcmp.eq.s32.totalorder %v6939_v4, %v6510_v0  ;;  %vm975_vm2 = vcmp.eq.s32.totalorder %v6943_v3, %v6442_v37 }
  0xe5   : > { %5615 = vmatprep.subr.mxu0 %v5376_v43  ;;  %v4704_v54 = vadd.f32 %v4448_v24, %v3904_v30  ;;  %v2975_v55 = vadd.f32 %v2719_v50, %v2175_v49  ;;  %v4319_v53 = vsel %vm4047_vm0, %v6504_v61, 0.0  ;;  %v5119_v62 = vsel %vm4847_vm1, %v6516_v2, 0.0 }
  0xe6   : > { %v1247_v47 = vsel %vm975_vm2, %v6445_v32, 0.0  ;;  %vm1775_vm3 = vcmp.eq.s32.totalorder %v6943_v3, %v6448_v40  ;;  %vm2575_vm4 = vcmp.eq.s32.totalorder %v6943_v3, %v6486_v28  ;;  %vm3375_vm7 = vcmp.eq.s32.totalorder %v6943_v3, %v6493_v36 }
  0xe7   : > { %v5504_v39 = vadd.f32 %v5248_v29, %v4704_v54  ;;  %v3775_v18 = vadd.f32 %v3519_v44, %v2975_v55  ;;  %v2047_v20 = vsel %vm1775_vm3, %v6457_v45, 0.0  ;;  %v2847_v23 = vsel %vm2575_vm4, %v6489_v58, 0.0 }
  0xe8   : > { %v2303_v21 = vadd.f32 %v2047_v20, %v1247_v47  ;;  %v3647_v24 = vsel %vm3375_vm7, %v6496_v31, 0.0  ;;  %vm4175_vm8 = vcmp.eq.s32.totalorder %v6943_v3, %v6501_v22  ;;  %vm4975_vm9 = vcmp.eq.s32.totalorder %v6943_v3, %v6510_v0 }
  0xe9   : > { %5686 = vmatprep.subr.mxu1 %v5504_v39  ;;  %v4575_v27 = vadd.f32 %v4319_v53, %v3775_v18  ;;  %v4447_v52 = vsel %vm4175_vm8, %v6504_v61, 0.0  ;;  %v5247_v29 = vsel %vm4975_vm9, %v6516_v2, 0.0  ;;  %v7018_v43 = vadd.s32 64, %v6211_v14 }
  0xea   : > { %v3103_v30 = vadd.f32 %v2847_v23, %v2303_v21  ;;  %v7021_v49 = vadd.s32 320, %v6211_v14  ;;  %v7024_v50 = vadd.s32 56, %v6211_v14  ;;  %v7027_v44 = vadd.s32 312, %v6211_v14 }
  0xeb   : > { %11506 = vst [vmem:[#allocation8_spill] sm:$0xff] %v7018_v43  ;;  %v5375_v54 = vadd.f32 %v5119_v62, %v4575_v27  ;;  %vm844_vm10 = vcmp.eq.s32.totalorder %v7018_v43, %v6385_v7  ;;  %vm1644_vm11 = vcmp.eq.s32.totalorder %v7018_v43, %v6397_v11  ;;  %vm2444_vm12 = vcmp.eq.s32.totalorder %v7018_v43, %v6411_v16 }
  0xec   : > { %11507 = vst [vmem:[#allocation9_spill] sm:$0xff] %v7021_v49  ;;  %11508 = vst [vmem:[#allocation10_spill] sm:$0xff] %v7024_v50  ;;  %v3903_v55 = vadd.f32 %v3647_v24, %v3103_v30  ;;  %v1116_v53 = vsel %vm844_vm10, %v6388_v8, 0.0  ;;  %v1916_v47 = vsel %vm1644_vm11, %v6400_v12, 0.0  ;;  %v2716_v39 = vsel %vm2444_vm12, %v6414_v17, 0.0 }
  0xed   : > { %11509 = vst [vmem:[#allocation11_spill] sm:$0xff] %v7027_v44  ;;  %5616 = vmatpush1.msra.mxu0 %v5375_v54  ;;  %v2172_v18 = vadd.f32 %v1916_v47, %v1116_v53  ;;  %vm3244_vm13 = vcmp.eq.s32.totalorder %v7018_v43, %v6417_v51  ;;  %vm4044_vm14 = vcmp.eq.s32.totalorder %v7018_v43, %v6403_v13 }
  0xee   : > { %vm4844_vm15 = vcmp.eq.s32.totalorder %v7018_v43, %v6451_v46  ;;  %v4703_v62 = vadd.f32 %v4447_v52, %v3903_v55  ;;  %v3516_v20 = vsel %vm3244_vm13, %v6423_v19, 0.0  ;;  %v4316_v23 = vsel %vm4044_vm14, %v6406_v15, 0.0 }
  0xef   : > { %v5116_v21 = vsel %vm4844_vm15, %v6454_v33, 0.0  ;;  %v2972_v24 = vadd.f32 %v2716_v39, %v2172_v18  ;;  %vm972_vm5 = vcmp.eq.s32.totalorder %v7021_v49, %v6385_v7  ;;  %vm1772_vm6 = vcmp.eq.s32.totalorder %v7021_v49, %v6397_v11 }
  0xf0   : > { %vm2572_vm0 = vcmp.eq.s32.totalorder %v7021_v49, %v6411_v16  ;;  %v5503_v27 = vadd.f32 %v5247_v29, %v4703_v62  ;;  %v1244_v30 = vsel %vm972_vm5, %v6388_v8, 0.0  ;;  %v2044_v52 = vsel %vm1772_vm6, %v6400_v12, 0.0 }
  0xf1   : > { %v2844_v54 = vsel %vm2572_vm0, %v6414_v17, 0.0  ;;  %v3772_v55 = vadd.f32 %v3516_v20, %v2972_v24  ;;  %v2300_v53 = vadd.f32 %v2044_v52, %v1244_v30  ;;  %vm3372_vm1 = vcmp.eq.s32.totalorder %v7021_v49, %v6417_v51 }
  0xf2   : > { %vm4172_vm2 = vcmp.eq.s32.totalorder %v7021_v49, %v6403_v13  ;;  %5687 = vmatpush1.msra.mxu1 %v5503_v27  ;;  %v3644_v47 = vsel %vm3372_vm1, %v6423_v19, 0.0  ;;  %vm4972_vm3 = vcmp.eq.s32.totalorder %v7021_v49, %v6451_v46  ;;  %vm843_vm4 = vcmp.eq.s32.totalorder %v7018_v43, %v6442_v37 }
  0xf3   : > { %v4444_v39 = vsel %vm4172_vm2, %v6406_v15, 0.0  ;;  %v4572_v29 = vadd.f32 %v4316_v23, %v3772_v55  ;;  %v3100_v18 = vadd.f32 %v2844_v54, %v2300_v53  ;;  %v5244_v62 = vsel %vm4972_vm3, %v6454_v33, 0.0 }
  0xf4   : > { %v1115_v20 = vsel %vm843_vm4, %v6445_v32, 0.0  ;;  %vm1643_vm7 = vcmp.eq.s32.totalorder %v7018_v43, %v6448_v40  ;;  %vm2443_vm8 = vcmp.eq.s32.totalorder %v7018_v43, %v6486_v28  ;;  %vm3243_vm9 = vcmp.eq.s32.totalorder %v7018_v43, %v6493_v36 }
  0xf5   : > { %vm4043_vm10 = vcmp.eq.s32.totalorder %v7018_v43, %v6501_v22  ;;  %v5372_v24 = vadd.f32 %v5116_v21, %v4572_v29  ;;  %v3900_v27 = vadd.f32 %v3644_v47, %v3100_v18  ;;  %v1915_v23 = vsel %vm1643_vm7, %v6457_v45, 0.0 }
  0xf6   : > { %v2715_v30 = vsel %vm2443_vm8, %v6489_v58, 0.0  ;;  %v2171_v52 = vadd.f32 %v1915_v23, %v1115_v20  ;;  %v3515_v54 = vsel %vm3243_vm9, %v6496_v31, 0.0  ;;  %v4315_v55 = vsel %vm4043_vm10, %v6504_v61, 0.0 }
  0xf7   : > { %vm4843_vm11 = vcmp.eq.s32.totalorder %v7018_v43, %v6510_v0  ;;  %5617 = vmatprep.subr.mxu0 %v5372_v24  ;;  %v4700_v53 = vadd.f32 %v4444_v39, %v3900_v27  ;;  %vm971_vm12 = vcmp.eq.s32.totalorder %v7021_v49, %v6442_v37  ;;  %vm1771_vm13 = vcmp.eq.s32.totalorder %v7021_v49, %v6448_v40 }
  0xf8   : > { %v5115_v3 = vsel %vm4843_vm11, %v6516_v2, 0.0  ;;  %v2971_v21 = vadd.f32 %v2715_v30, %v2171_v52  ;;  %v1243_v47 = vsel %vm971_vm12, %v6445_v32, 0.0  ;;  %v2043_v29 = vsel %vm1771_vm13, %v6457_v45, 0.0 }
  0xf9   : > { %vm2571_vm14 = vcmp.eq.s32.totalorder %v7021_v49, %v6486_v28  ;;  %v5500_v18 = vadd.f32 %v5244_v62, %v4700_v53  ;;  %v2299_v20 = vadd.f32 %v2043_v29, %v1243_v47  ;;  %vm3371_vm15 = vcmp.eq.s32.totalorder %v7021_v49, %v6493_v36 }
  0xfa   : > { %v2843_v39 = vsel %vm2571_vm14, %v6489_v58, 0.0  ;;  %v3771_v24 = vadd.f32 %v3515_v54, %v2971_v21  ;;  %v3643_v27 = vsel %vm3371_vm15, %v6496_v31, 0.0  ;;  %vm4171_vm5 = vcmp.eq.s32.totalorder %v7021_v49, %v6501_v22 }
  0xfb   : > { %vm4971_vm6 = vcmp.eq.s32.totalorder %v7021_v49, %v6510_v0  ;;  %5688 = vmatprep.subr.mxu1 %v5500_v18  ;;  %v3099_v23 = vadd.f32 %v2843_v39, %v2299_v20  ;;  %v4443_v30 = vsel %vm4171_vm5, %v6504_v61, 0.0  ;;  %vm840_vm0 = vcmp.eq.s32.totalorder %v7024_v50, %v6385_v7 }
  0xfc   : > { %v5243_v62 = vsel %vm4971_vm6, %v6516_v2, 0.0  ;;  %v4571_v52 = vadd.f32 %v4315_v55, %v3771_v24  ;;  %v1112_v54 = vsel %vm840_vm0, %v6388_v8, 0.0  ;;  %vm1640_vm1 = vcmp.eq.s32.totalorder %v7024_v50, %v6397_v11 }
  0xfd   : > { %vm2440_vm2 = vcmp.eq.s32.totalorder %v7024_v50, %v6411_v16  ;;  %v3899_v53 = vadd.f32 %v3643_v27, %v3099_v23  ;;  %v1912_v21 = vsel %vm1640_vm1, %v6400_v12, 0.0  ;;  %vm3240_vm3 = vcmp.eq.s32.totalorder %v7024_v50, %v6417_v51 }
  0xfe   : > { %v2712_v47 = vsel %vm2440_vm2, %v6414_v17, 0.0  ;;  %v5371_v29 = vadd.f32 %v5115_v3, %v4571_v52  ;;  %v2168_v18 = vadd.f32 %v1912_v21, %v1112_v54  ;;  %v3512_v55 = vsel %vm3240_vm3, %v6423_v19, 0.0 }
  0xff   : > { %vm4040_vm4 = vcmp.eq.s32.totalorder %v7024_v50, %v6403_v13  ;;  %v4699_v20 = vadd.f32 %v4443_v30, %v3899_v53  ;;  %vm4840_vm7 = vcmp.eq.s32.totalorder %v7024_v50, %v6451_v46  ;;  %vm968_vm8 = vcmp.eq.s32.totalorder %v7027_v44, %v6385_v7 }
 0x100   : > { %v4312_v39 = vsel %vm4040_vm4, %v6406_v15, 0.0  ;;  %5618 = vmatpush1.msra.mxu0 %v5371_v29  ;;  %v2968_v24 = vadd.f32 %v2712_v47, %v2168_v18  ;;  %v5112_v27 = vsel %vm4840_vm7, %v6454_v33, 0.0  ;;  %v1240_v3 = vsel %vm968_vm8, %v6388_v8, 0.0 }
 0x101   : > { %vm1768_vm9 = vcmp.eq.s32.totalorder %v7027_v44, %v6397_v11  ;;  %v5499_v23 = vadd.f32 %v5243_v62, %v4699_v20  ;;  %vm2568_vm10 = vcmp.eq.s32.totalorder %v7027_v44, %v6411_v16  ;;  %vm3368_vm11 = vcmp.eq.s32.totalorder %v7027_v44, %v6417_v51 }
 0x102   : > { %v2040_v30 = vsel %vm1768_vm9, %v6400_v12, 0.0  ;;  %v3768_v52 = vadd.f32 %v3512_v55, %v2968_v24  ;;  %v2840_v53 = vsel %vm2568_vm10, %v6414_v17, 0.0  ;;  %v3640_v21 = vsel %vm3368_vm11, %v6423_v19, 0.0 }
 0x103   : > { %v2296_v54 = vadd.f32 %v2040_v30, %v1240_v3  ;;  %5689 = vmatpush1.msra.mxu1 %v5499_v23  ;;  %vm4168_vm12 = vcmp.eq.s32.totalorder %v7027_v44, %v6403_v13  ;;  %vm4968_vm13 = vcmp.eq.s32.totalorder %v7027_v44, %v6451_v46  ;;  %vm839_vm14 = vcmp.eq.s32.totalorder %v7024_v50, %v6442_v37 }
 0x104   : > { %vm1639_vm15 = vcmp.eq.s32.totalorder %v7024_v50, %v6448_v40  ;;  %v4568_v62 = vadd.f32 %v4312_v39, %v3768_v52  ;;  %v4440_v29 = vsel %vm4168_vm12, %v6406_v15, 0.0  ;;  %v5240_v18 = vsel %vm4968_vm13, %v6454_v33, 0.0 }
 0x105   : > { %v3096_v47 = vadd.f32 %v2840_v53, %v2296_v54  ;;  %v1111_v55 = vsel %vm839_vm14, %v6445_v32, 0.0  ;;  %v1911_v20 = vsel %vm1639_vm15, %v6457_v45, 0.0  ;;  %vm2439_vm5 = vcmp.eq.s32.totalorder %v7024_v50, %v6486_v28 }
 0x106   : > { %vm3239_vm6 = vcmp.eq.s32.totalorder %v7024_v50, %v6493_v36  ;;  %v5368_v24 = vadd.f32 %v5112_v27, %v4568_v62  ;;  %v2167_v23 = vadd.f32 %v1911_v20, %v1111_v55  ;;  %v2711_v39 = vsel %vm2439_vm5, %v6489_v58, 0.0 }
 0x107   : > { %v3896_v3 = vadd.f32 %v3640_v21, %v3096_v47  ;;  %v3511_v30 = vsel %vm3239_vm6, %v6496_v31, 0.0  ;;  %vm4039_vm0 = vcmp.eq.s32.totalorder %v7024_v50, %v6501_v22  ;;  %vm4839_vm1 = vcmp.eq.s32.totalorder %v7024_v50, %v6510_v0 }
 0x108   : > { %vm967_vm2 = vcmp.eq.s32.totalorder %v7027_v44, %v6442_v37  ;;  %5619 = vmatprep.subr.mxu0 %v5368_v24  ;;  %v2967_v54 = vadd.f32 %v2711_v39, %v2167_v23  ;;  %v4311_v27 = vsel %vm4039_vm0, %v6504_v61, 0.0  ;;  %v5111_v53 = vsel %vm4839_vm1, %v6516_v2, 0.0 }
 0x109   : > { %v4696_v52 = vadd.f32 %v4440_v29, %v3896_v3  ;;  %v1239_v21 = vsel %vm967_vm2, %v6445_v32, 0.0  ;;  %vm1767_vm3 = vcmp.eq.s32.totalorder %v7027_v44, %v6448_v40  ;;  %vm2567_vm4 = vcmp.eq.s32.totalorder %v7027_v44, %v6486_v28 }
 0x10a   : > { %vm3367_vm7 = vcmp.eq.s32.totalorder %v7027_v44, %v6493_v36  ;;  %v3767_v47 = vadd.f32 %v3511_v30, %v2967_v54  ;;  %v2039_v29 = vsel %vm1767_vm3, %v6457_v45, 0.0  ;;  %v2839_v55 = vsel %vm2567_vm4, %v6489_v58, 0.0 }
 0x10b   : > { %v5496_v62 = vadd.f32 %v5240_v18, %v4696_v52  ;;  %v2295_v20 = vadd.f32 %v2039_v29, %v1239_v21  ;;  %v3639_v24 = vsel %vm3367_vm7, %v6496_v31, 0.0  ;;  %vm4167_vm8 = vcmp.eq.s32.totalorder %v7027_v44, %v6501_v22 }
 0x10c   : > { %vm4967_vm9 = vcmp.eq.s32.totalorder %v7027_v44, %v6510_v0  ;;  %v4567_v3 = vadd.f32 %v4311_v27, %v3767_v47  ;;  %v4439_v23 = vsel %vm4167_vm8, %v6504_v61, 0.0  ;;  %v7174_v39 = vadd.s32 48, %v6211_v14 }
 0x10d   : > { %5690 = vmatprep.subr.mxu1 %v5496_v62  ;;  %v5239_v18 = vsel %vm4967_vm9, %v6516_v2, 0.0  ;;  %v3095_v30 = vadd.f32 %v2839_v55, %v2295_v20  ;;  %v7177_v52 = vadd.s32 304, %v6211_v14  ;;  %v7180_v54 = vadd.s32 40, %v6211_v14 }
 0x10e   : > { %11510 = vst [vmem:[#allocation12_spill] sm:$0xff] %v7174_v39  ;;  %v7183_v21 = vadd.s32 296, %v6211_v14  ;;  %v5367_v29 = vadd.f32 %v5111_v53, %v4567_v3  ;;  %vm836_vm10 = vcmp.eq.s32.totalorder %v7174_v39, %v6385_v7  ;;  %vm1636_vm11 = vcmp.eq.s32.totalorder %v7174_v39, %v6397_v11 }
 0x10f   : > { %11511 = vst [vmem:[#allocation13_spill] sm:$0xff] %v7177_v52  ;;  %11512 = vst [vmem:[#allocation14_spill] sm:$0xff] %v7180_v54  ;;  %vm2436_vm12 = vcmp.eq.s32.totalorder %v7174_v39, %v6411_v16  ;;  %v3895_v27 = vadd.f32 %v3639_v24, %v3095_v30  ;;  %v1108_v62 = vsel %vm836_vm10, %v6388_v8, 0.0  ;;  %v1908_v47 = vsel %vm1636_vm11, %v6400_v12, 0.0 }
 0x110   : > { %11513 = vst [vmem:[#allocation15_spill] sm:$0xff] %v7183_v21  ;;  %v2708_v55 = vsel %vm2436_vm12, %v6414_v17, 0.0  ;;  %5620 = vmatpush1.msra.mxu0 %v5367_v29  ;;  %v2164_v20 = vadd.f32 %v1908_v47, %v1108_v62  ;;  %vm3236_vm13 = vcmp.eq.s32.totalorder %v7174_v39, %v6417_v51  ;;  %vm4036_vm14 = vcmp.eq.s32.totalorder %v7174_v39, %v6403_v13 }
 0x111   : > { %vm4836_vm15 = vcmp.eq.s32.totalorder %v7174_v39, %v6451_v46  ;;  %v4695_v53 = vadd.f32 %v4439_v23, %v3895_v27  ;;  %v3508_v24 = vsel %vm3236_vm13, %v6423_v19, 0.0  ;;  %v4308_v3 = vsel %vm4036_vm14, %v6406_v15, 0.0 }
 0x112   : > { %v5108_v30 = vsel %vm4836_vm15, %v6454_v33, 0.0  ;;  %v2964_v44 = vadd.f32 %v2708_v55, %v2164_v20  ;;  %vm964_vm5 = vcmp.eq.s32.totalorder %v7177_v52, %v6385_v7  ;;  %vm1764_vm6 = vcmp.eq.s32.totalorder %v7177_v52, %v6397_v11 }
 0x113   : > { %vm2564_vm0 = vcmp.eq.s32.totalorder %v7177_v52, %v6411_v16  ;;  %v5495_v29 = vadd.f32 %v5239_v18, %v4695_v53  ;;  %v1236_v62 = vsel %vm964_vm5, %v6388_v8, 0.0  ;;  %v2036_v23 = vsel %vm1764_vm6, %v6400_v12, 0.0 }
 0x114   : > { %v2836_v27 = vsel %vm2564_vm0, %v6414_v17, 0.0  ;;  %v3764_v47 = vadd.f32 %v3508_v24, %v2964_v44  ;;  %v2292_v50 = vadd.f32 %v2036_v23, %v1236_v62  ;;  %vm3364_vm1 = vcmp.eq.s32.totalorder %v7177_v52, %v6417_v51 }
 0x115   : > { %vm4164_vm2 = vcmp.eq.s32.totalorder %v7177_v52, %v6403_v13  ;;  %5691 = vmatpush1.msra.mxu1 %v5495_v29  ;;  %v3636_v55 = vsel %vm3364_vm1, %v6423_v19, 0.0  ;;  %vm4964_vm3 = vcmp.eq.s32.totalorder %v7177_v52, %v6451_v46  ;;  %vm835_vm4 = vcmp.eq.s32.totalorder %v7174_v39, %v6442_v37 }
 0x116   : > { %v4436_v20 = vsel %vm4164_vm2, %v6406_v15, 0.0  ;;  %v4564_v18 = vadd.f32 %v4308_v3, %v3764_v47  ;;  %v3092_v44 = vadd.f32 %v2836_v27, %v2292_v50  ;;  %v5236_v53 = vsel %vm4964_vm3, %v6454_v33, 0.0 }
 0x117   : > { %v1107_v24 = vsel %vm835_vm4, %v6445_v32, 0.0  ;;  %vm1635_vm7 = vcmp.eq.s32.totalorder %v7174_v39, %v6448_v40  ;;  %vm2435_vm8 = vcmp.eq.s32.totalorder %v7174_v39, %v6486_v28  ;;  %vm3235_vm9 = vcmp.eq.s32.totalorder %v7174_v39, %v6493_v36 }
 0x118   : > { %vm4035_vm10 = vcmp.eq.s32.totalorder %v7174_v39, %v6501_v22  ;;  %v5364_v29 = vadd.f32 %v5108_v30, %v4564_v18  ;;  %v3892_v62 = vadd.f32 %v3636_v55, %v3092_v44  ;;  %v1907_v50 = vsel %vm1635_vm7, %v6457_v45, 0.0 }
 0x119   : > { %v2707_v3 = vsel %vm2435_vm8, %v6489_v58, 0.0  ;;  %v2163_v23 = vadd.f32 %v1907_v50, %v1107_v24  ;;  %v3507_v27 = vsel %vm3235_vm9, %v6496_v31, 0.0  ;;  %v4307_v47 = vsel %vm4035_vm10, %v6504_v61, 0.0 }
 0x11a   : > { %vm4835_vm11 = vcmp.eq.s32.totalorder %v7174_v39, %v6510_v0  ;;  %5621 = vmatprep.subr.mxu0 %v5364_v29  ;;  %v4692_v49 = vadd.f32 %v4436_v20, %v3892_v62  ;;  %vm963_vm12 = vcmp.eq.s32.totalorder %v7177_v52, %v6442_v37  ;;  %vm1763_vm13 = vcmp.eq.s32.totalorder %v7177_v52, %v6448_v40 }
 0x11b   : > { %v5107_v43 = vsel %vm4835_vm11, %v6516_v2, 0.0  ;;  %v2963_v30 = vadd.f32 %v2707_v3, %v2163_v23  ;;  %v1235_v55 = vsel %vm963_vm12, %v6445_v32, 0.0  ;;  %v2035_v18 = vsel %vm1763_vm13, %v6457_v45, 0.0 }
 0x11c   : > { %vm2563_vm14 = vcmp.eq.s32.totalorder %v7177_v52, %v6486_v28  ;;  %v5492_v44 = vadd.f32 %v5236_v53, %v4692_v49  ;;  %v2291_v24 = vadd.f32 %v2035_v18, %v1235_v55  ;;  %vm3363_vm15 = vcmp.eq.s32.totalorder %v7177_v52, %v6493_v36 }
 0x11d   : > { %v2835_v20 = vsel %vm2563_vm14, %v6489_v58, 0.0  ;;  %v3763_v29 = vadd.f32 %v3507_v27, %v2963_v30  ;;  %v3635_v62 = vsel %vm3363_vm15, %v6496_v31, 0.0  ;;  %vm4163_vm5 = vcmp.eq.s32.totalorder %v7177_v52, %v6501_v22 }
 0x11e   : > { %vm4963_vm6 = vcmp.eq.s32.totalorder %v7177_v52, %v6510_v0  ;;  %5692 = vmatprep.subr.mxu1 %v5492_v44  ;;  %v3091_v50 = vadd.f32 %v2835_v20, %v2291_v24  ;;  %v4435_v3 = vsel %vm4163_vm5, %v6504_v61, 0.0  ;;  %vm832_vm0 = vcmp.eq.s32.totalorder %v7180_v54, %v6385_v7 }
 0x11f   : > { %v5235_v49 = vsel %vm4963_vm6, %v6516_v2, 0.0  ;;  %v4563_v53 = vadd.f32 %v4307_v47, %v3763_v29  ;;  %v1104_v23 = vsel %vm832_vm0, %v6388_v8, 0.0  ;;  %vm1632_vm1 = vcmp.eq.s32.totalorder %v7180_v54, %v6397_v11 }
 0x120   : > { %vm2432_vm2 = vcmp.eq.s32.totalorder %v7180_v54, %v6411_v16  ;;  %v3891_v27 = vadd.f32 %v3635_v62, %v3091_v50  ;;  %v1904_v30 = vsel %vm1632_vm1, %v6400_v12, 0.0  ;;  %vm3232_vm3 = vcmp.eq.s32.totalorder %v7180_v54, %v6417_v51 }
 0x121   : > { %v2704_v55 = vsel %vm2432_vm2, %v6414_v17, 0.0  ;;  %v5363_v18 = vadd.f32 %v5107_v43, %v4563_v53  ;;  %v2160_v44 = vadd.f32 %v1904_v30, %v1104_v23  ;;  %v3504_v47 = vsel %vm3232_vm3, %v6423_v19, 0.0 }
 0x122   : > { %vm4032_vm4 = vcmp.eq.s32.totalorder %v7180_v54, %v6403_v13  ;;  %v4691_v24 = vadd.f32 %v4435_v3, %v3891_v27  ;;  %vm4832_vm7 = vcmp.eq.s32.totalorder %v7180_v54, %v6451_v46  ;;  %vm960_vm8 = vcmp.eq.s32.totalorder %v7183_v21, %v6385_v7 }
 0x123   : > { %v4304_v20 = vsel %vm4032_vm4, %v6406_v15, 0.0  ;;  %5622 = vmatpush1.msra.mxu0 %v5363_v18  ;;  %v2960_v29 = vadd.f32 %v2704_v55, %v2160_v44  ;;  %v5104_v62 = vsel %vm4832_vm7, %v6454_v33, 0.0  ;;  %v1232_v43 = vsel %vm960_vm8, %v6388_v8, 0.0 }
 0x124   : > { %vm1760_vm9 = vcmp.eq.s32.totalorder %v7183_v21, %v6397_v11  ;;  %v5491_v50 = vadd.f32 %v5235_v49, %v4691_v24  ;;  %vm2560_vm10 = vcmp.eq.s32.totalorder %v7183_v21, %v6411_v16  ;;  %vm3360_vm11 = vcmp.eq.s32.totalorder %v7183_v21, %v6417_v51 }
 0x125   : > { %v2032_v3 = vsel %vm1760_vm9, %v6400_v12, 0.0  ;;  %v3760_v53 = vadd.f32 %v3504_v47, %v2960_v29  ;;  %v2832_v27 = vsel %vm2560_vm10, %v6414_v17, 0.0  ;;  %v3632_v30 = vsel %vm3360_vm11, %v6423_v19, 0.0 }
 0x126   : > { %v2288_v23 = vadd.f32 %v2032_v3, %v1232_v43  ;;  %5693 = vmatpush1.msra.mxu1 %v5491_v50  ;;  %vm4160_vm12 = vcmp.eq.s32.totalorder %v7183_v21, %v6403_v13  ;;  %vm4960_vm13 = vcmp.eq.s32.totalorder %v7183_v21, %v6451_v46  ;;  %vm831_vm14 = vcmp.eq.s32.totalorder %v7180_v54, %v6442_v37 }
 0x127   : > { %vm1631_vm15 = vcmp.eq.s32.totalorder %v7180_v54, %v6448_v40  ;;  %v4560_v49 = vadd.f32 %v4304_v20, %v3760_v53  ;;  %v4432_v18 = vsel %vm4160_vm12, %v6406_v15, 0.0  ;;  %v5232_v44 = vsel %vm4960_vm13, %v6454_v33, 0.0 }
 0x128   : > { %v3088_v55 = vadd.f32 %v2832_v27, %v2288_v23  ;;  %v1103_v47 = vsel %vm831_vm14, %v6445_v32, 0.0  ;;  %v1903_v24 = vsel %vm1631_vm15, %v6457_v45, 0.0  ;;  %vm2431_vm5 = vcmp.eq.s32.totalorder %v7180_v54, %v6486_v28 }
 0x129   : > { %vm3231_vm6 = vcmp.eq.s32.totalorder %v7180_v54, %v6493_v36  ;;  %v5360_v29 = vadd.f32 %v5104_v62, %v4560_v49  ;;  %v2159_v50 = vadd.f32 %v1903_v24, %v1103_v47  ;;  %v2703_v20 = vsel %vm2431_vm5, %v6489_v58, 0.0 }
 0x12a   : > { %v3888_v43 = vadd.f32 %v3632_v30, %v3088_v55  ;;  %v3503_v3 = vsel %vm3231_vm6, %v6496_v31, 0.0  ;;  %vm4031_vm0 = vcmp.eq.s32.totalorder %v7180_v54, %v6501_v22  ;;  %vm4831_vm1 = vcmp.eq.s32.totalorder %v7180_v54, %v6510_v0 }
 0x12b   : > { %vm959_vm2 = vcmp.eq.s32.totalorder %v7183_v21, %v6442_v37  ;;  %5623 = vmatprep.subr.mxu0 %v5360_v29  ;;  %v2959_v23 = vadd.f32 %v2703_v20, %v2159_v50  ;;  %v4303_v62 = vsel %vm4031_vm0, %v6504_v61, 0.0  ;;  %v5103_v27 = vsel %vm4831_vm1, %v6516_v2, 0.0 }
 0x12c   : > { %v4688_v53 = vadd.f32 %v4432_v18, %v3888_v43  ;;  %v1231_v30 = vsel %vm959_vm2, %v6445_v32, 0.0  ;;  %vm1759_vm3 = vcmp.eq.s32.totalorder %v7183_v21, %v6448_v40  ;;  %vm2559_vm4 = vcmp.eq.s32.totalorder %v7183_v21, %v6486_v28 }
 0x12d   : > { %vm3359_vm7 = vcmp.eq.s32.totalorder %v7183_v21, %v6493_v36  ;;  %v3759_v55 = vadd.f32 %v3503_v3, %v2959_v23  ;;  %v2031_v18 = vsel %vm1759_vm3, %v6457_v45, 0.0  ;;  %v2831_v47 = vsel %vm2559_vm4, %v6489_v58, 0.0 }
 0x12e   : > { %v5488_v49 = vadd.f32 %v5232_v44, %v4688_v53  ;;  %v2287_v24 = vadd.f32 %v2031_v18, %v1231_v30  ;;  %v3631_v29 = vsel %vm3359_vm7, %v6496_v31, 0.0  ;;  %vm4159_vm8 = vcmp.eq.s32.totalorder %v7183_v21, %v6501_v22 }
 0x12f   : > { %vm4959_vm9 = vcmp.eq.s32.totalorder %v7183_v21, %v6510_v0  ;;  %v4559_v43 = vadd.f32 %v4303_v62, %v3759_v55  ;;  %v4431_v50 = vsel %vm4159_vm8, %v6504_v61, 0.0  ;;  %v7330_v20 = vadd.s32 32, %v6211_v14 }
 0x130   : > { %5694 = vmatprep.subr.mxu1 %v5488_v49  ;;  %v5231_v44 = vsel %vm4959_vm9, %v6516_v2, 0.0  ;;  %v3087_v3 = vadd.f32 %v2831_v47, %v2287_v24  ;;  %v7333_v53 = vadd.s32 288, %v6211_v14  ;;  %v7336_v23 = vadd.s32 24, %v6211_v14 }
 0x131   : > { %11514 = vst [vmem:[#allocation16_spill] sm:$0xff] %v7330_v20  ;;  %v7339_v30 = vadd.s32 280, %v6211_v14  ;;  %v5359_v18 = vadd.f32 %v5103_v27, %v4559_v43  ;;  %vm828_vm10 = vcmp.eq.s32.totalorder %v7330_v20, %v6385_v7  ;;  %vm1628_vm11 = vcmp.eq.s32.totalorder %v7330_v20, %v6397_v11 }
 0x132   : > { %11515 = vst [vmem:[#allocation17_spill] sm:$0xff] %v7333_v53  ;;  %11516 = vst [vmem:[#allocation18_spill] sm:$0xff] %v7336_v23  ;;  %vm2428_vm12 = vcmp.eq.s32.totalorder %v7330_v20, %v6411_v16  ;;  %v3887_v62 = vadd.f32 %v3631_v29, %v3087_v3  ;;  %v1100_v49 = vsel %vm828_vm10, %v6388_v8, 0.0  ;;  %v1900_v55 = vsel %vm1628_vm11, %v6400_v12, 0.0 }
 0x133   : > { %11517 = vst [vmem:[#allocation19_spill] sm:$0xff] %v7339_v30  ;;  %v2700_v47 = vsel %vm2428_vm12, %v6414_v17, 0.0  ;;  %5624 = vmatpush1.msra.mxu0 %v5359_v18  ;;  %v2156_v24 = vadd.f32 %v1900_v55, %v1100_v49  ;;  %vm3228_vm13 = vcmp.eq.s32.totalorder %v7330_v20, %v6417_v51  ;;  %vm4028_vm14 = vcmp.eq.s32.totalorder %v7330_v20, %v6403_v13 }
 0x134   : > { %vm4828_vm15 = vcmp.eq.s32.totalorder %v7330_v20, %v6451_v46  ;;  %v4687_v27 = vadd.f32 %v4431_v50, %v3887_v62  ;;  %v3500_v29 = vsel %vm3228_vm13, %v6423_v19, 0.0  ;;  %v4300_v43 = vsel %vm4028_vm14, %v6406_v15, 0.0 }
 0x135   : > { %v5100_v3 = vsel %vm4828_vm15, %v6454_v33, 0.0  ;;  %v2956_v21 = vadd.f32 %v2700_v47, %v2156_v24  ;;  %vm956_vm5 = vcmp.eq.s32.totalorder %v7333_v53, %v6385_v7  ;;  %vm1756_vm6 = vcmp.eq.s32.totalorder %v7333_v53, %v6397_v11 }
 0x136   : > { %vm2556_vm0 = vcmp.eq.s32.totalorder %v7333_v53, %v6411_v16  ;;  %v5487_v18 = vadd.f32 %v5231_v44, %v4687_v27  ;;  %v1228_v49 = vsel %vm956_vm5, %v6388_v8, 0.0  ;;  %v2028_v50 = vsel %vm1756_vm6, %v6400_v12, 0.0 }
 0x137   : > { %v2828_v62 = vsel %vm2556_vm0, %v6414_v17, 0.0  ;;  %v3756_v55 = vadd.f32 %v3500_v29, %v2956_v21  ;;  %v2284_v54 = vadd.f32 %v2028_v50, %v1228_v49  ;;  %vm3356_vm1 = vcmp.eq.s32.totalorder %v7333_v53, %v6417_v51 }
 0x138   : > { %vm4156_vm2 = vcmp.eq.s32.totalorder %v7333_v53, %v6403_v13  ;;  %5695 = vmatpush1.msra.mxu1 %v5487_v18  ;;  %v3628_v47 = vsel %vm3356_vm1, %v6423_v19, 0.0  ;;  %vm4956_vm3 = vcmp.eq.s32.totalorder %v7333_v53, %v6451_v46  ;;  %vm827_vm4 = vcmp.eq.s32.totalorder %v7330_v20, %v6442_v37 }
 0x139   : > { %v4428_v24 = vsel %vm4156_vm2, %v6406_v15, 0.0  ;;  %v4556_v44 = vadd.f32 %v4300_v43, %v3756_v55  ;;  %v3084_v21 = vadd.f32 %v2828_v62, %v2284_v54  ;;  %v5228_v27 = vsel %vm4956_vm3, %v6454_v33, 0.0 }
 0x13a   : > { %v1099_v29 = vsel %vm827_vm4, %v6445_v32, 0.0  ;;  %vm1627_vm7 = vcmp.eq.s32.totalorder %v7330_v20, %v6448_v40  ;;  %vm2427_vm8 = vcmp.eq.s32.totalorder %v7330_v20, %v6486_v28  ;;  %vm3227_vm9 = vcmp.eq.s32.totalorder %v7330_v20, %v6493_v36 }
 0x13b   : > { %vm4027_vm10 = vcmp.eq.s32.totalorder %v7330_v20, %v6501_v22  ;;  %v5356_v18 = vadd.f32 %v5100_v3, %v4556_v44  ;;  %v3884_v49 = vadd.f32 %v3628_v47, %v3084_v21  ;;  %v1899_v54 = vsel %vm1627_vm7, %v6457_v45, 0.0 }
 0x13c   : > { %v2699_v43 = vsel %vm2427_vm8, %v6489_v58, 0.0  ;;  %v2155_v50 = vadd.f32 %v1899_v54, %v1099_v29  ;;  %v3499_v62 = vsel %vm3227_vm9, %v6496_v31, 0.0  ;;  %v4299_v55 = vsel %vm4027_vm10, %v6504_v61, 0.0 }
 0x13d   : > { %vm4827_vm11 = vcmp.eq.s32.totalorder %v7330_v20, %v6510_v0  ;;  %5625 = vmatprep.subr.mxu0 %v5356_v18  ;;  %v4684_v52 = vadd.f32 %v4428_v24, %v3884_v49  ;;  %vm955_vm12 = vcmp.eq.s32.totalorder %v7333_v53, %v6442_v37  ;;  %vm1755_vm13 = vcmp.eq.s32.totalorder %v7333_v53, %v6448_v40 }
 0x13e   : > { %v5099_v39 = vsel %vm4827_vm11, %v6516_v2, 0.0  ;;  %v2955_v3 = vadd.f32 %v2699_v43, %v2155_v50  ;;  %v1227_v47 = vsel %vm955_vm12, %v6445_v32, 0.0  ;;  %v2027_v44 = vsel %vm1755_vm13, %v6457_v45, 0.0 }
 0x13f   : > { %vm2555_vm14 = vcmp.eq.s32.totalorder %v7333_v53, %v6486_v28  ;;  %v5484_v21 = vadd.f32 %v5228_v27, %v4684_v52  ;;  %v2283_v29 = vadd.f32 %v2027_v44, %v1227_v47  ;;  %vm3355_vm15 = vcmp.eq.s32.totalorder %v7333_v53, %v6493_v36 }
 0x140   : > { %v2827_v24 = vsel %vm2555_vm14, %v6489_v58, 0.0  ;;  %v3755_v18 = vadd.f32 %v3499_v62, %v2955_v3  ;;  %v3627_v49 = vsel %vm3355_vm15, %v6496_v31, 0.0  ;;  %vm4155_vm5 = vcmp.eq.s32.totalorder %v7333_v53, %v6501_v22 }
 0x141   : > { %vm4955_vm6 = vcmp.eq.s32.totalorder %v7333_v53, %v6510_v0  ;;  %5696 = vmatprep.subr.mxu1 %v5484_v21  ;;  %v3083_v54 = vadd.f32 %v2827_v24, %v2283_v29  ;;  %v4427_v43 = vsel %vm4155_vm5, %v6504_v61, 0.0  ;;  %vm824_vm0 = vcmp.eq.s32.totalorder %v7336_v23, %v6385_v7 }
 0x142   : > { %v5227_v52 = vsel %vm4955_vm6, %v6516_v2, 0.0  ;;  %v4555_v27 = vadd.f32 %v4299_v55, %v3755_v18  ;;  %v1096_v50 = vsel %vm824_vm0, %v6388_v8, 0.0  ;;  %vm1624_vm1 = vcmp.eq.s32.totalorder %v7336_v23, %v6397_v11 }
 0x143   : > { %vm2424_vm2 = vcmp.eq.s32.totalorder %v7336_v23, %v6411_v16  ;;  %v3883_v62 = vadd.f32 %v3627_v49, %v3083_v54  ;;  %v1896_v3 = vsel %vm1624_vm1, %v6400_v12, 0.0  ;;  %vm3224_vm3 = vcmp.eq.s32.totalorder %v7336_v23, %v6417_v51 }
 0x144   : > { %v2696_v47 = vsel %vm2424_vm2, %v6414_v17, 0.0  ;;  %v5355_v44 = vadd.f32 %v5099_v39, %v4555_v27  ;;  %v2152_v21 = vadd.f32 %v1896_v3, %v1096_v50  ;;  %v3496_v55 = vsel %vm3224_vm3, %v6423_v19, 0.0 }
 0x145   : > { %vm4024_vm4 = vcmp.eq.s32.totalorder %v7336_v23, %v6403_v13  ;;  %v4683_v29 = vadd.f32 %v4427_v43, %v3883_v62  ;;  %vm4824_vm7 = vcmp.eq.s32.totalorder %v7336_v23, %v6451_v46  ;;  %vm952_vm8 = vcmp.eq.s32.totalorder %v7339_v30, %v6385_v7 }
 0x146   : > { %v4296_v24 = vsel %vm4024_vm4, %v6406_v15, 0.0  ;;  %5626 = vmatpush1.msra.mxu0 %v5355_v44  ;;  %v2952_v18 = vadd.f32 %v2696_v47, %v2152_v21  ;;  %v5096_v49 = vsel %vm4824_vm7, %v6454_v33, 0.0  ;;  %v1224_v39 = vsel %vm952_vm8, %v6388_v8, 0.0 }
 0x147   : > { %vm1752_vm9 = vcmp.eq.s32.totalorder %v7339_v30, %v6397_v11  ;;  %v5483_v54 = vadd.f32 %v5227_v52, %v4683_v29  ;;  %vm2552_vm10 = vcmp.eq.s32.totalorder %v7339_v30, %v6411_v16  ;;  %vm3352_vm11 = vcmp.eq.s32.totalorder %v7339_v30, %v6417_v51 }
 0x148   : > { %v2024_v43 = vsel %vm1752_vm9, %v6400_v12, 0.0  ;;  %v3752_v27 = vadd.f32 %v3496_v55, %v2952_v18  ;;  %v2824_v62 = vsel %vm2552_vm10, %v6414_v17, 0.0  ;;  %v3624_v3 = vsel %vm3352_vm11, %v6423_v19, 0.0 }
 0x149   : > { %v2280_v50 = vadd.f32 %v2024_v43, %v1224_v39  ;;  %5697 = vmatpush1.msra.mxu1 %v5483_v54  ;;  %vm4152_vm12 = vcmp.eq.s32.totalorder %v7339_v30, %v6403_v13  ;;  %vm4952_vm13 = vcmp.eq.s32.totalorder %v7339_v30, %v6451_v46  ;;  %vm823_vm14 = vcmp.eq.s32.totalorder %v7336_v23, %v6442_v37 }
 0x14a   : > { %vm1623_vm15 = vcmp.eq.s32.totalorder %v7336_v23, %v6448_v40  ;;  %v4552_v52 = vadd.f32 %v4296_v24, %v3752_v27  ;;  %v4424_v44 = vsel %vm4152_vm12, %v6406_v15, 0.0  ;;  %v5224_v21 = vsel %vm4952_vm13, %v6454_v33, 0.0 }
 0x14b   : > { %v3080_v47 = vadd.f32 %v2824_v62, %v2280_v50  ;;  %v1095_v55 = vsel %vm823_vm14, %v6445_v32, 0.0  ;;  %v1895_v29 = vsel %vm1623_vm15, %v6457_v45, 0.0  ;;  %vm2423_vm5 = vcmp.eq.s32.totalorder %v7336_v23, %v6486_v28 }
 0x14c   : > { %vm3223_vm6 = vcmp.eq.s32.totalorder %v7336_v23, %v6493_v36  ;;  %v5352_v18 = vadd.f32 %v5096_v49, %v4552_v52  ;;  %v2151_v54 = vadd.f32 %v1895_v29, %v1095_v55  ;;  %v2695_v24 = vsel %vm2423_vm5, %v6489_v58, 0.0 }
 0x14d   : > { %v3880_v39 = vadd.f32 %v3624_v3, %v3080_v47  ;;  %v3495_v43 = vsel %vm3223_vm6, %v6496_v31, 0.0  ;;  %vm4023_vm0 = vcmp.eq.s32.totalorder %v7336_v23, %v6501_v22  ;;  %vm4823_vm1 = vcmp.eq.s32.totalorder %v7336_v23, %v6510_v0 }
 0x14e   : > { %vm951_vm2 = vcmp.eq.s32.totalorder %v7339_v30, %v6442_v37  ;;  %5627 = vmatprep.subr.mxu0 %v5352_v18  ;;  %v2951_v50 = vadd.f32 %v2695_v24, %v2151_v54  ;;  %v4295_v49 = vsel %vm4023_vm0, %v6504_v61, 0.0  ;;  %v5095_v62 = vsel %vm4823_vm1, %v6516_v2, 0.0 }
 0x14f   : > { %v4680_v27 = vadd.f32 %v4424_v44, %v3880_v39  ;;  %v1223_v3 = vsel %vm951_vm2, %v6445_v32, 0.0  ;;  %vm1751_vm3 = vcmp.eq.s32.totalorder %v7339_v30, %v6448_v40  ;;  %vm2551_vm4 = vcmp.eq.s32.totalorder %v7339_v30, %v6486_v28 }
 0x150   : > { %vm3351_vm7 = vcmp.eq.s32.totalorder %v7339_v30, %v6493_v36  ;;  %v3751_v47 = vadd.f32 %v3495_v43, %v2951_v50  ;;  %v2023_v44 = vsel %vm1751_vm3, %v6457_v45, 0.0  ;;  %v2823_v55 = vsel %vm2551_vm4, %v6489_v58, 0.0 }
 0x151   : > { %v5480_v52 = vadd.f32 %v5224_v21, %v4680_v27  ;;  %v2279_v29 = vadd.f32 %v2023_v44, %v1223_v3  ;;  %v3623_v18 = vsel %vm3351_vm7, %v6496_v31, 0.0  ;;  %vm4151_vm8 = vcmp.eq.s32.totalorder %v7339_v30, %v6501_v22 }
 0x152   : > { %vm4951_vm9 = vcmp.eq.s32.totalorder %v7339_v30, %v6510_v0  ;;  %v4551_v39 = vadd.f32 %v4295_v49, %v3751_v47  ;;  %v4423_v54 = vsel %vm4151_vm8, %v6504_v61, 0.0  ;;  %v7486_v24 = vadd.s32 16, %v6211_v14 }
 0x153   : > { %5698 = vmatprep.subr.mxu1 %v5480_v52  ;;  %v5223_v21 = vsel %vm4951_vm9, %v6516_v2, 0.0  ;;  %v3079_v43 = vadd.f32 %v2823_v55, %v2279_v29  ;;  %v7489_v27 = vadd.s32 272, %v6211_v14  ;;  %v7492_v50 = vadd.s32 8, %v6211_v14 }
 0x154   : > { %v7495_v3 = vadd.s32 264, %v6211_v14  ;;  %v5351_v44 = vadd.f32 %v5095_v62, %v4551_v39  ;;  %vm820_vm10 = vcmp.eq.s32.totalorder %v7486_v24, %v6385_v7  ;;  %vm1620_vm11 = vcmp.eq.s32.totalorder %v7486_v24, %v6397_v11 }
 0x155   : > { %11518 = vst [vmem:[#allocation20_spill] sm:$0xff] %v7489_v27  ;;  %11519 = vst [vmem:[#allocation21_spill] sm:$0xff] %v7492_v50  ;;  %vm2420_vm12 = vcmp.eq.s32.totalorder %v7486_v24, %v6411_v16  ;;  %v3879_v49 = vadd.f32 %v3623_v18, %v3079_v43  ;;  %v1092_v52 = vsel %vm820_vm10, %v6388_v8, 0.0  ;;  %v1892_v47 = vsel %vm1620_vm11, %v6400_v12, 0.0 }
 0x156   : > { %11520 = vst [vmem:[#allocation22_spill] sm:$0xff] %v7495_v3  ;;  %v2692_v55 = vsel %vm2420_vm12, %v6414_v17, 0.0  ;;  %5628 = vmatpush1.msra.mxu0 %v5351_v44  ;;  %v2148_v29 = vadd.f32 %v1892_v47, %v1092_v52  ;;  %vm3220_vm13 = vcmp.eq.s32.totalorder %v7486_v24, %v6417_v51  ;;  %vm4020_vm14 = vcmp.eq.s32.totalorder %v7486_v24, %v6403_v13 }
 0x157   : > { %vm4820_vm15 = vcmp.eq.s32.totalorder %v7486_v24, %v6451_v46  ;;  %v4679_v62 = vadd.f32 %v4423_v54, %v3879_v49  ;;  %v3492_v18 = vsel %vm3220_vm13, %v6423_v19, 0.0  ;;  %v4292_v39 = vsel %vm4020_vm14, %v6406_v15, 0.0 }
 0x158   : > { %v5092_v43 = vsel %vm4820_vm15, %v6454_v33, 0.0  ;;  %v2948_v30 = vadd.f32 %v2692_v55, %v2148_v29  ;;  %vm948_vm5 = vcmp.eq.s32.totalorder %v7489_v27, %v6385_v7  ;;  %vm1748_vm6 = vcmp.eq.s32.totalorder %v7489_v27, %v6397_v11 }
 0x159   : > { %vm2548_vm0 = vcmp.eq.s32.totalorder %v7489_v27, %v6411_v16  ;;  %v5479_v44 = vadd.f32 %v5223_v21, %v4679_v62  ;;  %v1220_v52 = vsel %vm948_vm5, %v6388_v8, 0.0  ;;  %v2020_v54 = vsel %vm1748_vm6, %v6400_v12, 0.0 }
 0x15a   : > { %v2820_v49 = vsel %vm2548_vm0, %v6414_v17, 0.0  ;;  %v3748_v47 = vadd.f32 %v3492_v18, %v2948_v30  ;;  %v2276_v23 = vadd.f32 %v2020_v54, %v1220_v52  ;;  %vm3348_vm1 = vcmp.eq.s32.totalorder %v7489_v27, %v6417_v51 }
 0x15b   : > { %vm4148_vm2 = vcmp.eq.s32.totalorder %v7489_v27, %v6403_v13  ;;  %5699 = vmatpush1.msra.mxu1 %v5479_v44  ;;  %v3620_v55 = vsel %vm3348_vm1, %v6423_v19, 0.0  ;;  %vm4948_vm3 = vcmp.eq.s32.totalorder %v7489_v27, %v6451_v46  ;;  %vm819_vm4 = vcmp.eq.s32.totalorder %v7486_v24, %v6442_v37 }
 0x15c   : > { %v4420_v29 = vsel %vm4148_vm2, %v6406_v15, 0.0  ;;  %v4548_v21 = vadd.f32 %v4292_v39, %v3748_v47  ;;  %v3076_v30 = vadd.f32 %v2820_v49, %v2276_v23  ;;  %v5220_v62 = vsel %vm4948_vm3, %v6454_v33, 0.0 }
 0x15d   : > { %v1091_v18 = vsel %vm819_vm4, %v6445_v32, 0.0  ;;  %vm1619_vm7 = vcmp.eq.s32.totalorder %v7486_v24, %v6448_v40  ;;  %vm2419_vm8 = vcmp.eq.s32.totalorder %v7486_v24, %v6486_v28  ;;  %vm3219_vm9 = vcmp.eq.s32.totalorder %v7486_v24, %v6493_v36 }
 0x15e   : > { %vm4019_vm10 = vcmp.eq.s32.totalorder %v7486_v24, %v6501_v22  ;;  %v5348_v44 = vadd.f32 %v5092_v43, %v4548_v21  ;;  %v3876_v52 = vadd.f32 %v3620_v55, %v3076_v30  ;;  %v1891_v23 = vsel %vm1619_vm7, %v6457_v45, 0.0 }
 0x15f   : > { %v2691_v39 = vsel %vm2419_vm8, %v6489_v58, 0.0  ;;  %v2147_v54 = vadd.f32 %v1891_v23, %v1091_v18  ;;  %v3491_v49 = vsel %vm3219_vm9, %v6496_v31, 0.0  ;;  %v4291_v47 = vsel %vm4019_vm10, %v6504_v61, 0.0 }
 0x160   : > { %vm4819_vm11 = vcmp.eq.s32.totalorder %v7486_v24, %v6510_v0  ;;  %5629 = vmatprep.subr.mxu0 %v5348_v44  ;;  %v4676_v53 = vadd.f32 %v4420_v29, %v3876_v52  ;;  %vm947_vm12 = vcmp.eq.s32.totalorder %v7489_v27, %v6442_v37  ;;  %vm1747_vm13 = vcmp.eq.s32.totalorder %v7489_v27, %v6448_v40 }
 0x161   : > { %v5091_v20 = vsel %vm4819_vm11, %v6516_v2, 0.0  ;;  %v2947_v43 = vadd.f32 %v2691_v39, %v2147_v54  ;;  %v1219_v55 = vsel %vm947_vm12, %v6445_v32, 0.0  ;;  %v2019_v21 = vsel %vm1747_vm13, %v6457_v45, 0.0 }
 0x162   : > { %vm2547_vm14 = vcmp.eq.s32.totalorder %v7489_v27, %v6486_v28  ;;  %v5476_v30 = vadd.f32 %v5220_v62, %v4676_v53  ;;  %v2275_v18 = vadd.f32 %v2019_v21, %v1219_v55  ;;  %vm3347_vm15 = vcmp.eq.s32.totalorder %v7489_v27, %v6493_v36 }
 0x163   : > { %v2819_v29 = vsel %vm2547_vm14, %v6489_v58, 0.0  ;;  %v3747_v44 = vadd.f32 %v3491_v49, %v2947_v43  ;;  %v3619_v52 = vsel %vm3347_vm15, %v6496_v31, 0.0  ;;  %vm4147_vm5 = vcmp.eq.s32.totalorder %v7489_v27, %v6501_v22 }
 0x164   : > { %vm4947_vm6 = vcmp.eq.s32.totalorder %v7489_v27, %v6510_v0  ;;  %5700 = vmatprep.subr.mxu1 %v5476_v30  ;;  %v3075_v23 = vadd.f32 %v2819_v29, %v2275_v18  ;;  %v4419_v39 = vsel %vm4147_vm5, %v6504_v61, 0.0  ;;  %vm816_vm0 = vcmp.eq.s32.totalorder %v7492_v50, %v6385_v7 }
 0x165   : > { %v5219_v53 = vsel %vm4947_vm6, %v6516_v2, 0.0  ;;  %v4547_v62 = vadd.f32 %v4291_v47, %v3747_v44  ;;  %v1088_v54 = vsel %vm816_vm0, %v6388_v8, 0.0  ;;  %vm1616_vm1 = vcmp.eq.s32.totalorder %v7492_v50, %v6397_v11 }
 0x166   : > { %vm2416_vm2 = vcmp.eq.s32.totalorder %v7492_v50, %v6411_v16  ;;  %v3875_v49 = vadd.f32 %v3619_v52, %v3075_v23  ;;  %v1888_v43 = vsel %vm1616_vm1, %v6400_v12, 0.0  ;;  %vm3216_vm3 = vcmp.eq.s32.totalorder %v7492_v50, %v6417_v51 }
 0x167   : > { %v2688_v55 = vsel %vm2416_vm2, %v6414_v17, 0.0  ;;  %v5347_v21 = vadd.f32 %v5091_v20, %v4547_v62  ;;  %v2144_v30 = vadd.f32 %v1888_v43, %v1088_v54  ;;  %v3488_v47 = vsel %vm3216_vm3, %v6423_v19, 0.0 }
 0x168   : > { %vm4016_vm4 = vcmp.eq.s32.totalorder %v7492_v50, %v6403_v13  ;;  %v4675_v18 = vadd.f32 %v4419_v39, %v3875_v49  ;;  %vm4816_vm7 = vcmp.eq.s32.totalorder %v7492_v50, %v6451_v46  ;;  %vm944_vm8 = vcmp.eq.s32.totalorder %v7495_v3, %v6385_v7 }
 0x169   : > { %v4288_v29 = vsel %vm4016_vm4, %v6406_v15, 0.0  ;;  %5630 = vmatpush1.msra.mxu0 %v5347_v21  ;;  %v2944_v44 = vadd.f32 %v2688_v55, %v2144_v30  ;;  %v5088_v52 = vsel %vm4816_vm7, %v6454_v33, 0.0  ;;  %v1216_v20 = vsel %vm944_vm8, %v6388_v8, 0.0 }
 0x16a   : > { %vm1744_vm9 = vcmp.eq.s32.totalorder %v7495_v3, %v6397_v11  ;;  %v5475_v23 = vadd.f32 %v5219_v53, %v4675_v18  ;;  %vm2544_vm10 = vcmp.eq.s32.totalorder %v7495_v3, %v6411_v16  ;;  %vm3344_vm11 = vcmp.eq.s32.totalorder %v7495_v3, %v6417_v51 }
 0x16b   : > { %v2016_v39 = vsel %vm1744_vm9, %v6400_v12, 0.0  ;;  %v3744_v62 = vadd.f32 %v3488_v47, %v2944_v44  ;;  %v2816_v49 = vsel %vm2544_vm10, %v6414_v17, 0.0  ;;  %v3616_v43 = vsel %vm3344_vm11, %v6423_v19, 0.0 }
 0x16c   : > { %v2272_v54 = vadd.f32 %v2016_v39, %v1216_v20  ;;  %5701 = vmatpush1.msra.mxu1 %v5475_v23  ;;  %vm4144_vm12 = vcmp.eq.s32.totalorder %v7495_v3, %v6403_v13  ;;  %vm4944_vm13 = vcmp.eq.s32.totalorder %v7495_v3, %v6451_v46  ;;  %vm815_vm14 = vcmp.eq.s32.totalorder %v7492_v50, %v6442_v37 }
 0x16d   : > { %vm1615_vm15 = vcmp.eq.s32.totalorder %v7492_v50, %v6448_v40  ;;  %v4544_v53 = vadd.f32 %v4288_v29, %v3744_v62  ;;  %v4416_v21 = vsel %vm4144_vm12, %v6406_v15, 0.0  ;;  %v5216_v30 = vsel %vm4944_vm13, %v6454_v33, 0.0 }
 0x16e   : > { %v3072_v55 = vadd.f32 %v2816_v49, %v2272_v54  ;;  %v1087_v47 = vsel %vm815_vm14, %v6445_v32, 0.0  ;;  %v1887_v18 = vsel %vm1615_vm15, %v6457_v45, 0.0  ;;  %vm2415_vm5 = vcmp.eq.s32.totalorder %v7492_v50, %v6486_v28 }
 0x16f   : > { %vm3215_vm6 = vcmp.eq.s32.totalorder %v7492_v50, %v6493_v36  ;;  %v5344_v44 = vadd.f32 %v5088_v52, %v4544_v53  ;;  %v2143_v23 = vadd.f32 %v1887_v18, %v1087_v47  ;;  %v2687_v29 = vsel %vm2415_vm5, %v6489_v58, 0.0 }
 0x170   : > { %v3872_v20 = vadd.f32 %v3616_v43, %v3072_v55  ;;  %v3487_v39 = vsel %vm3215_vm6, %v6496_v31, 0.0  ;;  %vm4015_vm0 = vcmp.eq.s32.totalorder %v7492_v50, %v6501_v22  ;;  %vm4815_vm1 = vcmp.eq.s32.totalorder %v7492_v50, %v6510_v0 }
 0x171   : > { %vm943_vm2 = vcmp.eq.s32.totalorder %v7495_v3, %v6442_v37  ;;  %5631 = vmatprep.subr.mxu0 %v5344_v44  ;;  %v2943_v54 = vadd.f32 %v2687_v29, %v2143_v23  ;;  %v4287_v52 = vsel %vm4015_vm0, %v6504_v61, 0.0  ;;  %v5087_v49 = vsel %vm4815_vm1, %v6516_v2, 0.0 }
 0x172   : > { %v4672_v62 = vadd.f32 %v4416_v21, %v3872_v20  ;;  %v1215_v43 = vsel %vm943_vm2, %v6445_v32, 0.0  ;;  %vm1743_vm3 = vcmp.eq.s32.totalorder %v7495_v3, %v6448_v40  ;;  %vm2543_vm4 = vcmp.eq.s32.totalorder %v7495_v3, %v6486_v28 }
 0x173   : > { %vm3343_vm7 = vcmp.eq.s32.totalorder %v7495_v3, %v6493_v36  ;;  %v3743_v55 = vadd.f32 %v3487_v39, %v2943_v54  ;;  %v2015_v21 = vsel %vm1743_vm3, %v6457_v45, 0.0  ;;  %v2815_v47 = vsel %vm2543_vm4, %v6489_v58, 0.0 }
 0x174   : > { %v5472_v53 = vadd.f32 %v5216_v30, %v4672_v62  ;;  %v2271_v18 = vadd.f32 %v2015_v21, %v1215_v43  ;;  %v3615_v44 = vsel %vm3343_vm7, %v6496_v31, 0.0  ;;  %vm4143_vm8 = vcmp.eq.s32.totalorder %v7495_v3, %v6501_v22 }
 0x175   : > { %vm4943_vm9 = vcmp.eq.s32.totalorder %v7495_v3, %v6510_v0  ;;  %v4543_v20 = vadd.f32 %v4287_v52, %v3743_v55  ;;  %v4415_v23 = vsel %vm4143_vm8, %v6504_v61, 0.0  ;;  %vm812_vm10 = vcmp.eq.s32.totalorder %v6211_v14, %v6385_v7 }
 0x176   : > { %5702 = vmatprep.subr.mxu1 %v5472_v53  ;;  %v5215_v30 = vsel %vm4943_vm9, %v6516_v2, 0.0  ;;  %v3071_v29 = vadd.f32 %v2815_v47, %v2271_v18  ;;  %v1084_v39 = vsel %vm812_vm10, %v6388_v8, 0.0  ;;  %vm1612_vm11 = vcmp.eq.s32.totalorder %v6211_v14, %v6397_v11 }
 0x177   : > { %vm2412_vm12 = vcmp.eq.s32.totalorder %v6211_v14, %v6411_v16  ;;  %v5343_v62 = vadd.f32 %v5087_v49, %v4543_v20  ;;  %v1884_v54 = vsel %vm1612_vm11, %v6400_v12, 0.0  ;;  %vm3212_vm13 = vcmp.eq.s32.totalorder %v6211_v14, %v6417_v51 }
 0x178   : > { %v2684_v52 = vsel %vm2412_vm12, %v6414_v17, 0.0  ;;  %v3871_v43 = vadd.f32 %v3615_v44, %v3071_v29  ;;  %v2140_v53 = vadd.f32 %v1884_v54, %v1084_v39  ;;  %v3484_v55 = vsel %vm3212_vm13, %v6423_v19, 0.0 }
 0x179   : > { %vm4012_vm14 = vcmp.eq.s32.totalorder %v6211_v14, %v6403_v13  ;;  %5632 = vmatpush1.msra.mxu0 %v5343_v62  ;;  %vm4812_vm15 = vcmp.eq.s32.totalorder %v6211_v14, %v6451_v46  ;;  %v7659_v49 = vadd.s32 256, %v6211_v14  ;;  %vm811_vm5 = vcmp.eq.s32.totalorder %v6211_v14, %v6442_v37 }
 0x17a   : > { %v4284_v21 = vsel %vm4012_vm14, %v6406_v15, 0.0  ;;  %v4671_v47 = vadd.f32 %v4415_v23, %v3871_v43  ;;  %v2940_v18 = vadd.f32 %v2684_v52, %v2140_v53  ;;  %v5084_v44 = vsel %vm4812_vm15, %v6454_v33, 0.0 }
 0x17b   : > { %11521 = vst [vmem:[#allocation23_spill] sm:$0xff] %v7659_v49  ;;  %v1083_v20 = vsel %vm811_vm5, %v6445_v32, 0.0  ;;  %vm940_vm6 = vcmp.eq.s32.totalorder %v7659_v49, %v6385_v7  ;;  %vm1740_vm0 = vcmp.eq.s32.totalorder %v7659_v49, %v6397_v11  ;;  %vm2540_vm1 = vcmp.eq.s32.totalorder %v7659_v49, %v6411_v16 }
 0x17c   : > { %vm3340_vm2 = vcmp.eq.s32.totalorder %v7659_v49, %v6417_v51  ;;  %v5471_v29 = vadd.f32 %v5215_v30, %v4671_v47  ;;  %v3740_v39 = vadd.f32 %v3484_v55, %v2940_v18  ;;  %v1212_v23 = vsel %vm940_vm6, %v6388_v8, 0.0 }
 0x17d   : > { %v2012_v62 = vsel %vm1740_vm0, %v6400_v12, 0.0  ;;  %v2812_v52 = vsel %vm2540_vm1, %v6414_v17, 0.0  ;;  %v3612_v43 = vsel %vm3340_vm2, %v6423_v19, 0.0  ;;  %vm4140_vm3 = vcmp.eq.s32.totalorder %v7659_v49, %v6403_v13 }
 0x17e   : > { %v2268_v54 = vadd.f32 %v2012_v62, %v1212_v23  ;;  %5703 = vmatpush1.msra.mxu1 %v5471_v29  ;;  %v4540_v53 = vadd.f32 %v4284_v21, %v3740_v39  ;;  %v4412_v3 = vsel %vm4140_vm3, %v6406_v15, 0.0  ;;  %vm4940_vm4 = vcmp.eq.s32.totalorder %v7659_v49, %v6451_v46 }
 0x17f   : > { %vm1611_vm7 = vcmp.eq.s32.totalorder %v6211_v14, %v6448_v40  ;;  %v5212_v55 = vsel %vm4940_vm4, %v6454_v33, 0.0  ;;  %vm2411_vm8 = vcmp.eq.s32.totalorder %v6211_v14, %v6486_v28  ;;  %vm3211_vm9 = vcmp.eq.s32.totalorder %v6211_v14, %v6493_v36 }
 0x180   : > { %v3068_v30 = vadd.f32 %v2812_v52, %v2268_v54  ;;  %v1883_v47 = vsel %vm1611_vm7, %v6457_v45, 0.0  ;;  %v5340_v18 = vadd.f32 %v5084_v44, %v4540_v53  ;;  %v2683_v21 = vsel %vm2411_vm8, %v6489_v58, 0.0 }
 0x181   : > { %v2139_v23 = vadd.f32 %v1883_v47, %v1083_v20  ;;  %v3483_v39 = vsel %vm3211_vm9, %v6496_v31, 0.0  ;;  %vm4011_vm10 = vcmp.eq.s32.totalorder %v6211_v14, %v6501_v22  ;;  %vm4811_vm11 = vcmp.eq.s32.totalorder %v6211_v14, %v6510_v0 }
 0x182   : > { %v3868_v29 = vadd.f32 %v3612_v43, %v3068_v30  ;;  %5633 = vmatprep.subr.mxu0 %v5340_v18  ;;  %v4283_v54 = vsel %vm4011_vm10, %v6504_v61, 0.0  ;;  %v5083_v44 = vsel %vm4811_vm11, %v6516_v2, 0.0  ;;  %vm939_vm12 = vcmp.eq.s32.totalorder %v7659_v49, %v6442_v37 }
 0x183   : > { %v2939_v62 = vadd.f32 %v2683_v21, %v2139_v23  ;;  %v1211_v52 = vsel %vm939_vm12, %v6445_v32, 0.0  ;;  %vm1739_vm13 = vcmp.eq.s32.totalorder %v7659_v49, %v6448_v40  ;;  %vm2539_vm14 = vcmp.eq.s32.totalorder %v7659_v49, %v6486_v28 }
 0x184   : > { %v4668_v20 = vadd.f32 %v4412_v3, %v3868_v29  ;;  %v2011_v53 = vsel %vm1739_vm13, %v6457_v45, 0.0  ;;  %v2811_v30 = vsel %vm2539_vm14, %v6489_v58, 0.0  ;;  %vm3339_vm15 = vcmp.eq.s32.totalorder %v7659_v49, %v6493_v36 }
 0x185   : > { %v3739_v43 = vadd.f32 %v3483_v39, %v2939_v62  ;;  %v2267_v18 = vadd.f32 %v2011_v53, %v1211_v52  ;;  %v3611_v3 = vsel %vm3339_vm15, %v6496_v31, 0.0  ;;  %vm4139_vm5 = vcmp.eq.s32.totalorder %v7659_v49, %v6501_v22 }
 0x186   : > { %v5468_v47 = vadd.f32 %v5212_v55, %v4668_v20  ;;  %v4411_v21 = vsel %vm4139_vm5, %v6504_v61, 0.0  ;;  %vm4939_vm6 = vcmp.eq.s32.totalorder %v7659_v49, %v6510_v0  ;;  %v7716_v29 = vadd.s32 248, %v6211_v14 }
 0x187   : > { %v4539_v23 = vadd.f32 %v4283_v54, %v3739_v43  ;;  %v3067_v39 = vadd.f32 %v2811_v30, %v2267_v18  ;;  %v5211_v62 = vsel %vm4939_vm6, %v6516_v2, 0.0  ;;  %v7720_v55 = vadd.s32 504, %v6211_v14 }
 0x188   : > { %11522 = vst [vmem:[#allocation24_spill] sm:$0xff] %v7716_v29  ;;  %5704 = vmatprep.subr.mxu1 %v5468_v47  ;;  %v7723_v20 = vadd.s32 240, %v6211_v14  ;;  %vm936_vm0 = vcmp.eq.s32.totalorder %v7716_v29, %v6385_v7  ;;  %vm1736_vm1 = vcmp.eq.s32.totalorder %v7716_v29, %v6397_v11  ;;  %vm2536_vm2 = vcmp.eq.s32.totalorder %v7716_v29, %v6411_v16 }
 0x189   : > { %11523 = vst [vmem:[#allocation25_spill] sm:$0xff] %v7720_v55  ;;  %v5339_v52 = vadd.f32 %v5083_v44, %v4539_v23  ;;  %v3867_v54 = vadd.f32 %v3611_v3, %v3067_v39  ;;  %v1208_v43 = vsel %vm936_vm0, %v6388_v8, 0.0  ;;  %v2008_v53 = vsel %vm1736_vm1, %v6400_v12, 0.0 }
 0x18a   : > { %11524 = vst [vmem:[#allocation26_spill] sm:$0xff] %v7723_v20  ;;  %v2808_v30 = vsel %vm2536_vm2, %v6414_v17, 0.0  ;;  %v2264_v47 = vadd.f32 %v2008_v53, %v1208_v43  ;;  %vm3336_vm3 = vcmp.eq.s32.totalorder %v7716_v29, %v6417_v51  ;;  %vm4136_vm4 = vcmp.eq.s32.totalorder %v7716_v29, %v6403_v13 }
 0x18b   : > { %5634 = vmatpush1.msra.mxu0 %v5339_v52  ;;  %vm4936_vm7 = vcmp.eq.s32.totalorder %v7716_v29, %v6451_v46  ;;  %v4667_v44 = vadd.f32 %v4411_v21, %v3867_v54  ;;  %v3608_v18 = vsel %vm3336_vm3, %v6423_v19, 0.0  ;;  %v4408_v3 = vsel %vm4136_vm4, %v6406_v15, 0.0 }
 0x18c   : > { %v5208_v23 = vsel %vm4936_vm7, %v6454_v33, 0.0  ;;  %v3064_v39 = vadd.f32 %v2808_v30, %v2264_v47  ;;  %vm1064_vm8 = vcmp.eq.s32.totalorder %v7720_v55, %v6385_v7  ;;  %vm1864_vm9 = vcmp.eq.s32.totalorder %v7720_v55, %v6397_v11 }
 0x18d   : > { %vm2664_vm10 = vcmp.eq.s32.totalorder %v7720_v55, %v6411_v16  ;;  %v5467_v52 = vadd.f32 %v5211_v62, %v4667_v44  ;;  %v1336_v43 = vsel %vm1064_vm8, %v6388_v8, 0.0  ;;  %v2136_v21 = vsel %vm1864_vm9, %v6400_v12, 0.0 }
 0x18e   : > { %v2936_v54 = vsel %vm2664_vm10, %v6414_v17, 0.0  ;;  %v3864_v53 = vadd.f32 %v3608_v18, %v3064_v39  ;;  %v2392_v49 = vadd.f32 %v2136_v21, %v1336_v43  ;;  %vm3464_vm11 = vcmp.eq.s32.totalorder %v7720_v55, %v6417_v51 }
 0x18f   : > { %vm4264_vm12 = vcmp.eq.s32.totalorder %v7720_v55, %v6403_v13  ;;  %5705 = vmatpush1.msra.mxu1 %v5467_v52  ;;  %v3736_v30 = vsel %vm3464_vm11, %v6423_v19, 0.0  ;;  %vm5064_vm13 = vcmp.eq.s32.totalorder %v7720_v55, %v6451_v46  ;;  %vm935_vm14 = vcmp.eq.s32.totalorder %v7716_v29, %v6442_v37 }
 0x190   : > { %v4536_v47 = vsel %vm4264_vm12, %v6406_v15, 0.0  ;;  %v4664_v62 = vadd.f32 %v4408_v3, %v3864_v53  ;;  %v3192_v44 = vadd.f32 %v2936_v54, %v2392_v49  ;;  %v5336_v18 = vsel %vm5064_vm13, %v6454_v33, 0.0 }
 0x191   : > { %v1207_v39 = vsel %vm935_vm14, %v6445_v32, 0.0  ;;  %vm1735_vm15 = vcmp.eq.s32.totalorder %v7716_v29, %v6448_v40  ;;  %vm2535_vm5 = vcmp.eq.s32.totalorder %v7716_v29, %v6486_v28  ;;  %vm3335_vm6 = vcmp.eq.s32.totalorder %v7716_v29, %v6493_v36 }
 0x192   : > { %vm4135_vm0 = vcmp.eq.s32.totalorder %v7716_v29, %v6501_v22  ;;  %v5464_v52 = vadd.f32 %v5208_v23, %v4664_v62  ;;  %v3992_v43 = vadd.f32 %v3736_v30, %v3192_v44  ;;  %v2007_v49 = vsel %vm1735_vm15, %v6457_v45, 0.0 }
 0x193   : > { %v2807_v3 = vsel %vm2535_vm5, %v6489_v58, 0.0  ;;  %v2263_v21 = vadd.f32 %v2007_v49, %v1207_v39  ;;  %v3607_v54 = vsel %vm3335_vm6, %v6496_v31, 0.0  ;;  %v4407_v53 = vsel %vm4135_vm0, %v6504_v61, 0.0 }
 0x194   : > { %vm4935_vm1 = vcmp.eq.s32.totalorder %v7716_v29, %v6510_v0  ;;  %5635 = vmatprep.subr.mxu0 %v5464_v52  ;;  %v4792_v50 = vadd.f32 %v4536_v47, %v3992_v43  ;;  %vm1063_vm2 = vcmp.eq.s32.totalorder %v7720_v55, %v6442_v37  ;;  %vm1863_vm3 = vcmp.eq.s32.totalorder %v7720_v55, %v6448_v40 }
 0x195   : > { %v5207_v27 = vsel %vm4935_vm1, %v6516_v2, 0.0  ;;  %v3063_v23 = vadd.f32 %v2807_v3, %v2263_v21  ;;  %v1335_v30 = vsel %vm1063_vm2, %v6445_v32, 0.0  ;;  %v2135_v62 = vsel %vm1863_vm3, %v6457_v45, 0.0 }
 0x196   : > { %vm2663_vm4 = vcmp.eq.s32.totalorder %v7720_v55, %v6486_v28  ;;  %v5592_v44 = vadd.f32 %v5336_v18, %v4792_v50  ;;  %v2391_v39 = vadd.f32 %v2135_v62, %v1335_v30  ;;  %vm3463_vm7 = vcmp.eq.s32.totalorder %v7720_v55, %v6493_v36 }
 0x197   : > { %v2935_v47 = vsel %vm2663_vm4, %v6489_v58, 0.0  ;;  %v3863_v52 = vadd.f32 %v3607_v54, %v3063_v23  ;;  %v3735_v43 = vsel %vm3463_vm7, %v6496_v31, 0.0  ;;  %vm4263_vm8 = vcmp.eq.s32.totalorder %v7720_v55, %v6501_v22 }
 0x198   : > { %vm5063_vm9 = vcmp.eq.s32.totalorder %v7720_v55, %v6510_v0  ;;  %5706 = vmatprep.subr.mxu1 %v5592_v44  ;;  %v3191_v49 = vadd.f32 %v2935_v47, %v2391_v39  ;;  %v4535_v3 = vsel %vm4263_vm8, %v6504_v61, 0.0  ;;  %vm932_vm10 = vcmp.eq.s32.totalorder %v7723_v20, %v6385_v7 }
 0x199   : > { %v5335_v50 = vsel %vm5063_vm9, %v6516_v2, 0.0  ;;  %v4663_v18 = vadd.f32 %v4407_v53, %v3863_v52  ;;  %v1204_v21 = vsel %vm932_vm10, %v6388_v8, 0.0  ;;  %vm1732_vm11 = vcmp.eq.s32.totalorder %v7723_v20, %v6397_v11 }
 0x19a   : > { %vm2532_vm12 = vcmp.eq.s32.totalorder %v7723_v20, %v6411_v16  ;;  %v3991_v54 = vadd.f32 %v3735_v43, %v3191_v49  ;;  %v2004_v23 = vsel %vm1732_vm11, %v6400_v12, 0.0  ;;  %vm3332_vm13 = vcmp.eq.s32.totalorder %v7723_v20, %v6417_v51 }
 0x19b   : > { %v2804_v30 = vsel %vm2532_vm12, %v6414_v17, 0.0  ;;  %v5463_v62 = vadd.f32 %v5207_v27, %v4663_v18  ;;  %v2260_v44 = vadd.f32 %v2004_v23, %v1204_v21  ;;  %v3604_v53 = vsel %vm3332_vm13, %v6423_v19, 0.0 }
 0x19c   : > { %vm4132_vm14 = vcmp.eq.s32.totalorder %v7723_v20, %v6403_v13  ;;  %v4791_v39 = vadd.f32 %v4535_v3, %v3991_v54  ;;  %vm4932_vm15 = vcmp.eq.s32.totalorder %v7723_v20, %v6451_v46  ;;  %v7815_v52 = vadd.s32 496, %v6211_v14 }
 0x19d   : > { %v4404_v47 = vsel %vm4132_vm14, %v6406_v15, 0.0  ;;  %5636 = vmatpush2.msra.mxu0 %v5463_v62  ;;  %v3060_v43 = vadd.f32 %v2804_v30, %v2260_v44  ;;  %v5204_v49 = vsel %vm4932_vm15, %v6454_v33, 0.0  ;;  %vm931_vm5 = vcmp.eq.s32.totalorder %v7723_v20, %v6442_v37 }
 0x19e   : > { %11525 = vst [vmem:[#allocation27_spill] sm:$0xff] %v7815_v52  ;;  %vm1731_vm6 = vcmp.eq.s32.totalorder %v7723_v20, %v6448_v40  ;;  %v5591_v27 = vadd.f32 %v5335_v50, %v4791_v39  ;;  %vm1060_vm0 = vcmp.eq.s32.totalorder %v7815_v52, %v6385_v7  ;;  %vm1860_vm1 = vcmp.eq.s32.totalorder %v7815_v52, %v6397_v11 }
 0x19f   : > { %vm2660_vm2 = vcmp.eq.s32.totalorder %v7815_v52, %v6411_v16  ;;  %v3860_v3 = vadd.f32 %v3604_v53, %v3060_v43  ;;  %v1332_v18 = vsel %vm1060_vm0, %v6388_v8, 0.0  ;;  %v2132_v21 = vsel %vm1860_vm1, %v6400_v12, 0.0 }
 0x1a0   : > { %v2932_v54 = vsel %vm2660_vm2, %v6414_v17, 0.0  ;;  %5707 = vmatpush2.msra.mxu1 %v5591_v27  ;;  %v2388_v23 = vadd.f32 %v2132_v21, %v1332_v18  ;;  %vm3460_vm3 = vcmp.eq.s32.totalorder %v7815_v52, %v6417_v51  ;;  %vm4260_vm4 = vcmp.eq.s32.totalorder %v7815_v52, %v6403_v13 }
 0x1a1   : > { %vm5060_vm7 = vcmp.eq.s32.totalorder %v7815_v52, %v6451_v46  ;;  %v4660_v50 = vadd.f32 %v4404_v47, %v3860_v3  ;;  %v3732_v30 = vsel %vm3460_vm3, %v6423_v19, 0.0  ;;  %v4532_v62 = vsel %vm4260_vm4, %v6406_v15, 0.0 }
 0x1a2   : > { %v5332_v44 = vsel %vm5060_vm7, %v6454_v33, 0.0  ;;  %v3188_v53 = vadd.f32 %v2932_v54, %v2388_v23  ;;  %v1203_v39 = vsel %vm931_vm5, %v6445_v32, 0.0  ;;  %v2003_v43 = vsel %vm1731_vm6, %v6457_v45, 0.0 }
 0x1a3   : > { %vm2531_vm8 = vcmp.eq.s32.totalorder %v7723_v20, %v6486_v28  ;;  %v5460_v47 = vadd.f32 %v5204_v49, %v4660_v50  ;;  %v2259_v27 = vadd.f32 %v2003_v43, %v1203_v39  ;;  %vm3331_vm9 = vcmp.eq.s32.totalorder %v7723_v20, %v6493_v36 }
 0x1a4   : > { %v2803_v3 = vsel %vm2531_vm8, %v6489_v58, 0.0  ;;  %v3988_v18 = vadd.f32 %v3732_v30, %v3188_v53  ;;  %v3603_v21 = vsel %vm3331_vm9, %v6496_v31, 0.0  ;;  %vm4131_vm10 = vcmp.eq.s32.totalorder %v7723_v20, %v6501_v22 }
 0x1a5   : > { %vm4931_vm11 = vcmp.eq.s32.totalorder %v7723_v20, %v6510_v0  ;;  %5637 = vmatprep.subr.mxu0 %v5460_v47  ;;  %v3059_v54 = vadd.f32 %v2803_v3, %v2259_v27  ;;  %v4403_v23 = vsel %vm4131_vm10, %v6504_v61, 0.0  ;;  %vm1059_vm12 = vcmp.eq.s32.totalorder %v7815_v52, %v6442_v37 }
 0x1a6   : > { %v5203_v49 = vsel %vm4931_vm11, %v6516_v2, 0.0  ;;  %v4788_v50 = vadd.f32 %v4532_v62, %v3988_v18  ;;  %v1331_v30 = vsel %vm1059_vm12, %v6445_v32, 0.0  ;;  %vm1859_vm13 = vcmp.eq.s32.totalorder %v7815_v52, %v6448_v40 }
 0x1a7   : > { %vm2659_vm14 = vcmp.eq.s32.totalorder %v7815_v52, %v6486_v28  ;;  %v3859_v53 = vadd.f32 %v3603_v21, %v3059_v54  ;;  %v2131_v39 = vsel %vm1859_vm13, %v6457_v45, 0.0  ;;  %vm3459_vm15 = vcmp.eq.s32.totalorder %v7815_v52, %v6493_v36 }
 0x1a8   : > { %v2931_v43 = vsel %vm2659_vm14, %v6489_v58, 0.0  ;;  %v5588_v47 = vadd.f32 %v5332_v44, %v4788_v50  ;;  %v2387_v27 = vadd.f32 %v2131_v39, %v1331_v30  ;;  %v3731_v62 = vsel %vm3459_vm15, %v6496_v31, 0.0 }
 0x1a9   : > { %vm4259_vm5 = vcmp.eq.s32.totalorder %v7815_v52, %v6501_v22  ;;  %v4659_v3 = vadd.f32 %v4403_v23, %v3859_v53  ;;  %vm5059_vm6 = vcmp.eq.s32.totalorder %v7815_v52, %v6510_v0  ;;  %v7878_v21 = vadd.s32 232, %v6211_v14 }
 0x1aa   : > { %v4531_v18 = vsel %vm4259_vm5, %v6504_v61, 0.0  ;;  %5708 = vmatprep.subr.mxu1 %v5588_v47  ;;  %v3187_v54 = vadd.f32 %v2931_v43, %v2387_v27  ;;  %v5331_v20 = vsel %vm5059_vm6, %v6516_v2, 0.0  ;;  %v7882_v44 = vadd.s32 488, %v6211_v14 }
 0x1ab   : > { %11526 = vst [vmem:[#allocation28_spill] sm:$0xff] %v7878_v21  ;;  %v7885_v50 = vadd.s32 224, %v6211_v14  ;;  %v5459_v30 = vadd.f32 %v5203_v49, %v4659_v3  ;;  %vm928_vm0 = vcmp.eq.s32.totalorder %v7878_v21, %v6385_v7  ;;  %vm1728_vm1 = vcmp.eq.s32.totalorder %v7878_v21, %v6397_v11 }
 0x1ac   : > { %11527 = vst [vmem:[#allocation29_spill] sm:$0xff] %v7882_v44  ;;  %vm2528_vm2 = vcmp.eq.s32.totalorder %v7878_v21, %v6411_v16  ;;  %v3987_v23 = vadd.f32 %v3731_v62, %v3187_v54  ;;  %v1200_v53 = vsel %vm928_vm0, %v6388_v8, 0.0  ;;  %v2000_v39 = vsel %vm1728_vm1, %v6400_v12, 0.0 }
 0x1ad   : > { %11528 = vst [vmem:[#allocation30_spill] sm:$0xff] %v7885_v50  ;;  %v2800_v43 = vsel %vm2528_vm2, %v6414_v17, 0.0  ;;  %5638 = vmatpush2.msra.mxu0 %v5459_v30  ;;  %v2256_v47 = vadd.f32 %v2000_v39, %v1200_v53  ;;  %vm3328_vm3 = vcmp.eq.s32.totalorder %v7878_v21, %v6417_v51  ;;  %vm4128_vm4 = vcmp.eq.s32.totalorder %v7878_v21, %v6403_v13 }
 0x1ae   : > { %vm4928_vm7 = vcmp.eq.s32.totalorder %v7878_v21, %v6451_v46  ;;  %v4787_v49 = vadd.f32 %v4531_v18, %v3987_v23  ;;  %v3600_v27 = vsel %vm3328_vm3, %v6423_v19, 0.0  ;;  %v4400_v62 = vsel %vm4128_vm4, %v6406_v15, 0.0 }
 0x1af   : > { %v5200_v3 = vsel %vm4928_vm7, %v6454_v33, 0.0  ;;  %v3056_v54 = vadd.f32 %v2800_v43, %v2256_v47  ;;  %vm1056_vm8 = vcmp.eq.s32.totalorder %v7882_v44, %v6385_v7  ;;  %vm1856_vm9 = vcmp.eq.s32.totalorder %v7882_v44, %v6397_v11 }
 0x1b0   : > { %vm2656_vm10 = vcmp.eq.s32.totalorder %v7882_v44, %v6411_v16  ;;  %v5587_v30 = vadd.f32 %v5331_v20, %v4787_v49  ;;  %v1328_v53 = vsel %vm1056_vm8, %v6388_v8, 0.0  ;;  %v2128_v18 = vsel %vm1856_vm9, %v6400_v12, 0.0 }
 0x1b1   : > { %v2928_v23 = vsel %vm2656_vm10, %v6414_v17, 0.0  ;;  %v3856_v39 = vadd.f32 %v3600_v27, %v3056_v54  ;;  %v2384_v52 = vadd.f32 %v2128_v18, %v1328_v53  ;;  %vm3456_vm11 = vcmp.eq.s32.totalorder %v7882_v44, %v6417_v51 }
 0x1b2   : > { %vm4256_vm12 = vcmp.eq.s32.totalorder %v7882_v44, %v6403_v13  ;;  %5709 = vmatpush2.msra.mxu1 %v5587_v30  ;;  %v3728_v43 = vsel %vm3456_vm11, %v6423_v19, 0.0  ;;  %vm5056_vm13 = vcmp.eq.s32.totalorder %v7882_v44, %v6451_v46  ;;  %vm927_vm14 = vcmp.eq.s32.totalorder %v7878_v21, %v6442_v37 }
 0x1b3   : > { %v4528_v47 = vsel %vm4256_vm12, %v6406_v15, 0.0  ;;  %v4656_v20 = vadd.f32 %v4400_v62, %v3856_v39  ;;  %v3184_v49 = vadd.f32 %v2928_v23, %v2384_v52  ;;  %v5328_v27 = vsel %vm5056_vm13, %v6454_v33, 0.0 }
 0x1b4   : > { %v1199_v54 = vsel %vm927_vm14, %v6445_v32, 0.0  ;;  %vm1727_vm15 = vcmp.eq.s32.totalorder %v7878_v21, %v6448_v40  ;;  %vm2527_vm5 = vcmp.eq.s32.totalorder %v7878_v21, %v6486_v28  ;;  %vm3327_vm6 = vcmp.eq.s32.totalorder %v7878_v21, %v6493_v36 }
 0x1b5   : > { %vm4127_vm0 = vcmp.eq.s32.totalorder %v7878_v21, %v6501_v22  ;;  %v5456_v30 = vadd.f32 %v5200_v3, %v4656_v20  ;;  %v3984_v53 = vadd.f32 %v3728_v43, %v3184_v49  ;;  %v1999_v52 = vsel %vm1727_vm15, %v6457_v45, 0.0 }
 0x1b6   : > { %v2799_v62 = vsel %vm2527_vm5, %v6489_v58, 0.0  ;;  %v2255_v18 = vadd.f32 %v1999_v52, %v1199_v54  ;;  %v3599_v23 = vsel %vm3327_vm6, %v6496_v31, 0.0  ;;  %v4399_v39 = vsel %vm4127_vm0, %v6504_v61, 0.0 }
 0x1b7   : > { %vm4927_vm1 = vcmp.eq.s32.totalorder %v7878_v21, %v6510_v0  ;;  %5639 = vmatprep.subr.mxu0 %v5456_v30  ;;  %v4784_v55 = vadd.f32 %v4528_v47, %v3984_v53  ;;  %vm1055_vm2 = vcmp.eq.s32.totalorder %v7882_v44, %v6442_v37  ;;  %vm1855_vm3 = vcmp.eq.s32.totalorder %v7882_v44, %v6448_v40 }
 0x1b8   : > { %v5199_v29 = vsel %vm4927_vm1, %v6516_v2, 0.0  ;;  %v3055_v3 = vadd.f32 %v2799_v62, %v2255_v18  ;;  %v1327_v43 = vsel %vm1055_vm2, %v6445_v32, 0.0  ;;  %v2127_v20 = vsel %vm1855_vm3, %v6457_v45, 0.0 }
 0x1b9   : > { %vm2655_vm4 = vcmp.eq.s32.totalorder %v7882_v44, %v6486_v28  ;;  %v5584_v49 = vadd.f32 %v5328_v27, %v4784_v55  ;;  %v2383_v54 = vadd.f32 %v2127_v20, %v1327_v43  ;;  %vm3455_vm7 = vcmp.eq.s32.totalorder %v7882_v44, %v6493_v36 }
 0x1ba   : > { %v2927_v47 = vsel %vm2655_vm4, %v6489_v58, 0.0  ;;  %v3855_v30 = vadd.f32 %v3599_v23, %v3055_v3  ;;  %v3727_v53 = vsel %vm3455_vm7, %v6496_v31, 0.0  ;;  %vm4255_vm8 = vcmp.eq.s32.totalorder %v7882_v44, %v6501_v22 }
 0x1bb   : > { %vm5055_vm9 = vcmp.eq.s32.totalorder %v7882_v44, %v6510_v0  ;;  %5710 = vmatprep.subr.mxu1 %v5584_v49  ;;  %v3183_v52 = vadd.f32 %v2927_v47, %v2383_v54  ;;  %v4527_v62 = vsel %vm4255_vm8, %v6504_v61, 0.0  ;;  %vm924_vm10 = vcmp.eq.s32.totalorder %v7885_v50, %v6385_v7 }
 0x1bc   : > { %v5327_v55 = vsel %vm5055_vm9, %v6516_v2, 0.0  ;;  %v4655_v27 = vadd.f32 %v4399_v39, %v3855_v30  ;;  %v1196_v18 = vsel %vm924_vm10, %v6388_v8, 0.0  ;;  %vm1724_vm11 = vcmp.eq.s32.totalorder %v7885_v50, %v6397_v11 }
 0x1bd   : > { %vm2524_vm12 = vcmp.eq.s32.totalorder %v7885_v50, %v6411_v16  ;;  %v3983_v23 = vadd.f32 %v3727_v53, %v3183_v52  ;;  %v1996_v3 = vsel %vm1724_vm11, %v6400_v12, 0.0  ;;  %vm3324_vm13 = vcmp.eq.s32.totalorder %v7885_v50, %v6417_v51 }
 0x1be   : > { %v2796_v43 = vsel %vm2524_vm12, %v6414_v17, 0.0  ;;  %v5455_v20 = vadd.f32 %v5199_v29, %v4655_v27  ;;  %v2252_v49 = vadd.f32 %v1996_v3, %v1196_v18  ;;  %v3596_v39 = vsel %vm3324_vm13, %v6423_v19, 0.0 }
 0x1bf   : > { %vm4124_vm14 = vcmp.eq.s32.totalorder %v7885_v50, %v6403_v13  ;;  %v4783_v54 = vadd.f32 %v4527_v62, %v3983_v23  ;;  %vm4924_vm15 = vcmp.eq.s32.totalorder %v7885_v50, %v6451_v46  ;;  %v7977_v30 = vadd.s32 480, %v6211_v14 }
 0x1c0   : > { %v4396_v47 = vsel %vm4124_vm14, %v6406_v15, 0.0  ;;  %5640 = vmatpush2.msra.mxu0 %v5455_v20  ;;  %v3052_v53 = vadd.f32 %v2796_v43, %v2252_v49  ;;  %v5196_v52 = vsel %vm4924_vm15, %v6454_v33, 0.0  ;;  %vm923_vm5 = vcmp.eq.s32.totalorder %v7885_v50, %v6442_v37 }
 0x1c1   : > { %11529 = vst [vmem:[#allocation31_spill] sm:$0xff] %v7977_v30  ;;  %vm1723_vm6 = vcmp.eq.s32.totalorder %v7885_v50, %v6448_v40  ;;  %v5583_v29 = vadd.f32 %v5327_v55, %v4783_v54  ;;  %vm1052_vm0 = vcmp.eq.s32.totalorder %v7977_v30, %v6385_v7  ;;  %vm1852_vm1 = vcmp.eq.s32.totalorder %v7977_v30, %v6397_v11 }
 0x1c2   : > { %vm2652_vm2 = vcmp.eq.s32.totalorder %v7977_v30, %v6411_v16  ;;  %v3852_v62 = vadd.f32 %v3596_v39, %v3052_v53  ;;  %v1324_v27 = vsel %vm1052_vm0, %v6388_v8, 0.0  ;;  %v2124_v18 = vsel %vm1852_vm1, %v6400_v12, 0.0 }
 0x1c3   : > { %v2924_v23 = vsel %vm2652_vm2, %v6414_v17, 0.0  ;;  %5711 = vmatpush2.msra.mxu1 %v5583_v29  ;;  %v2380_v3 = vadd.f32 %v2124_v18, %v1324_v27  ;;  %vm3452_vm3 = vcmp.eq.s32.totalorder %v7977_v30, %v6417_v51  ;;  %vm4252_vm4 = vcmp.eq.s32.totalorder %v7977_v30, %v6403_v13 }
 0x1c4   : > { %vm5052_vm7 = vcmp.eq.s32.totalorder %v7977_v30, %v6451_v46  ;;  %v4652_v55 = vadd.f32 %v4396_v47, %v3852_v62  ;;  %v3724_v43 = vsel %vm3452_vm3, %v6423_v19, 0.0  ;;  %v4524_v20 = vsel %vm4252_vm4, %v6406_v15, 0.0 }
 0x1c5   : > { %v5324_v49 = vsel %vm5052_vm7, %v6454_v33, 0.0  ;;  %v3180_v39 = vadd.f32 %v2924_v23, %v2380_v3  ;;  %v1195_v54 = vsel %vm923_vm5, %v6445_v32, 0.0  ;;  %v1995_v53 = vsel %vm1723_vm6, %v6457_v45, 0.0 }
 0x1c6   : > { %vm2523_vm8 = vcmp.eq.s32.totalorder %v7885_v50, %v6486_v28  ;;  %v5452_v47 = vadd.f32 %v5196_v52, %v4652_v55  ;;  %v2251_v29 = vadd.f32 %v1995_v53, %v1195_v54  ;;  %vm3323_vm9 = vcmp.eq.s32.totalorder %v7885_v50, %v6493_v36 }
 0x1c7   : > { %v2795_v62 = vsel %vm2523_vm8, %v6489_v58, 0.0  ;;  %v3980_v27 = vadd.f32 %v3724_v43, %v3180_v39  ;;  %v3595_v18 = vsel %vm3323_vm9, %v6496_v31, 0.0  ;;  %vm4123_vm10 = vcmp.eq.s32.totalorder %v7885_v50, %v6501_v22 }
 0x1c8   : > { %vm4923_vm11 = vcmp.eq.s32.totalorder %v7885_v50, %v6510_v0  ;;  %5641 = vmatprep.subr.mxu0 %v5452_v47  ;;  %v3051_v23 = vadd.f32 %v2795_v62, %v2251_v29  ;;  %v4395_v3 = vsel %vm4123_vm10, %v6504_v61, 0.0  ;;  %vm1051_vm12 = vcmp.eq.s32.totalorder %v7977_v30, %v6442_v37 }
 0x1c9   : > { %v5195_v52 = vsel %vm4923_vm11, %v6516_v2, 0.0  ;;  %v4780_v55 = vadd.f32 %v4524_v20, %v3980_v27  ;;  %v1323_v43 = vsel %vm1051_vm12, %v6445_v32, 0.0  ;;  %vm1851_vm13 = vcmp.eq.s32.totalorder %v7977_v30, %v6448_v40 }
 0x1ca   : > { %vm2651_vm14 = vcmp.eq.s32.totalorder %v7977_v30, %v6486_v28  ;;  %v3851_v39 = vadd.f32 %v3595_v18, %v3051_v23  ;;  %v2123_v54 = vsel %vm1851_vm13, %v6457_v45, 0.0  ;;  %vm3451_vm15 = vcmp.eq.s32.totalorder %v7977_v30, %v6493_v36 }
 0x1cb   : > { %v2923_v53 = vsel %vm2651_vm14, %v6489_v58, 0.0  ;;  %v5580_v47 = vadd.f32 %v5324_v49, %v4780_v55  ;;  %v2379_v29 = vadd.f32 %v2123_v54, %v1323_v43  ;;  %v3723_v20 = vsel %vm3451_vm15, %v6496_v31, 0.0 }
 0x1cc   : > { %vm4251_vm5 = vcmp.eq.s32.totalorder %v7977_v30, %v6501_v22  ;;  %v4651_v62 = vadd.f32 %v4395_v3, %v3851_v39  ;;  %vm5051_vm6 = vcmp.eq.s32.totalorder %v7977_v30, %v6510_v0  ;;  %v8040_v18 = vadd.s32 216, %v6211_v14 }
 0x1cd   : > { %v4523_v27 = vsel %vm4251_vm5, %v6504_v61, 0.0  ;;  %5712 = vmatprep.subr.mxu1 %v5580_v47  ;;  %v3179_v23 = vadd.f32 %v2923_v53, %v2379_v29  ;;  %v5323_v50 = vsel %vm5051_vm6, %v6516_v2, 0.0  ;;  %v8044_v49 = vadd.s32 472, %v6211_v14 }
 0x1ce   : > { %11530 = vst [vmem:[#allocation32_spill] sm:$0xff] %v8040_v18  ;;  %v8047_v55 = vadd.s32 208, %v6211_v14  ;;  %v5451_v43 = vadd.f32 %v5195_v52, %v4651_v62  ;;  %vm920_vm0 = vcmp.eq.s32.totalorder %v8040_v18, %v6385_v7  ;;  %vm1720_vm1 = vcmp.eq.s32.totalorder %v8040_v18, %v6397_v11 }
 0x1cf   : > { %11531 = vst [vmem:[#allocation33_spill] sm:$0xff] %v8044_v49  ;;  %vm2520_vm2 = vcmp.eq.s32.totalorder %v8040_v18, %v6411_v16  ;;  %v3979_v3 = vadd.f32 %v3723_v20, %v3179_v23  ;;  %v1192_v39 = vsel %vm920_vm0, %v6388_v8, 0.0  ;;  %v1992_v54 = vsel %vm1720_vm1, %v6400_v12, 0.0 }
 0x1d0   : > { %11532 = vst [vmem:[#allocation34_spill] sm:$0xff] %v8047_v55  ;;  %v2792_v53 = vsel %vm2520_vm2, %v6414_v17, 0.0  ;;  %5642 = vmatpush2.msra.mxu0 %v5451_v43  ;;  %v2248_v47 = vadd.f32 %v1992_v54, %v1192_v39  ;;  %vm3320_vm3 = vcmp.eq.s32.totalorder %v8040_v18, %v6417_v51  ;;  %vm4120_vm4 = vcmp.eq.s32.totalorder %v8040_v18, %v6403_v13 }
 0x1d1   : > { %vm4920_vm7 = vcmp.eq.s32.totalorder %v8040_v18, %v6451_v46  ;;  %v4779_v52 = vadd.f32 %v4523_v27, %v3979_v3  ;;  %v3592_v29 = vsel %vm3320_vm3, %v6423_v19, 0.0  ;;  %v4392_v20 = vsel %vm4120_vm4, %v6406_v15, 0.0 }
 0x1d2   : > { %v5192_v62 = vsel %vm4920_vm7, %v6454_v33, 0.0  ;;  %v3048_v23 = vadd.f32 %v2792_v53, %v2248_v47  ;;  %vm1048_vm8 = vcmp.eq.s32.totalorder %v8044_v49, %v6385_v7  ;;  %vm1848_vm9 = vcmp.eq.s32.totalorder %v8044_v49, %v6397_v11 }
 0x1d3   : > { %vm2648_vm10 = vcmp.eq.s32.totalorder %v8044_v49, %v6411_v16  ;;  %v5579_v43 = vadd.f32 %v5323_v50, %v4779_v52  ;;  %v1320_v39 = vsel %vm1048_vm8, %v6388_v8, 0.0  ;;  %v2120_v27 = vsel %vm1848_vm9, %v6400_v12, 0.0 }
 0x1d4   : > { %v2920_v3 = vsel %vm2648_vm10, %v6414_v17, 0.0  ;;  %v3848_v54 = vadd.f32 %v3592_v29, %v3048_v23  ;;  %v2376_v30 = vadd.f32 %v2120_v27, %v1320_v39  ;;  %vm3448_vm11 = vcmp.eq.s32.totalorder %v8044_v49, %v6417_v51 }
 0x1d5   : > { %vm4248_vm12 = vcmp.eq.s32.totalorder %v8044_v49, %v6403_v13  ;;  %5713 = vmatpush2.msra.mxu1 %v5579_v43  ;;  %v3720_v53 = vsel %vm3448_vm11, %v6423_v19, 0.0  ;;  %vm5048_vm13 = vcmp.eq.s32.totalorder %v8044_v49, %v6451_v46  ;;  %vm919_vm14 = vcmp.eq.s32.totalorder %v8040_v18, %v6442_v37 }
 0x1d6   : > { %v4520_v47 = vsel %vm4248_vm12, %v6406_v15, 0.0  ;;  %v4648_v50 = vadd.f32 %v4392_v20, %v3848_v54  ;;  %v3176_v52 = vadd.f32 %v2920_v3, %v2376_v30  ;;  %v5320_v29 = vsel %vm5048_vm13, %v6454_v33, 0.0 }
 0x1d7   : > { %v1191_v23 = vsel %vm919_vm14, %v6445_v32, 0.0  ;;  %vm1719_vm15 = vcmp.eq.s32.totalorder %v8040_v18, %v6448_v40  ;;  %vm2519_vm5 = vcmp.eq.s32.totalorder %v8040_v18, %v6486_v28  ;;  %vm3319_vm6 = vcmp.eq.s32.totalorder %v8040_v18, %v6493_v36 }
 0x1d8   : > { %vm4119_vm0 = vcmp.eq.s32.totalorder %v8040_v18, %v6501_v22  ;;  %v5448_v43 = vadd.f32 %v5192_v62, %v4648_v50  ;;  %v3976_v39 = vadd.f32 %v3720_v53, %v3176_v52  ;;  %v1991_v30 = vsel %vm1719_vm15, %v6457_v45, 0.0 }
 0x1d9   : > { %v2791_v20 = vsel %vm2519_vm5, %v6489_v58, 0.0  ;;  %v2247_v27 = vadd.f32 %v1991_v30, %v1191_v23  ;;  %v3591_v3 = vsel %vm3319_vm6, %v6496_v31, 0.0  ;;  %v4391_v54 = vsel %vm4119_vm0, %v6504_v61, 0.0 }
 0x1da   : > { %vm4919_vm1 = vcmp.eq.s32.totalorder %v8040_v18, %v6510_v0  ;;  %5643 = vmatprep.subr.mxu0 %v5448_v43  ;;  %v4776_v44 = vadd.f32 %v4520_v47, %v3976_v39  ;;  %vm1047_vm2 = vcmp.eq.s32.totalorder %v8044_v49, %v6442_v37  ;;  %vm1847_vm3 = vcmp.eq.s32.totalorder %v8044_v49, %v6448_v40 }
 0x1db   : > { %v5191_v21 = vsel %vm4919_vm1, %v6516_v2, 0.0  ;;  %v3047_v62 = vadd.f32 %v2791_v20, %v2247_v27  ;;  %v1319_v53 = vsel %vm1047_vm2, %v6445_v32, 0.0  ;;  %v2119_v50 = vsel %vm1847_vm3, %v6457_v45, 0.0 }
 0x1dc   : > { %vm2647_vm4 = vcmp.eq.s32.totalorder %v8044_v49, %v6486_v28  ;;  %v5576_v52 = vadd.f32 %v5320_v29, %v4776_v44  ;;  %v2375_v23 = vadd.f32 %v2119_v50, %v1319_v53  ;;  %vm3447_vm7 = vcmp.eq.s32.totalorder %v8044_v49, %v6493_v36 }
 0x1dd   : > { %v2919_v47 = vsel %vm2647_vm4, %v6489_v58, 0.0  ;;  %v3847_v43 = vadd.f32 %v3591_v3, %v3047_v62  ;;  %v3719_v39 = vsel %vm3447_vm7, %v6496_v31, 0.0  ;;  %vm4247_vm8 = vcmp.eq.s32.totalorder %v8044_v49, %v6501_v22 }
 0x1de   : > { %vm5047_vm9 = vcmp.eq.s32.totalorder %v8044_v49, %v6510_v0  ;;  %5714 = vmatprep.subr.mxu1 %v5576_v52  ;;  %v3175_v30 = vadd.f32 %v2919_v47, %v2375_v23  ;;  %v4519_v20 = vsel %vm4247_vm8, %v6504_v61, 0.0  ;;  %vm916_vm10 = vcmp.eq.s32.totalorder %v8047_v55, %v6385_v7 }
 0x1df   : > { %v5319_v44 = vsel %vm5047_vm9, %v6516_v2, 0.0  ;;  %v4647_v29 = vadd.f32 %v4391_v54, %v3847_v43  ;;  %v1188_v27 = vsel %vm916_vm10, %v6388_v8, 0.0  ;;  %vm1716_vm11 = vcmp.eq.s32.totalorder %v8047_v55, %v6397_v11 }
 0x1e0   : > { %vm2516_vm12 = vcmp.eq.s32.totalorder %v8047_v55, %v6411_v16  ;;  %v3975_v3 = vadd.f32 %v3719_v39, %v3175_v30  ;;  %v1988_v62 = vsel %vm1716_vm11, %v6400_v12, 0.0  ;;  %vm3316_vm13 = vcmp.eq.s32.totalorder %v8047_v55, %v6417_v51 }
 0x1e1   : > { %v2788_v53 = vsel %vm2516_vm12, %v6414_v17, 0.0  ;;  %v5447_v50 = vadd.f32 %v5191_v21, %v4647_v29  ;;  %v2244_v52 = vadd.f32 %v1988_v62, %v1188_v27  ;;  %v3588_v54 = vsel %vm3316_vm13, %v6423_v19, 0.0 }
 0x1e2   : > { %vm4116_vm14 = vcmp.eq.s32.totalorder %v8047_v55, %v6403_v13  ;;  %v4775_v23 = vadd.f32 %v4519_v20, %v3975_v3  ;;  %vm4916_vm15 = vcmp.eq.s32.totalorder %v8047_v55, %v6451_v46  ;;  %v8139_v43 = vadd.s32 464, %v6211_v14 }
 0x1e3   : > { %v4388_v47 = vsel %vm4116_vm14, %v6406_v15, 0.0  ;;  %5644 = vmatpush2.msra.mxu0 %v5447_v50  ;;  %v3044_v39 = vadd.f32 %v2788_v53, %v2244_v52  ;;  %v5188_v30 = vsel %vm4916_vm15, %v6454_v33, 0.0  ;;  %vm915_vm5 = vcmp.eq.s32.totalorder %v8047_v55, %v6442_v37 }
 0x1e4   : > { %11533 = vst [vmem:[#allocation35_spill] sm:$0xff] %v8139_v43  ;;  %vm1715_vm6 = vcmp.eq.s32.totalorder %v8047_v55, %v6448_v40  ;;  %v5575_v21 = vadd.f32 %v5319_v44, %v4775_v23  ;;  %vm1044_vm0 = vcmp.eq.s32.totalorder %v8139_v43, %v6385_v7  ;;  %vm1844_vm1 = vcmp.eq.s32.totalorder %v8139_v43, %v6397_v11 }
 0x1e5   : > { %vm2644_vm2 = vcmp.eq.s32.totalorder %v8139_v43, %v6411_v16  ;;  %v3844_v20 = vadd.f32 %v3588_v54, %v3044_v39  ;;  %v1316_v29 = vsel %vm1044_vm0, %v6388_v8, 0.0  ;;  %v2116_v27 = vsel %vm1844_vm1, %v6400_v12, 0.0 }
 0x1e6   : > { %v2916_v3 = vsel %vm2644_vm2, %v6414_v17, 0.0  ;;  %5715 = vmatpush2.msra.mxu1 %v5575_v21  ;;  %v2372_v62 = vadd.f32 %v2116_v27, %v1316_v29  ;;  %vm3444_vm3 = vcmp.eq.s32.totalorder %v8139_v43, %v6417_v51  ;;  %vm4244_vm4 = vcmp.eq.s32.totalorder %v8139_v43, %v6403_v13 }
 0x1e7   : > { %vm5044_vm7 = vcmp.eq.s32.totalorder %v8139_v43, %v6451_v46  ;;  %v4644_v44 = vadd.f32 %v4388_v47, %v3844_v20  ;;  %v3716_v53 = vsel %vm3444_vm3, %v6423_v19, 0.0  ;;  %v4516_v50 = vsel %vm4244_vm4, %v6406_v15, 0.0 }
 0x1e8   : > { %v5316_v52 = vsel %vm5044_vm7, %v6454_v33, 0.0  ;;  %v3172_v54 = vadd.f32 %v2916_v3, %v2372_v62  ;;  %v1187_v23 = vsel %vm915_vm5, %v6445_v32, 0.0  ;;  %v1987_v39 = vsel %vm1715_vm6, %v6457_v45, 0.0 }
 0x1e9   : > { %vm2515_vm8 = vcmp.eq.s32.totalorder %v8047_v55, %v6486_v28  ;;  %v5444_v47 = vadd.f32 %v5188_v30, %v4644_v44  ;;  %v2243_v21 = vadd.f32 %v1987_v39, %v1187_v23  ;;  %vm3315_vm9 = vcmp.eq.s32.totalorder %v8047_v55, %v6493_v36 }
 0x1ea   : > { %v2787_v20 = vsel %vm2515_vm8, %v6489_v58, 0.0  ;;  %v3972_v29 = vadd.f32 %v3716_v53, %v3172_v54  ;;  %v3587_v27 = vsel %vm3315_vm9, %v6496_v31, 0.0  ;;  %vm4115_vm10 = vcmp.eq.s32.totalorder %v8047_v55, %v6501_v22 }
 0x1eb   : > { %vm4915_vm11 = vcmp.eq.s32.totalorder %v8047_v55, %v6510_v0  ;;  %5645 = vmatprep.subr.mxu0 %v5444_v47  ;;  %v3043_v3 = vadd.f32 %v2787_v20, %v2243_v21  ;;  %v4387_v62 = vsel %vm4115_vm10, %v6504_v61, 0.0  ;;  %vm1043_vm12 = vcmp.eq.s32.totalorder %v8139_v43, %v6442_v37 }
 0x1ec   : > { %v5187_v30 = vsel %vm4915_vm11, %v6516_v2, 0.0  ;;  %v4772_v44 = vadd.f32 %v4516_v50, %v3972_v29  ;;  %v1315_v53 = vsel %vm1043_vm12, %v6445_v32, 0.0  ;;  %vm1843_vm13 = vcmp.eq.s32.totalorder %v8139_v43, %v6448_v40 }
 0x1ed   : > { %vm2643_vm14 = vcmp.eq.s32.totalorder %v8139_v43, %v6486_v28  ;;  %v3843_v54 = vadd.f32 %v3587_v27, %v3043_v3  ;;  %v2115_v23 = vsel %vm1843_vm13, %v6457_v45, 0.0  ;;  %vm3443_vm15 = vcmp.eq.s32.totalorder %v8139_v43, %v6493_v36 }
 0x1ee   : > { %v2915_v39 = vsel %vm2643_vm14, %v6489_v58, 0.0  ;;  %v5572_v47 = vadd.f32 %v5316_v52, %v4772_v44  ;;  %v2371_v21 = vadd.f32 %v2115_v23, %v1315_v53  ;;  %v3715_v50 = vsel %vm3443_vm15, %v6496_v31, 0.0 }
 0x1ef   : > { %vm4243_vm5 = vcmp.eq.s32.totalorder %v8139_v43, %v6501_v22  ;;  %v4643_v20 = vadd.f32 %v4387_v62, %v3843_v54  ;;  %vm5043_vm6 = vcmp.eq.s32.totalorder %v8139_v43, %v6510_v0  ;;  %v8202_v27 = vadd.s32 200, %v6211_v14 }
 0x1f0   : > { %v4515_v29 = vsel %vm4243_vm5, %v6504_v61, 0.0  ;;  %5716 = vmatprep.subr.mxu1 %v5572_v47  ;;  %v3171_v3 = vadd.f32 %v2915_v39, %v2371_v21  ;;  %v5315_v55 = vsel %vm5043_vm6, %v6516_v2, 0.0  ;;  %v8206_v52 = vadd.s32 456, %v6211_v14 }
 0x1f1   : > { %11534 = vst [vmem:[#allocation36_spill] sm:$0xff] %v8202_v27  ;;  %v8209_v44 = vadd.s32 192, %v6211_v14  ;;  %v5443_v53 = vadd.f32 %v5187_v30, %v4643_v20  ;;  %vm912_vm0 = vcmp.eq.s32.totalorder %v8202_v27, %v6385_v7  ;;  %vm1712_vm1 = vcmp.eq.s32.totalorder %v8202_v27, %v6397_v11 }
 0x1f2   : > { %11535 = vst [vmem:[#allocation37_spill] sm:$0xff] %v8206_v52  ;;  %vm2512_vm2 = vcmp.eq.s32.totalorder %v8202_v27, %v6411_v16  ;;  %v3971_v62 = vadd.f32 %v3715_v50, %v3171_v3  ;;  %v1184_v54 = vsel %vm912_vm0, %v6388_v8, 0.0  ;;  %v1984_v23 = vsel %vm1712_vm1, %v6400_v12, 0.0 }
 0x1f3   : > { %11536 = vst [vmem:[#allocation38_spill] sm:$0xff] %v8209_v44  ;;  %v2784_v39 = vsel %vm2512_vm2, %v6414_v17, 0.0  ;;  %5646 = vmatpush2.msra.mxu0 %v5443_v53  ;;  %v2240_v47 = vadd.f32 %v1984_v23, %v1184_v54  ;;  %vm3312_vm3 = vcmp.eq.s32.totalorder %v8202_v27, %v6417_v51  ;;  %vm4112_vm4 = vcmp.eq.s32.totalorder %v8202_v27, %v6403_v13 }
 0x1f4   : > { %vm4912_vm7 = vcmp.eq.s32.totalorder %v8202_v27, %v6451_v46  ;;  %v4771_v30 = vadd.f32 %v4515_v29, %v3971_v62  ;;  %v3584_v21 = vsel %vm3312_vm3, %v6423_v19, 0.0  ;;  %v4384_v50 = vsel %vm4112_vm4, %v6406_v15, 0.0 }
 0x1f5   : > { %v5184_v20 = vsel %vm4912_vm7, %v6454_v33, 0.0  ;;  %v3040_v3 = vadd.f32 %v2784_v39, %v2240_v47  ;;  %vm1040_vm8 = vcmp.eq.s32.totalorder %v8206_v52, %v6385_v7  ;;  %vm1840_vm9 = vcmp.eq.s32.totalorder %v8206_v52, %v6397_v11 }
 0x1f6   : > { %vm2640_vm10 = vcmp.eq.s32.totalorder %v8206_v52, %v6411_v16  ;;  %v5571_v53 = vadd.f32 %v5315_v55, %v4771_v30  ;;  %v1312_v54 = vsel %vm1040_vm8, %v6388_v8, 0.0  ;;  %v2112_v29 = vsel %vm1840_vm9, %v6400_v12, 0.0 }
 0x1f7   : > { %v2912_v62 = vsel %vm2640_vm10, %v6414_v17, 0.0  ;;  %v3840_v23 = vadd.f32 %v3584_v21, %v3040_v3  ;;  %v2368_v43 = vadd.f32 %v2112_v29, %v1312_v54  ;;  %vm3440_vm11 = vcmp.eq.s32.totalorder %v8206_v52, %v6417_v51 }
 0x1f8   : > { %vm4240_vm12 = vcmp.eq.s32.totalorder %v8206_v52, %v6403_v13  ;;  %5717 = vmatpush2.msra.mxu1 %v5571_v53  ;;  %v3712_v39 = vsel %vm3440_vm11, %v6423_v19, 0.0  ;;  %vm5040_vm13 = vcmp.eq.s32.totalorder %v8206_v52, %v6451_v46  ;;  %vm911_vm14 = vcmp.eq.s32.totalorder %v8202_v27, %v6442_v37 }
 0x1f9   : > { %v4512_v47 = vsel %vm4240_vm12, %v6406_v15, 0.0  ;;  %v4640_v55 = vadd.f32 %v4384_v50, %v3840_v23  ;;  %v3168_v30 = vadd.f32 %v2912_v62, %v2368_v43  ;;  %v5312_v21 = vsel %vm5040_vm13, %v6454_v33, 0.0 }
 0x1fa   : > { %v1183_v3 = vsel %vm911_vm14, %v6445_v32, 0.0  ;;  %vm1711_vm15 = vcmp.eq.s32.totalorder %v8202_v27, %v6448_v40  ;;  %vm2511_vm5 = vcmp.eq.s32.totalorder %v8202_v27, %v6486_v28  ;;  %vm3311_vm6 = vcmp.eq.s32.totalorder %v8202_v27, %v6493_v36 }
 0x1fb   : > { %vm4111_vm0 = vcmp.eq.s32.totalorder %v8202_v27, %v6501_v22  ;;  %v5440_v53 = vadd.f32 %v5184_v20, %v4640_v55  ;;  %v3968_v54 = vadd.f32 %v3712_v39, %v3168_v30  ;;  %v1983_v43 = vsel %vm1711_vm15, %v6457_v45, 0.0 }
 0x1fc   : > { %v2783_v50 = vsel %vm2511_vm5, %v6489_v58, 0.0  ;;  %v2239_v29 = vadd.f32 %v1983_v43, %v1183_v3  ;;  %v3583_v62 = vsel %vm3311_vm6, %v6496_v31, 0.0  ;;  %v4383_v23 = vsel %vm4111_vm0, %v6504_v61, 0.0 }
 0x1fd   : > { %vm4911_vm1 = vcmp.eq.s32.totalorder %v8202_v27, %v6510_v0  ;;  %5647 = vmatprep.subr.mxu0 %v5440_v53  ;;  %v4768_v49 = vadd.f32 %v4512_v47, %v3968_v54  ;;  %vm1039_vm2 = vcmp.eq.s32.totalorder %v8206_v52, %v6442_v37  ;;  %vm1839_vm3 = vcmp.eq.s32.totalorder %v8206_v52, %v6448_v40 }
 0x1fe   : > { %v5183_v18 = vsel %vm4911_vm1, %v6516_v2, 0.0  ;;  %v3039_v20 = vadd.f32 %v2783_v50, %v2239_v29  ;;  %v1311_v39 = vsel %vm1039_vm2, %v6445_v32, 0.0  ;;  %v2111_v55 = vsel %vm1839_vm3, %v6457_v45, 0.0 }
 0x1ff   : > { %vm2639_vm4 = vcmp.eq.s32.totalorder %v8206_v52, %v6486_v28  ;;  %v5568_v30 = vadd.f32 %v5312_v21, %v4768_v49  ;;  %v2367_v3 = vadd.f32 %v2111_v55, %v1311_v39  ;;  %vm3439_vm7 = vcmp.eq.s32.totalorder %v8206_v52, %v6493_v36 }
 0x200   : > { %v2911_v47 = vsel %vm2639_vm4, %v6489_v58, 0.0  ;;  %v3839_v53 = vadd.f32 %v3583_v62, %v3039_v20  ;;  %v3711_v54 = vsel %vm3439_vm7, %v6496_v31, 0.0  ;;  %vm4239_vm8 = vcmp.eq.s32.totalorder %v8206_v52, %v6501_v22 }
 0x201   : > { %vm5039_vm9 = vcmp.eq.s32.totalorder %v8206_v52, %v6510_v0  ;;  %5718 = vmatprep.subr.mxu1 %v5568_v30  ;;  %v3167_v43 = vadd.f32 %v2911_v47, %v2367_v3  ;;  %v4511_v50 = vsel %vm4239_vm8, %v6504_v61, 0.0  ;;  %vm908_vm10 = vcmp.eq.s32.totalorder %v8209_v44, %v6385_v7 }
 0x202   : > { %v5311_v49 = vsel %vm5039_vm9, %v6516_v2, 0.0  ;;  %v4639_v21 = vadd.f32 %v4383_v23, %v3839_v53  ;;  %v1180_v29 = vsel %vm908_vm10, %v6388_v8, 0.0  ;;  %vm1708_vm11 = vcmp.eq.s32.totalorder %v8209_v44, %v6397_v11 }
 0x203   : > { %vm2508_vm12 = vcmp.eq.s32.totalorder %v8209_v44, %v6411_v16  ;;  %v3967_v62 = vadd.f32 %v3711_v54, %v3167_v43  ;;  %v1980_v20 = vsel %vm1708_vm11, %v6400_v12, 0.0  ;;  %vm3308_vm13 = vcmp.eq.s32.totalorder %v8209_v44, %v6417_v51 }
 0x204   : > { %v2780_v39 = vsel %vm2508_vm12, %v6414_v17, 0.0  ;;  %v5439_v55 = vadd.f32 %v5183_v18, %v4639_v21  ;;  %v2236_v30 = vadd.f32 %v1980_v20, %v1180_v29  ;;  %v3580_v23 = vsel %vm3308_vm13, %v6423_v19, 0.0 }
 0x205   : > { %vm4108_vm14 = vcmp.eq.s32.totalorder %v8209_v44, %v6403_v13  ;;  %v4767_v3 = vadd.f32 %v4511_v50, %v3967_v62  ;;  %vm4908_vm15 = vcmp.eq.s32.totalorder %v8209_v44, %v6451_v46  ;;  %v8301_v53 = vadd.s32 448, %v6211_v14 }
 0x206   : > { %v4380_v47 = vsel %vm4108_vm14, %v6406_v15, 0.0  ;;  %5648 = vmatpush2.msra.mxu0 %v5439_v55  ;;  %v3036_v54 = vadd.f32 %v2780_v39, %v2236_v30  ;;  %v5180_v43 = vsel %vm4908_vm15, %v6454_v33, 0.0  ;;  %vm907_vm5 = vcmp.eq.s32.totalorder %v8209_v44, %v6442_v37 }
 0x207   : > { %11537 = vst [vmem:[#allocation39_spill] sm:$0xff] %v8301_v53  ;;  %vm1707_vm6 = vcmp.eq.s32.totalorder %v8209_v44, %v6448_v40  ;;  %v5567_v18 = vadd.f32 %v5311_v49, %v4767_v3  ;;  %vm1036_vm0 = vcmp.eq.s32.totalorder %v8301_v53, %v6385_v7  ;;  %vm1836_vm1 = vcmp.eq.s32.totalorder %v8301_v53, %v6397_v11 }
 0x208   : > { %vm2636_vm2 = vcmp.eq.s32.totalorder %v8301_v53, %v6411_v16  ;;  %v3836_v50 = vadd.f32 %v3580_v23, %v3036_v54  ;;  %v1308_v21 = vsel %vm1036_vm0, %v6388_v8, 0.0  ;;  %v2108_v29 = vsel %vm1836_vm1, %v6400_v12, 0.0 }
 0x209   : > { %v2908_v62 = vsel %vm2636_vm2, %v6414_v17, 0.0  ;;  %5719 = vmatpush2.msra.mxu1 %v5567_v18  ;;  %v2364_v20 = vadd.f32 %v2108_v29, %v1308_v21  ;;  %vm3436_vm3 = vcmp.eq.s32.totalorder %v8301_v53, %v6417_v51  ;;  %vm4236_vm4 = vcmp.eq.s32.totalorder %v8301_v53, %v6403_v13 }
 0x20a   : > { %vm5036_vm7 = vcmp.eq.s32.totalorder %v8301_v53, %v6451_v46  ;;  %v4636_v49 = vadd.f32 %v4380_v47, %v3836_v50  ;;  %v3708_v39 = vsel %vm3436_vm3, %v6423_v19, 0.0  ;;  %v4508_v55 = vsel %vm4236_vm4, %v6406_v15, 0.0 }
 0x20b   : > { %v5308_v30 = vsel %vm5036_vm7, %v6454_v33, 0.0  ;;  %v3164_v23 = vadd.f32 %v2908_v62, %v2364_v20  ;;  %v1179_v3 = vsel %vm907_vm5, %v6445_v32, 0.0  ;;  %v1979_v54 = vsel %vm1707_vm6, %v6457_v45, 0.0 }
 0x20c   : > { %vm2507_vm8 = vcmp.eq.s32.totalorder %v8209_v44, %v6486_v28  ;;  %v5436_v47 = vadd.f32 %v5180_v43, %v4636_v49  ;;  %v2235_v18 = vadd.f32 %v1979_v54, %v1179_v3  ;;  %vm3307_vm9 = vcmp.eq.s32.totalorder %v8209_v44, %v6493_v36 }
 0x20d   : > { %v2779_v50 = vsel %vm2507_vm8, %v6489_v58, 0.0  ;;  %v3964_v21 = vadd.f32 %v3708_v39, %v3164_v23  ;;  %v3579_v29 = vsel %vm3307_vm9, %v6496_v31, 0.0  ;;  %vm4107_vm10 = vcmp.eq.s32.totalorder %v8209_v44, %v6501_v22 }
 0x20e   : > { %vm4907_vm11 = vcmp.eq.s32.totalorder %v8209_v44, %v6510_v0  ;;  %5649 = vmatprep.subr.mxu0 %v5436_v47  ;;  %v3035_v62 = vadd.f32 %v2779_v50, %v2235_v18  ;;  %v4379_v20 = vsel %vm4107_vm10, %v6504_v61, 0.0  ;;  %vm1035_vm12 = vcmp.eq.s32.totalorder %v8301_v53, %v6442_v37 }
 0x20f   : > { %v5179_v43 = vsel %vm4907_vm11, %v6516_v2, 0.0  ;;  %v4764_v49 = vadd.f32 %v4508_v55, %v3964_v21  ;;  %v1307_v39 = vsel %vm1035_vm12, %v6445_v32, 0.0  ;;  %vm1835_vm13 = vcmp.eq.s32.totalorder %v8301_v53, %v6448_v40 }
 0x210   : > { %vm2635_vm14 = vcmp.eq.s32.totalorder %v8301_v53, %v6486_v28  ;;  %v3835_v23 = vadd.f32 %v3579_v29, %v3035_v62  ;;  %v2107_v3 = vsel %vm1835_vm13, %v6457_v45, 0.0  ;;  %vm3435_vm15 = vcmp.eq.s32.totalorder %v8301_v53, %v6493_v36 }
 0x211   : > { %v2907_v54 = vsel %vm2635_vm14, %v6489_v58, 0.0  ;;  %v5564_v47 = vadd.f32 %v5308_v30, %v4764_v49  ;;  %v2363_v18 = vadd.f32 %v2107_v3, %v1307_v39  ;;  %v3707_v55 = vsel %vm3435_vm15, %v6496_v31, 0.0 }
 0x212   : > { %vm4235_vm5 = vcmp.eq.s32.totalorder %v8301_v53, %v6501_v22  ;;  %v4635_v50 = vadd.f32 %v4379_v20, %v3835_v23  ;;  %vm5035_vm6 = vcmp.eq.s32.totalorder %v8301_v53, %v6510_v0  ;;  %v8364_v29 = vadd.s32 184, %v6211_v14 }
 0x213   : > { %v4507_v21 = vsel %vm4235_vm5, %v6504_v61, 0.0  ;;  %5720 = vmatprep.subr.mxu1 %v5564_v47  ;;  %v3163_v62 = vadd.f32 %v2907_v54, %v2363_v18  ;;  %v5307_v44 = vsel %vm5035_vm6, %v6516_v2, 0.0  ;;  %v8368_v30 = vadd.s32 440, %v6211_v14 }
 0x214   : > { %11538 = vst [vmem:[#allocation40_spill] sm:$0xff] %v8364_v29  ;;  %v8371_v49 = vadd.s32 176, %v6211_v14  ;;  %v5435_v39 = vadd.f32 %v5179_v43, %v4635_v50  ;;  %vm904_vm0 = vcmp.eq.s32.totalorder %v8364_v29, %v6385_v7  ;;  %vm1704_vm1 = vcmp.eq.s32.totalorder %v8364_v29, %v6397_v11 }
 0x215   : > { %11539 = vst [vmem:[#allocation41_spill] sm:$0xff] %v8368_v30  ;;  %vm2504_vm2 = vcmp.eq.s32.totalorder %v8364_v29, %v6411_v16  ;;  %v3963_v20 = vadd.f32 %v3707_v55, %v3163_v62  ;;  %v1176_v23 = vsel %vm904_vm0, %v6388_v8, 0.0  ;;  %v1976_v3 = vsel %vm1704_vm1, %v6400_v12, 0.0 }
 0x216   : > { %11540 = vst [vmem:[#allocation42_spill] sm:$0xff] %v8371_v49  ;;  %v2776_v54 = vsel %vm2504_vm2, %v6414_v17, 0.0  ;;  %5650 = vmatpush2.msra.mxu0 %v5435_v39  ;;  %v2232_v47 = vadd.f32 %v1976_v3, %v1176_v23  ;;  %vm3304_vm3 = vcmp.eq.s32.totalorder %v8364_v29, %v6417_v51  ;;  %vm4104_vm4 = vcmp.eq.s32.totalorder %v8364_v29, %v6403_v13 }
 0x217   : > { %vm4904_vm7 = vcmp.eq.s32.totalorder %v8364_v29, %v6451_v46  ;;  %v4763_v43 = vadd.f32 %v4507_v21, %v3963_v20  ;;  %v3576_v18 = vsel %vm3304_vm3, %v6423_v19, 0.0  ;;  %v4376_v55 = vsel %vm4104_vm4, %v6406_v15, 0.0 }
 0x218   : > { %v5176_v50 = vsel %vm4904_vm7, %v6454_v33, 0.0  ;;  %v3032_v62 = vadd.f32 %v2776_v54, %v2232_v47  ;;  %vm1032_vm8 = vcmp.eq.s32.totalorder %v8368_v30, %v6385_v7  ;;  %vm1832_vm9 = vcmp.eq.s32.totalorder %v8368_v30, %v6397_v11 }
 0x219   : > { %vm2632_vm10 = vcmp.eq.s32.totalorder %v8368_v30, %v6411_v16  ;;  %v5563_v39 = vadd.f32 %v5307_v44, %v4763_v43  ;;  %v1304_v23 = vsel %vm1032_vm8, %v6388_v8, 0.0  ;;  %v2104_v21 = vsel %vm1832_vm9, %v6400_v12, 0.0 }
 0x21a   : > { %v2904_v20 = vsel %vm2632_vm10, %v6414_v17, 0.0  ;;  %v3832_v3 = vadd.f32 %v3576_v18, %v3032_v62  ;;  %v2360_v53 = vadd.f32 %v2104_v21, %v1304_v23  ;;  %vm3432_vm11 = vcmp.eq.s32.totalorder %v8368_v30, %v6417_v51 }
 0x21b   : > { %vm4232_vm12 = vcmp.eq.s32.totalorder %v8368_v30, %v6403_v13  ;;  %5721 = vmatpush2.msra.mxu1 %v5563_v39  ;;  %v3704_v54 = vsel %vm3432_vm11, %v6423_v19, 0.0  ;;  %vm5032_vm13 = vcmp.eq.s32.totalorder %v8368_v30, %v6451_v46  ;;  %vm903_vm14 = vcmp.eq.s32.totalorder %v8364_v29, %v6442_v37 }
 0x21c   : > { %v4504_v47 = vsel %vm4232_vm12, %v6406_v15, 0.0  ;;  %v4632_v44 = vadd.f32 %v4376_v55, %v3832_v3  ;;  %v3160_v43 = vadd.f32 %v2904_v20, %v2360_v53  ;;  %v5304_v18 = vsel %vm5032_vm13, %v6454_v33, 0.0 }
 0x21d   : > { %v1175_v62 = vsel %vm903_vm14, %v6445_v32, 0.0  ;;  %vm1703_vm15 = vcmp.eq.s32.totalorder %v8364_v29, %v6448_v40  ;;  %vm2503_vm5 = vcmp.eq.s32.totalorder %v8364_v29, %v6486_v28  ;;  %vm3303_vm6 = vcmp.eq.s32.totalorder %v8364_v29, %v6493_v36 }
 0x21e   : > { %vm4103_vm0 = vcmp.eq.s32.totalorder %v8364_v29, %v6501_v22  ;;  %v5432_v39 = vadd.f32 %v5176_v50, %v4632_v44  ;;  %v3960_v23 = vadd.f32 %v3704_v54, %v3160_v43  ;;  %v1975_v53 = vsel %vm1703_vm15, %v6457_v45, 0.0 }
 0x21f   : > { %v2775_v55 = vsel %vm2503_vm5, %v6489_v58, 0.0  ;;  %v2231_v21 = vadd.f32 %v1975_v53, %v1175_v62  ;;  %v3575_v20 = vsel %vm3303_vm6, %v6496_v31, 0.0  ;;  %v4375_v3 = vsel %vm4103_vm0, %v6504_v61, 0.0 }
 0x220   : > { %vm4903_vm1 = vcmp.eq.s32.totalorder %v8364_v29, %v6510_v0  ;;  %5651 = vmatprep.subr.mxu0 %v5432_v39  ;;  %v4760_v52 = vadd.f32 %v4504_v47, %v3960_v23  ;;  %vm1031_vm2 = vcmp.eq.s32.totalorder %v8368_v30, %v6442_v37  ;;  %vm1831_vm3 = vcmp.eq.s32.totalorder %v8368_v30, %v6448_v40 }
 0x221   : > { %v5175_v27 = vsel %vm4903_vm1, %v6516_v2, 0.0  ;;  %v3031_v50 = vadd.f32 %v2775_v55, %v2231_v21  ;;  %v1303_v54 = vsel %vm1031_vm2, %v6445_v32, 0.0  ;;  %v2103_v44 = vsel %vm1831_vm3, %v6457_v45, 0.0 }
 0x222   : > { %vm2631_vm4 = vcmp.eq.s32.totalorder %v8368_v30, %v6486_v28  ;;  %v5560_v43 = vadd.f32 %v5304_v18, %v4760_v52  ;;  %v2359_v62 = vadd.f32 %v2103_v44, %v1303_v54  ;;  %vm3431_vm7 = vcmp.eq.s32.totalorder %v8368_v30, %v6493_v36 }
 0x223   : > { %v2903_v47 = vsel %vm2631_vm4, %v6489_v58, 0.0  ;;  %v3831_v39 = vadd.f32 %v3575_v20, %v3031_v50  ;;  %v3703_v23 = vsel %vm3431_vm7, %v6496_v31, 0.0  ;;  %vm4231_vm8 = vcmp.eq.s32.totalorder %v8368_v30, %v6501_v22 }
 0x224   : > { %vm5031_vm9 = vcmp.eq.s32.totalorder %v8368_v30, %v6510_v0  ;;  %5722 = vmatprep.subr.mxu1 %v5560_v43  ;;  %v3159_v53 = vadd.f32 %v2903_v47, %v2359_v62  ;;  %v4503_v55 = vsel %vm4231_vm8, %v6504_v61, 0.0  ;;  %vm900_vm10 = vcmp.eq.s32.totalorder %v8371_v49, %v6385_v7 }
 0x225   : > { %v5303_v52 = vsel %vm5031_vm9, %v6516_v2, 0.0  ;;  %v4631_v18 = vadd.f32 %v4375_v3, %v3831_v39  ;;  %v1172_v21 = vsel %vm900_vm10, %v6388_v8, 0.0  ;;  %vm1700_vm11 = vcmp.eq.s32.totalorder %v8371_v49, %v6397_v11 }
 0x226   : > { %vm2500_vm12 = vcmp.eq.s32.totalorder %v8371_v49, %v6411_v16  ;;  %v3959_v20 = vadd.f32 %v3703_v23, %v3159_v53  ;;  %v1972_v50 = vsel %vm1700_vm11, %v6400_v12, 0.0  ;;  %vm3300_vm13 = vcmp.eq.s32.totalorder %v8371_v49, %v6417_v51 }
 0x227   : > { %v2772_v54 = vsel %vm2500_vm12, %v6414_v17, 0.0  ;;  %v5431_v44 = vadd.f32 %v5175_v27, %v4631_v18  ;;  %v2228_v43 = vadd.f32 %v1972_v50, %v1172_v21  ;;  %v3572_v3 = vsel %vm3300_vm13, %v6423_v19, 0.0 }
 0x228   : > { %vm4100_vm14 = vcmp.eq.s32.totalorder %v8371_v49, %v6403_v13  ;;  %v4759_v62 = vadd.f32 %v4503_v55, %v3959_v20  ;;  %vm4900_vm15 = vcmp.eq.s32.totalorder %v8371_v49, %v6451_v46  ;;  %v8463_v39 = vadd.s32 432, %v6211_v14 }
 0x229   : > { %v4372_v47 = vsel %vm4100_vm14, %v6406_v15, 0.0  ;;  %5652 = vmatpush2.msra.mxu0 %v5431_v44  ;;  %v3028_v23 = vadd.f32 %v2772_v54, %v2228_v43  ;;  %v5172_v53 = vsel %vm4900_vm15, %v6454_v33, 0.0  ;;  %vm899_vm5 = vcmp.eq.s32.totalorder %v8371_v49, %v6442_v37 }
 0x22a   : > { %11541 = vst [vmem:[#allocation43_spill] sm:$0xff] %v8463_v39  ;;  %vm1699_vm6 = vcmp.eq.s32.totalorder %v8371_v49, %v6448_v40  ;;  %v5559_v27 = vadd.f32 %v5303_v52, %v4759_v62  ;;  %vm1028_vm0 = vcmp.eq.s32.totalorder %v8463_v39, %v6385_v7  ;;  %vm1828_vm1 = vcmp.eq.s32.totalorder %v8463_v39, %v6397_v11 }
 0x22b   : > { %vm2628_vm2 = vcmp.eq.s32.totalorder %v8463_v39, %v6411_v16  ;;  %v3828_v55 = vadd.f32 %v3572_v3, %v3028_v23  ;;  %v1300_v18 = vsel %vm1028_vm0, %v6388_v8, 0.0  ;;  %v2100_v21 = vsel %vm1828_vm1, %v6400_v12, 0.0 }
 0x22c   : > { %v2900_v20 = vsel %vm2628_vm2, %v6414_v17, 0.0  ;;  %5723 = vmatpush2.msra.mxu1 %v5559_v27  ;;  %v2356_v50 = vadd.f32 %v2100_v21, %v1300_v18  ;;  %vm3428_vm3 = vcmp.eq.s32.totalorder %v8463_v39, %v6417_v51  ;;  %vm4228_vm4 = vcmp.eq.s32.totalorder %v8463_v39, %v6403_v13 }
 0x22d   : > { %vm5028_vm7 = vcmp.eq.s32.totalorder %v8463_v39, %v6451_v46  ;;  %v4628_v52 = vadd.f32 %v4372_v47, %v3828_v55  ;;  %v3700_v54 = vsel %vm3428_vm3, %v6423_v19, 0.0  ;;  %v4500_v44 = vsel %vm4228_vm4, %v6406_v15, 0.0 }
 0x22e   : > { %v5300_v43 = vsel %vm5028_vm7, %v6454_v33, 0.0  ;;  %v3156_v3 = vadd.f32 %v2900_v20, %v2356_v50  ;;  %v1171_v62 = vsel %vm899_vm5, %v6445_v32, 0.0  ;;  %v1971_v23 = vsel %vm1699_vm6, %v6457_v45, 0.0 }
 0x22f   : > { %vm2499_vm8 = vcmp.eq.s32.totalorder %v8371_v49, %v6486_v28  ;;  %v5428_v47 = vadd.f32 %v5172_v53, %v4628_v52  ;;  %v2227_v27 = vadd.f32 %v1971_v23, %v1171_v62  ;;  %vm3299_vm9 = vcmp.eq.s32.totalorder %v8371_v49, %v6493_v36 }
 0x230   : > { %v2771_v55 = vsel %vm2499_vm8, %v6489_v58, 0.0  ;;  %v3956_v18 = vadd.f32 %v3700_v54, %v3156_v3  ;;  %v3571_v21 = vsel %vm3299_vm9, %v6496_v31, 0.0  ;;  %vm4099_vm10 = vcmp.eq.s32.totalorder %v8371_v49, %v6501_v22 }
 0x231   : > { %vm4899_vm11 = vcmp.eq.s32.totalorder %v8371_v49, %v6510_v0  ;;  %5653 = vmatprep.subr.mxu0 %v5428_v47  ;;  %v3027_v20 = vadd.f32 %v2771_v55, %v2227_v27  ;;  %v4371_v50 = vsel %vm4099_vm10, %v6504_v61, 0.0  ;;  %vm1027_vm12 = vcmp.eq.s32.totalorder %v8463_v39, %v6442_v37 }
 0x232   : > { %v5171_v53 = vsel %vm4899_vm11, %v6516_v2, 0.0  ;;  %v4756_v52 = vadd.f32 %v4500_v44, %v3956_v18  ;;  %v1299_v54 = vsel %vm1027_vm12, %v6445_v32, 0.0  ;;  %vm1827_vm13 = vcmp.eq.s32.totalorder %v8463_v39, %v6448_v40 }
 0x233   : > { %vm2627_vm14 = vcmp.eq.s32.totalorder %v8463_v39, %v6486_v28  ;;  %v3827_v3 = vadd.f32 %v3571_v21, %v3027_v20  ;;  %v2099_v62 = vsel %vm1827_vm13, %v6457_v45, 0.0  ;;  %vm3427_vm15 = vcmp.eq.s32.totalorder %v8463_v39, %v6493_v36 }
 0x234   : > { %v2899_v23 = vsel %vm2627_vm14, %v6489_v58, 0.0  ;;  %v5556_v47 = vadd.f32 %v5300_v43, %v4756_v52  ;;  %v2355_v27 = vadd.f32 %v2099_v62, %v1299_v54  ;;  %v3699_v44 = vsel %vm3427_vm15, %v6496_v31, 0.0 }
 0x235   : > { %vm4227_vm5 = vcmp.eq.s32.totalorder %v8463_v39, %v6501_v22  ;;  %v4627_v55 = vadd.f32 %v4371_v50, %v3827_v3  ;;  %vm5027_vm6 = vcmp.eq.s32.totalorder %v8463_v39, %v6510_v0  ;;  %v8526_v21 = vadd.s32 168, %v6211_v14 }
 0x236   : > { %v4499_v18 = vsel %vm4227_vm5, %v6504_v61, 0.0  ;;  %5724 = vmatprep.subr.mxu1 %v5556_v47  ;;  %v3155_v20 = vadd.f32 %v2899_v23, %v2355_v27  ;;  %v5299_v49 = vsel %vm5027_vm6, %v6516_v2, 0.0  ;;  %v8530_v43 = vadd.s32 424, %v6211_v14 }
 0x237   : > { %11542 = vst [vmem:[#allocation44_spill] sm:$0xff] %v8526_v21  ;;  %v8533_v52 = vadd.s32 160, %v6211_v14  ;;  %v5427_v54 = vadd.f32 %v5171_v53, %v4627_v55  ;;  %vm896_vm0 = vcmp.eq.s32.totalorder %v8526_v21, %v6385_v7  ;;  %vm1696_vm1 = vcmp.eq.s32.totalorder %v8526_v21, %v6397_v11 }
 0x238   : > { %11543 = vst [vmem:[#allocation45_spill] sm:$0xff] %v8530_v43  ;;  %vm2496_vm2 = vcmp.eq.s32.totalorder %v8526_v21, %v6411_v16  ;;  %v3955_v50 = vadd.f32 %v3699_v44, %v3155_v20  ;;  %v1168_v3 = vsel %vm896_vm0, %v6388_v8, 0.0  ;;  %v1968_v62 = vsel %vm1696_vm1, %v6400_v12, 0.0 }
 0x239   : > { %11544 = vst [vmem:[#allocation46_spill] sm:$0xff] %v8533_v52  ;;  %v2768_v23 = vsel %vm2496_vm2, %v6414_v17, 0.0  ;;  %5654 = vmatpush2.msra.mxu0 %v5427_v54  ;;  %v2224_v47 = vadd.f32 %v1968_v62, %v1168_v3  ;;  %vm3296_vm3 = vcmp.eq.s32.totalorder %v8526_v21, %v6417_v51  ;;  %vm4096_vm4 = vcmp.eq.s32.totalorder %v8526_v21, %v6403_v13 }
 0x23a   : > { %vm4896_vm7 = vcmp.eq.s32.totalorder %v8526_v21, %v6451_v46  ;;  %v4755_v53 = vadd.f32 %v4499_v18, %v3955_v50  ;;  %v3568_v27 = vsel %vm3296_vm3, %v6423_v19, 0.0  ;;  %v4368_v44 = vsel %vm4096_vm4, %v6406_v15, 0.0 }
 0x23b   : > { %v5168_v55 = vsel %vm4896_vm7, %v6454_v33, 0.0  ;;  %v3024_v20 = vadd.f32 %v2768_v23, %v2224_v47  ;;  %vm1024_vm8 = vcmp.eq.s32.totalorder %v8530_v43, %v6385_v7  ;;  %vm1824_vm9 = vcmp.eq.s32.totalorder %v8530_v43, %v6397_v11 }
 0x23c   : > { %vm2624_vm10 = vcmp.eq.s32.totalorder %v8530_v43, %v6411_v16  ;;  %v5555_v54 = vadd.f32 %v5299_v49, %v4755_v53  ;;  %v1296_v3 = vsel %vm1024_vm8, %v6388_v8, 0.0  ;;  %v2096_v18 = vsel %vm1824_vm9, %v6400_v12, 0.0 }
 0x23d   : > { %v2896_v50 = vsel %vm2624_vm10, %v6414_v17, 0.0  ;;  %v3824_v62 = vadd.f32 %v3568_v27, %v3024_v20  ;;  %v2352_v39 = vadd.f32 %v2096_v18, %v1296_v3  ;;  %vm3424_vm11 = vcmp.eq.s32.totalorder %v8530_v43, %v6417_v51 }
 0x23e   : > { %vm4224_vm12 = vcmp.eq.s32.totalorder %v8530_v43, %v6403_v13  ;;  %5725 = vmatpush2.msra.mxu1 %v5555_v54  ;;  %v3696_v23 = vsel %vm3424_vm11, %v6423_v19, 0.0  ;;  %vm5024_vm13 = vcmp.eq.s32.totalorder %v8530_v43, %v6451_v46  ;;  %vm895_vm14 = vcmp.eq.s32.totalorder %v8526_v21, %v6442_v37 }
 0x23f   : > { %v4496_v47 = vsel %vm4224_vm12, %v6406_v15, 0.0  ;;  %v4624_v49 = vadd.f32 %v4368_v44, %v3824_v62  ;;  %v3152_v53 = vadd.f32 %v2896_v50, %v2352_v39  ;;  %v5296_v27 = vsel %vm5024_vm13, %v6454_v33, 0.0 }
 0x240   : > { %v1167_v20 = vsel %vm895_vm14, %v6445_v32, 0.0  ;;  %vm1695_vm15 = vcmp.eq.s32.totalorder %v8526_v21, %v6448_v40  ;;  %vm2495_vm5 = vcmp.eq.s32.totalorder %v8526_v21, %v6486_v28  ;;  %vm3295_vm6 = vcmp.eq.s32.totalorder %v8526_v21, %v6493_v36 }
 0x241   : > { %vm4095_vm0 = vcmp.eq.s32.totalorder %v8526_v21, %v6501_v22  ;;  %v5424_v54 = vadd.f32 %v5168_v55, %v4624_v49  ;;  %v3952_v3 = vadd.f32 %v3696_v23, %v3152_v53  ;;  %v1967_v39 = vsel %vm1695_vm15, %v6457_v45, 0.0 }
 0x242   : > { %v2767_v44 = vsel %vm2495_vm5, %v6489_v58, 0.0  ;;  %v2223_v18 = vadd.f32 %v1967_v39, %v1167_v20  ;;  %v3567_v50 = vsel %vm3295_vm6, %v6496_v31, 0.0  ;;  %v4367_v62 = vsel %vm4095_vm0, %v6504_v61, 0.0 }
 0x243   : > { %vm4895_vm1 = vcmp.eq.s32.totalorder %v8526_v21, %v6510_v0  ;;  %5655 = vmatprep.subr.mxu0 %v5424_v54  ;;  %v4752_v30 = vadd.f32 %v4496_v47, %v3952_v3  ;;  %vm1023_vm2 = vcmp.eq.s32.totalorder %v8530_v43, %v6442_v37  ;;  %vm1823_vm3 = vcmp.eq.s32.totalorder %v8530_v43, %v6448_v40 }
 0x244   : > { %v5167_v29 = vsel %vm4895_vm1, %v6516_v2, 0.0  ;;  %v3023_v55 = vadd.f32 %v2767_v44, %v2223_v18  ;;  %v1295_v23 = vsel %vm1023_vm2, %v6445_v32, 0.0  ;;  %v2095_v49 = vsel %vm1823_vm3, %v6457_v45, 0.0 }
 0x245   : > { %vm2623_vm4 = vcmp.eq.s32.totalorder %v8530_v43, %v6486_v28  ;;  %v5552_v53 = vadd.f32 %v5296_v27, %v4752_v30  ;;  %v2351_v20 = vadd.f32 %v2095_v49, %v1295_v23  ;;  %vm3423_vm7 = vcmp.eq.s32.totalorder %v8530_v43, %v6493_v36 }
 0x246   : > { %v2895_v47 = vsel %vm2623_vm4, %v6489_v58, 0.0  ;;  %v3823_v54 = vadd.f32 %v3567_v50, %v3023_v55  ;;  %v3695_v3 = vsel %vm3423_vm7, %v6496_v31, 0.0  ;;  %vm4223_vm8 = vcmp.eq.s32.totalorder %v8530_v43, %v6501_v22 }
 0x247   : > { %vm5023_vm9 = vcmp.eq.s32.totalorder %v8530_v43, %v6510_v0  ;;  %5726 = vmatprep.subr.mxu1 %v5552_v53  ;;  %v3151_v39 = vadd.f32 %v2895_v47, %v2351_v20  ;;  %v4495_v44 = vsel %vm4223_vm8, %v6504_v61, 0.0  ;;  %vm892_vm10 = vcmp.eq.s32.totalorder %v8533_v52, %v6385_v7 }
 0x248   : > { %v5295_v30 = vsel %vm5023_vm9, %v6516_v2, 0.0  ;;  %v4623_v27 = vadd.f32 %v4367_v62, %v3823_v54  ;;  %v1164_v18 = vsel %vm892_vm10, %v6388_v8, 0.0  ;;  %vm1692_vm11 = vcmp.eq.s32.totalorder %v8533_v52, %v6397_v11 }
 0x249   : > { %vm2492_vm12 = vcmp.eq.s32.totalorder %v8533_v52, %v6411_v16  ;;  %v3951_v50 = vadd.f32 %v3695_v3, %v3151_v39  ;;  %v1964_v55 = vsel %vm1692_vm11, %v6400_v12, 0.0  ;;  %vm3292_vm13 = vcmp.eq.s32.totalorder %v8533_v52, %v6417_v51 }
 0x24a   : > { %v2764_v23 = vsel %vm2492_vm12, %v6414_v17, 0.0  ;;  %v5423_v49 = vadd.f32 %v5167_v29, %v4623_v27  ;;  %v2220_v53 = vadd.f32 %v1964_v55, %v1164_v18  ;;  %v3564_v62 = vsel %vm3292_vm13, %v6423_v19, 0.0 }
 0x24b   : > { %vm4092_vm14 = vcmp.eq.s32.totalorder %v8533_v52, %v6403_v13  ;;  %v4751_v20 = vadd.f32 %v4495_v44, %v3951_v50  ;;  %vm4892_vm15 = vcmp.eq.s32.totalorder %v8533_v52, %v6451_v46  ;;  %v8625_v54 = vadd.s32 416, %v6211_v14 }
 0x24c   : > { %v4364_v47 = vsel %vm4092_vm14, %v6406_v15, 0.0  ;;  %5656 = vmatpush2.msra.mxu0 %v5423_v49  ;;  %v3020_v3 = vadd.f32 %v2764_v23, %v2220_v53  ;;  %v5164_v39 = vsel %vm4892_vm15, %v6454_v33, 0.0  ;;  %vm891_vm5 = vcmp.eq.s32.totalorder %v8533_v52, %v6442_v37 }
 0x24d   : > { %11545 = vst [vmem:[#allocation47_spill] sm:$0xff] %v8625_v54  ;;  %vm1691_vm6 = vcmp.eq.s32.totalorder %v8533_v52, %v6448_v40  ;;  %v5551_v29 = vadd.f32 %v5295_v30, %v4751_v20  ;;  %vm1020_vm0 = vcmp.eq.s32.totalorder %v8625_v54, %v6385_v7  ;;  %vm1820_vm1 = vcmp.eq.s32.totalorder %v8625_v54, %v6397_v11 }
 0x24e   : > { %vm2620_vm2 = vcmp.eq.s32.totalorder %v8625_v54, %v6411_v16  ;;  %v3820_v44 = vadd.f32 %v3564_v62, %v3020_v3  ;;  %v1292_v27 = vsel %vm1020_vm0, %v6388_v8, 0.0  ;;  %v2092_v18 = vsel %vm1820_vm1, %v6400_v12, 0.0 }
 0x24f   : > { %v2892_v50 = vsel %vm2620_vm2, %v6414_v17, 0.0  ;;  %5727 = vmatpush2.msra.mxu1 %v5551_v29  ;;  %v2348_v55 = vadd.f32 %v2092_v18, %v1292_v27  ;;  %vm3420_vm3 = vcmp.eq.s32.totalorder %v8625_v54, %v6417_v51  ;;  %vm4220_vm4 = vcmp.eq.s32.totalorder %v8625_v54, %v6403_v13 }
 0x250   : > { %vm5020_vm7 = vcmp.eq.s32.totalorder %v8625_v54, %v6451_v46  ;;  %v4620_v30 = vadd.f32 %v4364_v47, %v3820_v44  ;;  %v3692_v23 = vsel %vm3420_vm3, %v6423_v19, 0.0  ;;  %v4492_v49 = vsel %vm4220_vm4, %v6406_v15, 0.0 }
 0x251   : > { %v5292_v53 = vsel %vm5020_vm7, %v6454_v33, 0.0  ;;  %v3148_v62 = vadd.f32 %v2892_v50, %v2348_v55  ;;  %v1163_v20 = vsel %vm891_vm5, %v6445_v32, 0.0  ;;  %v1963_v3 = vsel %vm1691_vm6, %v6457_v45, 0.0 }
 0x252   : > { %vm2491_vm8 = vcmp.eq.s32.totalorder %v8533_v52, %v6486_v28  ;;  %v5420_v47 = vadd.f32 %v5164_v39, %v4620_v30  ;;  %v2219_v29 = vadd.f32 %v1963_v3, %v1163_v20  ;;  %vm3291_vm9 = vcmp.eq.s32.totalorder %v8533_v52, %v6493_v36 }
 0x253   : > { %v2763_v44 = vsel %vm2491_vm8, %v6489_v58, 0.0  ;;  %v3948_v27 = vadd.f32 %v3692_v23, %v3148_v62  ;;  %v3563_v18 = vsel %vm3291_vm9, %v6496_v31, 0.0  ;;  %vm4091_vm10 = vcmp.eq.s32.totalorder %v8533_v52, %v6501_v22 }
 0x254   : > { %vm4891_vm11 = vcmp.eq.s32.totalorder %v8533_v52, %v6510_v0  ;;  %5657 = vmatprep.subr.mxu0 %v5420_v47  ;;  %v3019_v50 = vadd.f32 %v2763_v44, %v2219_v29  ;;  %v4363_v55 = vsel %vm4091_vm10, %v6504_v61, 0.0  ;;  %vm1019_vm12 = vcmp.eq.s32.totalorder %v8625_v54, %v6442_v37 }
 0x255   : > { %v5163_v39 = vsel %vm4891_vm11, %v6516_v2, 0.0  ;;  %v4748_v30 = vadd.f32 %v4492_v49, %v3948_v27  ;;  %v1291_v23 = vsel %vm1019_vm12, %v6445_v32, 0.0  ;;  %vm1819_vm13 = vcmp.eq.s32.totalorder %v8625_v54, %v6448_v40 }
 0x256   : > { %vm2619_vm14 = vcmp.eq.s32.totalorder %v8625_v54, %v6486_v28  ;;  %v3819_v62 = vadd.f32 %v3563_v18, %v3019_v50  ;;  %v2091_v20 = vsel %vm1819_vm13, %v6457_v45, 0.0  ;;  %vm3419_vm15 = vcmp.eq.s32.totalorder %v8625_v54, %v6493_v36 }
 0x257   : > { %v2891_v3 = vsel %vm2619_vm14, %v6489_v58, 0.0  ;;  %v5548_v47 = vadd.f32 %v5292_v53, %v4748_v30  ;;  %v2347_v29 = vadd.f32 %v2091_v20, %v1291_v23  ;;  %v3691_v49 = vsel %vm3419_vm15, %v6496_v31, 0.0 }
 0x258   : > { %vm4219_vm5 = vcmp.eq.s32.totalorder %v8625_v54, %v6501_v22  ;;  %v4619_v44 = vadd.f32 %v4363_v55, %v3819_v62  ;;  %vm5019_vm6 = vcmp.eq.s32.totalorder %v8625_v54, %v6510_v0  ;;  %v8688_v18 = vadd.s32 152, %v6211_v14 }
 0x259   : > { %v4491_v27 = vsel %vm4219_vm5, %v6504_v61, 0.0  ;;  %5728 = vmatprep.subr.mxu1 %v5548_v47  ;;  %v3147_v50 = vadd.f32 %v2891_v3, %v2347_v29  ;;  %v5291_v52 = vsel %vm5019_vm6, %v6516_v2, 0.0  ;;  %v8692_v53 = vadd.s32 408, %v6211_v14 }
 0x25a   : > { %11546 = vst [vmem:[#allocation48_spill] sm:$0xff] %v8688_v18  ;;  %v8695_v30 = vadd.s32 144, %v6211_v14  ;;  %v5419_v23 = vadd.f32 %v5163_v39, %v4619_v44  ;;  %vm888_vm0 = vcmp.eq.s32.totalorder %v8688_v18, %v6385_v7  ;;  %vm1688_vm1 = vcmp.eq.s32.totalorder %v8688_v18, %v6397_v11 }
 0x25b   : > { %11547 = vst [vmem:[#allocation49_spill] sm:$0xff] %v8692_v53  ;;  %vm2488_vm2 = vcmp.eq.s32.totalorder %v8688_v18, %v6411_v16  ;;  %v3947_v55 = vadd.f32 %v3691_v49, %v3147_v50  ;;  %v1160_v62 = vsel %vm888_vm0, %v6388_v8, 0.0  ;;  %v1960_v20 = vsel %vm1688_vm1, %v6400_v12, 0.0 }
 0x25c   : > { %11548 = vst [vmem:[#allocation50_spill] sm:$0xff] %v8695_v30  ;;  %v2760_v3 = vsel %vm2488_vm2, %v6414_v17, 0.0  ;;  %5658 = vmatpush2.msra.mxu0 %v5419_v23  ;;  %v2216_v47 = vadd.f32 %v1960_v20, %v1160_v62  ;;  %vm3288_vm3 = vcmp.eq.s32.totalorder %v8688_v18, %v6417_v51  ;;  %vm4088_vm4 = vcmp.eq.s32.totalorder %v8688_v18, %v6403_v13 }
 0x25d   : > { %vm4888_vm7 = vcmp.eq.s32.totalorder %v8688_v18, %v6451_v46  ;;  %v4747_v39 = vadd.f32 %v4491_v27, %v3947_v55  ;;  %v3560_v29 = vsel %vm3288_vm3, %v6423_v19, 0.0  ;;  %v4360_v49 = vsel %vm4088_vm4, %v6406_v15, 0.0 }
 0x25e   : > { %v5160_v44 = vsel %vm4888_vm7, %v6454_v33, 0.0  ;;  %v3016_v50 = vadd.f32 %v2760_v3, %v2216_v47  ;;  %vm1016_vm8 = vcmp.eq.s32.totalorder %v8692_v53, %v6385_v7  ;;  %vm1816_vm9 = vcmp.eq.s32.totalorder %v8692_v53, %v6397_v11 }
 0x25f   : > { %vm2616_vm10 = vcmp.eq.s32.totalorder %v8692_v53, %v6411_v16  ;;  %v5547_v23 = vadd.f32 %v5291_v52, %v4747_v39  ;;  %v1288_v62 = vsel %vm1016_vm8, %v6388_v8, 0.0  ;;  %v2088_v27 = vsel %vm1816_vm9, %v6400_v12, 0.0 }
 0x260   : > { %v2888_v55 = vsel %vm2616_vm10, %v6414_v17, 0.0  ;;  %v3816_v20 = vadd.f32 %v3560_v29, %v3016_v50  ;;  %v2344_v54 = vadd.f32 %v2088_v27, %v1288_v62  ;;  %vm3416_vm11 = vcmp.eq.s32.totalorder %v8692_v53, %v6417_v51 }
 0x261   : > { %vm4216_vm12 = vcmp.eq.s32.totalorder %v8692_v53, %v6403_v13  ;;  %5729 = vmatpush2.msra.mxu1 %v5547_v23  ;;  %v3688_v3 = vsel %vm3416_vm11, %v6423_v19, 0.0  ;;  %vm5016_vm13 = vcmp.eq.s32.totalorder %v8692_v53, %v6451_v46  ;;  %vm887_vm14 = vcmp.eq.s32.totalorder %v8688_v18, %v6442_v37 }
 0x262   : > { %v4488_v47 = vsel %vm4216_vm12, %v6406_v15, 0.0  ;;  %v4616_v52 = vadd.f32 %v4360_v49, %v3816_v20  ;;  %v3144_v39 = vadd.f32 %v2888_v55, %v2344_v54  ;;  %v5288_v29 = vsel %vm5016_vm13, %v6454_v33, 0.0 }
 0x263   : > { %v1159_v50 = vsel %vm887_vm14, %v6445_v32, 0.0  ;;  %vm1687_vm15 = vcmp.eq.s32.totalorder %v8688_v18, %v6448_v40  ;;  %vm2487_vm5 = vcmp.eq.s32.totalorder %v8688_v18, %v6486_v28  ;;  %vm3287_vm6 = vcmp.eq.s32.totalorder %v8688_v18, %v6493_v36 }
 0x264   : > { %vm4087_vm0 = vcmp.eq.s32.totalorder %v8688_v18, %v6501_v22  ;;  %v5416_v23 = vadd.f32 %v5160_v44, %v4616_v52  ;;  %v3944_v62 = vadd.f32 %v3688_v3, %v3144_v39  ;;  %v1959_v54 = vsel %vm1687_vm15, %v6457_v45, 0.0 }
 0x265   : > { %v2759_v49 = vsel %vm2487_vm5, %v6489_v58, 0.0  ;;  %v2215_v27 = vadd.f32 %v1959_v54, %v1159_v50  ;;  %v3559_v55 = vsel %vm3287_vm6, %v6496_v31, 0.0  ;;  %v4359_v20 = vsel %vm4087_vm0, %v6504_v61, 0.0 }
 0x266   : > { %vm4887_vm1 = vcmp.eq.s32.totalorder %v8688_v18, %v6510_v0  ;;  %5659 = vmatprep.subr.mxu0 %v5416_v23  ;;  %v4744_v43 = vadd.f32 %v4488_v47, %v3944_v62  ;;  %vm1015_vm2 = vcmp.eq.s32.totalorder %v8692_v53, %v6442_v37  ;;  %vm1815_vm3 = vcmp.eq.s32.totalorder %v8692_v53, %v6448_v40 }
 0x267   : > { %v5159_v21 = vsel %vm4887_vm1, %v6516_v2, 0.0  ;;  %v3015_v44 = vadd.f32 %v2759_v49, %v2215_v27  ;;  %v1287_v3 = vsel %vm1015_vm2, %v6445_v32, 0.0  ;;  %v2087_v52 = vsel %vm1815_vm3, %v6457_v45, 0.0 }
 0x268   : > { %vm2615_vm4 = vcmp.eq.s32.totalorder %v8692_v53, %v6486_v28  ;;  %v5544_v39 = vadd.f32 %v5288_v29, %v4744_v43  ;;  %v2343_v50 = vadd.f32 %v2087_v52, %v1287_v3  ;;  %vm3415_vm7 = vcmp.eq.s32.totalorder %v8692_v53, %v6493_v36 }
 0x269   : > { %v2887_v47 = vsel %vm2615_vm4, %v6489_v58, 0.0  ;;  %v3815_v23 = vadd.f32 %v3559_v55, %v3015_v44  ;;  %v3687_v62 = vsel %vm3415_vm7, %v6496_v31, 0.0  ;;  %vm4215_vm8 = vcmp.eq.s32.totalorder %v8692_v53, %v6501_v22 }
 0x26a   : > { %vm5015_vm9 = vcmp.eq.s32.totalorder %v8692_v53, %v6510_v0  ;;  %5730 = vmatprep.subr.mxu1 %v5544_v39  ;;  %v3143_v54 = vadd.f32 %v2887_v47, %v2343_v50  ;;  %v4487_v49 = vsel %vm4215_vm8, %v6504_v61, 0.0  ;;  %vm884_vm10 = vcmp.eq.s32.totalorder %v8695_v30, %v6385_v7 }
 0x26b   : > { %v5287_v43 = vsel %vm5015_vm9, %v6516_v2, 0.0  ;;  %v4615_v29 = vadd.f32 %v4359_v20, %v3815_v23  ;;  %v1156_v27 = vsel %vm884_vm10, %v6388_v8, 0.0  ;;  %vm1684_vm11 = vcmp.eq.s32.totalorder %v8695_v30, %v6397_v11 }
 0x26c   : > { %vm2484_vm12 = vcmp.eq.s32.totalorder %v8695_v30, %v6411_v16  ;;  %v3943_v55 = vadd.f32 %v3687_v62, %v3143_v54  ;;  %v1956_v44 = vsel %vm1684_vm11, %v6400_v12, 0.0  ;;  %vm3284_vm13 = vcmp.eq.s32.totalorder %v8695_v30, %v6417_v51 }
 0x26d   : > { %v2756_v3 = vsel %vm2484_vm12, %v6414_v17, 0.0  ;;  %v5415_v52 = vadd.f32 %v5159_v21, %v4615_v29  ;;  %v2212_v39 = vadd.f32 %v1956_v44, %v1156_v27  ;;  %v3556_v20 = vsel %vm3284_vm13, %v6423_v19, 0.0 }
 0x26e   : > { %vm4084_vm14 = vcmp.eq.s32.totalorder %v8695_v30, %v6403_v13  ;;  %v4743_v50 = vadd.f32 %v4487_v49, %v3943_v55  ;;  %vm4884_vm15 = vcmp.eq.s32.totalorder %v8695_v30, %v6451_v46  ;;  %v8787_v23 = vadd.s32 400, %v6211_v14 }
 0x26f   : > { %v4356_v47 = vsel %vm4084_vm14, %v6406_v15, 0.0  ;;  %5660 = vmatpush2.msra.mxu0 %v5415_v52  ;;  %v3012_v62 = vadd.f32 %v2756_v3, %v2212_v39  ;;  %v5156_v54 = vsel %vm4884_vm15, %v6454_v33, 0.0  ;;  %vm883_vm5 = vcmp.eq.s32.totalorder %v8695_v30, %v6442_v37 }
 0x270   : > { %11549 = vst [vmem:[#allocation51_spill] sm:$0xff] %v8787_v23  ;;  %vm1683_vm6 = vcmp.eq.s32.totalorder %v8695_v30, %v6448_v40  ;;  %v5543_v21 = vadd.f32 %v5287_v43, %v4743_v50  ;;  %vm1012_vm0 = vcmp.eq.s32.totalorder %v8787_v23, %v6385_v7  ;;  %vm1812_vm1 = vcmp.eq.s32.totalorder %v8787_v23, %v6397_v11 }
 0x271   : > { %vm2612_vm2 = vcmp.eq.s32.totalorder %v8787_v23, %v6411_v16  ;;  %v3812_v49 = vadd.f32 %v3556_v20, %v3012_v62  ;;  %v1284_v29 = vsel %vm1012_vm0, %v6388_v8, 0.0  ;;  %v2084_v27 = vsel %vm1812_vm1, %v6400_v12, 0.0 }
 0x272   : > { %v2884_v55 = vsel %vm2612_vm2, %v6414_v17, 0.0  ;;  %5731 = vmatpush2.msra.mxu1 %v5543_v21  ;;  %v2340_v44 = vadd.f32 %v2084_v27, %v1284_v29  ;;  %vm3412_vm3 = vcmp.eq.s32.totalorder %v8787_v23, %v6417_v51  ;;  %vm4212_vm4 = vcmp.eq.s32.totalorder %v8787_v23, %v6403_v13 }
 0x273   : > { %vm5012_vm7 = vcmp.eq.s32.totalorder %v8787_v23, %v6451_v46  ;;  %v4612_v43 = vadd.f32 %v4356_v47, %v3812_v49  ;;  %v3684_v3 = vsel %vm3412_vm3, %v6423_v19, 0.0  ;;  %v4484_v52 = vsel %vm4212_vm4, %v6406_v15, 0.0 }
 0x274   : > { %v5284_v39 = vsel %vm5012_vm7, %v6454_v33, 0.0  ;;  %v3140_v20 = vadd.f32 %v2884_v55, %v2340_v44  ;;  %v1155_v50 = vsel %vm883_vm5, %v6445_v32, 0.0  ;;  %v1955_v62 = vsel %vm1683_vm6, %v6457_v45, 0.0 }
 0x275   : > { %vm2483_vm8 = vcmp.eq.s32.totalorder %v8695_v30, %v6486_v28  ;;  %v5412_v47 = vadd.f32 %v5156_v54, %v4612_v43  ;;  %v2211_v21 = vadd.f32 %v1955_v62, %v1155_v50  ;;  %vm3283_vm9 = vcmp.eq.s32.totalorder %v8695_v30, %v6493_v36 }
 0x276   : > { %v2755_v49 = vsel %vm2483_vm8, %v6489_v58, 0.0  ;;  %v3940_v29 = vadd.f32 %v3684_v3, %v3140_v20  ;;  %v3555_v27 = vsel %vm3283_vm9, %v6496_v31, 0.0  ;;  %vm4083_vm10 = vcmp.eq.s32.totalorder %v8695_v30, %v6501_v22 }
 0x277   : > { %vm4883_vm11 = vcmp.eq.s32.totalorder %v8695_v30, %v6510_v0  ;;  %5661 = vmatprep.subr.mxu0 %v5412_v47  ;;  %v3011_v55 = vadd.f32 %v2755_v49, %v2211_v21  ;;  %v4355_v44 = vsel %vm4083_vm10, %v6504_v61, 0.0  ;;  %vm1011_vm12 = vcmp.eq.s32.totalorder %v8787_v23, %v6442_v37 }
 0x278   : > { %v5155_v54 = vsel %vm4883_vm11, %v6516_v2, 0.0  ;;  %v4740_v43 = vadd.f32 %v4484_v52, %v3940_v29  ;;  %v1283_v3 = vsel %vm1011_vm12, %v6445_v32, 0.0  ;;  %vm1811_vm13 = vcmp.eq.s32.totalorder %v8787_v23, %v6448_v40 }
 0x279   : > { %vm2611_vm14 = vcmp.eq.s32.totalorder %v8787_v23, %v6486_v28  ;;  %v3811_v20 = vadd.f32 %v3555_v27, %v3011_v55  ;;  %v2083_v50 = vsel %vm1811_vm13, %v6457_v45, 0.0  ;;  %vm3411_vm15 = vcmp.eq.s32.totalorder %v8787_v23, %v6493_v36 }
 0x27a   : > { %v2883_v62 = vsel %vm2611_vm14, %v6489_v58, 0.0  ;;  %v5540_v47 = vadd.f32 %v5284_v39, %v4740_v43  ;;  %v2339_v21 = vadd.f32 %v2083_v50, %v1283_v3  ;;  %v3683_v52 = vsel %vm3411_vm15, %v6496_v31, 0.0 }
 0x27b   : > { %vm4211_vm5 = vcmp.eq.s32.totalorder %v8787_v23, %v6501_v22  ;;  %v4611_v49 = vadd.f32 %v4355_v44, %v3811_v20  ;;  %vm5011_vm6 = vcmp.eq.s32.totalorder %v8787_v23, %v6510_v0  ;;  %v8850_v27 = vadd.s32 136, %v6211_v14 }
 0x27c   : > { %v4483_v29 = vsel %vm4211_vm5, %v6504_v61, 0.0  ;;  %5732 = vmatprep.subr.mxu1 %v5540_v47  ;;  %v3139_v55 = vadd.f32 %v2883_v62, %v2339_v21  ;;  %v5283_v30 = vsel %vm5011_vm6, %v6516_v2, 0.0  ;;  %v8854_v39 = vadd.s32 392, %v6211_v14 }
 0x27d   : > { %v8857_v43 = vadd.s32 128, %v6211_v14  ;;  %v5411_v3 = vadd.f32 %v5155_v54, %v4611_v49  ;;  %vm880_vm0 = vcmp.eq.s32.totalorder %v8850_v27, %v6385_v7  ;;  %vm1680_vm1 = vcmp.eq.s32.totalorder %v8850_v27, %v6397_v11 }
 0x27e   : > { %vm2480_vm2 = vcmp.eq.s32.totalorder %v8850_v27, %v6411_v16  ;;  %v3939_v44 = vadd.f32 %v3683_v52, %v3139_v55  ;;  %v1152_v20 = vsel %vm880_vm0, %v6388_v8, 0.0  ;;  %v1952_v50 = vsel %vm1680_vm1, %v6400_v12, 0.0 }
 0x27f   : > { %v2752_v62 = vsel %vm2480_vm2, %v6414_v17, 0.0  ;;  %5662 = vmatpush2.msra.mxu0 %v5411_v3  ;;  %v2208_v47 = vadd.f32 %v1952_v50, %v1152_v20  ;;  %vm3280_vm3 = vcmp.eq.s32.totalorder %v8850_v27, %v6417_v51  ;;  %vm4080_vm4 = vcmp.eq.s32.totalorder %v8850_v27, %v6403_v13 }
 0x280   : > { %vm4880_vm7 = vcmp.eq.s32.totalorder %v8850_v27, %v6451_v46  ;;  %v4739_v54 = vadd.f32 %v4483_v29, %v3939_v44  ;;  %v3552_v21 = vsel %vm3280_vm3, %v6423_v19, 0.0  ;;  %v4352_v52 = vsel %vm4080_vm4, %v6406_v15, 0.0 }
 0x281   : > { %v5152_v49 = vsel %vm4880_vm7, %v6454_v33, 0.0  ;;  %v3008_v55 = vadd.f32 %v2752_v62, %v2208_v47  ;;  %vm1008_vm8 = vcmp.eq.s32.totalorder %v8854_v39, %v6385_v7  ;;  %vm1808_vm9 = vcmp.eq.s32.totalorder %v8854_v39, %v6397_v11 }
 0x282   : > { %vm2608_vm10 = vcmp.eq.s32.totalorder %v8854_v39, %v6411_v16  ;;  %v5539_v3 = vadd.f32 %v5283_v30, %v4739_v54  ;;  %v1280_v20 = vsel %vm1008_vm8, %v6388_v8, 0.0  ;;  %v2080_v29 = vsel %vm1808_vm9, %v6400_v12, 0.0 }
 0x283   : > { %v2880_v44 = vsel %vm2608_vm10, %v6414_v17, 0.0  ;;  %v3808_v50 = vadd.f32 %v3552_v21, %v3008_v55  ;;  %v2336_v23 = vadd.f32 %v2080_v29, %v1280_v20  ;;  %vm3408_vm11 = vcmp.eq.s32.totalorder %v8854_v39, %v6417_v51 }
 0x284   : > { %vm4208_vm12 = vcmp.eq.s32.totalorder %v8854_v39, %v6403_v13  ;;  %5733 = vmatpush2.msra.mxu1 %v5539_v3  ;;  %v3680_v62 = vsel %vm3408_vm11, %v6423_v19, 0.0  ;;  %vm5008_vm13 = vcmp.eq.s32.totalorder %v8854_v39, %v6451_v46  ;;  %vm879_vm14 = vcmp.eq.s32.totalorder %v8850_v27, %v6442_v37 }
 0x285   : > { %v4480_v47 = vsel %vm4208_vm12, %v6406_v15, 0.0  ;;  %v4608_v30 = vadd.f32 %v4352_v52, %v3808_v50  ;;  %v3136_v54 = vadd.f32 %v2880_v44, %v2336_v23  ;;  %v5280_v21 = vsel %vm5008_vm13, %v6454_v33, 0.0 }
 0x286   : > { %v1151_v55 = vsel %vm879_vm14, %v6445_v32, 0.0  ;;  %vm1679_vm15 = vcmp.eq.s32.totalorder %v8850_v27, %v6448_v40  ;;  %vm2479_vm5 = vcmp.eq.s32.totalorder %v8850_v27, %v6486_v28  ;;  %vm3279_vm6 = vcmp.eq.s32.totalorder %v8850_v27, %v6493_v36 }
 0x287   : > { %vm4079_vm0 = vcmp.eq.s32.totalorder %v8850_v27, %v6501_v22  ;;  %v5408_v3 = vadd.f32 %v5152_v49, %v4608_v30  ;;  %v3936_v20 = vadd.f32 %v3680_v62, %v3136_v54  ;;  %v1951_v23 = vsel %vm1679_vm15, %v6457_v45, 0.0 }
 0x288   : > { %v2751_v52 = vsel %vm2479_vm5, %v6489_v58, 0.0  ;;  %v2207_v29 = vadd.f32 %v1951_v23, %v1151_v55  ;;  %v3551_v44 = vsel %vm3279_vm6, %v6496_v31, 0.0  ;;  %v4351_v50 = vsel %vm4079_vm0, %v6504_v61, 0.0 }
 0x289   : > { %vm4879_vm1 = vcmp.eq.s32.totalorder %v8850_v27, %v6510_v0  ;;  %5663 = vmatprep.subr.mxu0 %v5408_v3  ;;  %v4736_v53 = vadd.f32 %v4480_v47, %v3936_v20  ;;  %vm1007_vm2 = vcmp.eq.s32.totalorder %v8854_v39, %v6442_v37  ;;  %vm1807_vm3 = vcmp.eq.s32.totalorder %v8854_v39, %v6448_v40 }
 0x28a   : > { %v5151_v18 = vsel %vm4879_vm1, %v6516_v2, 0.0  ;;  %v3007_v49 = vadd.f32 %v2751_v52, %v2207_v29  ;;  %v1279_v62 = vsel %vm1007_vm2, %v6445_v32, 0.0  ;;  %v2079_v30 = vsel %vm1807_vm3, %v6457_v45, 0.0 }
 0x28b   : > { %vm2607_vm4 = vcmp.eq.s32.totalorder %v8854_v39, %v6486_v28  ;;  %v5536_v54 = vadd.f32 %v5280_v21, %v4736_v53  ;;  %v2335_v55 = vadd.f32 %v2079_v30, %v1279_v62  ;;  %vm3407_vm7 = vcmp.eq.s32.totalorder %v8854_v39, %v6493_v36 }
 0x28c   : > { %v2879_v47 = vsel %vm2607_vm4, %v6489_v58, 0.0  ;;  %v3807_v3 = vadd.f32 %v3551_v44, %v3007_v49  ;;  %v3679_v20 = vsel %vm3407_vm7, %v6496_v31, 0.0  ;;  %vm4207_vm8 = vcmp.eq.s32.totalorder %v8854_v39, %v6501_v22 }
 0x28d   : > { %vm5007_vm9 = vcmp.eq.s32.totalorder %v8854_v39, %v6510_v0  ;;  %5734 = vmatprep.subr.mxu1 %v5536_v54  ;;  %v3135_v23 = vadd.f32 %v2879_v47, %v2335_v55  ;;  %v4479_v52 = vsel %vm4207_vm8, %v6504_v61, 0.0  ;;  %vm876_vm10 = vcmp.eq.s32.totalorder %v8857_v43, %v6385_v7 }
 0x28e   : > { %v5279_v53 = vsel %vm5007_vm9, %v6516_v2, 0.0  ;;  %v4607_v21 = vadd.f32 %v4351_v50, %v3807_v3  ;;  %v1148_v29 = vsel %vm876_vm10, %v6388_v8, 0.0  ;;  %vm1676_vm11 = vcmp.eq.s32.totalorder %v8857_v43, %v6397_v11 }
 0x28f   : > { %vm2476_vm12 = vcmp.eq.s32.totalorder %v8857_v43, %v6411_v16  ;;  %v3935_v44 = vadd.f32 %v3679_v20, %v3135_v23  ;;  %v1948_v49 = vsel %vm1676_vm11, %v6400_v12, 0.0  ;;  %vm3276_vm13 = vcmp.eq.s32.totalorder %v8857_v43, %v6417_v51 }
 0x290   : > { %v2748_v62 = vsel %vm2476_vm12, %v6414_v17, 0.0  ;;  %v5407_v30 = vadd.f32 %v5151_v18, %v4607_v21  ;;  %v2204_v54 = vadd.f32 %v1948_v49, %v1148_v29  ;;  %v3548_v50 = vsel %vm3276_vm13, %v6423_v19, 0.0 }
 0x291   : > { %vm4076_vm14 = vcmp.eq.s32.totalorder %v8857_v43, %v6403_v13  ;;  %v4735_v55 = vadd.f32 %v4479_v52, %v3935_v44  ;;  %vm4876_vm15 = vcmp.eq.s32.totalorder %v8857_v43, %v6451_v46  ;;  %v8949_v3 = vadd.s32 384, %v6211_v14 }
 0x292   : > { %v4348_v47 = vsel %vm4076_vm14, %v6406_v15, 0.0  ;;  %5664 = vmatpush2.msra.mxu0 %v5407_v30  ;;  %v3004_v20 = vadd.f32 %v2748_v62, %v2204_v54  ;;  %v5148_v23 = vsel %vm4876_vm15, %v6454_v33, 0.0  ;;  %vm875_vm5 = vcmp.eq.s32.totalorder %v8857_v43, %v6442_v37 }
 0x293   : > { %vm1675_vm6 = vcmp.eq.s32.totalorder %v8857_v43, %v6448_v40  ;;  %v5535_v18 = vadd.f32 %v5279_v53, %v4735_v55  ;;  %vm1004_vm0 = vcmp.eq.s32.totalorder %v8949_v3, %v6385_v7  ;;  %vm1804_vm1 = vcmp.eq.s32.totalorder %v8949_v3, %v6397_v11 }
 0x294   : > { %vm2604_vm2 = vcmp.eq.s32.totalorder %v8949_v3, %v6411_v16  ;;  %v3804_v52 = vadd.f32 %v3548_v50, %v3004_v20  ;;  %v1276_v21 = vsel %vm1004_vm0, %v6388_v8, 0.0  ;;  %v2076_v29 = vsel %vm1804_vm1, %v6400_v12, 0.0 }
 0x295   : > { %v2876_v44 = vsel %vm2604_vm2, %v6414_v17, 0.0  ;;  %5735 = vmatpush2.msra.mxu1 %v5535_v18  ;;  %v2332_v49 = vadd.f32 %v2076_v29, %v1276_v21  ;;  %vm3404_vm3 = vcmp.eq.s32.totalorder %v8949_v3, %v6417_v51  ;;  %vm4204_vm4 = vcmp.eq.s32.totalorder %v8949_v3, %v6403_v13  ;;  %v715_v51 = vld [vmem:[%s6197_s29] sm:$0xff]  ;;  %v720_v21 = vld [vmem:[#allocation3 + $0x10] sm:$0x3f] }
 0x296   : > { %vm5004_vm7 = vcmp.eq.s32.totalorder %v8949_v3, %v6451_v46  ;;  %v4604_v7 = vadd.f32 %v4348_v47, %v3804_v52  ;;  %v3676_v11 = vsel %vm3404_vm3, %v6423_v19, 0.0  ;;  %v4476_v8 = vsel %vm4204_vm4, %v6406_v15, 0.0  ;;  %v716_v52 = vld [vmem:[%s6197_s29 + $0x8] sm:$0xff] }
 0x297   : > { %v5276_v12 = vsel %vm5004_vm7, %v6454_v33, 0.0  ;;  %v3132_v16 = vadd.f32 %v2876_v44, %v2332_v49  ;;  %v1147_v17 = vsel %vm875_vm5, %v6445_v32, 0.0  ;;  %v1947_v13 = vsel %vm1675_vm6, %v6457_v45, 0.0 }
 0x298   : > { %vm2475_vm8 = vcmp.eq.s32.totalorder %v8857_v43, %v6486_v28  ;;  %v5404_v19 = vadd.f32 %v5148_v23, %v4604_v7  ;;  %v2203_v46 = vadd.f32 %v1947_v13, %v1147_v17  ;;  %vm3275_vm9 = vcmp.eq.s32.totalorder %v8857_v43, %v6493_v36 }
 0x299   : > { %v2747_v15 = vsel %vm2475_vm8, %v6489_v58, 0.0  ;;  %v3932_v33 = vadd.f32 %v3676_v11, %v3132_v16  ;;  %v3547_v53 = vsel %vm3275_vm9, %v6496_v31, 0.0  ;;  %vm4075_vm10 = vcmp.eq.s32.totalorder %v8857_v43, %v6501_v22 }
 0x29a   : > { %vm4875_vm11 = vcmp.eq.s32.totalorder %v8857_v43, %v6510_v0  ;;  %5665 = vmatprep.subr.mxu0 %v5404_v19  ;;  %v3003_v62 = vadd.f32 %v2747_v15, %v2203_v46  ;;  %v4347_v30 = vsel %vm4075_vm10, %v6504_v61, 0.0  ;;  %v5599_v50 = vcombine.high %v715_v51, %v715_v51 }
 0x29b   : > { %v5147_v54 = vsel %vm4875_vm11, %v6516_v2, 0.0  ;;  %v4732_v55 = vadd.f32 %v4476_v8, %v3932_v33  ;;  %vm1003_vm12 = vcmp.eq.s32.totalorder %v8949_v3, %v6442_v37  ;;  %vm1803_vm13 = vcmp.eq.s32.totalorder %v8949_v3, %v6448_v40  ;;  %v729_v37 = vld [vmem:[#allocation2 + $0x8] sm:$0x3f] }
 0x29c   : > { %vm2603_vm14 = vcmp.eq.s32.totalorder %v8949_v3, %v6486_v28  ;;  %v3803_v47 = vadd.f32 %v3547_v53, %v3003_v62  ;;  %5667 = vmatprep.mubr.f32.mxu0 %v5599_v50  ;;  %v1275_v20 = vsel %vm1003_vm12, %v6445_v32, 0.0  ;;  %v2075_v23 = vsel %vm1803_vm13, %v6457_v45, 0.0 }
 0x29d   : > { %v2875_v18 = vsel %vm2603_vm14, %v6489_v58, 0.0  ;;  %v5532_v29 = vadd.f32 %v5276_v12, %v4732_v55  ;;  %v2331_v44 = vadd.f32 %v2075_v23, %v1275_v20  ;;  %vm3403_vm15 = vcmp.eq.s32.totalorder %v8949_v3, %v6493_v36 }
 0x29e   : > { %vm4203_vm5 = vcmp.eq.s32.totalorder %v8949_v3, %v6501_v22  ;;  %v4603_v40 = vadd.f32 %v4347_v30, %v3803_v47  ;;  %v3675_v28 = vsel %vm3403_vm15, %v6496_v31, 0.0  ;;  %vm5003_vm6 = vcmp.eq.s32.totalorder %v8949_v3, %v6510_v0  ;;  %v719_v47 = vld [vmem:[#allocation3 + $0x8] sm:$0x3f] }
 0x29f   : > { %v4475_v32 = vsel %vm4203_vm5, %v6504_v61, 0.0  ;;  %5736 = vmatprep.subr.mxu1 %v5532_v29  ;;  %v3131_v45 = vadd.f32 %v2875_v18, %v2331_v44  ;;  %v5275_v58 = vsel %vm5003_vm6, %v6516_v2, 0.0  ;;  %v5600_v49 = vcombine.high %v716_v52, %v716_v52  ;;  %v728_v29 = vld [vmem:[#allocation2 + $0x18] sm:$0x3f] }
 0x2a0   : > { %v9015_v7 = vrot.slane %v720_v21, %v6216_v25  ;;  %v5403_v36 = vadd.f32 %v5147_v54, %v4603_v40  ;;  %v9018_v22 = vrot.slane %v729_v37, %v6216_v25  ;;  %v9021_v11 = vrot.slane %v720_v21, %v6382_v6 }
 0x2a1   : > { %v9024_v31 = vrot.slane %v729_v37, %v6382_v6  ;;  %v3931_v61 = vadd.f32 %v3675_v28, %v3131_v45  ;;  %5738 = vmatprep.mubr.f32.mxu1 %v5600_v49  ;;  %v9029_v0 = vrot.slane %v720_v21, %v6391_v9  ;;  %v9032_v2 = vrot.slane %v729_v37, %v6391_v9 }
 0x2a2   : > { %vm874_vm0 = vcmp.eq.s32.totalorder %v6379_v5, %v9015_v7  ;;  %5666 = vmatpush2.msra.mxu0 %v5403_v36  ;;  %vm1674_vm1 = vcmp.eq.s32.totalorder %v6379_v5, %v9021_v11  ;;  %v9038_v12 = vrot.slane %v720_v21, %v6394_v10  ;;  %v9041_v16 = vrot.slane %v729_v37, %v6394_v10 }
 0x2a3   : > { %v1146_v8 = vsel %vm874_vm0, %v9018_v22, 0.0  ;;  %v4731_v17 = vadd.f32 %v4475_v32, %v3931_v61  ;;  %5668 = vmatmul.mubr.f32.vlgmr.msra.gmra.mxu0 %v715_v51  ;;  %v1946_v13 = vsel %vm1674_vm1, %v9024_v31, 0.0  ;;  %vm2474_vm2 = vcmp.eq.s32.totalorder %v6379_v5, %v9029_v0 }
 0x2a4   : > { %v9047_v19 = vrot.slane %v720_v21, %v6219_v26  ;;  %v2202_v46 = vadd.f32 %v1946_v13, %v1146_v8  ;;  %v2746_v15 = vsel %vm2474_vm2, %v9032_v2, 0.0  ;;  %vm3274_vm3 = vcmp.eq.s32.totalorder %v6379_v5, %v9038_v12  ;;  %5809 = vmatprep.mubr.f32.mxu0 %v5599_v50 }
 0x2a5   : > { %v9053_v33 = vrot.slane %v729_v37, %v6219_v26  ;;  %v5531_v53 = vadd.f32 %v5275_v58, %v4731_v17  ;;  %v3546_v51 = vsel %vm3274_vm3, %v9041_v16, 0.0  ;;  %v9059_v62 = vrot.slane %v720_v21, %v6436_v34 }
 0x2a6   : > { %vm4074_vm4 = vcmp.eq.s32.totalorder %v6379_v5, %v9047_v19  ;;  %v3002_v30 = vadd.f32 %v2746_v15, %v2202_v46  ;;  %v9063_v55 = vrot.slane %v729_v37, %v6436_v34  ;;  %vm1002_vm7 = vcmp.eq.s32.totalorder %v6439_v35, %v9015_v7 }
 0x2a7   : > { %v4346_v54 = vsel %vm4074_vm4, %v9053_v33, 0.0  ;;  %5737 = vmatpush2.msra.mxu1 %v5531_v53  ;;  %vm4874_vm8 = vcmp.eq.s32.totalorder %v6379_v5, %v9059_v62  ;;  %v1274_v50 = vsel %vm1002_vm7, %v9018_v22, 0.0  ;;  %vm1802_vm9 = vcmp.eq.s32.totalorder %v6439_v35, %v9021_v11 }
 0x2a8   : > { %vm2602_vm10 = vcmp.eq.s32.totalorder %v6439_v35, %v9029_v0  ;;  %5739 = vmatmul.mubr.f32.vlgmr.msra.gmra.mxu1 %v716_v52  ;;  %v3802_v20 = vadd.f32 %v3546_v51, %v3002_v30  ;;  %v5146_v23 = vsel %vm4874_vm8, %v9063_v55, 0.0  ;;  %v2074_v18 = vsel %vm1802_vm9, %v9024_v31, 0.0 }
 0x2a9   : > { %v2874_v21 = vsel %vm2602_vm10, %v9032_v2, 0.0  ;;  %v2330_v44 = vadd.f32 %v2074_v18, %v1274_v50  ;;  %vm3402_vm11 = vcmp.eq.s32.totalorder %v6439_v35, %v9038_v12  ;;  %vm4202_vm12 = vcmp.eq.s32.totalorder %v6439_v35, %v9047_v19  ;;  %5880 = vmatprep.mubr.f32.mxu1 %v5600_v49 }
 0x2aa   : > { %vm5002_vm13 = vcmp.eq.s32.totalorder %v6439_v35, %v9059_v62  ;;  %v4602_v52 = vadd.f32 %v4346_v54, %v3802_v20  ;;  %v3674_v37 = vsel %vm3402_vm11, %v9041_v16, 0.0  ;;  %v4474_v40 = vsel %vm4202_vm12, %v9053_v33, 0.0 }
 0x2ab   : > { %v5274_v28 = vsel %vm5002_vm13, %v9063_v55, 0.0  ;;  %v3130_v32 = vadd.f32 %v2874_v21, %v2330_v44  ;;  %v9087_v45 = vrot.slane %v719_v47, %v6216_v25  ;;  %v9090_v58 = vrot.slane %v728_v29, %v6216_v25 }
 0x2ac   : > { %v9093_v36 = vrot.slane %v719_v47, %v6382_v6  ;;  %v5402_v61 = vadd.f32 %v5146_v23, %v4602_v52  ;;  %v9096_v49 = vrot.slane %v728_v29, %v6382_v6  ;;  %v9099_v8 = vrot.slane %v719_v47, %v6391_v9 }
 0x2ad   : > { %v9102_v17 = vrot.slane %v728_v29, %v6391_v9  ;;  %v3930_v13 = vadd.f32 %v3674_v37, %v3130_v32  ;;  %vm873_vm14 = vcmp.eq.s32.totalorder %v6379_v5, %v9087_v45  ;;  %v9109_v25 = vrot.slane %v719_v47, %v6394_v10 }
 0x2ae   : > { %vm1673_vm15 = vcmp.eq.s32.totalorder %v6379_v5, %v9093_v36  ;;  %5745 = vmatprep.subr.mxu0 %v5402_v61  ;;  %v1145_v6 = vsel %vm873_vm14, %v9090_v58, 0.0  ;;  %vm2473_vm5 = vcmp.eq.s32.totalorder %v6379_v5, %v9099_v8  ;;  %v9116_v9 = vrot.slane %v728_v29, %v6394_v10 }
 0x2af   : > { %v1945_v46 = vsel %vm1673_vm15, %v9096_v49, 0.0  ;;  %v4730_v15 = vadd.f32 %v4474_v40, %v3930_v13  ;;  %v2745_v51 = vsel %vm2473_vm5, %v9102_v17, 0.0  ;;  %vm3273_vm6 = vcmp.eq.s32.totalorder %v6379_v5, %v9109_v25 }
 0x2b0   : > { %v2201_v53 = vadd.f32 %v1945_v46, %v1145_v6  ;;  %v3545_v30 = vsel %vm3273_vm6, %v9116_v9, 0.0  ;;  %v9123_v54 = vrot.slane %v719_v47, %v6219_v26  ;;  %v9126_v50 = vrot.slane %v728_v29, %v6219_v26 }
 0x2b1   : > { %v9129_v20 = vrot.slane %v719_v47, %v6436_v34  ;;  %v5530_v10 = vadd.f32 %v5274_v28, %v4730_v15  ;;  %v9132_v18 = vrot.slane %v728_v29, %v6436_v34  ;;  %vm1001_vm0 = vcmp.eq.s32.totalorder %v6439_v35, %v9087_v45 }
 0x2b2   : > { %v3001_v23 = vadd.f32 %v2745_v51, %v2201_v53  ;;  %vm4073_vm1 = vcmp.eq.s32.totalorder %v6379_v5, %v9123_v54  ;;  %v1273_v26 = vsel %vm1001_vm0, %v9090_v58, 0.0  ;;  %vm1801_vm3 = vcmp.eq.s32.totalorder %v6439_v35, %v9093_v36 }
 0x2b3   : > { %vm4873_vm2 = vcmp.eq.s32.totalorder %v6379_v5, %v9129_v20  ;;  %5816 = vmatprep.subr.mxu1 %v5530_v10  ;;  %v4345_v21 = vsel %vm4073_vm1, %v9126_v50, 0.0  ;;  %v2073_v29 = vsel %vm1801_vm3, %v9096_v49, 0.0  ;;  %vm2601_vm4 = vcmp.eq.s32.totalorder %v6439_v35, %v9099_v8 }
 0x2b4   : > { %v3801_v47 = vadd.f32 %v3545_v30, %v3001_v23  ;;  %v5145_v34 = vsel %vm4873_vm2, %v9132_v18, 0.0  ;;  %v2329_v44 = vadd.f32 %v2073_v29, %v1273_v26  ;;  %vm3401_vm7 = vcmp.eq.s32.totalorder %v6439_v35, %v9109_v25 }
 0x2b5   : > { %vm4201_vm8 = vcmp.eq.s32.totalorder %v6439_v35, %v9123_v54  ;;  %v2873_v52 = vsel %vm2601_vm4, %v9102_v17, 0.0  ;;  %v3673_v37 = vsel %vm3401_vm7, %v9116_v9, 0.0  ;;  %vm5001_vm9 = vcmp.eq.s32.totalorder %v6439_v35, %v9129_v20 }
 0x2b6   : > { %v4601_v5 = vadd.f32 %v4345_v21, %v3801_v47  ;;  %v3129_v40 = vadd.f32 %v2873_v52, %v2329_v44  ;;  %vm870_vm10 = vcmp.eq.s32.totalorder %v6540_v38, %v9015_v7  ;;  %vm1670_vm11 = vcmp.eq.s32.totalorder %v6540_v38, %v9021_v11 }
 0x2b7   : > { %v4473_v32 = vsel %vm4201_vm8, %v9126_v50, 0.0  ;;  %v1142_v61 = vsel %vm870_vm10, %v9018_v22, 0.0  ;;  %v1942_v13 = vsel %vm1670_vm11, %v9024_v31, 0.0  ;;  %vm2470_vm12 = vcmp.eq.s32.totalorder %v6540_v38, %v9029_v0 }
 0x2b8   : > { %v5401_v28 = vadd.f32 %v5145_v34, %v4601_v5  ;;  %v3929_v6 = vadd.f32 %v3673_v37, %v3129_v40  ;;  %v2198_v46 = vadd.f32 %v1942_v13, %v1142_v61  ;;  %vm3270_vm13 = vcmp.eq.s32.totalorder %v6540_v38, %v9038_v12 }
 0x2b9   : > { %v5273_v35 = vsel %vm5001_vm9, %v9132_v18, 0.0  ;;  %v2742_v15 = vsel %vm2470_vm12, %v9032_v2, 0.0  ;;  %v3542_v53 = vsel %vm3270_vm13, %v9041_v16, 0.0  ;;  %vm4070_vm14 = vcmp.eq.s32.totalorder %v6540_v38, %v9047_v19 }
 0x2ba   : > { %5746 = vmatpush1.msra.mxu0 %v5401_v28  ;;  %v4729_v51 = vadd.f32 %v4473_v32, %v3929_v6  ;;  %v2998_v30 = vadd.f32 %v2742_v15, %v2198_v46  ;;  %v4342_v10 = vsel %vm4070_vm14, %v9053_v33, 0.0  ;;  %vm4870_vm15 = vcmp.eq.s32.totalorder %v6540_v38, %v9059_v62 }
 0x2bb   : > { %vm998_vm5 = vcmp.eq.s32.totalorder %v6543_v41, %v9015_v7  ;;  %vm1798_vm6 = vcmp.eq.s32.totalorder %v6543_v41, %v9021_v11  ;;  %vm2598_vm0 = vcmp.eq.s32.totalorder %v6543_v41, %v9029_v0  ;;  %vm3398_vm1 = vcmp.eq.s32.totalorder %v6543_v41, %v9038_v12 }
 0x2bc   : > { %v5529_v23 = vadd.f32 %v5273_v35, %v4729_v51  ;;  %v3798_v26 = vadd.f32 %v3542_v53, %v2998_v30  ;;  %v1270_v47 = vsel %vm998_vm5, %v9018_v22, 0.0  ;;  %v2070_v21 = vsel %vm1798_vm6, %v9024_v31, 0.0 }
 0x2bd   : > { %v5142_v34 = vsel %vm4870_vm15, %v9063_v55, 0.0  ;;  %v2326_v29 = vadd.f32 %v2070_v21, %v1270_v47  ;;  %v2870_v44 = vsel %vm2598_vm0, %v9032_v2, 0.0  ;;  %vm4198_vm2 = vcmp.eq.s32.totalorder %v6543_v41, %v9047_v19 }
 0x2be   : > { %5817 = vmatpush1.msra.mxu1 %v5529_v23  ;;  %v4598_v5 = vadd.f32 %v4342_v10, %v3798_v26  ;;  %v3670_v52 = vsel %vm3398_vm1, %v9041_v16, 0.0  ;;  %vm4998_vm3 = vcmp.eq.s32.totalorder %v6543_v41, %v9059_v62  ;;  %vm869_vm4 = vcmp.eq.s32.totalorder %v6540_v38, %v9087_v45 }
 0x2bf   : > { %v3126_v37 = vadd.f32 %v2870_v44, %v2326_v29  ;;  %v4470_v40 = vsel %vm4198_vm2, %v9053_v33, 0.0  ;;  %v1141_v28 = vsel %vm869_vm4, %v9090_v58, 0.0  ;;  %vm1669_vm7 = vcmp.eq.s32.totalorder %v6540_v38, %v9093_v36 }
 0x2c0   : > { %v5398_v32 = vadd.f32 %v5142_v34, %v4598_v5  ;;  %v1941_v61 = vsel %vm1669_vm7, %v9096_v49, 0.0  ;;  %vm2469_vm8 = vcmp.eq.s32.totalorder %v6540_v38, %v9099_v8  ;;  %vm3269_vm9 = vcmp.eq.s32.totalorder %v6540_v38, %v9109_v25 }
 0x2c1   : > { %v3926_v13 = vadd.f32 %v3670_v52, %v3126_v37  ;;  %v5270_v6 = vsel %vm4998_vm3, %v9063_v55, 0.0  ;;  %v2197_v46 = vadd.f32 %v1941_v61, %v1141_v28  ;;  %v2741_v35 = vsel %vm2469_vm8, %v9102_v17, 0.0 }
 0x2c2   : > { %5747 = vmatprep.subr.mxu0 %v5398_v32  ;;  %v3541_v15 = vsel %vm3269_vm9, %v9116_v9, 0.0  ;;  %vm4069_vm10 = vcmp.eq.s32.totalorder %v6540_v38, %v9123_v54  ;;  %vm997_vm11 = vcmp.eq.s32.totalorder %v6543_v41, %v9087_v45  ;;  %vm1797_vm12 = vcmp.eq.s32.totalorder %v6543_v41, %v9093_v36 }
 0x2c3   : > { %v4726_v53 = vadd.f32 %v4470_v40, %v3926_v13  ;;  %v2997_v51 = vadd.f32 %v2741_v35, %v2197_v46  ;;  %v4341_v30 = vsel %vm4069_vm10, %v9126_v50, 0.0  ;;  %vm4869_vm13 = vcmp.eq.s32.totalorder %v6540_v38, %v9129_v20 }
 0x2c4   : > { %v1269_v10 = vsel %vm997_vm11, %v9090_v58, 0.0  ;;  %v2069_v23 = vsel %vm1797_vm12, %v9096_v49, 0.0  ;;  %vm2597_vm14 = vcmp.eq.s32.totalorder %v6543_v41, %v9099_v8  ;;  %vm3397_vm15 = vcmp.eq.s32.totalorder %v6543_v41, %v9109_v25 }
 0x2c5   : > { %v5526_v26 = vadd.f32 %v5270_v6, %v4726_v53  ;;  %v3797_v47 = vadd.f32 %v3541_v15, %v2997_v51  ;;  %v2325_v21 = vadd.f32 %v2069_v23, %v1269_v10  ;;  %v2869_v34 = vsel %vm2597_vm14, %v9102_v17, 0.0 }
 0x2c6   : > { %v5141_v29 = vsel %vm4869_vm13, %v9132_v18, 0.0  ;;  %v3669_v44 = vsel %vm3397_vm15, %v9116_v9, 0.0  ;;  %vm4197_vm5 = vcmp.eq.s32.totalorder %v6543_v41, %v9123_v54  ;;  %vm866_vm6 = vcmp.eq.s32.totalorder %v6547_v48, %v9015_v7 }
 0x2c7   : > { %5818 = vmatprep.subr.mxu1 %v5526_v26  ;;  %v4597_v38 = vadd.f32 %v4341_v30, %v3797_v47  ;;  %v3125_v5 = vadd.f32 %v2869_v34, %v2325_v21  ;;  %v4469_v52 = vsel %vm4197_vm5, %v9126_v50, 0.0  ;;  %vm4997_vm0 = vcmp.eq.s32.totalorder %v6543_v41, %v9129_v20 }
 0x2c8   : > { %v1138_v37 = vsel %vm866_vm6, %v9018_v22, 0.0  ;;  %vm1666_vm1 = vcmp.eq.s32.totalorder %v6547_v48, %v9021_v11  ;;  %vm2466_vm2 = vcmp.eq.s32.totalorder %v6547_v48, %v9029_v0  ;;  %vm3266_vm3 = vcmp.eq.s32.totalorder %v6547_v48, %v9038_v12 }
 0x2c9   : > { %v5397_v40 = vadd.f32 %v5141_v29, %v4597_v38  ;;  %v3925_v28 = vadd.f32 %v3669_v44, %v3125_v5  ;;  %v1938_v32 = vsel %vm1666_vm1, %v9024_v31, 0.0  ;;  %v2738_v61 = vsel %vm2466_vm2, %v9032_v2, 0.0 }
 0x2ca   : > { %v5269_v13 = vsel %vm4997_vm0, %v9132_v18, 0.0  ;;  %v2194_v41 = vadd.f32 %v1938_v32, %v1138_v37  ;;  %v3538_v6 = vsel %vm3266_vm3, %v9041_v16, 0.0  ;;  %vm4066_vm4 = vcmp.eq.s32.totalorder %v6547_v48, %v9047_v19 }
 0x2cb   : > { %5748 = vmatpush1.msra.mxu0 %v5397_v40  ;;  %v4725_v46 = vadd.f32 %v4469_v52, %v3925_v28  ;;  %v4338_v35 = vsel %vm4066_vm4, %v9053_v33, 0.0  ;;  %vm4866_vm7 = vcmp.eq.s32.totalorder %v6547_v48, %v9059_v62  ;;  %vm994_vm8 = vcmp.eq.s32.totalorder %v6640_v42, %v9015_v7 }
 0x2cc   : > { %v2994_v15 = vadd.f32 %v2738_v61, %v2194_v41  ;;  %v1266_v53 = vsel %vm994_vm8, %v9018_v22, 0.0  ;;  %vm1794_vm9 = vcmp.eq.s32.totalorder %v6640_v42, %v9021_v11  ;;  %vm2594_vm10 = vcmp.eq.s32.totalorder %v6640_v42, %v9029_v0 }
 0x2cd   : > { %v5525_v51 = vadd.f32 %v5269_v13, %v4725_v46  ;;  %v2066_v30 = vsel %vm1794_vm9, %v9024_v31, 0.0  ;;  %v2866_v10 = vsel %vm2594_vm10, %v9032_v2, 0.0  ;;  %vm3394_vm11 = vcmp.eq.s32.totalorder %v6640_v42, %v9038_v12 }
 0x2ce   : > { %v3794_v23 = vadd.f32 %v3538_v6, %v2994_v15  ;;  %v5138_v26 = vsel %vm4866_vm7, %v9063_v55, 0.0  ;;  %v2322_v47 = vadd.f32 %v2066_v30, %v1266_v53  ;;  %vm4194_vm12 = vcmp.eq.s32.totalorder %v6640_v42, %v9047_v19 }
 0x2cf   : > { %5819 = vmatpush1.msra.mxu1 %v5525_v51  ;;  %v3666_v21 = vsel %vm3394_vm11, %v9041_v16, 0.0  ;;  %v4466_v34 = vsel %vm4194_vm12, %v9053_v33, 0.0  ;;  %vm865_vm13 = vcmp.eq.s32.totalorder %v6547_v48, %v9087_v45  ;;  %vm1665_vm14 = vcmp.eq.s32.totalorder %v6547_v48, %v9093_v36 }
 0x2d0   : > { %v4594_v29 = vadd.f32 %v4338_v35, %v3794_v23  ;;  %v3122_v44 = vadd.f32 %v2866_v10, %v2322_v47  ;;  %vm4994_vm15 = vcmp.eq.s32.totalorder %v6640_v42, %v9059_v62  ;;  %v1137_v38 = vsel %vm865_vm13, %v9090_v58, 0.0 }
 0x2d1   : > { %v1937_v5 = vsel %vm1665_vm14, %v9096_v49, 0.0  ;;  %vm2465_vm5 = vcmp.eq.s32.totalorder %v6547_v48, %v9099_v8  ;;  %vm3265_vm6 = vcmp.eq.s32.totalorder %v6547_v48, %v9109_v25  ;;  %vm4065_vm0 = vcmp.eq.s32.totalorder %v6547_v48, %v9123_v54 }
 0x2d2   : > { %v5394_v52 = vadd.f32 %v5138_v26, %v4594_v29  ;;  %v3922_v37 = vadd.f32 %v3666_v21, %v3122_v44  ;;  %v2193_v40 = vadd.f32 %v1937_v5, %v1137_v38  ;;  %v2737_v28 = vsel %vm2465_vm5, %v9102_v17, 0.0 }
 0x2d3   : > { %v5266_v32 = vsel %vm4994_vm15, %v9063_v55, 0.0  ;;  %v3537_v61 = vsel %vm3265_vm6, %v9116_v9, 0.0  ;;  %v4337_v13 = vsel %vm4065_vm0, %v9126_v50, 0.0  ;;  %vm993_vm1 = vcmp.eq.s32.totalorder %v6640_v42, %v9087_v45 }
 0x2d4   : > { %5749 = vmatprep.subr.mxu0 %v5394_v52  ;;  %v4722_v41 = vadd.f32 %v4466_v34, %v3922_v37  ;;  %v2993_v6 = vadd.f32 %v2737_v28, %v2193_v40  ;;  %vm4865_vm2 = vcmp.eq.s32.totalorder %v6547_v48, %v9129_v20  ;;  %v1265_v46 = vsel %vm993_vm1, %v9090_v58, 0.0 }
 0x2d5   : > { %vm1793_vm3 = vcmp.eq.s32.totalorder %v6640_v42, %v9093_v36  ;;  %vm2593_vm4 = vcmp.eq.s32.totalorder %v6640_v42, %v9099_v8  ;;  %vm3393_vm7 = vcmp.eq.s32.totalorder %v6640_v42, %v9109_v25  ;;  %vm4193_vm8 = vcmp.eq.s32.totalorder %v6640_v42, %v9123_v54 }
 0x2d6   : > { %v5522_v35 = vadd.f32 %v5266_v32, %v4722_v41  ;;  %v3793_v15 = vadd.f32 %v3537_v61, %v2993_v6  ;;  %v2065_v53 = vsel %vm1793_vm3, %v9096_v49, 0.0  ;;  %v2865_v48 = vsel %vm2593_vm4, %v9102_v17, 0.0 }
 0x2d7   : > { %v5137_v51 = vsel %vm4865_vm2, %v9132_v18, 0.0  ;;  %v2321_v30 = vadd.f32 %v2065_v53, %v1265_v46  ;;  %v3665_v10 = vsel %vm3393_vm7, %v9116_v9, 0.0  ;;  %v4465_v23 = vsel %vm4193_vm8, %v9126_v50, 0.0 }
 0x2d8   : > { %5820 = vmatprep.subr.mxu1 %v5522_v35  ;;  %v4593_v26 = vadd.f32 %v4337_v13, %v3793_v15  ;;  %vm4993_vm9 = vcmp.eq.s32.totalorder %v6640_v42, %v9129_v20  ;;  %vm862_vm10 = vcmp.eq.s32.totalorder %v6706_v56, %v9015_v7  ;;  %vm1662_vm11 = vcmp.eq.s32.totalorder %v6706_v56, %v9021_v11 }
 0x2d9   : > { %v3121_v47 = vadd.f32 %v2865_v48, %v2321_v30  ;;  %v1134_v21 = vsel %vm862_vm10, %v9018_v22, 0.0  ;;  %v1934_v34 = vsel %vm1662_vm11, %v9024_v31, 0.0  ;;  %vm2462_vm12 = vcmp.eq.s32.totalorder %v6706_v56, %v9029_v0 }
 0x2da   : > { %v5393_v29 = vadd.f32 %v5137_v51, %v4593_v26  ;;  %v2190_v44 = vadd.f32 %v1934_v34, %v1134_v21  ;;  %v2734_v38 = vsel %vm2462_vm12, %v9032_v2, 0.0  ;;  %vm3262_vm13 = vcmp.eq.s32.totalorder %v6706_v56, %v9038_v12 }
 0x2db   : > { %v3921_v42 = vadd.f32 %v3665_v10, %v3121_v47  ;;  %v5265_v5 = vsel %vm4993_vm9, %v9132_v18, 0.0  ;;  %v3534_v52 = vsel %vm3262_vm13, %v9041_v16, 0.0  ;;  %vm4062_vm14 = vcmp.eq.s32.totalorder %v6706_v56, %v9047_v19 }
 0x2dc   : > { %5750 = vmatpush1.msra.mxu0 %v5393_v29  ;;  %v2990_v37 = vadd.f32 %v2734_v38, %v2190_v44  ;;  %v4334_v40 = vsel %vm4062_vm14, %v9053_v33, 0.0  ;;  %vm4862_vm15 = vcmp.eq.s32.totalorder %v6706_v56, %v9059_v62  ;;  %vm990_vm5 = vcmp.eq.s32.totalorder %v6709_v57, %v9015_v7 }
 0x2dd   : > { %v4721_v28 = vadd.f32 %v4465_v23, %v3921_v42  ;;  %v1262_v32 = vsel %vm990_vm5, %v9018_v22, 0.0  ;;  %vm1790_vm6 = vcmp.eq.s32.totalorder %v6709_v57, %v9021_v11  ;;  %vm2590_vm0 = vcmp.eq.s32.totalorder %v6709_v57, %v9029_v0 }
 0x2de   : > { %v3790_v61 = vadd.f32 %v3534_v52, %v2990_v37  ;;  %v2062_v13 = vsel %vm1790_vm6, %v9024_v31, 0.0  ;;  %v2862_v41 = vsel %vm2590_vm0, %v9032_v2, 0.0  ;;  %vm3390_vm1 = vcmp.eq.s32.totalorder %v6709_v57, %v9038_v12 }
 0x2df   : > { %v5521_v6 = vadd.f32 %v5265_v5, %v4721_v28  ;;  %v5134_v46 = vsel %vm4862_vm15, %v9063_v55, 0.0  ;;  %v2318_v35 = vadd.f32 %v2062_v13, %v1262_v32  ;;  %vm4190_vm2 = vcmp.eq.s32.totalorder %v6709_v57, %v9047_v19 }
 0x2e0   : > { %v4590_v15 = vadd.f32 %v4334_v40, %v3790_v61  ;;  %v3662_v53 = vsel %vm3390_vm1, %v9041_v16, 0.0  ;;  %vm4990_vm3 = vcmp.eq.s32.totalorder %v6709_v57, %v9059_v62  ;;  %vm861_vm4 = vcmp.eq.s32.totalorder %v6706_v56, %v9087_v45 }
 0x2e1   : > { %5821 = vmatpush1.msra.mxu1 %v5521_v6  ;;  %v3118_v48 = vadd.f32 %v2862_v41, %v2318_v35  ;;  %v4462_v51 = vsel %vm4190_vm2, %v9053_v33, 0.0  ;;  %v1133_v30 = vsel %vm861_vm4, %v9090_v58, 0.0  ;;  %vm1661_vm7 = vcmp.eq.s32.totalorder %v6706_v56, %v9093_v36 }
 0x2e2   : > { %v5390_v10 = vadd.f32 %v5134_v46, %v4590_v15  ;;  %v1933_v23 = vsel %vm1661_vm7, %v9096_v49, 0.0  ;;  %vm2461_vm8 = vcmp.eq.s32.totalorder %v6706_v56, %v9099_v8  ;;  %vm3261_vm9 = vcmp.eq.s32.totalorder %v6706_v56, %v9109_v25 }
 0x2e3   : > { %v3918_v26 = vadd.f32 %v3662_v53, %v3118_v48  ;;  %v5262_v47 = vsel %vm4990_vm3, %v9063_v55, 0.0  ;;  %v2189_v21 = vadd.f32 %v1933_v23, %v1133_v30  ;;  %v2733_v34 = vsel %vm2461_vm8, %v9102_v17, 0.0 }
 0x2e4   : > { %5751 = vmatprep.subr.mxu0 %v5390_v10  ;;  %v3533_v29 = vsel %vm3261_vm9, %v9116_v9, 0.0  ;;  %vm4061_vm10 = vcmp.eq.s32.totalorder %v6706_v56, %v9123_v54  ;;  %vm989_vm11 = vcmp.eq.s32.totalorder %v6709_v57, %v9087_v45  ;;  %vm1789_vm12 = vcmp.eq.s32.totalorder %v6709_v57, %v9093_v36 }
 0x2e5   : > { %v4718_v44 = vadd.f32 %v4462_v51, %v3918_v26  ;;  %v2989_v38 = vadd.f32 %v2733_v34, %v2189_v21  ;;  %v4333_v42 = vsel %vm4061_vm10, %v9126_v50, 0.0  ;;  %vm4861_vm13 = vcmp.eq.s32.totalorder %v6706_v56, %v9129_v20 }
 0x2e6   : > { %v1261_v5 = vsel %vm989_vm11, %v9090_v58, 0.0  ;;  %v2061_v52 = vsel %vm1789_vm12, %v9096_v49, 0.0  ;;  %vm2589_vm14 = vcmp.eq.s32.totalorder %v6709_v57, %v9099_v8  ;;  %vm3389_vm15 = vcmp.eq.s32.totalorder %v6709_v57, %v9109_v25 }
 0x2e7   : > { %v5518_v37 = vadd.f32 %v5262_v47, %v4718_v44  ;;  %v3789_v40 = vadd.f32 %v3533_v29, %v2989_v38  ;;  %v2317_v28 = vadd.f32 %v2061_v52, %v1261_v5  ;;  %v2861_v32 = vsel %vm2589_vm14, %v9102_v17, 0.0 }
 0x2e8   : > { %v5133_v61 = vsel %vm4861_vm13, %v9132_v18, 0.0  ;;  %v3661_v13 = vsel %vm3389_vm15, %v9116_v9, 0.0  ;;  %vm4189_vm5 = vcmp.eq.s32.totalorder %v6709_v57, %v9123_v54  ;;  %vm858_vm6 = vcmp.eq.s32.totalorder %v6712_v59, %v9015_v7 }
 0x2e9   : > { %5822 = vmatprep.subr.mxu1 %v5518_v37  ;;  %v4589_v56 = vadd.f32 %v4333_v42, %v3789_v40  ;;  %v3117_v41 = vadd.f32 %v2861_v32, %v2317_v28  ;;  %v4461_v6 = vsel %vm4189_vm5, %v9126_v50, 0.0  ;;  %vm4989_vm0 = vcmp.eq.s32.totalorder %v6709_v57, %v9129_v20 }
 0x2ea   : > { %v1130_v46 = vsel %vm858_vm6, %v9018_v22, 0.0  ;;  %vm1658_vm1 = vcmp.eq.s32.totalorder %v6712_v59, %v9021_v11  ;;  %vm2458_vm2 = vcmp.eq.s32.totalorder %v6712_v59, %v9029_v0  ;;  %vm3258_vm3 = vcmp.eq.s32.totalorder %v6712_v59, %v9038_v12 }
 0x2eb   : > { %v5389_v35 = vadd.f32 %v5133_v61, %v4589_v56  ;;  %v3917_v15 = vadd.f32 %v3661_v13, %v3117_v41  ;;  %v1930_v53 = vsel %vm1658_vm1, %v9024_v31, 0.0  ;;  %v2730_v48 = vsel %vm2458_vm2, %v9032_v2, 0.0 }
 0x2ec   : > { %v5261_v51 = vsel %vm4989_vm0, %v9132_v18, 0.0  ;;  %v2186_v57 = vadd.f32 %v1930_v53, %v1130_v46  ;;  %v3530_v30 = vsel %vm3258_vm3, %v9041_v16, 0.0  ;;  %vm4058_vm4 = vcmp.eq.s32.totalorder %v6712_v59, %v9047_v19 }
 0x2ed   : > { %5752 = vmatpush1.msra.mxu0 %v5389_v35  ;;  %v4717_v10 = vadd.f32 %v4461_v6, %v3917_v15  ;;  %v4330_v23 = vsel %vm4058_vm4, %v9053_v33, 0.0  ;;  %vm4858_vm7 = vcmp.eq.s32.totalorder %v6712_v59, %v9059_v62  ;;  %vm986_vm8 = vcmp.eq.s32.totalorder %v6715_v60, %v9015_v7 }
 0x2ee   : > { %v2986_v26 = vadd.f32 %v2730_v48, %v2186_v57  ;;  %v1258_v47 = vsel %vm986_vm8, %v9018_v22, 0.0  ;;  %vm1786_vm9 = vcmp.eq.s32.totalorder %v6715_v60, %v9021_v11  ;;  %vm2586_vm10 = vcmp.eq.s32.totalorder %v6715_v60, %v9029_v0 }
 0x2ef   : > { %v5517_v21 = vadd.f32 %v5261_v51, %v4717_v10  ;;  %v2058_v34 = vsel %vm1786_vm9, %v9024_v31, 0.0  ;;  %v2858_v29 = vsel %vm2586_vm10, %v9032_v2, 0.0  ;;  %vm3386_vm11 = vcmp.eq.s32.totalorder %v6715_v60, %v9038_v12 }
 0x2f0   : > { %v3786_v44 = vadd.f32 %v3530_v30, %v2986_v26  ;;  %v5130_v38 = vsel %vm4858_vm7, %v9063_v55, 0.0  ;;  %v2314_v42 = vadd.f32 %v2058_v34, %v1258_v47  ;;  %vm4186_vm12 = vcmp.eq.s32.totalorder %v6715_v60, %v9047_v19 }
 0x2f1   : > { %5823 = vmatpush1.msra.mxu1 %v5517_v21  ;;  %v3658_v5 = vsel %vm3386_vm11, %v9041_v16, 0.0  ;;  %v4458_v52 = vsel %vm4186_vm12, %v9053_v33, 0.0  ;;  %vm857_vm13 = vcmp.eq.s32.totalorder %v6712_v59, %v9087_v45  ;;  %vm1657_vm14 = vcmp.eq.s32.totalorder %v6712_v59, %v9093_v36 }
 0x2f2   : > { %v4586_v37 = vadd.f32 %v4330_v23, %v3786_v44  ;;  %v3114_v40 = vadd.f32 %v2858_v29, %v2314_v42  ;;  %vm4986_vm15 = vcmp.eq.s32.totalorder %v6715_v60, %v9059_v62  ;;  %v1129_v28 = vsel %vm857_vm13, %v9090_v58, 0.0 }
 0x2f3   : > { %v1929_v32 = vsel %vm1657_vm14, %v9096_v49, 0.0  ;;  %vm2457_vm5 = vcmp.eq.s32.totalorder %v6712_v59, %v9099_v8  ;;  %vm3257_vm6 = vcmp.eq.s32.totalorder %v6712_v59, %v9109_v25  ;;  %vm4057_vm0 = vcmp.eq.s32.totalorder %v6712_v59, %v9123_v54 }
 0x2f4   : > { %v5386_v61 = vadd.f32 %v5130_v38, %v4586_v37  ;;  %v3914_v13 = vadd.f32 %v3658_v5, %v3114_v40  ;;  %v2185_v56 = vadd.f32 %v1929_v32, %v1129_v28  ;;  %v2729_v41 = vsel %vm2457_vm5, %v9102_v17, 0.0 }
 0x2f5   : > { %v5258_v6 = vsel %vm4986_vm15, %v9063_v55, 0.0  ;;  %v3529_v46 = vsel %vm3257_vm6, %v9116_v9, 0.0  ;;  %v4329_v35 = vsel %vm4057_vm0, %v9126_v50, 0.0  ;;  %vm985_vm1 = vcmp.eq.s32.totalorder %v6715_v60, %v9087_v45 }
 0x2f6   : > { %5753 = vmatprep.subr.mxu0 %v5386_v61  ;;  %v4714_v15 = vadd.f32 %v4458_v52, %v3914_v13  ;;  %v2985_v53 = vadd.f32 %v2729_v41, %v2185_v56  ;;  %vm4857_vm2 = vcmp.eq.s32.totalorder %v6712_v59, %v9129_v20  ;;  %v1257_v48 = vsel %vm985_vm1, %v9090_v58, 0.0 }
 0x2f7   : > { %vm1785_vm3 = vcmp.eq.s32.totalorder %v6715_v60, %v9093_v36  ;;  %vm2585_vm4 = vcmp.eq.s32.totalorder %v6715_v60, %v9099_v8  ;;  %vm3385_vm7 = vcmp.eq.s32.totalorder %v6715_v60, %v9109_v25  ;;  %vm4185_vm8 = vcmp.eq.s32.totalorder %v6715_v60, %v9123_v54 }
 0x2f8   : > { %v5514_v51 = vadd.f32 %v5258_v6, %v4714_v15  ;;  %v3785_v57 = vadd.f32 %v3529_v46, %v2985_v53  ;;  %v2057_v30 = vsel %vm1785_vm3, %v9096_v49, 0.0  ;;  %v2857_v59 = vsel %vm2585_vm4, %v9102_v17, 0.0 }
 0x2f9   : > { %v5129_v10 = vsel %vm4857_vm2, %v9132_v18, 0.0  ;;  %v2313_v23 = vadd.f32 %v2057_v30, %v1257_v48  ;;  %v3657_v26 = vsel %vm3385_vm7, %v9116_v9, 0.0  ;;  %v4457_v47 = vsel %vm4185_vm8, %v9126_v50, 0.0 }
 0x2fa   : > { %5824 = vmatprep.subr.mxu1 %v5514_v51  ;;  %v4585_v21 = vadd.f32 %v4329_v35, %v3785_v57  ;;  %vm4985_vm9 = vcmp.eq.s32.totalorder %v6715_v60, %v9129_v20  ;;  %vm854_vm10 = vcmp.eq.s32.totalorder %v6718_v63, %v9015_v7  ;;  %vm1654_vm11 = vcmp.eq.s32.totalorder %v6718_v63, %v9021_v11 }
 0x2fb   : > { %v3113_v34 = vadd.f32 %v2857_v59, %v2313_v23  ;;  %v1126_v29 = vsel %vm854_vm10, %v9018_v22, 0.0  ;;  %v1926_v44 = vsel %vm1654_vm11, %v9024_v31, 0.0  ;;  %vm2454_vm12 = vcmp.eq.s32.totalorder %v6718_v63, %v9029_v0 }
 0x2fc   : > { %v5385_v38 = vadd.f32 %v5129_v10, %v4585_v21  ;;  %v2182_v42 = vadd.f32 %v1926_v44, %v1126_v29  ;;  %v2726_v5 = vsel %vm2454_vm12, %v9032_v2, 0.0  ;;  %vm3254_vm13 = vcmp.eq.s32.totalorder %v6718_v63, %v9038_v12 }
 0x2fd   : > { %v3913_v60 = vadd.f32 %v3657_v26, %v3113_v34  ;;  %v5257_v52 = vsel %vm4985_vm9, %v9132_v18, 0.0  ;;  %v3526_v37 = vsel %vm3254_vm13, %v9041_v16, 0.0  ;;  %vm4054_vm14 = vcmp.eq.s32.totalorder %v6718_v63, %v9047_v19 }
 0x2fe   : > { %5754 = vmatpush1.msra.mxu0 %v5385_v38  ;;  %v2982_v40 = vadd.f32 %v2726_v5, %v2182_v42  ;;  %v4326_v28 = vsel %vm4054_vm14, %v9053_v33, 0.0  ;;  %vm4854_vm15 = vcmp.eq.s32.totalorder %v6718_v63, %v9059_v62  ;;  %vm982_vm5 = vcmp.eq.s32.totalorder %v6721_v1, %v9015_v7 }
 0x2ff   : > { %v4713_v32 = vadd.f32 %v4457_v47, %v3913_v60  ;;  %v1254_v61 = vsel %vm982_vm5, %v9018_v22, 0.0  ;;  %vm1782_vm6 = vcmp.eq.s32.totalorder %v6721_v1, %v9021_v11  ;;  %vm2582_vm0 = vcmp.eq.s32.totalorder %v6721_v1, %v9029_v0 }
 0x300   : > { %v3782_v13 = vadd.f32 %v3526_v37, %v2982_v40  ;;  %v2054_v56 = vsel %vm1782_vm6, %v9024_v31, 0.0  ;;  %v2854_v41 = vsel %vm2582_vm0, %v9032_v2, 0.0  ;;  %vm3382_vm1 = vcmp.eq.s32.totalorder %v6721_v1, %v9038_v12 }
 0x301   : > { %v5513_v6 = vadd.f32 %v5257_v52, %v4713_v32  ;;  %v5126_v46 = vsel %vm4854_vm15, %v9063_v55, 0.0  ;;  %v2310_v35 = vadd.f32 %v2054_v56, %v1254_v61  ;;  %vm4182_vm2 = vcmp.eq.s32.totalorder %v6721_v1, %v9047_v19 }
 0x302   : > { %v4582_v15 = vadd.f32 %v4326_v28, %v3782_v13  ;;  %v3654_v53 = vsel %vm3382_vm1, %v9041_v16, 0.0  ;;  %vm4982_vm3 = vcmp.eq.s32.totalorder %v6721_v1, %v9059_v62  ;;  %vm853_vm4 = vcmp.eq.s32.totalorder %v6718_v63, %v9087_v45 }
 0x303   : > { %5825 = vmatpush1.msra.mxu1 %v5513_v6  ;;  %v3110_v48 = vadd.f32 %v2854_v41, %v2310_v35  ;;  %v4454_v51 = vsel %vm4182_vm2, %v9053_v33, 0.0  ;;  %v1125_v57 = vsel %vm853_vm4, %v9090_v58, 0.0  ;;  %vm1653_vm7 = vcmp.eq.s32.totalorder %v6718_v63, %v9093_v36 }
 0x304   : > { %v5382_v30 = vadd.f32 %v5126_v46, %v4582_v15  ;;  %v1925_v59 = vsel %vm1653_vm7, %v9096_v49, 0.0  ;;  %vm2453_vm8 = vcmp.eq.s32.totalorder %v6718_v63, %v9099_v8  ;;  %vm3253_vm9 = vcmp.eq.s32.totalorder %v6718_v63, %v9109_v25 }
 0x305   : > { %v3910_v10 = vadd.f32 %v3654_v53, %v3110_v48  ;;  %v5254_v23 = vsel %vm4982_vm3, %v9063_v55, 0.0  ;;  %v2181_v26 = vadd.f32 %v1925_v59, %v1125_v57  ;;  %v2725_v47 = vsel %vm2453_vm8, %v9102_v17, 0.0 }
 0x306   : > { %5755 = vmatprep.subr.mxu0 %v5382_v30  ;;  %v3525_v21 = vsel %vm3253_vm9, %v9116_v9, 0.0  ;;  %vm4053_vm10 = vcmp.eq.s32.totalorder %v6718_v63, %v9123_v54  ;;  %vm981_vm11 = vcmp.eq.s32.totalorder %v6721_v1, %v9087_v45  ;;  %vm1781_vm12 = vcmp.eq.s32.totalorder %v6721_v1, %v9093_v36 }
 0x307   : > { %v4710_v34 = vadd.f32 %v4454_v51, %v3910_v10  ;;  %v2981_v29 = vadd.f32 %v2725_v47, %v2181_v26  ;;  %v4325_v44 = vsel %vm4053_vm10, %v9126_v50, 0.0  ;;  %vm4853_vm13 = vcmp.eq.s32.totalorder %v6718_v63, %v9129_v20  ;;  %v11550_v51 = vld [vmem:[#allocation7_spill] sm:$0xff] }
 0x308   : > { %v1253_v38 = vsel %vm981_vm11, %v9090_v58, 0.0  ;;  %v2053_v42 = vsel %vm1781_vm12, %v9096_v49, 0.0  ;;  %vm2581_vm14 = vcmp.eq.s32.totalorder %v6721_v1, %v9099_v8  ;;  %vm3381_vm15 = vcmp.eq.s32.totalorder %v6721_v1, %v9109_v25 }
 0x309   : > { %v5510_v5 = vadd.f32 %v5254_v23, %v4710_v34  ;;  %v3781_v60 = vadd.f32 %v3525_v21, %v2981_v29  ;;  %v2309_v52 = vadd.f32 %v2053_v42, %v1253_v38  ;;  %v2853_v37 = vsel %vm2581_vm14, %v9102_v17, 0.0 }
 0x30a   : > { %v5125_v40 = vsel %vm4853_vm13, %v9132_v18, 0.0  ;;  %v3653_v28 = vsel %vm3381_vm15, %v9116_v9, 0.0  ;;  %vm4181_vm5 = vcmp.eq.s32.totalorder %v6721_v1, %v9123_v54  ;;  %vm850_vm6 = vcmp.eq.s32.totalorder %v6939_v4, %v9015_v7 }
 0x30b   : > { %5826 = vmatprep.subr.mxu1 %v5510_v5  ;;  %v4581_v63 = vadd.f32 %v4325_v44, %v3781_v60  ;;  %v3109_v32 = vadd.f32 %v2853_v37, %v2309_v52  ;;  %v4453_v61 = vsel %vm4181_vm5, %v9126_v50, 0.0  ;;  %vm4981_vm0 = vcmp.eq.s32.totalorder %v6721_v1, %v9129_v20 }
 0x30c   : > { %v1122_v13 = vsel %vm850_vm6, %v9018_v22, 0.0  ;;  %vm1650_vm1 = vcmp.eq.s32.totalorder %v6939_v4, %v9021_v11  ;;  %vm2450_vm2 = vcmp.eq.s32.totalorder %v6939_v4, %v9029_v0  ;;  %vm3250_vm3 = vcmp.eq.s32.totalorder %v6939_v4, %v9038_v12 }
 0x30d   : > { %v5381_v56 = vadd.f32 %v5125_v40, %v4581_v63  ;;  %v3909_v41 = vadd.f32 %v3653_v28, %v3109_v32  ;;  %v1922_v6 = vsel %vm1650_vm1, %v9024_v31, 0.0  ;;  %v2722_v46 = vsel %vm2450_vm2, %v9032_v2, 0.0 }
 0x30e   : > { %v5253_v35 = vsel %vm4981_vm0, %v9132_v18, 0.0  ;;  %v2178_v1 = vadd.f32 %v1922_v6, %v1122_v13  ;;  %v3522_v15 = vsel %vm3250_vm3, %v9041_v16, 0.0  ;;  %vm4050_vm4 = vcmp.eq.s32.totalorder %v6939_v4, %v9047_v19 }
 0x30f   : > { %5756 = vmatpush1.msra.mxu0 %v5381_v56  ;;  %v4709_v53 = vadd.f32 %v4453_v61, %v3909_v41  ;;  %v4322_v48 = vsel %vm4050_vm4, %v9053_v33, 0.0  ;;  %vm4850_vm7 = vcmp.eq.s32.totalorder %v6939_v4, %v9059_v62  ;;  %vm978_vm8 = vcmp.eq.s32.totalorder %v11550_v51, %v9015_v7 }
 0x310   : > { %v2978_v57 = vadd.f32 %v2722_v46, %v2178_v1  ;;  %v1250_v30 = vsel %vm978_vm8, %v9018_v22, 0.0  ;;  %vm1778_vm9 = vcmp.eq.s32.totalorder %v11550_v51, %v9021_v11  ;;  %vm2578_vm10 = vcmp.eq.s32.totalorder %v11550_v51, %v9029_v0 }
 0x311   : > { %v5509_v59 = vadd.f32 %v5253_v35, %v4709_v53  ;;  %v2050_v10 = vsel %vm1778_vm9, %v9024_v31, 0.0  ;;  %v2850_v23 = vsel %vm2578_vm10, %v9032_v2, 0.0  ;;  %vm3378_vm11 = vcmp.eq.s32.totalorder %v11550_v51, %v9038_v12 }
 0x312   : > { %v3778_v26 = vadd.f32 %v3522_v15, %v2978_v57  ;;  %v5122_v47 = vsel %vm4850_vm7, %v9063_v55, 0.0  ;;  %v2306_v21 = vadd.f32 %v2050_v10, %v1250_v30  ;;  %vm4178_vm12 = vcmp.eq.s32.totalorder %v11550_v51, %v9047_v19  ;;  %v11551_v57 = vld [vmem:[#allocation8_spill] sm:$0xff] }
 0x313   : > { %5827 = vmatpush1.msra.mxu1 %v5509_v59  ;;  %v3650_v34 = vsel %vm3378_vm11, %v9041_v16, 0.0  ;;  %v4450_v29 = vsel %vm4178_vm12, %v9053_v33, 0.0  ;;  %vm849_vm13 = vcmp.eq.s32.totalorder %v6939_v4, %v9087_v45  ;;  %vm1649_vm14 = vcmp.eq.s32.totalorder %v6939_v4, %v9093_v36 }
 0x314   : > { %v4578_v44 = vadd.f32 %v4322_v48, %v3778_v26  ;;  %v3106_v38 = vadd.f32 %v2850_v23, %v2306_v21  ;;  %vm4978_vm15 = vcmp.eq.s32.totalorder %v11550_v51, %v9059_v62  ;;  %v1121_v42 = vsel %vm849_vm13, %v9090_v58, 0.0 }
 0x315   : > { %v1921_v5 = vsel %vm1649_vm14, %v9096_v49, 0.0  ;;  %vm2449_vm5 = vcmp.eq.s32.totalorder %v6939_v4, %v9099_v8  ;;  %vm3249_vm6 = vcmp.eq.s32.totalorder %v6939_v4, %v9109_v25  ;;  %vm4049_vm0 = vcmp.eq.s32.totalorder %v6939_v4, %v9123_v54 }
 0x316   : > { %v5378_v60 = vadd.f32 %v5122_v47, %v4578_v44  ;;  %v3906_v52 = vadd.f32 %v3650_v34, %v3106_v38  ;;  %v2177_v37 = vadd.f32 %v1921_v5, %v1121_v42  ;;  %v2721_v40 = vsel %vm2449_vm5, %v9102_v17, 0.0  ;;  %v11552_v38 = vld [vmem:[#allocation9_spill] sm:$0xff] }
 0x317   : > { %v5250_v28 = vsel %vm4978_vm15, %v9063_v55, 0.0  ;;  %v3521_v63 = vsel %vm3249_vm6, %v9116_v9, 0.0  ;;  %v4321_v32 = vsel %vm4049_vm0, %v9126_v50, 0.0  ;;  %vm977_vm1 = vcmp.eq.s32.totalorder %v11550_v51, %v9087_v45 }
 0x318   : > { %5757 = vmatprep.subr.mxu0 %v5378_v60  ;;  %v4706_v61 = vadd.f32 %v4450_v29, %v3906_v52  ;;  %v2977_v13 = vadd.f32 %v2721_v40, %v2177_v37  ;;  %vm4849_vm2 = vcmp.eq.s32.totalorder %v6939_v4, %v9129_v20  ;;  %v1249_v56 = vsel %vm977_vm1, %v9090_v58, 0.0 }
 0x319   : > { %vm1777_vm3 = vcmp.eq.s32.totalorder %v11550_v51, %v9093_v36  ;;  %vm2577_vm4 = vcmp.eq.s32.totalorder %v11550_v51, %v9099_v8  ;;  %vm3377_vm7 = vcmp.eq.s32.totalorder %v11550_v51, %v9109_v25  ;;  %vm4177_vm8 = vcmp.eq.s32.totalorder %v11550_v51, %v9123_v54 }
 0x31a   : > { %v5506_v41 = vadd.f32 %v5250_v28, %v4706_v61  ;;  %v3777_v6 = vadd.f32 %v3521_v63, %v2977_v13  ;;  %v2049_v46 = vsel %vm1777_vm3, %v9096_v49, 0.0  ;;  %v2849_v4 = vsel %vm2577_vm4, %v9102_v17, 0.0 }
 0x31b   : > { %v5121_v35 = vsel %vm4849_vm2, %v9132_v18, 0.0  ;;  %v2305_v1 = vadd.f32 %v2049_v46, %v1249_v56  ;;  %v3649_v15 = vsel %vm3377_vm7, %v9116_v9, 0.0  ;;  %v4449_v53 = vsel %vm4177_vm8, %v9126_v50, 0.0 }
 0x31c   : > { %5828 = vmatprep.subr.mxu1 %v5506_v41  ;;  %v4577_v48 = vadd.f32 %v4321_v32, %v3777_v6  ;;  %vm4977_vm9 = vcmp.eq.s32.totalorder %v11550_v51, %v9129_v20  ;;  %vm846_vm10 = vcmp.eq.s32.totalorder %v11551_v57, %v9015_v7  ;;  %vm1646_vm11 = vcmp.eq.s32.totalorder %v11551_v57, %v9021_v11 }
 0x31d   : > { %v3105_v30 = vadd.f32 %v2849_v4, %v2305_v1  ;;  %v1118_v59 = vsel %vm846_vm10, %v9018_v22, 0.0  ;;  %v1918_v10 = vsel %vm1646_vm11, %v9024_v31, 0.0  ;;  %vm2446_vm12 = vcmp.eq.s32.totalorder %v11551_v57, %v9029_v0 }
 0x31e   : > { %v5377_v23 = vadd.f32 %v5121_v35, %v4577_v48  ;;  %v2174_v26 = vadd.f32 %v1918_v10, %v1118_v59  ;;  %v2718_v47 = vsel %vm2446_vm12, %v9032_v2, 0.0  ;;  %vm3246_vm13 = vcmp.eq.s32.totalorder %v11551_v57, %v9038_v12 }
 0x31f   : > { %v3905_v51 = vadd.f32 %v3649_v15, %v3105_v30  ;;  %v5249_v21 = vsel %vm4977_vm9, %v9132_v18, 0.0  ;;  %v3518_v34 = vsel %vm3246_vm13, %v9041_v16, 0.0  ;;  %vm4046_vm14 = vcmp.eq.s32.totalorder %v11551_v57, %v9047_v19 }
 0x320   : > { %5758 = vmatpush1.msra.mxu0 %v5377_v23  ;;  %v2974_v29 = vadd.f32 %v2718_v47, %v2174_v26  ;;  %v4318_v44 = vsel %vm4046_vm14, %v9053_v33, 0.0  ;;  %vm4846_vm15 = vcmp.eq.s32.totalorder %v11551_v57, %v9059_v62  ;;  %vm974_vm5 = vcmp.eq.s32.totalorder %v11552_v38, %v9015_v7 }
 0x321   : > { %v4705_v42 = vadd.f32 %v4449_v53, %v3905_v51  ;;  %v1246_v5 = vsel %vm974_vm5, %v9018_v22, 0.0  ;;  %vm1774_vm6 = vcmp.eq.s32.totalorder %v11552_v38, %v9021_v11  ;;  %vm2574_vm0 = vcmp.eq.s32.totalorder %v11552_v38, %v9029_v0 }
 0x322   : > { %v3774_v60 = vadd.f32 %v3518_v34, %v2974_v29  ;;  %v2046_v52 = vsel %vm1774_vm6, %v9024_v31, 0.0  ;;  %v2846_v37 = vsel %vm2574_vm0, %v9032_v2, 0.0  ;;  %vm3374_vm1 = vcmp.eq.s32.totalorder %v11552_v38, %v9038_v12 }
 0x323   : > { %v5505_v40 = vadd.f32 %v5249_v21, %v4705_v42  ;;  %v5118_v28 = vsel %vm4846_vm15, %v9063_v55, 0.0  ;;  %v2302_v63 = vadd.f32 %v2046_v52, %v1246_v5  ;;  %vm4174_vm2 = vcmp.eq.s32.totalorder %v11552_v38, %v9047_v19 }
 0x324   : > { %v4574_v32 = vadd.f32 %v4318_v44, %v3774_v60  ;;  %v3646_v61 = vsel %vm3374_vm1, %v9041_v16, 0.0  ;;  %vm4974_vm3 = vcmp.eq.s32.totalorder %v11552_v38, %v9059_v62  ;;  %vm845_vm4 = vcmp.eq.s32.totalorder %v11551_v57, %v9087_v45 }
 0x325   : > { %5829 = vmatpush1.msra.mxu1 %v5505_v40  ;;  %v3102_v13 = vadd.f32 %v2846_v37, %v2302_v63  ;;  %v4446_v56 = vsel %vm4174_vm2, %v9053_v33, 0.0  ;;  %v1117_v41 = vsel %vm845_vm4, %v9090_v58, 0.0  ;;  %vm1645_vm7 = vcmp.eq.s32.totalorder %v11551_v57, %v9093_v36 }
 0x326   : > { %v5374_v6 = vadd.f32 %v5118_v28, %v4574_v32  ;;  %v1917_v46 = vsel %vm1645_vm7, %v9096_v49, 0.0  ;;  %vm2445_vm8 = vcmp.eq.s32.totalorder %v11551_v57, %v9099_v8  ;;  %vm3245_vm9 = vcmp.eq.s32.totalorder %v11551_v57, %v9109_v25 }
 0x327   : > { %v3902_v4 = vadd.f32 %v3646_v61, %v3102_v13  ;;  %v5246_v35 = vsel %vm4974_vm3, %v9063_v55, 0.0  ;;  %v2173_v1 = vadd.f32 %v1917_v46, %v1117_v41  ;;  %v2717_v15 = vsel %vm2445_vm8, %v9102_v17, 0.0 }
 0x328   : > { %5759 = vmatprep.subr.mxu0 %v5374_v6  ;;  %v3517_v53 = vsel %vm3245_vm9, %v9116_v9, 0.0  ;;  %vm4045_vm10 = vcmp.eq.s32.totalorder %v11551_v57, %v9123_v54  ;;  %vm973_vm11 = vcmp.eq.s32.totalorder %v11552_v38, %v9087_v45  ;;  %vm1773_vm12 = vcmp.eq.s32.totalorder %v11552_v38, %v9093_v36 }
 0x329   : > { %v4702_v48 = vadd.f32 %v4446_v56, %v3902_v4  ;;  %v2973_v30 = vadd.f32 %v2717_v15, %v2173_v1  ;;  %v4317_v59 = vsel %vm4045_vm10, %v9126_v50, 0.0  ;;  %vm4845_vm13 = vcmp.eq.s32.totalorder %v11551_v57, %v9129_v20  ;;  %v11553_v57 = vld [vmem:[#allocation10_spill] sm:$0xff]  ;;  %v11554_v56 = vld [vmem:[#allocation11_spill] sm:$0xff] }
 0x32a   : > { %v1245_v10 = vsel %vm973_vm11, %v9090_v58, 0.0  ;;  %v2045_v23 = vsel %vm1773_vm12, %v9096_v49, 0.0  ;;  %vm2573_vm14 = vcmp.eq.s32.totalorder %v11552_v38, %v9099_v8  ;;  %vm3373_vm15 = vcmp.eq.s32.totalorder %v11552_v38, %v9109_v25 }
 0x32b   : > { %v5502_v26 = vadd.f32 %v5246_v35, %v4702_v48  ;;  %v3773_v47 = vadd.f32 %v3517_v53, %v2973_v30  ;;  %v2301_v51 = vadd.f32 %v2045_v23, %v1245_v10  ;;  %v2845_v21 = vsel %vm2573_vm14, %v9102_v17, 0.0 }
 0x32c   : > { %v5117_v34 = vsel %vm4845_vm13, %v9132_v18, 0.0  ;;  %v3645_v29 = vsel %vm3373_vm15, %v9116_v9, 0.0  ;;  %vm4173_vm5 = vcmp.eq.s32.totalorder %v11552_v38, %v9123_v54  ;;  %vm842_vm6 = vcmp.eq.s32.totalorder %v11553_v57, %v9015_v7 }
 0x32d   : > { %5830 = vmatprep.subr.mxu1 %v5502_v26  ;;  %v4573_v44 = vadd.f32 %v4317_v59, %v3773_v47  ;;  %v3101_v42 = vadd.f32 %v2845_v21, %v2301_v51  ;;  %v4445_v5 = vsel %vm4173_vm5, %v9126_v50, 0.0  ;;  %vm4973_vm0 = vcmp.eq.s32.totalorder %v11552_v38, %v9129_v20 }
 0x32e   : > { %v1114_v60 = vsel %vm842_vm6, %v9018_v22, 0.0  ;;  %vm1642_vm1 = vcmp.eq.s32.totalorder %v11553_v57, %v9021_v11  ;;  %vm2442_vm2 = vcmp.eq.s32.totalorder %v11553_v57, %v9029_v0  ;;  %vm3242_vm3 = vcmp.eq.s32.totalorder %v11553_v57, %v9038_v12 }
 0x32f   : > { %v5373_v52 = vadd.f32 %v5117_v34, %v4573_v44  ;;  %v3901_v37 = vadd.f32 %v3645_v29, %v3101_v42  ;;  %v1914_v40 = vsel %vm1642_vm1, %v9024_v31, 0.0  ;;  %v2714_v28 = vsel %vm2442_vm2, %v9032_v2, 0.0 }
 0x330   : > { %v5245_v63 = vsel %vm4973_vm0, %v9132_v18, 0.0  ;;  %v2170_v38 = vadd.f32 %v1914_v40, %v1114_v60  ;;  %v3514_v32 = vsel %vm3242_vm3, %v9041_v16, 0.0  ;;  %vm4042_vm4 = vcmp.eq.s32.totalorder %v11553_v57, %v9047_v19 }
 0x331   : > { %5760 = vmatpush1.msra.mxu0 %v5373_v52  ;;  %v4701_v61 = vadd.f32 %v4445_v5, %v3901_v37  ;;  %v4314_v13 = vsel %vm4042_vm4, %v9053_v33, 0.0  ;;  %vm4842_vm7 = vcmp.eq.s32.totalorder %v11553_v57, %v9059_v62  ;;  %vm970_vm8 = vcmp.eq.s32.totalorder %v11554_v56, %v9015_v7 }
 0x332   : > { %v2970_v41 = vadd.f32 %v2714_v28, %v2170_v38  ;;  %v1242_v6 = vsel %vm970_vm8, %v9018_v22, 0.0  ;;  %vm1770_vm9 = vcmp.eq.s32.totalorder %v11554_v56, %v9021_v11  ;;  %vm2570_vm10 = vcmp.eq.s32.totalorder %v11554_v56, %v9029_v0 }
 0x333   : > { %v5501_v46 = vadd.f32 %v5245_v63, %v4701_v61  ;;  %v2042_v4 = vsel %vm1770_vm9, %v9024_v31, 0.0  ;;  %v2842_v35 = vsel %vm2570_vm10, %v9032_v2, 0.0  ;;  %vm3370_vm11 = vcmp.eq.s32.totalorder %v11554_v56, %v9038_v12 }
 0x334   : > { %v3770_v1 = vadd.f32 %v3514_v32, %v2970_v41  ;;  %v5114_v15 = vsel %vm4842_vm7, %v9063_v55, 0.0  ;;  %v2298_v53 = vadd.f32 %v2042_v4, %v1242_v6  ;;  %vm4170_vm12 = vcmp.eq.s32.totalorder %v11554_v56, %v9047_v19  ;;  %v11555_v41 = vld [vmem:[#allocation12_spill] sm:$0xff] }
 0x335   : > { %5831 = vmatpush1.msra.mxu1 %v5501_v46  ;;  %v3642_v48 = vsel %vm3370_vm11, %v9041_v16, 0.0  ;;  %v4442_v30 = vsel %vm4170_vm12, %v9053_v33, 0.0  ;;  %vm841_vm13 = vcmp.eq.s32.totalorder %v11553_v57, %v9087_v45  ;;  %vm1641_vm14 = vcmp.eq.s32.totalorder %v11553_v57, %v9093_v36 }
 0x336   : > { %v4570_v59 = vadd.f32 %v4314_v13, %v3770_v1  ;;  %v3098_v10 = vadd.f32 %v2842_v35, %v2298_v53  ;;  %vm4970_vm15 = vcmp.eq.s32.totalorder %v11554_v56, %v9059_v62  ;;  %v1113_v23 = vsel %vm841_vm13, %v9090_v58, 0.0 }
 0x337   : > { %v1913_v26 = vsel %vm1641_vm14, %v9096_v49, 0.0  ;;  %vm2441_vm5 = vcmp.eq.s32.totalorder %v11553_v57, %v9099_v8  ;;  %vm3241_vm6 = vcmp.eq.s32.totalorder %v11553_v57, %v9109_v25  ;;  %vm4041_vm0 = vcmp.eq.s32.totalorder %v11553_v57, %v9123_v54 }
 0x338   : > { %v5370_v47 = vadd.f32 %v5114_v15, %v4570_v59  ;;  %v3898_v51 = vadd.f32 %v3642_v48, %v3098_v10  ;;  %v2169_v21 = vadd.f32 %v1913_v26, %v1113_v23  ;;  %v2713_v34 = vsel %vm2441_vm5, %v9102_v17, 0.0  ;;  %v11556_v10 = vld [vmem:[#allocation13_spill] sm:$0xff] }
 0x339   : > { %v5242_v29 = vsel %vm4970_vm15, %v9063_v55, 0.0  ;;  %v3513_v44 = vsel %vm3241_vm6, %v9116_v9, 0.0  ;;  %v4313_v42 = vsel %vm4041_vm0, %v9126_v50, 0.0  ;;  %vm969_vm1 = vcmp.eq.s32.totalorder %v11554_v56, %v9087_v45 }
 0x33a   : > { %5761 = vmatprep.subr.mxu0 %v5370_v47  ;;  %v4698_v5 = vadd.f32 %v4442_v30, %v3898_v51  ;;  %v2969_v60 = vadd.f32 %v2713_v34, %v2169_v21  ;;  %vm4841_vm2 = vcmp.eq.s32.totalorder %v11553_v57, %v9129_v20  ;;  %v1241_v52 = vsel %vm969_vm1, %v9090_v58, 0.0 }
 0x33b   : > { %vm1769_vm3 = vcmp.eq.s32.totalorder %v11554_v56, %v9093_v36  ;;  %vm2569_vm4 = vcmp.eq.s32.totalorder %v11554_v56, %v9099_v8  ;;  %vm3369_vm7 = vcmp.eq.s32.totalorder %v11554_v56, %v9109_v25  ;;  %vm4169_vm8 = vcmp.eq.s32.totalorder %v11554_v56, %v9123_v54 }
 0x33c   : > { %v5498_v37 = vadd.f32 %v5242_v29, %v4698_v5  ;;  %v3769_v40 = vadd.f32 %v3513_v44, %v2969_v60  ;;  %v2041_v28 = vsel %vm1769_vm3, %v9096_v49, 0.0  ;;  %v2841_v57 = vsel %vm2569_vm4, %v9102_v17, 0.0 }
 0x33d   : > { %v5113_v63 = vsel %vm4841_vm2, %v9132_v18, 0.0  ;;  %v2297_v38 = vadd.f32 %v2041_v28, %v1241_v52  ;;  %v3641_v32 = vsel %vm3369_vm7, %v9116_v9, 0.0  ;;  %v4441_v61 = vsel %vm4169_vm8, %v9126_v50, 0.0 }
 0x33e   : > { %5832 = vmatprep.subr.mxu1 %v5498_v37  ;;  %v4569_v13 = vadd.f32 %v4313_v42, %v3769_v40  ;;  %vm4969_vm9 = vcmp.eq.s32.totalorder %v11554_v56, %v9129_v20  ;;  %vm838_vm10 = vcmp.eq.s32.totalorder %v11555_v41, %v9015_v7  ;;  %vm1638_vm11 = vcmp.eq.s32.totalorder %v11555_v41, %v9021_v11 }
 0x33f   : > { %v3097_v6 = vadd.f32 %v2841_v57, %v2297_v38  ;;  %v1110_v46 = vsel %vm838_vm10, %v9018_v22, 0.0  ;;  %v1910_v4 = vsel %vm1638_vm11, %v9024_v31, 0.0  ;;  %vm2438_vm12 = vcmp.eq.s32.totalorder %v11555_v41, %v9029_v0 }
 0x340   : > { %v5369_v35 = vadd.f32 %v5113_v63, %v4569_v13  ;;  %v2166_v1 = vadd.f32 %v1910_v4, %v1110_v46  ;;  %v2710_v15 = vsel %vm2438_vm12, %v9032_v2, 0.0  ;;  %vm3238_vm13 = vcmp.eq.s32.totalorder %v11555_v41, %v9038_v12 }
 0x341   : > { %v3897_v56 = vadd.f32 %v3641_v32, %v3097_v6  ;;  %v5241_v53 = vsel %vm4969_vm9, %v9132_v18, 0.0  ;;  %v3510_v48 = vsel %vm3238_vm13, %v9041_v16, 0.0  ;;  %vm4038_vm14 = vcmp.eq.s32.totalorder %v11555_v41, %v9047_v19 }
 0x342   : > { %5762 = vmatpush1.msra.mxu0 %v5369_v35  ;;  %v2966_v30 = vadd.f32 %v2710_v15, %v2166_v1  ;;  %v4310_v59 = vsel %vm4038_vm14, %v9053_v33, 0.0  ;;  %vm4838_vm15 = vcmp.eq.s32.totalorder %v11555_v41, %v9059_v62  ;;  %vm966_vm5 = vcmp.eq.s32.totalorder %v11556_v10, %v9015_v7 }
 0x343   : > { %v4697_v23 = vadd.f32 %v4441_v61, %v3897_v56  ;;  %v1238_v26 = vsel %vm966_vm5, %v9018_v22, 0.0  ;;  %vm1766_vm6 = vcmp.eq.s32.totalorder %v11556_v10, %v9021_v11  ;;  %vm2566_vm0 = vcmp.eq.s32.totalorder %v11556_v10, %v9029_v0 }
 0x344   : > { %v3766_v47 = vadd.f32 %v3510_v48, %v2966_v30  ;;  %v2038_v51 = vsel %vm1766_vm6, %v9024_v31, 0.0  ;;  %v2838_v21 = vsel %vm2566_vm0, %v9032_v2, 0.0  ;;  %vm3366_vm1 = vcmp.eq.s32.totalorder %v11556_v10, %v9038_v12 }
 0x345   : > { %v5497_v34 = vadd.f32 %v5241_v53, %v4697_v23  ;;  %v5110_v29 = vsel %vm4838_vm15, %v9063_v55, 0.0  ;;  %v2294_v44 = vadd.f32 %v2038_v51, %v1238_v26  ;;  %vm4166_vm2 = vcmp.eq.s32.totalorder %v11556_v10, %v9047_v19 }
 0x346   : > { %v4566_v42 = vadd.f32 %v4310_v59, %v3766_v47  ;;  %v3638_v5 = vsel %vm3366_vm1, %v9041_v16, 0.0  ;;  %vm4966_vm3 = vcmp.eq.s32.totalorder %v11556_v10, %v9059_v62  ;;  %vm837_vm4 = vcmp.eq.s32.totalorder %v11555_v41, %v9087_v45 }
 0x347   : > { %5833 = vmatpush1.msra.mxu1 %v5497_v34  ;;  %v3094_v60 = vadd.f32 %v2838_v21, %v2294_v44  ;;  %v4438_v52 = vsel %vm4166_vm2, %v9053_v33, 0.0  ;;  %v1109_v37 = vsel %vm837_vm4, %v9090_v58, 0.0  ;;  %vm1637_vm7 = vcmp.eq.s32.totalorder %v11555_v41, %v9093_v36 }
 0x348   : > { %v5366_v40 = vadd.f32 %v5110_v29, %v4566_v42  ;;  %v1909_v28 = vsel %vm1637_vm7, %v9096_v49, 0.0  ;;  %vm2437_vm8 = vcmp.eq.s32.totalorder %v11555_v41, %v9099_v8  ;;  %vm3237_vm9 = vcmp.eq.s32.totalorder %v11555_v41, %v9109_v25 }
 0x349   : > { %v3894_v57 = vadd.f32 %v3638_v5, %v3094_v60  ;;  %v5238_v63 = vsel %vm4966_vm3, %v9063_v55, 0.0  ;;  %v2165_v38 = vadd.f32 %v1909_v28, %v1109_v37  ;;  %v2709_v32 = vsel %vm2437_vm8, %v9102_v17, 0.0 }
 0x34a   : > { %5763 = vmatprep.subr.mxu0 %v5366_v40  ;;  %v3509_v61 = vsel %vm3237_vm9, %v9116_v9, 0.0  ;;  %vm4037_vm10 = vcmp.eq.s32.totalorder %v11555_v41, %v9123_v54  ;;  %vm965_vm11 = vcmp.eq.s32.totalorder %v11556_v10, %v9087_v45  ;;  %vm1765_vm12 = vcmp.eq.s32.totalorder %v11556_v10, %v9093_v36 }
 0x34b   : > { %v4694_v13 = vadd.f32 %v4438_v52, %v3894_v57  ;;  %v2965_v6 = vadd.f32 %v2709_v32, %v2165_v38  ;;  %v4309_v46 = vsel %vm4037_vm10, %v9126_v50, 0.0  ;;  %vm4837_vm13 = vcmp.eq.s32.totalorder %v11555_v41, %v9129_v20  ;;  %v11557_v41 = vld [vmem:[#allocation14_spill] sm:$0xff]  ;;  %v11558_v52 = vld [vmem:[#allocation15_spill] sm:$0xff] }
 0x34c   : > { %v1237_v4 = vsel %vm965_vm11, %v9090_v58, 0.0  ;;  %v2037_v35 = vsel %vm1765_vm12, %v9096_v49, 0.0  ;;  %vm2565_vm14 = vcmp.eq.s32.totalorder %v11556_v10, %v9099_v8  ;;  %vm3365_vm15 = vcmp.eq.s32.totalorder %v11556_v10, %v9109_v25 }
 0x34d   : > { %v5494_v1 = vadd.f32 %v5238_v63, %v4694_v13  ;;  %v3765_v15 = vadd.f32 %v3509_v61, %v2965_v6  ;;  %v2293_v56 = vadd.f32 %v2037_v35, %v1237_v4  ;;  %v2837_v53 = vsel %vm2565_vm14, %v9102_v17, 0.0 }
 0x34e   : > { %v5109_v48 = vsel %vm4837_vm13, %v9132_v18, 0.0  ;;  %v3637_v30 = vsel %vm3365_vm15, %v9116_v9, 0.0  ;;  %vm4165_vm5 = vcmp.eq.s32.totalorder %v11556_v10, %v9123_v54  ;;  %vm834_vm6 = vcmp.eq.s32.totalorder %v11557_v41, %v9015_v7 }
 0x34f   : > { %5834 = vmatprep.subr.mxu1 %v5494_v1  ;;  %v4565_v59 = vadd.f32 %v4309_v46, %v3765_v15  ;;  %v3093_v23 = vadd.f32 %v2837_v53, %v2293_v56  ;;  %v4437_v26 = vsel %vm4165_vm5, %v9126_v50, 0.0  ;;  %vm4965_vm0 = vcmp.eq.s32.totalorder %v11556_v10, %v9129_v20 }
 0x350   : > { %v1106_v47 = vsel %vm834_vm6, %v9018_v22, 0.0  ;;  %vm1634_vm1 = vcmp.eq.s32.totalorder %v11557_v41, %v9021_v11  ;;  %vm2434_vm2 = vcmp.eq.s32.totalorder %v11557_v41, %v9029_v0  ;;  %vm3234_vm3 = vcmp.eq.s32.totalorder %v11557_v41, %v9038_v12 }
 0x351   : > { %v5365_v51 = vadd.f32 %v5109_v48, %v4565_v59  ;;  %v3893_v21 = vadd.f32 %v3637_v30, %v3093_v23  ;;  %v1906_v34 = vsel %vm1634_vm1, %v9024_v31, 0.0  ;;  %v2706_v29 = vsel %vm2434_vm2, %v9032_v2, 0.0 }
 0x352   : > { %v5237_v44 = vsel %vm4965_vm0, %v9132_v18, 0.0  ;;  %v2162_v10 = vadd.f32 %v1906_v34, %v1106_v47  ;;  %v3506_v42 = vsel %vm3234_vm3, %v9041_v16, 0.0  ;;  %vm4034_vm4 = vcmp.eq.s32.totalorder %v11557_v41, %v9047_v19 }
 0x353   : > { %5764 = vmatpush1.msra.mxu0 %v5365_v51  ;;  %v4693_v5 = vadd.f32 %v4437_v26, %v3893_v21  ;;  %v4306_v60 = vsel %vm4034_vm4, %v9053_v33, 0.0  ;;  %vm4834_vm7 = vcmp.eq.s32.totalorder %v11557_v41, %v9059_v62  ;;  %vm962_vm8 = vcmp.eq.s32.totalorder %v11558_v52, %v9015_v7 }
 0x354   : > { %v2962_v37 = vadd.f32 %v2706_v29, %v2162_v10  ;;  %v1234_v40 = vsel %vm962_vm8, %v9018_v22, 0.0  ;;  %vm1762_vm9 = vcmp.eq.s32.totalorder %v11558_v52, %v9021_v11  ;;  %vm2562_vm10 = vcmp.eq.s32.totalorder %v11558_v52, %v9029_v0 }
 0x355   : > { %v5493_v28 = vadd.f32 %v5237_v44, %v4693_v5  ;;  %v2034_v57 = vsel %vm1762_vm9, %v9024_v31, 0.0  ;;  %v2834_v63 = vsel %vm2562_vm10, %v9032_v2, 0.0  ;;  %vm3362_vm11 = vcmp.eq.s32.totalorder %v11558_v52, %v9038_v12 }
 0x356   : > { %v3762_v38 = vadd.f32 %v3506_v42, %v2962_v37  ;;  %v5106_v32 = vsel %vm4834_vm7, %v9063_v55, 0.0  ;;  %v2290_v61 = vadd.f32 %v2034_v57, %v1234_v40  ;;  %vm4162_vm12 = vcmp.eq.s32.totalorder %v11558_v52, %v9047_v19  ;;  %v11559_v37 = vld [vmem:[#allocation16_spill] sm:$0xff] }
 0x357   : > { %5835 = vmatpush1.msra.mxu1 %v5493_v28  ;;  %v3634_v13 = vsel %vm3362_vm11, %v9041_v16, 0.0  ;;  %v4434_v6 = vsel %vm4162_vm12, %v9053_v33, 0.0  ;;  %vm833_vm13 = vcmp.eq.s32.totalorder %v11557_v41, %v9087_v45  ;;  %vm1633_vm14 = vcmp.eq.s32.totalorder %v11557_v41, %v9093_v36 }
 0x358   : > { %v4562_v46 = vadd.f32 %v4306_v60, %v3762_v38  ;;  %v3090_v4 = vadd.f32 %v2834_v63, %v2290_v61  ;;  %vm4962_vm15 = vcmp.eq.s32.totalorder %v11558_v52, %v9059_v62  ;;  %v1105_v35 = vsel %vm833_vm13, %v9090_v58, 0.0 }
 0x359   : > { %v1905_v1 = vsel %vm1633_vm14, %v9096_v49, 0.0  ;;  %vm2433_vm5 = vcmp.eq.s32.totalorder %v11557_v41, %v9099_v8  ;;  %vm3233_vm6 = vcmp.eq.s32.totalorder %v11557_v41, %v9109_v25  ;;  %vm4033_vm0 = vcmp.eq.s32.totalorder %v11557_v41, %v9123_v54 }
 0x35a   : > { %v5362_v15 = vadd.f32 %v5106_v32, %v4562_v46  ;;  %v3890_v56 = vadd.f32 %v3634_v13, %v3090_v4  ;;  %v2161_v53 = vadd.f32 %v1905_v1, %v1105_v35  ;;  %v2705_v48 = vsel %vm2433_vm5, %v9102_v17, 0.0  ;;  %v11560_v4 = vld [vmem:[#allocation17_spill] sm:$0xff] }
 0x35b   : > { %v5234_v30 = vsel %vm4962_vm15, %v9063_v55, 0.0  ;;  %v3505_v59 = vsel %vm3233_vm6, %v9116_v9, 0.0  ;;  %v4305_v23 = vsel %vm4033_vm0, %v9126_v50, 0.0  ;;  %vm961_vm1 = vcmp.eq.s32.totalorder %v11558_v52, %v9087_v45 }
 0x35c   : > { %5765 = vmatprep.subr.mxu0 %v5362_v15  ;;  %v4690_v26 = vadd.f32 %v4434_v6, %v3890_v56  ;;  %v2961_v47 = vadd.f32 %v2705_v48, %v2161_v53  ;;  %vm4833_vm2 = vcmp.eq.s32.totalorder %v11557_v41, %v9129_v20  ;;  %v1233_v51 = vsel %vm961_vm1, %v9090_v58, 0.0 }
 0x35d   : > { %vm1761_vm3 = vcmp.eq.s32.totalorder %v11558_v52, %v9093_v36  ;;  %vm2561_vm4 = vcmp.eq.s32.totalorder %v11558_v52, %v9099_v8  ;;  %vm3361_vm7 = vcmp.eq.s32.totalorder %v11558_v52, %v9109_v25  ;;  %vm4161_vm8 = vcmp.eq.s32.totalorder %v11558_v52, %v9123_v54 }
 0x35e   : > { %v5490_v21 = vadd.f32 %v5234_v30, %v4690_v26  ;;  %v3761_v34 = vadd.f32 %v3505_v59, %v2961_v47  ;;  %v2033_v29 = vsel %vm1761_vm3, %v9096_v49, 0.0  ;;  %v2833_v41 = vsel %vm2561_vm4, %v9102_v17, 0.0 }
 0x35f   : > { %v5105_v44 = vsel %vm4833_vm2, %v9132_v18, 0.0  ;;  %v2289_v10 = vadd.f32 %v2033_v29, %v1233_v51  ;;  %v3633_v42 = vsel %vm3361_vm7, %v9116_v9, 0.0  ;;  %v4433_v5 = vsel %vm4161_vm8, %v9126_v50, 0.0 }
 0x360   : > { %5836 = vmatprep.subr.mxu1 %v5490_v21  ;;  %v4561_v60 = vadd.f32 %v4305_v23, %v3761_v34  ;;  %vm4961_vm9 = vcmp.eq.s32.totalorder %v11558_v52, %v9129_v20  ;;  %vm830_vm10 = vcmp.eq.s32.totalorder %v11559_v37, %v9015_v7  ;;  %vm1630_vm11 = vcmp.eq.s32.totalorder %v11559_v37, %v9021_v11 }
 0x361   : > { %v3089_v40 = vadd.f32 %v2833_v41, %v2289_v10  ;;  %v1102_v28 = vsel %vm830_vm10, %v9018_v22, 0.0  ;;  %v1902_v57 = vsel %vm1630_vm11, %v9024_v31, 0.0  ;;  %vm2430_vm12 = vcmp.eq.s32.totalorder %v11559_v37, %v9029_v0 }
 0x362   : > { %v5361_v63 = vadd.f32 %v5105_v44, %v4561_v60  ;;  %v2158_v38 = vadd.f32 %v1902_v57, %v1102_v28  ;;  %v2702_v32 = vsel %vm2430_vm12, %v9032_v2, 0.0  ;;  %vm3230_vm13 = vcmp.eq.s32.totalorder %v11559_v37, %v9038_v12 }
 0x363   : > { %v3889_v52 = vadd.f32 %v3633_v42, %v3089_v40  ;;  %v5233_v61 = vsel %vm4961_vm9, %v9132_v18, 0.0  ;;  %v3502_v13 = vsel %vm3230_vm13, %v9041_v16, 0.0  ;;  %vm4030_vm14 = vcmp.eq.s32.totalorder %v11559_v37, %v9047_v19 }
 0x364   : > { %5766 = vmatpush1.msra.mxu0 %v5361_v63  ;;  %v2958_v6 = vadd.f32 %v2702_v32, %v2158_v38  ;;  %v4302_v46 = vsel %vm4030_vm14, %v9053_v33, 0.0  ;;  %vm4830_vm15 = vcmp.eq.s32.totalorder %v11559_v37, %v9059_v62  ;;  %vm958_vm5 = vcmp.eq.s32.totalorder %v11560_v4, %v9015_v7 }
 0x365   : > { %v4689_v35 = vadd.f32 %v4433_v5, %v3889_v52  ;;  %v1230_v1 = vsel %vm958_vm5, %v9018_v22, 0.0  ;;  %vm1758_vm6 = vcmp.eq.s32.totalorder %v11560_v4, %v9021_v11  ;;  %vm2558_vm0 = vcmp.eq.s32.totalorder %v11560_v4, %v9029_v0 }
 0x366   : > { %v3758_v15 = vadd.f32 %v3502_v13, %v2958_v6  ;;  %v2030_v56 = vsel %vm1758_vm6, %v9024_v31, 0.0  ;;  %v2830_v53 = vsel %vm2558_vm0, %v9032_v2, 0.0  ;;  %vm3358_vm1 = vcmp.eq.s32.totalorder %v11560_v4, %v9038_v12 }
 0x367   : > { %v5489_v48 = vadd.f32 %v5233_v61, %v4689_v35  ;;  %v5102_v30 = vsel %vm4830_vm15, %v9063_v55, 0.0  ;;  %v2286_v59 = vadd.f32 %v2030_v56, %v1230_v1  ;;  %vm4158_vm2 = vcmp.eq.s32.totalorder %v11560_v4, %v9047_v19 }
 0x368   : > { %v4558_v23 = vadd.f32 %v4302_v46, %v3758_v15  ;;  %v3630_v26 = vsel %vm3358_vm1, %v9041_v16, 0.0  ;;  %vm4958_vm3 = vcmp.eq.s32.totalorder %v11560_v4, %v9059_v62  ;;  %vm829_vm4 = vcmp.eq.s32.totalorder %v11559_v37, %v9087_v45 }
 0x369   : > { %5837 = vmatpush1.msra.mxu1 %v5489_v48  ;;  %v3086_v47 = vadd.f32 %v2830_v53, %v2286_v59  ;;  %v4430_v51 = vsel %vm4158_vm2, %v9053_v33, 0.0  ;;  %v1101_v21 = vsel %vm829_vm4, %v9090_v58, 0.0  ;;  %vm1629_vm7 = vcmp.eq.s32.totalorder %v11559_v37, %v9093_v36 }
 0x36a   : > { %v5358_v34 = vadd.f32 %v5102_v30, %v4558_v23  ;;  %v1901_v29 = vsel %vm1629_vm7, %v9096_v49, 0.0  ;;  %vm2429_vm8 = vcmp.eq.s32.totalorder %v11559_v37, %v9099_v8  ;;  %vm3229_vm9 = vcmp.eq.s32.totalorder %v11559_v37, %v9109_v25 }
 0x36b   : > { %v3886_v41 = vadd.f32 %v3630_v26, %v3086_v47  ;;  %v5230_v44 = vsel %vm4958_vm3, %v9063_v55, 0.0  ;;  %v2157_v10 = vadd.f32 %v1901_v29, %v1101_v21  ;;  %v2701_v42 = vsel %vm2429_vm8, %v9102_v17, 0.0 }
 0x36c   : > { %5767 = vmatprep.subr.mxu0 %v5358_v34  ;;  %v3501_v5 = vsel %vm3229_vm9, %v9116_v9, 0.0  ;;  %vm4029_vm10 = vcmp.eq.s32.totalorder %v11559_v37, %v9123_v54  ;;  %vm957_vm11 = vcmp.eq.s32.totalorder %v11560_v4, %v9087_v45  ;;  %vm1757_vm12 = vcmp.eq.s32.totalorder %v11560_v4, %v9093_v36 }
 0x36d   : > { %v4686_v60 = vadd.f32 %v4430_v51, %v3886_v41  ;;  %v2957_v40 = vadd.f32 %v2701_v42, %v2157_v10  ;;  %v4301_v28 = vsel %vm4029_vm10, %v9126_v50, 0.0  ;;  %vm4829_vm13 = vcmp.eq.s32.totalorder %v11559_v37, %v9129_v20  ;;  %v11561_v37 = vld [vmem:[#allocation18_spill] sm:$0xff]  ;;  %v11562_v51 = vld [vmem:[#allocation19_spill] sm:$0xff] }
 0x36e   : > { %v1229_v57 = vsel %vm957_vm11, %v9090_v58, 0.0  ;;  %v2029_v63 = vsel %vm1757_vm12, %v9096_v49, 0.0  ;;  %vm2557_vm14 = vcmp.eq.s32.totalorder %v11560_v4, %v9099_v8  ;;  %vm3357_vm15 = vcmp.eq.s32.totalorder %v11560_v4, %v9109_v25 }
 0x36f   : > { %v5486_v38 = vadd.f32 %v5230_v44, %v4686_v60  ;;  %v3757_v32 = vadd.f32 %v3501_v5, %v2957_v40  ;;  %v2285_v52 = vadd.f32 %v2029_v63, %v1229_v57  ;;  %v2829_v61 = vsel %vm2557_vm14, %v9102_v17, 0.0 }
 0x370   : > { %v5101_v13 = vsel %vm4829_vm13, %v9132_v18, 0.0  ;;  %v3629_v6 = vsel %vm3357_vm15, %v9116_v9, 0.0  ;;  %vm4157_vm5 = vcmp.eq.s32.totalorder %v11560_v4, %v9123_v54  ;;  %vm826_vm6 = vcmp.eq.s32.totalorder %v11561_v37, %v9015_v7 }
 0x371   : > { %5838 = vmatprep.subr.mxu1 %v5486_v38  ;;  %v4557_v46 = vadd.f32 %v4301_v28, %v3757_v32  ;;  %v3085_v35 = vadd.f32 %v2829_v61, %v2285_v52  ;;  %v4429_v1 = vsel %vm4157_vm5, %v9126_v50, 0.0  ;;  %vm4957_vm0 = vcmp.eq.s32.totalorder %v11560_v4, %v9129_v20 }
 0x372   : > { %v1098_v15 = vsel %vm826_vm6, %v9018_v22, 0.0  ;;  %vm1626_vm1 = vcmp.eq.s32.totalorder %v11561_v37, %v9021_v11  ;;  %vm2426_vm2 = vcmp.eq.s32.totalorder %v11561_v37, %v9029_v0  ;;  %vm3226_vm3 = vcmp.eq.s32.totalorder %v11561_v37, %v9038_v12 }
 0x373   : > { %v5357_v56 = vadd.f32 %v5101_v13, %v4557_v46  ;;  %v3885_v53 = vadd.f32 %v3629_v6, %v3085_v35  ;;  %v1898_v48 = vsel %vm1626_vm1, %v9024_v31, 0.0  ;;  %v2698_v30 = vsel %vm2426_vm2, %v9032_v2, 0.0 }
 0x374   : > { %v5229_v59 = vsel %vm4957_vm0, %v9132_v18, 0.0  ;;  %v2154_v4 = vadd.f32 %v1898_v48, %v1098_v15  ;;  %v3498_v23 = vsel %vm3226_vm3, %v9041_v16, 0.0  ;;  %vm4026_vm4 = vcmp.eq.s32.totalorder %v11561_v37, %v9047_v19 }
 0x375   : > { %5768 = vmatpush1.msra.mxu0 %v5357_v56  ;;  %v4685_v26 = vadd.f32 %v4429_v1, %v3885_v53  ;;  %v4298_v47 = vsel %vm4026_vm4, %v9053_v33, 0.0  ;;  %vm4826_vm7 = vcmp.eq.s32.totalorder %v11561_v37, %v9059_v62  ;;  %vm954_vm8 = vcmp.eq.s32.totalorder %v11562_v51, %v9015_v7 }
 0x376   : > { %v2954_v21 = vadd.f32 %v2698_v30, %v2154_v4  ;;  %v1226_v34 = vsel %vm954_vm8, %v9018_v22, 0.0  ;;  %vm1754_vm9 = vcmp.eq.s32.totalorder %v11562_v51, %v9021_v11  ;;  %vm2554_vm10 = vcmp.eq.s32.totalorder %v11562_v51, %v9029_v0 }
 0x377   : > { %v5485_v29 = vadd.f32 %v5229_v59, %v4685_v26  ;;  %v2026_v41 = vsel %vm1754_vm9, %v9024_v31, 0.0  ;;  %v2826_v44 = vsel %vm2554_vm10, %v9032_v2, 0.0  ;;  %vm3354_vm11 = vcmp.eq.s32.totalorder %v11562_v51, %v9038_v12 }
 0x378   : > { %v3754_v10 = vadd.f32 %v3498_v23, %v2954_v21  ;;  %v5098_v42 = vsel %vm4826_vm7, %v9063_v55, 0.0  ;;  %v2282_v5 = vadd.f32 %v2026_v41, %v1226_v34  ;;  %vm4154_vm12 = vcmp.eq.s32.totalorder %v11562_v51, %v9047_v19 }
 0x379   : > { %5839 = vmatpush1.msra.mxu1 %v5485_v29  ;;  %v3626_v60 = vsel %vm3354_vm11, %v9041_v16, 0.0  ;;  %v4426_v40 = vsel %vm4154_vm12, %v9053_v33, 0.0  ;;  %vm825_vm13 = vcmp.eq.s32.totalorder %v11561_v37, %v9087_v45  ;;  %vm1625_vm14 = vcmp.eq.s32.totalorder %v11561_v37, %v9093_v36 }
 0x37a   : > { %v4554_v28 = vadd.f32 %v4298_v47, %v3754_v10  ;;  %v3082_v57 = vadd.f32 %v2826_v44, %v2282_v5  ;;  %vm4954_vm15 = vcmp.eq.s32.totalorder %v11562_v51, %v9059_v62  ;;  %v1097_v63 = vsel %vm825_vm13, %v9090_v58, 0.0 }
 0x37b   : > { %v1897_v38 = vsel %vm1625_vm14, %v9096_v49, 0.0  ;;  %vm2425_vm5 = vcmp.eq.s32.totalorder %v11561_v37, %v9099_v8  ;;  %vm3225_vm6 = vcmp.eq.s32.totalorder %v11561_v37, %v9109_v25  ;;  %vm4025_vm0 = vcmp.eq.s32.totalorder %v11561_v37, %v9123_v54 }
 0x37c   : > { %v5354_v32 = vadd.f32 %v5098_v42, %v4554_v28  ;;  %v3882_v52 = vadd.f32 %v3626_v60, %v3082_v57  ;;  %v2153_v61 = vadd.f32 %v1897_v38, %v1097_v63  ;;  %v2697_v13 = vsel %vm2425_vm5, %v9102_v17, 0.0  ;;  %v11563_v28 = vld [vmem:[#allocation20_spill] sm:$0xff] }
 0x37d   : > { %v5226_v6 = vsel %vm4954_vm15, %v9063_v55, 0.0  ;;  %v3497_v46 = vsel %vm3225_vm6, %v9116_v9, 0.0  ;;  %v4297_v35 = vsel %vm4025_vm0, %v9126_v50, 0.0  ;;  %vm953_vm1 = vcmp.eq.s32.totalorder %v11562_v51, %v9087_v45 }
 0x37e   : > { %5769 = vmatprep.subr.mxu0 %v5354_v32  ;;  %v4682_v1 = vadd.f32 %v4426_v40, %v3882_v52  ;;  %v2953_v15 = vadd.f32 %v2697_v13, %v2153_v61  ;;  %vm4825_vm2 = vcmp.eq.s32.totalorder %v11561_v37, %v9129_v20  ;;  %v1225_v56 = vsel %vm953_vm1, %v9090_v58, 0.0 }
 0x37f   : > { %vm1753_vm3 = vcmp.eq.s32.totalorder %v11562_v51, %v9093_v36  ;;  %vm2553_vm4 = vcmp.eq.s32.totalorder %v11562_v51, %v9099_v8  ;;  %vm3353_vm7 = vcmp.eq.s32.totalorder %v11562_v51, %v9109_v25  ;;  %vm4153_vm8 = vcmp.eq.s32.totalorder %v11562_v51, %v9123_v54 }
 0x380   : > { %v5482_v53 = vadd.f32 %v5226_v6, %v4682_v1  ;;  %v3753_v48 = vadd.f32 %v3497_v46, %v2953_v15  ;;  %v2025_v30 = vsel %vm1753_vm3, %v9096_v49, 0.0  ;;  %v2825_v37 = vsel %vm2553_vm4, %v9102_v17, 0.0 }
 0x381   : > { %v5097_v59 = vsel %vm4825_vm2, %v9132_v18, 0.0  ;;  %v2281_v4 = vadd.f32 %v2025_v30, %v1225_v56  ;;  %v3625_v23 = vsel %vm3353_vm7, %v9116_v9, 0.0  ;;  %v4425_v26 = vsel %vm4153_vm8, %v9126_v50, 0.0 }
 0x382   : > { %5840 = vmatprep.subr.mxu1 %v5482_v53  ;;  %v4553_v47 = vadd.f32 %v4297_v35, %v3753_v48  ;;  %vm4953_vm9 = vcmp.eq.s32.totalorder %v11562_v51, %v9129_v20  ;;  %vm822_vm10 = vcmp.eq.s32.totalorder %v7486_v24, %v9015_v7  ;;  %vm1622_vm11 = vcmp.eq.s32.totalorder %v7486_v24, %v9021_v11 }
 0x383   : > { %v3081_v21 = vadd.f32 %v2825_v37, %v2281_v4  ;;  %v1094_v34 = vsel %vm822_vm10, %v9018_v22, 0.0  ;;  %v1894_v29 = vsel %vm1622_vm11, %v9024_v31, 0.0  ;;  %vm2422_vm12 = vcmp.eq.s32.totalorder %v7486_v24, %v9029_v0 }
 0x384   : > { %v5353_v41 = vadd.f32 %v5097_v59, %v4553_v47  ;;  %v2150_v44 = vadd.f32 %v1894_v29, %v1094_v34  ;;  %v2694_v10 = vsel %vm2422_vm12, %v9032_v2, 0.0  ;;  %vm3222_vm13 = vcmp.eq.s32.totalorder %v7486_v24, %v9038_v12 }
 0x385   : > { %v3881_v51 = vadd.f32 %v3625_v23, %v3081_v21  ;;  %v5225_v42 = vsel %vm4953_vm9, %v9132_v18, 0.0  ;;  %v3494_v5 = vsel %vm3222_vm13, %v9041_v16, 0.0  ;;  %vm4022_vm14 = vcmp.eq.s32.totalorder %v7486_v24, %v9047_v19 }
 0x386   : > { %5770 = vmatpush1.msra.mxu0 %v5353_v41  ;;  %v2950_v60 = vadd.f32 %v2694_v10, %v2150_v44  ;;  %v4294_v40 = vsel %vm4022_vm14, %v9053_v33, 0.0  ;;  %vm4822_vm15 = vcmp.eq.s32.totalorder %v7486_v24, %v9059_v62  ;;  %vm950_vm5 = vcmp.eq.s32.totalorder %v11563_v28, %v9015_v7 }
 0x387   : > { %v4681_v57 = vadd.f32 %v4425_v26, %v3881_v51  ;;  %v1222_v63 = vsel %vm950_vm5, %v9018_v22, 0.0  ;;  %vm1750_vm6 = vcmp.eq.s32.totalorder %v11563_v28, %v9021_v11  ;;  %vm2550_vm0 = vcmp.eq.s32.totalorder %v11563_v28, %v9029_v0 }
 0x388   : > { %v3750_v38 = vadd.f32 %v3494_v5, %v2950_v60  ;;  %v2022_v32 = vsel %vm1750_vm6, %v9024_v31, 0.0  ;;  %v2822_v52 = vsel %vm2550_vm0, %v9032_v2, 0.0  ;;  %vm3350_vm1 = vcmp.eq.s32.totalorder %v11563_v28, %v9038_v12 }
 0x389   : > { %v5481_v61 = vadd.f32 %v5225_v42, %v4681_v57  ;;  %v5094_v13 = vsel %vm4822_vm15, %v9063_v55, 0.0  ;;  %v2278_v6 = vadd.f32 %v2022_v32, %v1222_v63  ;;  %vm4150_vm2 = vcmp.eq.s32.totalorder %v11563_v28, %v9047_v19 }
 0x38a   : > { %v4550_v46 = vadd.f32 %v4294_v40, %v3750_v38  ;;  %v3622_v35 = vsel %vm3350_vm1, %v9041_v16, 0.0  ;;  %vm4950_vm3 = vcmp.eq.s32.totalorder %v11563_v28, %v9059_v62  ;;  %vm821_vm4 = vcmp.eq.s32.totalorder %v7486_v24, %v9087_v45 }
 0x38b   : > { %5841 = vmatpush1.msra.mxu1 %v5481_v61  ;;  %v3078_v1 = vadd.f32 %v2822_v52, %v2278_v6  ;;  %v4422_v15 = vsel %vm4150_vm2, %v9053_v33, 0.0  ;;  %v1093_v56 = vsel %vm821_vm4, %v9090_v58, 0.0  ;;  %vm1621_vm7 = vcmp.eq.s32.totalorder %v7486_v24, %v9093_v36 }
 0x38c   : > { %v5350_v53 = vadd.f32 %v5094_v13, %v4550_v46  ;;  %v1893_v48 = vsel %vm1621_vm7, %v9096_v49, 0.0  ;;  %vm2421_vm8 = vcmp.eq.s32.totalorder %v7486_v24, %v9099_v8  ;;  %vm3221_vm9 = vcmp.eq.s32.totalorder %v7486_v24, %v9109_v25 }
 0x38d   : > { %v3878_v30 = vadd.f32 %v3622_v35, %v3078_v1  ;;  %v5222_v37 = vsel %vm4950_vm3, %v9063_v55, 0.0  ;;  %v2149_v59 = vadd.f32 %v1893_v48, %v1093_v56  ;;  %v2693_v4 = vsel %vm2421_vm8, %v9102_v17, 0.0  ;;  %v11565_v1 = vld [vmem:[#allocation22_spill] sm:$0xff] }
 0x38e   : > { %5771 = vmatprep.subr.mxu0 %v5350_v53  ;;  %v3493_v23 = vsel %vm3221_vm9, %v9116_v9, 0.0  ;;  %vm4021_vm10 = vcmp.eq.s32.totalorder %v7486_v24, %v9123_v54  ;;  %vm949_vm11 = vcmp.eq.s32.totalorder %v11563_v28, %v9087_v45  ;;  %vm1749_vm12 = vcmp.eq.s32.totalorder %v11563_v28, %v9093_v36 }
 0x38f   : > { %v4678_v26 = vadd.f32 %v4422_v15, %v3878_v30  ;;  %v2949_v47 = vadd.f32 %v2693_v4, %v2149_v59  ;;  %v4293_v21 = vsel %vm4021_vm10, %v9126_v50, 0.0  ;;  %vm4821_vm13 = vcmp.eq.s32.totalorder %v7486_v24, %v9129_v20  ;;  %v11564_v24 = vld [vmem:[#allocation21_spill] sm:$0xff] }
 0x390   : > { %v1221_v34 = vsel %vm949_vm11, %v9090_v58, 0.0  ;;  %v2021_v29 = vsel %vm1749_vm12, %v9096_v49, 0.0  ;;  %vm2549_vm14 = vcmp.eq.s32.totalorder %v11563_v28, %v9099_v8  ;;  %vm3349_vm15 = vcmp.eq.s32.totalorder %v11563_v28, %v9109_v25 }
 0x391   : > { %v5478_v41 = vadd.f32 %v5222_v37, %v4678_v26  ;;  %v3749_v44 = vadd.f32 %v3493_v23, %v2949_v47  ;;  %v2277_v10 = vadd.f32 %v2021_v29, %v1221_v34  ;;  %v2821_v51 = vsel %vm2549_vm14, %v9102_v17, 0.0 }
 0x392   : > { %v5093_v42 = vsel %vm4821_vm13, %v9132_v18, 0.0  ;;  %v3621_v5 = vsel %vm3349_vm15, %v9116_v9, 0.0  ;;  %vm4149_vm5 = vcmp.eq.s32.totalorder %v11563_v28, %v9123_v54  ;;  %vm818_vm6 = vcmp.eq.s32.totalorder %v11564_v24, %v9015_v7 }
 0x393   : > { %5842 = vmatprep.subr.mxu1 %v5478_v41  ;;  %v4549_v60 = vadd.f32 %v4293_v21, %v3749_v44  ;;  %v3077_v40 = vadd.f32 %v2821_v51, %v2277_v10  ;;  %v4421_v57 = vsel %vm4149_vm5, %v9126_v50, 0.0  ;;  %vm4949_vm0 = vcmp.eq.s32.totalorder %v11563_v28, %v9129_v20 }
 0x394   : > { %v1090_v63 = vsel %vm818_vm6, %v9018_v22, 0.0  ;;  %vm1618_vm1 = vcmp.eq.s32.totalorder %v11564_v24, %v9021_v11  ;;  %vm2418_vm2 = vcmp.eq.s32.totalorder %v11564_v24, %v9029_v0  ;;  %vm3218_vm3 = vcmp.eq.s32.totalorder %v11564_v24, %v9038_v12 }
 0x395   : > { %v5349_v38 = vadd.f32 %v5093_v42, %v4549_v60  ;;  %v3877_v32 = vadd.f32 %v3621_v5, %v3077_v40  ;;  %v1890_v52 = vsel %vm1618_vm1, %v9024_v31, 0.0  ;;  %v2690_v61 = vsel %vm2418_vm2, %v9032_v2, 0.0 }
 0x396   : > { %v5221_v13 = vsel %vm4949_vm0, %v9132_v18, 0.0  ;;  %v2146_v28 = vadd.f32 %v1890_v52, %v1090_v63  ;;  %v3490_v6 = vsel %vm3218_vm3, %v9041_v16, 0.0  ;;  %vm4018_vm4 = vcmp.eq.s32.totalorder %v11564_v24, %v9047_v19 }
 0x397   : > { %5772 = vmatpush1.msra.mxu0 %v5349_v38  ;;  %v4677_v46 = vadd.f32 %v4421_v57, %v3877_v32  ;;  %v4290_v35 = vsel %vm4018_vm4, %v9053_v33, 0.0  ;;  %vm4818_vm7 = vcmp.eq.s32.totalorder %v11564_v24, %v9059_v62  ;;  %vm946_vm8 = vcmp.eq.s32.totalorder %v11565_v1, %v9015_v7 }
 0x398   : > { %v2946_v15 = vadd.f32 %v2690_v61, %v2146_v28  ;;  %v1218_v56 = vsel %vm946_vm8, %v9018_v22, 0.0  ;;  %vm1746_vm9 = vcmp.eq.s32.totalorder %v11565_v1, %v9021_v11  ;;  %vm2546_vm10 = vcmp.eq.s32.totalorder %v11565_v1, %v9029_v0 }
 0x399   : > { %v5477_v53 = vadd.f32 %v5221_v13, %v4677_v46  ;;  %v2018_v48 = vsel %vm1746_vm9, %v9024_v31, 0.0  ;;  %v2818_v30 = vsel %vm2546_vm10, %v9032_v2, 0.0  ;;  %vm3346_vm11 = vcmp.eq.s32.totalorder %v11565_v1, %v9038_v12 }
 0x39a   : > { %v3746_v37 = vadd.f32 %v3490_v6, %v2946_v15  ;;  %v5090_v59 = vsel %vm4818_vm7, %v9063_v55, 0.0  ;;  %v2274_v4 = vadd.f32 %v2018_v48, %v1218_v56  ;;  %vm4146_vm12 = vcmp.eq.s32.totalorder %v11565_v1, %v9047_v19 }
 0x39b   : > { %5843 = vmatpush1.msra.mxu1 %v5477_v53  ;;  %v3618_v23 = vsel %vm3346_vm11, %v9041_v16, 0.0  ;;  %v4418_v26 = vsel %vm4146_vm12, %v9053_v33, 0.0  ;;  %vm817_vm13 = vcmp.eq.s32.totalorder %v11564_v24, %v9087_v45  ;;  %vm1617_vm14 = vcmp.eq.s32.totalorder %v11564_v24, %v9093_v36 }
 0x39c   : > { %v4546_v47 = vadd.f32 %v4290_v35, %v3746_v37  ;;  %v3074_v21 = vadd.f32 %v2818_v30, %v2274_v4  ;;  %vm4946_vm15 = vcmp.eq.s32.totalorder %v11565_v1, %v9059_v62  ;;  %v1089_v34 = vsel %vm817_vm13, %v9090_v58, 0.0 }
 0x39d   : > { %v1889_v29 = vsel %vm1617_vm14, %v9096_v49, 0.0  ;;  %vm2417_vm5 = vcmp.eq.s32.totalorder %v11564_v24, %v9099_v8  ;;  %vm3217_vm6 = vcmp.eq.s32.totalorder %v11564_v24, %v9109_v25  ;;  %vm4017_vm0 = vcmp.eq.s32.totalorder %v11564_v24, %v9123_v54 }
 0x39e   : > { %v5346_v41 = vadd.f32 %v5090_v59, %v4546_v47  ;;  %v3874_v44 = vadd.f32 %v3618_v23, %v3074_v21  ;;  %v2145_v10 = vadd.f32 %v1889_v29, %v1089_v34  ;;  %v2689_v51 = vsel %vm2417_vm5, %v9102_v17, 0.0 }
 0x39f   : > { %v5218_v42 = vsel %vm4946_vm15, %v9063_v55, 0.0  ;;  %v3489_v5 = vsel %vm3217_vm6, %v9116_v9, 0.0  ;;  %v4289_v60 = vsel %vm4017_vm0, %v9126_v50, 0.0  ;;  %vm945_vm1 = vcmp.eq.s32.totalorder %v11565_v1, %v9087_v45 }
 0x3a0   : > { %5773 = vmatprep.subr.mxu0 %v5346_v41  ;;  %v4674_v40 = vadd.f32 %v4418_v26, %v3874_v44  ;;  %v2945_v57 = vadd.f32 %v2689_v51, %v2145_v10  ;;  %vm4817_vm2 = vcmp.eq.s32.totalorder %v11564_v24, %v9129_v20  ;;  %v1217_v63 = vsel %vm945_vm1, %v9090_v58, 0.0  ;;  %v11566_v26 = vld [vmem:[#allocation23_spill] sm:$0xff] }
 0x3a1   : > { %vm1745_vm3 = vcmp.eq.s32.totalorder %v11565_v1, %v9093_v36  ;;  %vm2545_vm4 = vcmp.eq.s32.totalorder %v11565_v1, %v9099_v8  ;;  %vm3345_vm7 = vcmp.eq.s32.totalorder %v11565_v1, %v9109_v25  ;;  %vm4145_vm8 = vcmp.eq.s32.totalorder %v11565_v1, %v9123_v54 }
 0x3a2   : > { %v5474_v38 = vadd.f32 %v5218_v42, %v4674_v40  ;;  %v3745_v32 = vadd.f32 %v3489_v5, %v2945_v57  ;;  %v2017_v52 = vsel %vm1745_vm3, %v9096_v49, 0.0  ;;  %v2817_v24 = vsel %vm2545_vm4, %v9102_v17, 0.0 }
 0x3a3   : > { %v5089_v61 = vsel %vm4817_vm2, %v9132_v18, 0.0  ;;  %v2273_v13 = vadd.f32 %v2017_v52, %v1217_v63  ;;  %v3617_v28 = vsel %vm3345_vm7, %v9116_v9, 0.0  ;;  %v4417_v6 = vsel %vm4145_vm8, %v9126_v50, 0.0 }
 0x3a4   : > { %5844 = vmatprep.subr.mxu1 %v5474_v38  ;;  %v4545_v46 = vadd.f32 %v4289_v60, %v3745_v32  ;;  %vm4945_vm9 = vcmp.eq.s32.totalorder %v11565_v1, %v9129_v20  ;;  %vm814_vm10 = vcmp.eq.s32.totalorder %v6211_v14, %v9015_v7  ;;  %vm1614_vm11 = vcmp.eq.s32.totalorder %v6211_v14, %v9021_v11 }
 0x3a5   : > { %v3073_v35 = vadd.f32 %v2817_v24, %v2273_v13  ;;  %v1086_v15 = vsel %vm814_vm10, %v9018_v22, 0.0  ;;  %v1886_v56 = vsel %vm1614_vm11, %v9024_v31, 0.0  ;;  %vm2414_vm12 = vcmp.eq.s32.totalorder %v6211_v14, %v9029_v0 }
 0x3a6   : > { %v5345_v53 = vadd.f32 %v5089_v61, %v4545_v46  ;;  %v2142_v48 = vadd.f32 %v1886_v56, %v1086_v15  ;;  %v2686_v30 = vsel %vm2414_vm12, %v9032_v2, 0.0  ;;  %vm3214_vm13 = vcmp.eq.s32.totalorder %v6211_v14, %v9038_v12 }
 0x3a7   : > { %v3873_v1 = vadd.f32 %v3617_v28, %v3073_v35  ;;  %v5217_v37 = vsel %vm4945_vm9, %v9132_v18, 0.0  ;;  %v3486_v59 = vsel %vm3214_vm13, %v9041_v16, 0.0  ;;  %vm4014_vm14 = vcmp.eq.s32.totalorder %v6211_v14, %v9047_v19 }
 0x3a8   : > { %5774 = vmatpush1.msra.mxu0 %v5345_v53  ;;  %v2942_v4 = vadd.f32 %v2686_v30, %v2142_v48  ;;  %v4286_v23 = vsel %vm4014_vm14, %v9053_v33, 0.0  ;;  %vm4814_vm15 = vcmp.eq.s32.totalorder %v6211_v14, %v9059_v62  ;;  %vm942_vm5 = vcmp.eq.s32.totalorder %v11566_v26, %v9015_v7 }
 0x3a9   : > { %v4673_v47 = vadd.f32 %v4417_v6, %v3873_v1  ;;  %v1214_v21 = vsel %vm942_vm5, %v9018_v22, 0.0  ;;  %vm1742_vm6 = vcmp.eq.s32.totalorder %v11566_v26, %v9021_v11  ;;  %vm2542_vm0 = vcmp.eq.s32.totalorder %v11566_v26, %v9029_v0 }
 0x3aa   : > { %v3742_v34 = vadd.f32 %v3486_v59, %v2942_v4  ;;  %v2014_v29 = vsel %vm1742_vm6, %v9024_v31, 0.0  ;;  %v2814_v41 = vsel %vm2542_vm0, %v9032_v2, 0.0  ;;  %vm3342_vm1 = vcmp.eq.s32.totalorder %v11566_v26, %v9038_v12 }
 0x3ab   : > { %v5473_v44 = vadd.f32 %v5217_v37, %v4673_v47  ;;  %v5086_v10 = vsel %vm4814_vm15, %v9063_v55, 0.0  ;;  %v2270_v51 = vadd.f32 %v2014_v29, %v1214_v21  ;;  %vm4142_vm2 = vcmp.eq.s32.totalorder %v11566_v26, %v9047_v19 }
 0x3ac   : > { %v4542_v42 = vadd.f32 %v4286_v23, %v3742_v34  ;;  %v3614_v5 = vsel %vm3342_vm1, %v9041_v16, 0.0  ;;  %vm4942_vm3 = vcmp.eq.s32.totalorder %v11566_v26, %v9059_v62  ;;  %vm813_vm4 = vcmp.eq.s32.totalorder %v6211_v14, %v9087_v45 }
 0x3ad   : > { %5845 = vmatpush1.msra.mxu1 %v5473_v44  ;;  %v3070_v60 = vadd.f32 %v2814_v41, %v2270_v51  ;;  %v4414_v40 = vsel %vm4142_vm2, %v9053_v33, 0.0  ;;  %v1085_v57 = vsel %vm813_vm4, %v9090_v58, 0.0  ;;  %vm1613_vm7 = vcmp.eq.s32.totalorder %v6211_v14, %v9093_v36 }
 0x3ae   : > { %v5342_v63 = vadd.f32 %v5086_v10, %v4542_v42  ;;  %v1885_v38 = vsel %vm1613_vm7, %v9096_v49, 0.0  ;;  %vm2413_vm8 = vcmp.eq.s32.totalorder %v6211_v14, %v9099_v8  ;;  %vm3213_vm9 = vcmp.eq.s32.totalorder %v6211_v14, %v9109_v25 }
 0x3af   : > { %v3870_v32 = vadd.f32 %v3614_v5, %v3070_v60  ;;  %v5214_v52 = vsel %vm4942_vm3, %v9063_v55, 0.0  ;;  %v2141_v24 = vadd.f32 %v1885_v38, %v1085_v57  ;;  %v2685_v61 = vsel %vm2413_vm8, %v9102_v17, 0.0  ;;  %v11568_v5 = vld [vmem:[#allocation25_spill] sm:$0xff] }
 0x3b0   : > { %5775 = vmatprep.subr.mxu0 %v5342_v63  ;;  %v3485_v13 = vsel %vm3213_vm9, %v9116_v9, 0.0  ;;  %vm4013_vm10 = vcmp.eq.s32.totalorder %v6211_v14, %v9123_v54  ;;  %vm941_vm11 = vcmp.eq.s32.totalorder %v11566_v26, %v9087_v45  ;;  %vm1741_vm12 = vcmp.eq.s32.totalorder %v11566_v26, %v9093_v36 }
 0x3b1   : > { %v4670_v28 = vadd.f32 %v4414_v40, %v3870_v32  ;;  %v2941_v6 = vadd.f32 %v2685_v61, %v2141_v24  ;;  %v4285_v46 = vsel %vm4013_vm10, %v9126_v50, 0.0  ;;  %vm4813_vm13 = vcmp.eq.s32.totalorder %v6211_v14, %v9129_v20  ;;  %v11567_v14 = vld [vmem:[#allocation24_spill] sm:$0xff] }
 0x3b2   : > { %v1213_v35 = vsel %vm941_vm11, %v9090_v58, 0.0  ;;  %v2013_v15 = vsel %vm1741_vm12, %v9096_v49, 0.0  ;;  %vm2541_vm14 = vcmp.eq.s32.totalorder %v11566_v26, %v9099_v8  ;;  %vm3341_vm15 = vcmp.eq.s32.totalorder %v11566_v26, %v9109_v25 }
 0x3b3   : > { %v5470_v56 = vadd.f32 %v5214_v52, %v4670_v28  ;;  %v3741_v53 = vadd.f32 %v3485_v13, %v2941_v6  ;;  %v2269_v48 = vadd.f32 %v2013_v15, %v1213_v35  ;;  %v2813_v30 = vsel %vm2541_vm14, %v9102_v17, 0.0 }
 0x3b4   : > { %v5085_v1 = vsel %vm4813_vm13, %v9132_v18, 0.0  ;;  %v3613_v37 = vsel %vm3341_vm15, %v9116_v9, 0.0  ;;  %vm4141_vm5 = vcmp.eq.s32.totalorder %v11566_v26, %v9123_v54  ;;  %vm938_vm6 = vcmp.eq.s32.totalorder %v11567_v14, %v9015_v7 }
 0x3b5   : > { %5846 = vmatprep.subr.mxu1 %v5470_v56  ;;  %v4541_v59 = vadd.f32 %v4285_v46, %v3741_v53  ;;  %v3069_v4 = vadd.f32 %v2813_v30, %v2269_v48  ;;  %v4413_v23 = vsel %vm4141_vm5, %v9126_v50, 0.0  ;;  %vm4941_vm0 = vcmp.eq.s32.totalorder %v11566_v26, %v9129_v20 }
 0x3b6   : > { %v1210_v47 = vsel %vm938_vm6, %v9018_v22, 0.0  ;;  %vm1738_vm1 = vcmp.eq.s32.totalorder %v11567_v14, %v9021_v11  ;;  %vm2538_vm2 = vcmp.eq.s32.totalorder %v11567_v14, %v9029_v0  ;;  %vm3338_vm3 = vcmp.eq.s32.totalorder %v11567_v14, %v9038_v12 }
 0x3b7   : > { %v5341_v21 = vadd.f32 %v5085_v1, %v4541_v59  ;;  %v3869_v34 = vadd.f32 %v3613_v37, %v3069_v4  ;;  %v2010_v29 = vsel %vm1738_vm1, %v9024_v31, 0.0  ;;  %v2810_v41 = vsel %vm2538_vm2, %v9032_v2, 0.0 }
 0x3b8   : > { %v5213_v44 = vsel %vm4941_vm0, %v9132_v18, 0.0  ;;  %v2266_v26 = vadd.f32 %v2010_v29, %v1210_v47  ;;  %v3610_v10 = vsel %vm3338_vm3, %v9041_v16, 0.0  ;;  %vm4138_vm4 = vcmp.eq.s32.totalorder %v11567_v14, %v9047_v19 }
 0x3b9   : > { %5776 = vmatpush1.msra.mxu0 %v5341_v21  ;;  %v4669_v51 = vadd.f32 %v4413_v23, %v3869_v34  ;;  %v4410_v42 = vsel %vm4138_vm4, %v9053_v33, 0.0  ;;  %vm4938_vm7 = vcmp.eq.s32.totalorder %v11567_v14, %v9059_v62  ;;  %vm1066_vm8 = vcmp.eq.s32.totalorder %v11568_v5, %v9015_v7 }
 0x3ba   : > { %v3066_v60 = vadd.f32 %v2810_v41, %v2266_v26  ;;  %v1338_v40 = vsel %vm1066_vm8, %v9018_v22, 0.0  ;;  %vm1866_vm9 = vcmp.eq.s32.totalorder %v11568_v5, %v9021_v11  ;;  %vm2666_vm10 = vcmp.eq.s32.totalorder %v11568_v5, %v9029_v0 }
 0x3bb   : > { %v5469_v57 = vadd.f32 %v5213_v44, %v4669_v51  ;;  %v2138_v63 = vsel %vm1866_vm9, %v9024_v31, 0.0  ;;  %v2938_v38 = vsel %vm2666_vm10, %v9032_v2, 0.0  ;;  %vm3466_vm11 = vcmp.eq.s32.totalorder %v11568_v5, %v9038_v12  ;;  %v11569_v51 = vld [vmem:[#allocation26_spill] sm:$0xff] }
 0x3bc   : > { %v3866_v32 = vadd.f32 %v3610_v10, %v3066_v60  ;;  %v5210_v52 = vsel %vm4938_vm7, %v9063_v55, 0.0  ;;  %v2394_v24 = vadd.f32 %v2138_v63, %v1338_v40  ;;  %vm4266_vm12 = vcmp.eq.s32.totalorder %v11568_v5, %v9047_v19 }
 0x3bd   : > { %5847 = vmatpush1.msra.mxu1 %v5469_v57  ;;  %v3738_v61 = vsel %vm3466_vm11, %v9041_v16, 0.0  ;;  %v4538_v13 = vsel %vm4266_vm12, %v9053_v33, 0.0  ;;  %vm937_vm13 = vcmp.eq.s32.totalorder %v11567_v14, %v9087_v45  ;;  %vm1737_vm14 = vcmp.eq.s32.totalorder %v11567_v14, %v9093_v36 }
 0x3be   : > { %v4666_v28 = vadd.f32 %v4410_v42, %v3866_v32  ;;  %v3194_v6 = vadd.f32 %v2938_v38, %v2394_v24  ;;  %vm5066_vm15 = vcmp.eq.s32.totalorder %v11568_v5, %v9059_v62  ;;  %v1209_v46 = vsel %vm937_vm13, %v9090_v58, 0.0 }
 0x3bf   : > { %v2009_v35 = vsel %vm1737_vm14, %v9096_v49, 0.0  ;;  %vm2537_vm5 = vcmp.eq.s32.totalorder %v11567_v14, %v9099_v8  ;;  %vm3337_vm6 = vcmp.eq.s32.totalorder %v11567_v14, %v9109_v25  ;;  %vm4137_vm0 = vcmp.eq.s32.totalorder %v11567_v14, %v9123_v54 }
 0x3c0   : > { %v5466_v15 = vadd.f32 %v5210_v52, %v4666_v28  ;;  %v3994_v56 = vadd.f32 %v3738_v61, %v3194_v6  ;;  %v2265_v53 = vadd.f32 %v2009_v35, %v1209_v46  ;;  %v2809_v48 = vsel %vm2537_vm5, %v9102_v17, 0.0 }
 0x3c1   : > { %v5338_v30 = vsel %vm5066_vm15, %v9063_v55, 0.0  ;;  %v3609_v1 = vsel %vm3337_vm6, %v9116_v9, 0.0  ;;  %v4409_v37 = vsel %vm4137_vm0, %v9126_v50, 0.0  ;;  %vm1065_vm1 = vcmp.eq.s32.totalorder %v11568_v5, %v9087_v45 }
 0x3c2   : > { %5777 = vmatprep.subr.mxu0 %v5466_v15  ;;  %v4794_v59 = vadd.f32 %v4538_v13, %v3994_v56  ;;  %v3065_v4 = vadd.f32 %v2809_v48, %v2265_v53  ;;  %vm4937_vm2 = vcmp.eq.s32.totalorder %v11567_v14, %v9129_v20  ;;  %v1337_v23 = vsel %vm1065_vm1, %v9090_v58, 0.0  ;;  %v11570_v13 = vld [vmem:[#allocation27_spill] sm:$0xff] }
 0x3c3   : > { %vm1865_vm3 = vcmp.eq.s32.totalorder %v11568_v5, %v9093_v36  ;;  %vm2665_vm4 = vcmp.eq.s32.totalorder %v11568_v5, %v9099_v8  ;;  %vm3465_vm7 = vcmp.eq.s32.totalorder %v11568_v5, %v9109_v25  ;;  %vm4265_vm8 = vcmp.eq.s32.totalorder %v11568_v5, %v9123_v54 }
 0x3c4   : > { %v5594_v47 = vadd.f32 %v5338_v30, %v4794_v59  ;;  %v3865_v21 = vadd.f32 %v3609_v1, %v3065_v4  ;;  %v2137_v34 = vsel %vm1865_vm3, %v9096_v49, 0.0  ;;  %v2937_v14 = vsel %vm2665_vm4, %v9102_v17, 0.0 }
 0x3c5   : > { %v5209_v29 = vsel %vm4937_vm2, %v9132_v18, 0.0  ;;  %v2393_v41 = vadd.f32 %v2137_v34, %v1337_v23  ;;  %v3737_v44 = vsel %vm3465_vm7, %v9116_v9, 0.0  ;;  %v4537_v26 = vsel %vm4265_vm8, %v9126_v50, 0.0 }
 0x3c6   : > { %5848 = vmatprep.subr.mxu1 %v5594_v47  ;;  %v4665_v10 = vadd.f32 %v4409_v37, %v3865_v21  ;;  %vm5065_vm9 = vcmp.eq.s32.totalorder %v11568_v5, %v9129_v20  ;;  %vm934_vm10 = vcmp.eq.s32.totalorder %v11569_v51, %v9015_v7  ;;  %vm1734_vm11 = vcmp.eq.s32.totalorder %v11569_v51, %v9021_v11 }
 0x3c7   : > { %v3193_v42 = vadd.f32 %v2937_v14, %v2393_v41  ;;  %v1206_v60 = vsel %vm934_vm10, %v9018_v22, 0.0  ;;  %v2006_v40 = vsel %vm1734_vm11, %v9024_v31, 0.0  ;;  %vm2534_vm12 = vcmp.eq.s32.totalorder %v11569_v51, %v9029_v0 }
 0x3c8   : > { %v5465_v57 = vadd.f32 %v5209_v29, %v4665_v10  ;;  %v2262_v63 = vadd.f32 %v2006_v40, %v1206_v60  ;;  %v2806_v38 = vsel %vm2534_vm12, %v9032_v2, 0.0  ;;  %vm3334_vm13 = vcmp.eq.s32.totalorder %v11569_v51, %v9038_v12 }
 0x3c9   : > { %v3993_v5 = vadd.f32 %v3737_v44, %v3193_v42  ;;  %v5337_v32 = vsel %vm5065_vm9, %v9132_v18, 0.0  ;;  %v3606_v52 = vsel %vm3334_vm13, %v9041_v16, 0.0  ;;  %vm4134_vm14 = vcmp.eq.s32.totalorder %v11569_v51, %v9047_v19 }
 0x3ca   : > { %5778 = vmatpush2.msra.mxu0 %v5465_v57  ;;  %v3062_v24 = vadd.f32 %v2806_v38, %v2262_v63  ;;  %v4406_v61 = vsel %vm4134_vm14, %v9053_v33, 0.0  ;;  %vm4934_vm15 = vcmp.eq.s32.totalorder %v11569_v51, %v9059_v62  ;;  %vm1062_vm5 = vcmp.eq.s32.totalorder %v11570_v13, %v9015_v7 }
 0x3cb   : > { %v4793_v28 = vadd.f32 %v4537_v26, %v3993_v5  ;;  %v1334_v6 = vsel %vm1062_vm5, %v9018_v22, 0.0  ;;  %vm1862_vm6 = vcmp.eq.s32.totalorder %v11570_v13, %v9021_v11  ;;  %vm2662_vm0 = vcmp.eq.s32.totalorder %v11570_v13, %v9029_v0 }
 0x3cc   : > { %v3862_v46 = vadd.f32 %v3606_v52, %v3062_v24  ;;  %v2134_v35 = vsel %vm1862_vm6, %v9024_v31, 0.0  ;;  %v2934_v15 = vsel %vm2662_vm0, %v9032_v2, 0.0  ;;  %vm3462_vm1 = vcmp.eq.s32.totalorder %v11570_v13, %v9038_v12 }
 0x3cd   : > { %v5593_v56 = vadd.f32 %v5337_v32, %v4793_v28  ;;  %v5206_v53 = vsel %vm4934_vm15, %v9063_v55, 0.0  ;;  %v2390_v48 = vadd.f32 %v2134_v35, %v1334_v6  ;;  %vm4262_vm2 = vcmp.eq.s32.totalorder %v11570_v13, %v9047_v19 }
 0x3ce   : > { %v4662_v30 = vadd.f32 %v4406_v61, %v3862_v46  ;;  %v3734_v1 = vsel %vm3462_vm1, %v9041_v16, 0.0  ;;  %vm5062_vm3 = vcmp.eq.s32.totalorder %v11570_v13, %v9059_v62  ;;  %vm933_vm4 = vcmp.eq.s32.totalorder %v11569_v51, %v9087_v45 }
 0x3cf   : > { %5849 = vmatpush2.msra.mxu1 %v5593_v56  ;;  %v3190_v37 = vadd.f32 %v2934_v15, %v2390_v48  ;;  %v4534_v59 = vsel %vm4262_vm2, %v9053_v33, 0.0  ;;  %v1205_v4 = vsel %vm933_vm4, %v9090_v58, 0.0  ;;  %vm1733_vm7 = vcmp.eq.s32.totalorder %v11569_v51, %v9093_v36 }
 0x3d0   : > { %v5462_v23 = vadd.f32 %v5206_v53, %v4662_v30  ;;  %v2005_v47 = vsel %vm1733_vm7, %v9096_v49, 0.0  ;;  %vm2533_vm8 = vcmp.eq.s32.totalorder %v11569_v51, %v9099_v8  ;;  %vm3333_vm9 = vcmp.eq.s32.totalorder %v11569_v51, %v9109_v25 }
 0x3d1   : > { %v3990_v21 = vadd.f32 %v3734_v1, %v3190_v37  ;;  %v5334_v34 = vsel %vm5062_vm3, %v9063_v55, 0.0  ;;  %v2261_v14 = vadd.f32 %v2005_v47, %v1205_v4  ;;  %v2805_v29 = vsel %vm2533_vm8, %v9102_v17, 0.0  ;;  %v11572_v1 = vld [vmem:[#allocation29_spill] sm:$0xff] }
 0x3d2   : > { %5779 = vmatprep.subr.mxu0 %v5462_v23  ;;  %v3605_v41 = vsel %vm3333_vm9, %v9116_v9, 0.0  ;;  %vm4133_vm10 = vcmp.eq.s32.totalorder %v11569_v51, %v9123_v54  ;;  %vm1061_vm11 = vcmp.eq.s32.totalorder %v11570_v13, %v9087_v45  ;;  %vm1861_vm12 = vcmp.eq.s32.totalorder %v11570_v13, %v9093_v36 }
 0x3d3   : > { %v4790_v44 = vadd.f32 %v4534_v59, %v3990_v21  ;;  %v3061_v26 = vadd.f32 %v2805_v29, %v2261_v14  ;;  %v4405_v10 = vsel %vm4133_vm10, %v9126_v50, 0.0  ;;  %vm4933_vm13 = vcmp.eq.s32.totalorder %v11569_v51, %v9129_v20  ;;  %v11571_v51 = vld [vmem:[#allocation28_spill] sm:$0xff] }
 0x3d4   : > { %v1333_v42 = vsel %vm1061_vm11, %v9090_v58, 0.0  ;;  %v2133_v60 = vsel %vm1861_vm12, %v9096_v49, 0.0  ;;  %vm2661_vm14 = vcmp.eq.s32.totalorder %v11570_v13, %v9099_v8  ;;  %vm3461_vm15 = vcmp.eq.s32.totalorder %v11570_v13, %v9109_v25 }
 0x3d5   : > { %v5590_v40 = vadd.f32 %v5334_v34, %v4790_v44  ;;  %v3861_v57 = vadd.f32 %v3605_v41, %v3061_v26  ;;  %v2389_v63 = vadd.f32 %v2133_v60, %v1333_v42  ;;  %v2933_v38 = vsel %vm2661_vm14, %v9102_v17, 0.0 }
 0x3d6   : > { %v5205_v5 = vsel %vm4933_vm13, %v9132_v18, 0.0  ;;  %v3733_v32 = vsel %vm3461_vm15, %v9116_v9, 0.0  ;;  %vm4261_vm5 = vcmp.eq.s32.totalorder %v11570_v13, %v9123_v54  ;;  %vm930_vm6 = vcmp.eq.s32.totalorder %v11571_v51, %v9015_v7 }
 0x3d7   : > { %5850 = vmatprep.subr.mxu1 %v5590_v40  ;;  %v4661_v52 = vadd.f32 %v4405_v10, %v3861_v57  ;;  %v3189_v24 = vadd.f32 %v2933_v38, %v2389_v63  ;;  %v4533_v61 = vsel %vm4261_vm5, %v9126_v50, 0.0  ;;  %vm5061_vm0 = vcmp.eq.s32.totalorder %v11570_v13, %v9129_v20 }
 0x3d8   : > { %v1202_v28 = vsel %vm930_vm6, %v9018_v22, 0.0  ;;  %vm1730_vm1 = vcmp.eq.s32.totalorder %v11571_v51, %v9021_v11  ;;  %vm2530_vm2 = vcmp.eq.s32.totalorder %v11571_v51, %v9029_v0  ;;  %vm3330_vm3 = vcmp.eq.s32.totalorder %v11571_v51, %v9038_v12 }
 0x3d9   : > { %v5461_v6 = vadd.f32 %v5205_v5, %v4661_v52  ;;  %v3989_v46 = vadd.f32 %v3733_v32, %v3189_v24  ;;  %v2002_v35 = vsel %vm1730_vm1, %v9024_v31, 0.0  ;;  %v2802_v15 = vsel %vm2530_vm2, %v9032_v2, 0.0 }
 0x3da   : > { %v5333_v56 = vsel %vm5061_vm0, %v9132_v18, 0.0  ;;  %v2258_v13 = vadd.f32 %v2002_v35, %v1202_v28  ;;  %v3602_v53 = vsel %vm3330_vm3, %v9041_v16, 0.0  ;;  %vm4130_vm4 = vcmp.eq.s32.totalorder %v11571_v51, %v9047_v19 }
 0x3db   : > { %5780 = vmatpush2.msra.mxu0 %v5461_v6  ;;  %v4789_v48 = vadd.f32 %v4533_v61, %v3989_v46  ;;  %v4402_v30 = vsel %vm4130_vm4, %v9053_v33, 0.0  ;;  %vm4930_vm7 = vcmp.eq.s32.totalorder %v11571_v51, %v9059_v62  ;;  %vm1058_vm8 = vcmp.eq.s32.totalorder %v11572_v1, %v9015_v7 }
 0x3dc   : > { %v3058_v37 = vadd.f32 %v2802_v15, %v2258_v13  ;;  %v1330_v59 = vsel %vm1058_vm8, %v9018_v22, 0.0  ;;  %vm1858_vm9 = vcmp.eq.s32.totalorder %v11572_v1, %v9021_v11  ;;  %vm2658_vm10 = vcmp.eq.s32.totalorder %v11572_v1, %v9029_v0 }
 0x3dd   : > { %v5589_v4 = vadd.f32 %v5333_v56, %v4789_v48  ;;  %v2130_v23 = vsel %vm1858_vm9, %v9024_v31, 0.0  ;;  %v2930_v47 = vsel %vm2658_vm10, %v9032_v2, 0.0  ;;  %vm3458_vm11 = vcmp.eq.s32.totalorder %v11572_v1, %v9038_v12  ;;  %v11573_v48 = vld [vmem:[#allocation30_spill] sm:$0xff] }
 0x3de   : > { %v3858_v21 = vadd.f32 %v3602_v53, %v3058_v37  ;;  %v5202_v34 = vsel %vm4930_vm7, %v9063_v55, 0.0  ;;  %v2386_v14 = vadd.f32 %v2130_v23, %v1330_v59  ;;  %vm4258_vm12 = vcmp.eq.s32.totalorder %v11572_v1, %v9047_v19 }
 0x3df   : > { %5851 = vmatpush2.msra.mxu1 %v5589_v4  ;;  %v3730_v29 = vsel %vm3458_vm11, %v9041_v16, 0.0  ;;  %v4530_v41 = vsel %vm4258_vm12, %v9053_v33, 0.0  ;;  %vm929_vm13 = vcmp.eq.s32.totalorder %v11571_v51, %v9087_v45  ;;  %vm1729_vm14 = vcmp.eq.s32.totalorder %v11571_v51, %v9093_v36 }
 0x3e0   : > { %v4658_v44 = vadd.f32 %v4402_v30, %v3858_v21  ;;  %v3186_v26 = vadd.f32 %v2930_v47, %v2386_v14  ;;  %vm5058_vm15 = vcmp.eq.s32.totalorder %v11572_v1, %v9059_v62  ;;  %v1201_v10 = vsel %vm929_vm13, %v9090_v58, 0.0 }
 0x3e1   : > { %v2001_v42 = vsel %vm1729_vm14, %v9096_v49, 0.0  ;;  %vm2529_vm5 = vcmp.eq.s32.totalorder %v11571_v51, %v9099_v8  ;;  %vm3329_vm6 = vcmp.eq.s32.totalorder %v11571_v51, %v9109_v25  ;;  %vm4129_vm0 = vcmp.eq.s32.totalorder %v11571_v51, %v9123_v54 }
 0x3e2   : > { %v5458_v60 = vadd.f32 %v5202_v34, %v4658_v44  ;;  %v3986_v40 = vadd.f32 %v3730_v29, %v3186_v26  ;;  %v2257_v57 = vadd.f32 %v2001_v42, %v1201_v10  ;;  %v2801_v63 = vsel %vm2529_vm5, %v9102_v17, 0.0 }
 0x3e3   : > { %v5330_v38 = vsel %vm5058_vm15, %v9063_v55, 0.0  ;;  %v3601_v5 = vsel %vm3329_vm6, %v9116_v9, 0.0  ;;  %v4401_v32 = vsel %vm4129_vm0, %v9126_v50, 0.0  ;;  %vm1057_vm1 = vcmp.eq.s32.totalorder %v11572_v1, %v9087_v45 }
 0x3e4   : > { %5781 = vmatprep.subr.mxu0 %v5458_v60  ;;  %v4786_v52 = vadd.f32 %v4530_v41, %v3986_v40  ;;  %v3057_v24 = vadd.f32 %v2801_v63, %v2257_v57  ;;  %vm4929_vm2 = vcmp.eq.s32.totalorder %v11571_v51, %v9129_v20  ;;  %v1329_v61 = vsel %vm1057_vm1, %v9090_v58, 0.0  ;;  %v11574_v41 = vld [vmem:[#allocation31_spill] sm:$0xff] }
 0x3e5   : > { %vm1857_vm3 = vcmp.eq.s32.totalorder %v11572_v1, %v9093_v36  ;;  %vm2657_vm4 = vcmp.eq.s32.totalorder %v11572_v1, %v9099_v8  ;;  %vm3457_vm7 = vcmp.eq.s32.totalorder %v11572_v1, %v9109_v25  ;;  %vm4257_vm8 = vcmp.eq.s32.totalorder %v11572_v1, %v9123_v54 }
 0x3e6   : > { %v5586_v28 = vadd.f32 %v5330_v38, %v4786_v52  ;;  %v3857_v6 = vadd.f32 %v3601_v5, %v3057_v24  ;;  %v2129_v46 = vsel %vm1857_vm3, %v9096_v49, 0.0  ;;  %v2929_v51 = vsel %vm2657_vm4, %v9102_v17, 0.0 }
 0x3e7   : > { %v5201_v35 = vsel %vm4929_vm2, %v9132_v18, 0.0  ;;  %v2385_v15 = vadd.f32 %v2129_v46, %v1329_v61  ;;  %v3729_v56 = vsel %vm3457_vm7, %v9116_v9, 0.0  ;;  %v4529_v13 = vsel %vm4257_vm8, %v9126_v50, 0.0 }
 0x3e8   : > { %5852 = vmatprep.subr.mxu1 %v5586_v28  ;;  %v4657_v53 = vadd.f32 %v4401_v32, %v3857_v6  ;;  %vm5057_vm9 = vcmp.eq.s32.totalorder %v11572_v1, %v9129_v20  ;;  %vm926_vm10 = vcmp.eq.s32.totalorder %v11573_v48, %v9015_v7  ;;  %vm1726_vm11 = vcmp.eq.s32.totalorder %v11573_v48, %v9021_v11 }
 0x3e9   : > { %v3185_v30 = vadd.f32 %v2929_v51, %v2385_v15  ;;  %v1198_v37 = vsel %vm926_vm10, %v9018_v22, 0.0  ;;  %v1998_v59 = vsel %vm1726_vm11, %v9024_v31, 0.0  ;;  %vm2526_vm12 = vcmp.eq.s32.totalorder %v11573_v48, %v9029_v0 }
 0x3ea   : > { %v5457_v4 = vadd.f32 %v5201_v35, %v4657_v53  ;;  %v2254_v23 = vadd.f32 %v1998_v59, %v1198_v37  ;;  %v2798_v47 = vsel %vm2526_vm12, %v9032_v2, 0.0  ;;  %vm3326_vm13 = vcmp.eq.s32.totalorder %v11573_v48, %v9038_v12 }
 0x3eb   : > { %v3985_v1 = vadd.f32 %v3729_v56, %v3185_v30  ;;  %v5329_v21 = vsel %vm5057_vm9, %v9132_v18, 0.0  ;;  %v3598_v34 = vsel %vm3326_vm13, %v9041_v16, 0.0  ;;  %vm4126_vm14 = vcmp.eq.s32.totalorder %v11573_v48, %v9047_v19 }
 0x3ec   : > { %5782 = vmatpush2.msra.mxu0 %v5457_v4  ;;  %v3054_v14 = vadd.f32 %v2798_v47, %v2254_v23  ;;  %v4398_v29 = vsel %vm4126_vm14, %v9053_v33, 0.0  ;;  %vm4926_vm15 = vcmp.eq.s32.totalorder %v11573_v48, %v9059_v62  ;;  %vm1054_vm5 = vcmp.eq.s32.totalorder %v11574_v41, %v9015_v7 }
 0x3ed   : > { %v4785_v44 = vadd.f32 %v4529_v13, %v3985_v1  ;;  %v1326_v26 = vsel %vm1054_vm5, %v9018_v22, 0.0  ;;  %vm1854_vm6 = vcmp.eq.s32.totalorder %v11574_v41, %v9021_v11  ;;  %vm2654_vm0 = vcmp.eq.s32.totalorder %v11574_v41, %v9029_v0 }
 0x3ee   : > { %v3854_v10 = vadd.f32 %v3598_v34, %v3054_v14  ;;  %v2126_v42 = vsel %vm1854_vm6, %v9024_v31, 0.0  ;;  %v2926_v60 = vsel %vm2654_vm0, %v9032_v2, 0.0  ;;  %vm3454_vm1 = vcmp.eq.s32.totalorder %v11574_v41, %v9038_v12 }
 0x3ef   : > { %v5585_v40 = vadd.f32 %v5329_v21, %v4785_v44  ;;  %v5198_v57 = vsel %vm4926_vm15, %v9063_v55, 0.0  ;;  %v2382_v63 = vadd.f32 %v2126_v42, %v1326_v26  ;;  %vm4254_vm2 = vcmp.eq.s32.totalorder %v11574_v41, %v9047_v19 }
 0x3f0   : > { %v4654_v38 = vadd.f32 %v4398_v29, %v3854_v10  ;;  %v3726_v5 = vsel %vm3454_vm1, %v9041_v16, 0.0  ;;  %vm5054_vm3 = vcmp.eq.s32.totalorder %v11574_v41, %v9059_v62  ;;  %vm925_vm4 = vcmp.eq.s32.totalorder %v11573_v48, %v9087_v45 }
 0x3f1   : > { %5853 = vmatpush2.msra.mxu1 %v5585_v40  ;;  %v3182_v32 = vadd.f32 %v2926_v60, %v2382_v63  ;;  %v4526_v52 = vsel %vm4254_vm2, %v9053_v33, 0.0  ;;  %v1197_v24 = vsel %vm925_vm4, %v9090_v58, 0.0  ;;  %vm1725_vm7 = vcmp.eq.s32.totalorder %v11573_v48, %v9093_v36 }
 0x3f2   : > { %v5454_v61 = vadd.f32 %v5198_v57, %v4654_v38  ;;  %v1997_v28 = vsel %vm1725_vm7, %v9096_v49, 0.0  ;;  %vm2525_vm8 = vcmp.eq.s32.totalorder %v11573_v48, %v9099_v8  ;;  %vm3325_vm9 = vcmp.eq.s32.totalorder %v11573_v48, %v9109_v25 }
 0x3f3   : > { %v3982_v6 = vadd.f32 %v3726_v5, %v3182_v32  ;;  %v5326_v46 = vsel %vm5054_vm3, %v9063_v55, 0.0  ;;  %v2253_v51 = vadd.f32 %v1997_v28, %v1197_v24  ;;  %v2797_v35 = vsel %vm2525_vm8, %v9102_v17, 0.0  ;;  %v11576_v5 = vld [vmem:[#allocation33_spill] sm:$0xff] }
 0x3f4   : > { %5783 = vmatprep.subr.mxu0 %v5454_v61  ;;  %v3597_v15 = vsel %vm3325_vm9, %v9116_v9, 0.0  ;;  %vm4125_vm10 = vcmp.eq.s32.totalorder %v11573_v48, %v9123_v54  ;;  %vm1053_vm11 = vcmp.eq.s32.totalorder %v11574_v41, %v9087_v45  ;;  %vm1853_vm12 = vcmp.eq.s32.totalorder %v11574_v41, %v9093_v36 }
 0x3f5   : > { %v4782_v56 = vadd.f32 %v4526_v52, %v3982_v6  ;;  %v3053_v13 = vadd.f32 %v2797_v35, %v2253_v51  ;;  %v4397_v53 = vsel %vm4125_vm10, %v9126_v50, 0.0  ;;  %vm4925_vm13 = vcmp.eq.s32.totalorder %v11573_v48, %v9129_v20  ;;  %v11575_v48 = vld [vmem:[#allocation32_spill] sm:$0xff] }
 0x3f6   : > { %v1325_v30 = vsel %vm1053_vm11, %v9090_v58, 0.0  ;;  %v2125_v37 = vsel %vm1853_vm12, %v9096_v49, 0.0  ;;  %vm2653_vm14 = vcmp.eq.s32.totalorder %v11574_v41, %v9099_v8  ;;  %vm3453_vm15 = vcmp.eq.s32.totalorder %v11574_v41, %v9109_v25 }
 0x3f7   : > { %v5582_v59 = vadd.f32 %v5326_v46, %v4782_v56  ;;  %v3853_v4 = vadd.f32 %v3597_v15, %v3053_v13  ;;  %v2381_v23 = vadd.f32 %v2125_v37, %v1325_v30  ;;  %v2925_v47 = vsel %vm2653_vm14, %v9102_v17, 0.0 }
 0x3f8   : > { %v5197_v1 = vsel %vm4925_vm13, %v9132_v18, 0.0  ;;  %v3725_v21 = vsel %vm3453_vm15, %v9116_v9, 0.0  ;;  %vm4253_vm5 = vcmp.eq.s32.totalorder %v11574_v41, %v9123_v54  ;;  %vm922_vm6 = vcmp.eq.s32.totalorder %v11575_v48, %v9015_v7 }
 0x3f9   : > { %5854 = vmatprep.subr.mxu1 %v5582_v59  ;;  %v4653_v34 = vadd.f32 %v4397_v53, %v3853_v4  ;;  %v3181_v14 = vadd.f32 %v2925_v47, %v2381_v23  ;;  %v4525_v29 = vsel %vm4253_vm5, %v9126_v50, 0.0  ;;  %vm5053_vm0 = vcmp.eq.s32.totalorder %v11574_v41, %v9129_v20 }
 0x3fa   : > { %v1194_v44 = vsel %vm922_vm6, %v9018_v22, 0.0  ;;  %vm1722_vm1 = vcmp.eq.s32.totalorder %v11575_v48, %v9021_v11  ;;  %vm2522_vm2 = vcmp.eq.s32.totalorder %v11575_v48, %v9029_v0  ;;  %vm3322_vm3 = vcmp.eq.s32.totalorder %v11575_v48, %v9038_v12 }
 0x3fb   : > { %v5453_v26 = vadd.f32 %v5197_v1, %v4653_v34  ;;  %v3981_v10 = vadd.f32 %v3725_v21, %v3181_v14  ;;  %v1994_v42 = vsel %vm1722_vm1, %v9024_v31, 0.0  ;;  %v2794_v60 = vsel %vm2522_vm2, %v9032_v2, 0.0 }
 0x3fc   : > { %v5325_v40 = vsel %vm5053_vm0, %v9132_v18, 0.0  ;;  %v2250_v41 = vadd.f32 %v1994_v42, %v1194_v44  ;;  %v3594_v57 = vsel %vm3322_vm3, %v9041_v16, 0.0  ;;  %vm4122_vm4 = vcmp.eq.s32.totalorder %v11575_v48, %v9047_v19 }
 0x3fd   : > { %5784 = vmatpush2.msra.mxu0 %v5453_v26  ;;  %v4781_v63 = vadd.f32 %v4525_v29, %v3981_v10  ;;  %v4394_v38 = vsel %vm4122_vm4, %v9053_v33, 0.0  ;;  %vm4922_vm7 = vcmp.eq.s32.totalorder %v11575_v48, %v9059_v62  ;;  %vm1050_vm8 = vcmp.eq.s32.totalorder %v11576_v5, %v9015_v7 }
 0x3fe   : > { %v3050_v32 = vadd.f32 %v2794_v60, %v2250_v41  ;;  %v1322_v52 = vsel %vm1050_vm8, %v9018_v22, 0.0  ;;  %vm1850_vm9 = vcmp.eq.s32.totalorder %v11576_v5, %v9021_v11  ;;  %vm2650_vm10 = vcmp.eq.s32.totalorder %v11576_v5, %v9029_v0 }
 0x3ff   : > { %v5581_v24 = vadd.f32 %v5325_v40, %v4781_v63  ;;  %v2122_v61 = vsel %vm1850_vm9, %v9024_v31, 0.0  ;;  %v2922_v28 = vsel %vm2650_vm10, %v9032_v2, 0.0  ;;  %vm3450_vm11 = vcmp.eq.s32.totalorder %v11576_v5, %v9038_v12  ;;  %v11577_v63 = vld [vmem:[#allocation34_spill] sm:$0xff] }
 0x400   : > { %v3850_v6 = vadd.f32 %v3594_v57, %v3050_v32  ;;  %v5194_v46 = vsel %vm4922_vm7, %v9063_v55, 0.0  ;;  %v2378_v51 = vadd.f32 %v2122_v61, %v1322_v52  ;;  %vm4250_vm12 = vcmp.eq.s32.totalorder %v11576_v5, %v9047_v19 }
 0x401   : > { %5855 = vmatpush2.msra.mxu1 %v5581_v24  ;;  %v3722_v35 = vsel %vm3450_vm11, %v9041_v16, 0.0  ;;  %v4522_v15 = vsel %vm4250_vm12, %v9053_v33, 0.0  ;;  %vm921_vm13 = vcmp.eq.s32.totalorder %v11575_v48, %v9087_v45  ;;  %vm1721_vm14 = vcmp.eq.s32.totalorder %v11575_v48, %v9093_v36 }
 0x402   : > { %v4650_v56 = vadd.f32 %v4394_v38, %v3850_v6  ;;  %v3178_v13 = vadd.f32 %v2922_v28, %v2378_v51  ;;  %vm5050_vm15 = vcmp.eq.s32.totalorder %v11576_v5, %v9059_v62  ;;  %v1193_v53 = vsel %vm921_vm13, %v9090_v58, 0.0 }
 0x403   : > { %v1993_v30 = vsel %vm1721_vm14, %v9096_v49, 0.0  ;;  %vm2521_vm5 = vcmp.eq.s32.totalorder %v11575_v48, %v9099_v8  ;;  %vm3321_vm6 = vcmp.eq.s32.totalorder %v11575_v48, %v9109_v25  ;;  %vm4121_vm0 = vcmp.eq.s32.totalorder %v11575_v48, %v9123_v54 }
 0x404   : > { %v5450_v37 = vadd.f32 %v5194_v46, %v4650_v56  ;;  %v3978_v59 = vadd.f32 %v3722_v35, %v3178_v13  ;;  %v2249_v4 = vadd.f32 %v1993_v30, %v1193_v53  ;;  %v2793_v23 = vsel %vm2521_vm5, %v9102_v17, 0.0 }
 0x405   : > { %v5322_v47 = vsel %vm5050_vm15, %v9063_v55, 0.0  ;;  %v3593_v1 = vsel %vm3321_vm6, %v9116_v9, 0.0  ;;  %v4393_v21 = vsel %vm4121_vm0, %v9126_v50, 0.0  ;;  %vm1049_vm1 = vcmp.eq.s32.totalorder %v11576_v5, %v9087_v45 }
 0x406   : > { %5785 = vmatprep.subr.mxu0 %v5450_v37  ;;  %v4778_v34 = vadd.f32 %v4522_v15, %v3978_v59  ;;  %v3049_v14 = vadd.f32 %v2793_v23, %v2249_v4  ;;  %vm4921_vm2 = vcmp.eq.s32.totalorder %v11575_v48, %v9129_v20  ;;  %v1321_v29 = vsel %vm1049_vm1, %v9090_v58, 0.0  ;;  %v11578_v15 = vld [vmem:[#allocation35_spill] sm:$0xff] }
 0x407   : > { %vm1849_vm3 = vcmp.eq.s32.totalorder %v11576_v5, %v9093_v36  ;;  %vm2649_vm4 = vcmp.eq.s32.totalorder %v11576_v5, %v9099_v8  ;;  %vm3449_vm7 = vcmp.eq.s32.totalorder %v11576_v5, %v9109_v25  ;;  %vm4249_vm8 = vcmp.eq.s32.totalorder %v11576_v5, %v9123_v54 }
 0x408   : > { %v5578_v44 = vadd.f32 %v5322_v47, %v4778_v34  ;;  %v3849_v26 = vadd.f32 %v3593_v1, %v3049_v14  ;;  %v2121_v10 = vsel %vm1849_vm3, %v9096_v49, 0.0  ;;  %v2921_v48 = vsel %vm2649_vm4, %v9102_v17, 0.0 }
 0x409   : > { %v5193_v42 = vsel %vm4921_vm2, %v9132_v18, 0.0  ;;  %v2377_v60 = vadd.f32 %v2121_v10, %v1321_v29  ;;  %v3721_v40 = vsel %vm3449_vm7, %v9116_v9, 0.0  ;;  %v4521_v41 = vsel %vm4249_vm8, %v9126_v50, 0.0 }
 0x40a   : > { %5856 = vmatprep.subr.mxu1 %v5578_v44  ;;  %v4649_v57 = vadd.f32 %v4393_v21, %v3849_v26  ;;  %vm5049_vm9 = vcmp.eq.s32.totalorder %v11576_v5, %v9129_v20  ;;  %vm918_vm10 = vcmp.eq.s32.totalorder %v11577_v63, %v9015_v7  ;;  %vm1718_vm11 = vcmp.eq.s32.totalorder %v11577_v63, %v9021_v11 }
 0x40b   : > { %v3177_v38 = vadd.f32 %v2921_v48, %v2377_v60  ;;  %v1190_v32 = vsel %vm918_vm10, %v9018_v22, 0.0  ;;  %v1990_v52 = vsel %vm1718_vm11, %v9024_v31, 0.0  ;;  %vm2518_vm12 = vcmp.eq.s32.totalorder %v11577_v63, %v9029_v0 }
 0x40c   : > { %v5449_v24 = vadd.f32 %v5193_v42, %v4649_v57  ;;  %v2246_v61 = vadd.f32 %v1990_v52, %v1190_v32  ;;  %v2790_v28 = vsel %vm2518_vm12, %v9032_v2, 0.0  ;;  %vm3318_vm13 = vcmp.eq.s32.totalorder %v11577_v63, %v9038_v12 }
 0x40d   : > { %v3977_v5 = vadd.f32 %v3721_v40, %v3177_v38  ;;  %v5321_v6 = vsel %vm5049_vm9, %v9132_v18, 0.0  ;;  %v3590_v46 = vsel %vm3318_vm13, %v9041_v16, 0.0  ;;  %vm4118_vm14 = vcmp.eq.s32.totalorder %v11577_v63, %v9047_v19 }
 0x40e   : > { %5786 = vmatpush2.msra.mxu0 %v5449_v24  ;;  %v3046_v51 = vadd.f32 %v2790_v28, %v2246_v61  ;;  %v4390_v35 = vsel %vm4118_vm14, %v9053_v33, 0.0  ;;  %vm4918_vm15 = vcmp.eq.s32.totalorder %v11577_v63, %v9059_v62  ;;  %vm1046_vm5 = vcmp.eq.s32.totalorder %v11578_v15, %v9015_v7 }
 0x40f   : > { %v4777_v56 = vadd.f32 %v4521_v41, %v3977_v5  ;;  %v1318_v13 = vsel %vm1046_vm5, %v9018_v22, 0.0  ;;  %vm1846_vm6 = vcmp.eq.s32.totalorder %v11578_v15, %v9021_v11  ;;  %vm2646_vm0 = vcmp.eq.s32.totalorder %v11578_v15, %v9029_v0 }
 0x410   : > { %v3846_v53 = vadd.f32 %v3590_v46, %v3046_v51  ;;  %v2118_v30 = vsel %vm1846_vm6, %v9024_v31, 0.0  ;;  %v2918_v37 = vsel %vm2646_vm0, %v9032_v2, 0.0  ;;  %vm3446_vm1 = vcmp.eq.s32.totalorder %v11578_v15, %v9038_v12 }
 0x411   : > { %v5577_v59 = vadd.f32 %v5321_v6, %v4777_v56  ;;  %v5190_v4 = vsel %vm4918_vm15, %v9063_v55, 0.0  ;;  %v2374_v23 = vadd.f32 %v2118_v30, %v1318_v13  ;;  %vm4246_vm2 = vcmp.eq.s32.totalorder %v11578_v15, %v9047_v19 }
 0x412   : > { %v4646_v47 = vadd.f32 %v4390_v35, %v3846_v53  ;;  %v3718_v1 = vsel %vm3446_vm1, %v9041_v16, 0.0  ;;  %vm5046_vm3 = vcmp.eq.s32.totalorder %v11578_v15, %v9059_v62  ;;  %vm917_vm4 = vcmp.eq.s32.totalorder %v11577_v63, %v9087_v45 }
 0x413   : > { %5857 = vmatpush2.msra.mxu1 %v5577_v59  ;;  %v3174_v21 = vadd.f32 %v2918_v37, %v2374_v23  ;;  %v4518_v34 = vsel %vm4246_vm2, %v9053_v33, 0.0  ;;  %v1189_v14 = vsel %vm917_vm4, %v9090_v58, 0.0  ;;  %vm1717_vm7 = vcmp.eq.s32.totalorder %v11577_v63, %v9093_v36 }
 0x414   : > { %v5446_v29 = vadd.f32 %v5190_v4, %v4646_v47  ;;  %v1989_v44 = vsel %vm1717_vm7, %v9096_v49, 0.0  ;;  %vm2517_vm8 = vcmp.eq.s32.totalorder %v11577_v63, %v9099_v8  ;;  %vm3317_vm9 = vcmp.eq.s32.totalorder %v11577_v63, %v9109_v25 }
 0x415   : > { %v3974_v26 = vadd.f32 %v3718_v1, %v3174_v21  ;;  %v5318_v10 = vsel %vm5046_vm3, %v9063_v55, 0.0  ;;  %v2245_v48 = vadd.f32 %v1989_v44, %v1189_v14  ;;  %v2789_v42 = vsel %vm2517_vm8, %v9102_v17, 0.0  ;;  %v11580_v1 = vld [vmem:[#allocation37_spill] sm:$0xff] }
 0x416   : > { %5787 = vmatprep.subr.mxu0 %v5446_v29  ;;  %v3589_v60 = vsel %vm3317_vm9, %v9116_v9, 0.0  ;;  %vm4117_vm10 = vcmp.eq.s32.totalorder %v11577_v63, %v9123_v54  ;;  %vm1045_vm11 = vcmp.eq.s32.totalorder %v11578_v15, %v9087_v45  ;;  %vm1845_vm12 = vcmp.eq.s32.totalorder %v11578_v15, %v9093_v36 }
 0x417   : > { %v4774_v40 = vadd.f32 %v4518_v34, %v3974_v26  ;;  %v3045_v41 = vadd.f32 %v2789_v42, %v2245_v48  ;;  %v4389_v57 = vsel %vm4117_vm10, %v9126_v50, 0.0  ;;  %vm4917_vm13 = vcmp.eq.s32.totalorder %v11577_v63, %v9129_v20  ;;  %v11579_v63 = vld [vmem:[#allocation36_spill] sm:$0xff] }
 0x418   : > { %v1317_v38 = vsel %vm1045_vm11, %v9090_v58, 0.0  ;;  %v2117_v32 = vsel %vm1845_vm12, %v9096_v49, 0.0  ;;  %vm2645_vm14 = vcmp.eq.s32.totalorder %v11578_v15, %v9099_v8  ;;  %vm3445_vm15 = vcmp.eq.s32.totalorder %v11578_v15, %v9109_v25 }
 0x419   : > { %v5574_v52 = vadd.f32 %v5318_v10, %v4774_v40  ;;  %v3845_v24 = vadd.f32 %v3589_v60, %v3045_v41  ;;  %v2373_v61 = vadd.f32 %v2117_v32, %v1317_v38  ;;  %v2917_v28 = vsel %vm2645_vm14, %v9102_v17, 0.0 }
 0x41a   : > { %v5189_v5 = vsel %vm4917_vm13, %v9132_v18, 0.0  ;;  %v3717_v6 = vsel %vm3445_vm15, %v9116_v9, 0.0  ;;  %vm4245_vm5 = vcmp.eq.s32.totalorder %v11578_v15, %v9123_v54  ;;  %vm914_vm6 = vcmp.eq.s32.totalorder %v11579_v63, %v9015_v7 }
 0x41b   : > { %5858 = vmatprep.subr.mxu1 %v5574_v52  ;;  %v4645_v46 = vadd.f32 %v4389_v57, %v3845_v24  ;;  %v3173_v51 = vadd.f32 %v2917_v28, %v2373_v61  ;;  %v4517_v35 = vsel %vm4245_vm5, %v9126_v50, 0.0  ;;  %vm5045_vm0 = vcmp.eq.s32.totalorder %v11578_v15, %v9129_v20 }
 0x41c   : > { %v1186_v56 = vsel %vm914_vm6, %v9018_v22, 0.0  ;;  %vm1714_vm1 = vcmp.eq.s32.totalorder %v11579_v63, %v9021_v11  ;;  %vm2514_vm2 = vcmp.eq.s32.totalorder %v11579_v63, %v9029_v0  ;;  %vm3314_vm3 = vcmp.eq.s32.totalorder %v11579_v63, %v9038_v12 }
 0x41d   : > { %v5445_v13 = vadd.f32 %v5189_v5, %v4645_v46  ;;  %v3973_v53 = vadd.f32 %v3717_v6, %v3173_v51  ;;  %v1986_v30 = vsel %vm1714_vm1, %v9024_v31, 0.0  ;;  %v2786_v37 = vsel %vm2514_vm2, %v9032_v2, 0.0 }
 0x41e   : > { %v5317_v59 = vsel %vm5045_vm0, %v9132_v18, 0.0  ;;  %v2242_v15 = vadd.f32 %v1986_v30, %v1186_v56  ;;  %v3586_v4 = vsel %vm3314_vm3, %v9041_v16, 0.0  ;;  %vm4114_vm4 = vcmp.eq.s32.totalorder %v11579_v63, %v9047_v19 }
 0x41f   : > { %5788 = vmatpush2.msra.mxu0 %v5445_v13  ;;  %v4773_v23 = vadd.f32 %v4517_v35, %v3973_v53  ;;  %v4386_v47 = vsel %vm4114_vm4, %v9053_v33, 0.0  ;;  %vm4914_vm7 = vcmp.eq.s32.totalorder %v11579_v63, %v9059_v62  ;;  %vm1042_vm8 = vcmp.eq.s32.totalorder %v11580_v1, %v9015_v7 }
 0x420   : > { %v3042_v21 = vadd.f32 %v2786_v37, %v2242_v15  ;;  %v1314_v34 = vsel %vm1042_vm8, %v9018_v22, 0.0  ;;  %vm1842_vm9 = vcmp.eq.s32.totalorder %v11580_v1, %v9021_v11  ;;  %vm2642_vm10 = vcmp.eq.s32.totalorder %v11580_v1, %v9029_v0 }
 0x421   : > { %v5573_v14 = vadd.f32 %v5317_v59, %v4773_v23  ;;  %v2114_v29 = vsel %vm1842_vm9, %v9024_v31, 0.0  ;;  %v2914_v44 = vsel %vm2642_vm10, %v9032_v2, 0.0  ;;  %vm3442_vm11 = vcmp.eq.s32.totalorder %v11580_v1, %v9038_v12  ;;  %v11581_v23 = vld [vmem:[#allocation38_spill] sm:$0xff] }
 0x422   : > { %v3842_v26 = vadd.f32 %v3586_v4, %v3042_v21  ;;  %v5186_v10 = vsel %vm4914_vm7, %v9063_v55, 0.0  ;;  %v2370_v48 = vadd.f32 %v2114_v29, %v1314_v34  ;;  %vm4242_vm12 = vcmp.eq.s32.totalorder %v11580_v1, %v9047_v19 }
 0x423   : > { %5859 = vmatpush2.msra.mxu1 %v5573_v14  ;;  %v3714_v42 = vsel %vm3442_vm11, %v9041_v16, 0.0  ;;  %v4514_v60 = vsel %vm4242_vm12, %v9053_v33, 0.0  ;;  %vm913_vm13 = vcmp.eq.s32.totalorder %v11579_v63, %v9087_v45  ;;  %vm1713_vm14 = vcmp.eq.s32.totalorder %v11579_v63, %v9093_v36 }
 0x424   : > { %v4642_v40 = vadd.f32 %v4386_v47, %v3842_v26  ;;  %v3170_v41 = vadd.f32 %v2914_v44, %v2370_v48  ;;  %vm5042_vm15 = vcmp.eq.s32.totalorder %v11580_v1, %v9059_v62  ;;  %v1185_v57 = vsel %vm913_vm13, %v9090_v58, 0.0 }
 0x425   : > { %v1985_v38 = vsel %vm1713_vm14, %v9096_v49, 0.0  ;;  %vm2513_vm5 = vcmp.eq.s32.totalorder %v11579_v63, %v9099_v8  ;;  %vm3313_vm6 = vcmp.eq.s32.totalorder %v11579_v63, %v9109_v25  ;;  %vm4113_vm0 = vcmp.eq.s32.totalorder %v11579_v63, %v9123_v54 }
 0x426   : > { %v5442_v32 = vadd.f32 %v5186_v10, %v4642_v40  ;;  %v3970_v52 = vadd.f32 %v3714_v42, %v3170_v41  ;;  %v2241_v24 = vadd.f32 %v1985_v38, %v1185_v57  ;;  %v2785_v61 = vsel %vm2513_vm5, %v9102_v17, 0.0 }
 0x427   : > { %v5314_v28 = vsel %vm5042_vm15, %v9063_v55, 0.0  ;;  %v3585_v5 = vsel %vm3313_vm6, %v9116_v9, 0.0  ;;  %v4385_v6 = vsel %vm4113_vm0, %v9126_v50, 0.0  ;;  %vm1041_vm1 = vcmp.eq.s32.totalorder %v11580_v1, %v9087_v45 }
 0x428   : > { %5789 = vmatprep.subr.mxu0 %v5442_v32  ;;  %v4770_v46 = vadd.f32 %v4514_v60, %v3970_v52  ;;  %v3041_v51 = vadd.f32 %v2785_v61, %v2241_v24  ;;  %vm4913_vm2 = vcmp.eq.s32.totalorder %v11579_v63, %v9129_v20  ;;  %v1313_v35 = vsel %vm1041_vm1, %v9090_v58, 0.0  ;;  %v11582_v60 = vld [vmem:[#allocation39_spill] sm:$0xff] }
 0x429   : > { %vm1841_vm3 = vcmp.eq.s32.totalorder %v11580_v1, %v9093_v36  ;;  %vm2641_vm4 = vcmp.eq.s32.totalorder %v11580_v1, %v9099_v8  ;;  %vm3441_vm7 = vcmp.eq.s32.totalorder %v11580_v1, %v9109_v25  ;;  %vm4241_vm8 = vcmp.eq.s32.totalorder %v11580_v1, %v9123_v54 }
 0x42a   : > { %v5570_v56 = vadd.f32 %v5314_v28, %v4770_v46  ;;  %v3841_v13 = vadd.f32 %v3585_v5, %v3041_v51  ;;  %v2113_v53 = vsel %vm1841_vm3, %v9096_v49, 0.0  ;;  %v2913_v63 = vsel %vm2641_vm4, %v9102_v17, 0.0 }
 0x42b   : > { %v5185_v30 = vsel %vm4913_vm2, %v9132_v18, 0.0  ;;  %v2369_v37 = vadd.f32 %v2113_v53, %v1313_v35  ;;  %v3713_v59 = vsel %vm3441_vm7, %v9116_v9, 0.0  ;;  %v4513_v15 = vsel %vm4241_vm8, %v9126_v50, 0.0 }
 0x42c   : > { %5860 = vmatprep.subr.mxu1 %v5570_v56  ;;  %v4641_v4 = vadd.f32 %v4385_v6, %v3841_v13  ;;  %vm5041_vm9 = vcmp.eq.s32.totalorder %v11580_v1, %v9129_v20  ;;  %vm910_vm10 = vcmp.eq.s32.totalorder %v11581_v23, %v9015_v7  ;;  %vm1710_vm11 = vcmp.eq.s32.totalorder %v11581_v23, %v9021_v11 }
 0x42d   : > { %v3169_v47 = vadd.f32 %v2913_v63, %v2369_v37  ;;  %v1182_v21 = vsel %vm910_vm10, %v9018_v22, 0.0  ;;  %v1982_v34 = vsel %vm1710_vm11, %v9024_v31, 0.0  ;;  %vm2510_vm12 = vcmp.eq.s32.totalorder %v11581_v23, %v9029_v0 }
 0x42e   : > { %v5441_v14 = vadd.f32 %v5185_v30, %v4641_v4  ;;  %v2238_v29 = vadd.f32 %v1982_v34, %v1182_v21  ;;  %v2782_v44 = vsel %vm2510_vm12, %v9032_v2, 0.0  ;;  %vm3310_vm13 = vcmp.eq.s32.totalorder %v11581_v23, %v9038_v12 }
 0x42f   : > { %v3969_v1 = vadd.f32 %v3713_v59, %v3169_v47  ;;  %v5313_v26 = vsel %vm5041_vm9, %v9132_v18, 0.0  ;;  %v3582_v10 = vsel %vm3310_vm13, %v9041_v16, 0.0  ;;  %vm4110_vm14 = vcmp.eq.s32.totalorder %v11581_v23, %v9047_v19 }
 0x430   : > { %5790 = vmatpush2.msra.mxu0 %v5441_v14  ;;  %v3038_v48 = vadd.f32 %v2782_v44, %v2238_v29  ;;  %v4382_v42 = vsel %vm4110_vm14, %v9053_v33, 0.0  ;;  %vm4910_vm15 = vcmp.eq.s32.totalorder %v11581_v23, %v9059_v62  ;;  %vm1038_vm5 = vcmp.eq.s32.totalorder %v11582_v60, %v9015_v7 }
 0x431   : > { %v4769_v40 = vadd.f32 %v4513_v15, %v3969_v1  ;;  %v1310_v41 = vsel %vm1038_vm5, %v9018_v22, 0.0  ;;  %vm1838_vm6 = vcmp.eq.s32.totalorder %v11582_v60, %v9021_v11  ;;  %vm2638_vm0 = vcmp.eq.s32.totalorder %v11582_v60, %v9029_v0 }
 0x432   : > { %v3838_v57 = vadd.f32 %v3582_v10, %v3038_v48  ;;  %v2110_v38 = vsel %vm1838_vm6, %v9024_v31, 0.0  ;;  %v2910_v32 = vsel %vm2638_vm0, %v9032_v2, 0.0  ;;  %vm3438_vm1 = vcmp.eq.s32.totalorder %v11582_v60, %v9038_v12 }
 0x433   : > { %v5569_v52 = vadd.f32 %v5313_v26, %v4769_v40  ;;  %v5182_v24 = vsel %vm4910_vm15, %v9063_v55, 0.0  ;;  %v2366_v61 = vadd.f32 %v2110_v38, %v1310_v41  ;;  %vm4238_vm2 = vcmp.eq.s32.totalorder %v11582_v60, %v9047_v19 }
 0x434   : > { %v4638_v28 = vadd.f32 %v4382_v42, %v3838_v57  ;;  %v3710_v5 = vsel %vm3438_vm1, %v9041_v16, 0.0  ;;  %vm5038_vm3 = vcmp.eq.s32.totalorder %v11582_v60, %v9059_v62  ;;  %vm909_vm4 = vcmp.eq.s32.totalorder %v11581_v23, %v9087_v45 }
 0x435   : > { %5861 = vmatpush2.msra.mxu1 %v5569_v52  ;;  %v3166_v6 = vadd.f32 %v2910_v32, %v2366_v61  ;;  %v4510_v46 = vsel %vm4238_vm2, %v9053_v33, 0.0  ;;  %v1181_v51 = vsel %vm909_vm4, %v9090_v58, 0.0  ;;  %vm1709_vm7 = vcmp.eq.s32.totalorder %v11581_v23, %v9093_v36 }
 0x436   : > { %v5438_v35 = vadd.f32 %v5182_v24, %v4638_v28  ;;  %v1981_v56 = vsel %vm1709_vm7, %v9096_v49, 0.0  ;;  %vm2509_vm8 = vcmp.eq.s32.totalorder %v11581_v23, %v9099_v8  ;;  %vm3309_vm9 = vcmp.eq.s32.totalorder %v11581_v23, %v9109_v25 }
 0x437   : > { %v3966_v13 = vadd.f32 %v3710_v5, %v3166_v6  ;;  %v5310_v53 = vsel %vm5038_vm3, %v9063_v55, 0.0  ;;  %v2237_v63 = vadd.f32 %v1981_v56, %v1181_v51  ;;  %v2781_v30 = vsel %vm2509_vm8, %v9102_v17, 0.0  ;;  %v11584_v5 = vld [vmem:[#allocation41_spill] sm:$0xff] }
 0x438   : > { %5791 = vmatprep.subr.mxu0 %v5438_v35  ;;  %v3581_v37 = vsel %vm3309_vm9, %v9116_v9, 0.0  ;;  %vm4109_vm10 = vcmp.eq.s32.totalorder %v11581_v23, %v9123_v54  ;;  %vm1037_vm11 = vcmp.eq.s32.totalorder %v11582_v60, %v9087_v45  ;;  %vm1837_vm12 = vcmp.eq.s32.totalorder %v11582_v60, %v9093_v36 }
 0x439   : > { %v4766_v59 = vadd.f32 %v4510_v46, %v3966_v13  ;;  %v3037_v15 = vadd.f32 %v2781_v30, %v2237_v63  ;;  %v4381_v4 = vsel %vm4109_vm10, %v9126_v50, 0.0  ;;  %vm4909_vm13 = vcmp.eq.s32.totalorder %v11581_v23, %v9129_v20  ;;  %v11583_v23 = vld [vmem:[#allocation40_spill] sm:$0xff] }
 0x43a   : > { %v1309_v47 = vsel %vm1037_vm11, %v9090_v58, 0.0  ;;  %v2109_v21 = vsel %vm1837_vm12, %v9096_v49, 0.0  ;;  %vm2637_vm14 = vcmp.eq.s32.totalorder %v11582_v60, %v9099_v8  ;;  %vm3437_vm15 = vcmp.eq.s32.totalorder %v11582_v60, %v9109_v25 }
 0x43b   : > { %v5566_v34 = vadd.f32 %v5310_v53, %v4766_v59  ;;  %v3837_v14 = vadd.f32 %v3581_v37, %v3037_v15  ;;  %v2365_v29 = vadd.f32 %v2109_v21, %v1309_v47  ;;  %v2909_v44 = vsel %vm2637_vm14, %v9102_v17, 0.0 }
 0x43c   : > { %v5181_v1 = vsel %vm4909_vm13, %v9132_v18, 0.0  ;;  %v3709_v26 = vsel %vm3437_vm15, %v9116_v9, 0.0  ;;  %vm4237_vm5 = vcmp.eq.s32.totalorder %v11582_v60, %v9123_v54  ;;  %vm906_vm6 = vcmp.eq.s32.totalorder %v11583_v23, %v9015_v7 }
 0x43d   : > { %5862 = vmatprep.subr.mxu1 %v5566_v34  ;;  %v4637_v10 = vadd.f32 %v4381_v4, %v3837_v14  ;;  %v3165_v48 = vadd.f32 %v2909_v44, %v2365_v29  ;;  %v4509_v42 = vsel %vm4237_vm5, %v9126_v50, 0.0  ;;  %vm5037_vm0 = vcmp.eq.s32.totalorder %v11582_v60, %v9129_v20 }
 0x43e   : > { %v1178_v40 = vsel %vm906_vm6, %v9018_v22, 0.0  ;;  %vm1706_vm1 = vcmp.eq.s32.totalorder %v11583_v23, %v9021_v11  ;;  %vm2506_vm2 = vcmp.eq.s32.totalorder %v11583_v23, %v9029_v0  ;;  %vm3306_vm3 = vcmp.eq.s32.totalorder %v11583_v23, %v9038_v12 }
 0x43f   : > { %v5437_v41 = vadd.f32 %v5181_v1, %v4637_v10  ;;  %v3965_v57 = vadd.f32 %v3709_v26, %v3165_v48  ;;  %v1978_v38 = vsel %vm1706_vm1, %v9024_v31, 0.0  ;;  %v2778_v32 = vsel %vm2506_vm2, %v9032_v2, 0.0 }
 0x440   : > { %v5309_v52 = vsel %vm5037_vm0, %v9132_v18, 0.0  ;;  %v2234_v60 = vadd.f32 %v1978_v38, %v1178_v40  ;;  %v3578_v24 = vsel %vm3306_vm3, %v9041_v16, 0.0  ;;  %vm4106_vm4 = vcmp.eq.s32.totalorder %v11583_v23, %v9047_v19 }
 0x441   : > { %5792 = vmatpush2.msra.mxu0 %v5437_v41  ;;  %v4765_v61 = vadd.f32 %v4509_v42, %v3965_v57  ;;  %v4378_v28 = vsel %vm4106_vm4, %v9053_v33, 0.0  ;;  %vm4906_vm7 = vcmp.eq.s32.totalorder %v11583_v23, %v9059_v62  ;;  %vm1034_vm8 = vcmp.eq.s32.totalorder %v11584_v5, %v9015_v7 }
 0x442   : > { %v3034_v6 = vadd.f32 %v2778_v32, %v2234_v60  ;;  %v1306_v46 = vsel %vm1034_vm8, %v9018_v22, 0.0  ;;  %vm1834_vm9 = vcmp.eq.s32.totalorder %v11584_v5, %v9021_v11  ;;  %vm2634_vm10 = vcmp.eq.s32.totalorder %v11584_v5, %v9029_v0 }
 0x443   : > { %v5565_v51 = vadd.f32 %v5309_v52, %v4765_v61  ;;  %v2106_v35 = vsel %vm1834_vm9, %v9024_v31, 0.0  ;;  %v2906_v56 = vsel %vm2634_vm10, %v9032_v2, 0.0  ;;  %vm3434_vm11 = vcmp.eq.s32.totalorder %v11584_v5, %v9038_v12  ;;  %v11585_v61 = vld [vmem:[#allocation42_spill] sm:$0xff] }
 0x444   : > { %v3834_v13 = vadd.f32 %v3578_v24, %v3034_v6  ;;  %v5178_v53 = vsel %vm4906_vm7, %v9063_v55, 0.0  ;;  %v2362_v63 = vadd.f32 %v2106_v35, %v1306_v46  ;;  %vm4234_vm12 = vcmp.eq.s32.totalorder %v11584_v5, %v9047_v19 }
 0x445   : > { %5863 = vmatpush2.msra.mxu1 %v5565_v51  ;;  %v3706_v30 = vsel %vm3434_vm11, %v9041_v16, 0.0  ;;  %v4506_v37 = vsel %vm4234_vm12, %v9053_v33, 0.0  ;;  %vm905_vm13 = vcmp.eq.s32.totalorder %v11583_v23, %v9087_v45  ;;  %vm1705_vm14 = vcmp.eq.s32.totalorder %v11583_v23, %v9093_v36 }
 0x446   : > { %v4634_v59 = vadd.f32 %v4378_v28, %v3834_v13  ;;  %v3162_v15 = vadd.f32 %v2906_v56, %v2362_v63  ;;  %vm5034_vm15 = vcmp.eq.s32.totalorder %v11584_v5, %v9059_v62  ;;  %v1177_v4 = vsel %vm905_vm13, %v9090_v58, 0.0 }
 0x447   : > { %v1977_v47 = vsel %vm1705_vm14, %v9096_v49, 0.0  ;;  %vm2505_vm5 = vcmp.eq.s32.totalorder %v11583_v23, %v9099_v8  ;;  %vm3305_vm6 = vcmp.eq.s32.totalorder %v11583_v23, %v9109_v25  ;;  %vm4105_vm0 = vcmp.eq.s32.totalorder %v11583_v23, %v9123_v54 }
 0x448   : > { %v5434_v21 = vadd.f32 %v5178_v53, %v4634_v59  ;;  %v3962_v34 = vadd.f32 %v3706_v30, %v3162_v15  ;;  %v2233_v14 = vadd.f32 %v1977_v47, %v1177_v4  ;;  %v2777_v29 = vsel %vm2505_vm5, %v9102_v17, 0.0 }
 0x449   : > { %v5306_v44 = vsel %vm5034_vm15, %v9063_v55, 0.0  ;;  %v3577_v1 = vsel %vm3305_vm6, %v9116_v9, 0.0  ;;  %v4377_v26 = vsel %vm4105_vm0, %v9126_v50, 0.0  ;;  %vm1033_vm1 = vcmp.eq.s32.totalorder %v11584_v5, %v9087_v45 }
 0x44a   : > { %5793 = vmatprep.subr.mxu0 %v5434_v21  ;;  %v4762_v10 = vadd.f32 %v4506_v37, %v3962_v34  ;;  %v3033_v48 = vadd.f32 %v2777_v29, %v2233_v14  ;;  %vm4905_vm2 = vcmp.eq.s32.totalorder %v11583_v23, %v9129_v20  ;;  %v1305_v42 = vsel %vm1033_vm1, %v9090_v58, 0.0  ;;  %v11586_v37 = vld [vmem:[#allocation43_spill] sm:$0xff] }
 0x44b   : > { %vm1833_vm3 = vcmp.eq.s32.totalorder %v11584_v5, %v9093_v36  ;;  %vm2633_vm4 = vcmp.eq.s32.totalorder %v11584_v5, %v9099_v8  ;;  %vm3433_vm7 = vcmp.eq.s32.totalorder %v11584_v5, %v9109_v25  ;;  %vm4233_vm8 = vcmp.eq.s32.totalorder %v11584_v5, %v9123_v54 }
 0x44c   : > { %v5562_v40 = vadd.f32 %v5306_v44, %v4762_v10  ;;  %v3833_v41 = vadd.f32 %v3577_v1, %v3033_v48  ;;  %v2105_v57 = vsel %vm1833_vm3, %v9096_v49, 0.0  ;;  %v2905_v23 = vsel %vm2633_vm4, %v9102_v17, 0.0 }
 0x44d   : > { %v5177_v38 = vsel %vm4905_vm2, %v9132_v18, 0.0  ;;  %v2361_v32 = vadd.f32 %v2105_v57, %v1305_v42  ;;  %v3705_v52 = vsel %vm3433_vm7, %v9116_v9, 0.0  ;;  %v4505_v60 = vsel %vm4233_vm8, %v9126_v50, 0.0 }
 0x44e   : > { %5864 = vmatprep.subr.mxu1 %v5562_v40  ;;  %v4633_v24 = vadd.f32 %v4377_v26, %v3833_v41  ;;  %vm5033_vm9 = vcmp.eq.s32.totalorder %v11584_v5, %v9129_v20  ;;  %vm902_vm10 = vcmp.eq.s32.totalorder %v11585_v61, %v9015_v7  ;;  %vm1702_vm11 = vcmp.eq.s32.totalorder %v11585_v61, %v9021_v11 }
 0x44f   : > { %v3161_v28 = vadd.f32 %v2905_v23, %v2361_v32  ;;  %v1174_v6 = vsel %vm902_vm10, %v9018_v22, 0.0  ;;  %v1974_v46 = vsel %vm1702_vm11, %v9024_v31, 0.0  ;;  %vm2502_vm12 = vcmp.eq.s32.totalorder %v11585_v61, %v9029_v0 }
 0x450   : > { %v5433_v51 = vadd.f32 %v5177_v38, %v4633_v24  ;;  %v2230_v35 = vadd.f32 %v1974_v46, %v1174_v6  ;;  %v2774_v56 = vsel %vm2502_vm12, %v9032_v2, 0.0  ;;  %vm3302_vm13 = vcmp.eq.s32.totalorder %v11585_v61, %v9038_v12 }
 0x451   : > { %v3961_v5 = vadd.f32 %v3705_v52, %v3161_v28  ;;  %v5305_v13 = vsel %vm5033_vm9, %v9132_v18, 0.0  ;;  %v3574_v53 = vsel %vm3302_vm13, %v9041_v16, 0.0  ;;  %vm4102_vm14 = vcmp.eq.s32.totalorder %v11585_v61, %v9047_v19 }
 0x452   : > { %5794 = vmatpush2.msra.mxu0 %v5433_v51  ;;  %v3030_v63 = vadd.f32 %v2774_v56, %v2230_v35  ;;  %v4374_v30 = vsel %vm4102_vm14, %v9053_v33, 0.0  ;;  %vm4902_vm15 = vcmp.eq.s32.totalorder %v11585_v61, %v9059_v62  ;;  %vm1030_vm5 = vcmp.eq.s32.totalorder %v11586_v37, %v9015_v7 }
 0x453   : > { %v4761_v59 = vadd.f32 %v4505_v60, %v3961_v5  ;;  %v1302_v15 = vsel %vm1030_vm5, %v9018_v22, 0.0  ;;  %vm1830_vm6 = vcmp.eq.s32.totalorder %v11586_v37, %v9021_v11  ;;  %vm2630_vm0 = vcmp.eq.s32.totalorder %v11586_v37, %v9029_v0 }
 0x454   : > { %v3830_v4 = vadd.f32 %v3574_v53, %v3030_v63  ;;  %v2102_v47 = vsel %vm1830_vm6, %v9024_v31, 0.0  ;;  %v2902_v21 = vsel %vm2630_vm0, %v9032_v2, 0.0  ;;  %vm3430_vm1 = vcmp.eq.s32.totalorder %v11586_v37, %v9038_v12 }
 0x455   : > { %v5561_v34 = vadd.f32 %v5305_v13, %v4761_v59  ;;  %v5174_v14 = vsel %vm4902_vm15, %v9063_v55, 0.0  ;;  %v2358_v29 = vadd.f32 %v2102_v47, %v1302_v15  ;;  %vm4230_vm2 = vcmp.eq.s32.totalorder %v11586_v37, %v9047_v19 }
 0x456   : > { %v4630_v44 = vadd.f32 %v4374_v30, %v3830_v4  ;;  %v3702_v1 = vsel %vm3430_vm1, %v9041_v16, 0.0  ;;  %vm5030_vm3 = vcmp.eq.s32.totalorder %v11586_v37, %v9059_v62  ;;  %vm901_vm4 = vcmp.eq.s32.totalorder %v11585_v61, %v9087_v45 }
 0x457   : > { %5865 = vmatpush2.msra.mxu1 %v5561_v34  ;;  %v3158_v26 = vadd.f32 %v2902_v21, %v2358_v29  ;;  %v4502_v10 = vsel %vm4230_vm2, %v9053_v33, 0.0  ;;  %v1173_v48 = vsel %vm901_vm4, %v9090_v58, 0.0  ;;  %vm1701_vm7 = vcmp.eq.s32.totalorder %v11585_v61, %v9093_v36 }
 0x458   : > { %v5430_v42 = vadd.f32 %v5174_v14, %v4630_v44  ;;  %v1973_v40 = vsel %vm1701_vm7, %v9096_v49, 0.0  ;;  %vm2501_vm8 = vcmp.eq.s32.totalorder %v11585_v61, %v9099_v8  ;;  %vm3301_vm9 = vcmp.eq.s32.totalorder %v11585_v61, %v9109_v25 }
 0x459   : > { %v3958_v41 = vadd.f32 %v3702_v1, %v3158_v26  ;;  %v5302_v57 = vsel %vm5030_vm3, %v9063_v55, 0.0  ;;  %v2229_v23 = vadd.f32 %v1973_v40, %v1173_v48  ;;  %v2773_v38 = vsel %vm2501_vm8, %v9102_v17, 0.0  ;;  %v11588_v1 = vld [vmem:[#allocation45_spill] sm:$0xff] }
 0x45a   : > { %5795 = vmatprep.subr.mxu0 %v5430_v42  ;;  %v3573_v32 = vsel %vm3301_vm9, %v9116_v9, 0.0  ;;  %vm4101_vm10 = vcmp.eq.s32.totalorder %v11585_v61, %v9123_v54  ;;  %vm1029_vm11 = vcmp.eq.s32.totalorder %v11586_v37, %v9087_v45  ;;  %vm1829_vm12 = vcmp.eq.s32.totalorder %v11586_v37, %v9093_v36 }
 0x45b   : > { %v4758_v52 = vadd.f32 %v4502_v10, %v3958_v41  ;;  %v3029_v60 = vadd.f32 %v2773_v38, %v2229_v23  ;;  %v4373_v24 = vsel %vm4101_vm10, %v9126_v50, 0.0  ;;  %vm4901_vm13 = vcmp.eq.s32.totalorder %v11585_v61, %v9129_v20  ;;  %v11587_v61 = vld [vmem:[#allocation44_spill] sm:$0xff] }
 0x45c   : > { %v1301_v28 = vsel %vm1029_vm11, %v9090_v58, 0.0  ;;  %v2101_v6 = vsel %vm1829_vm12, %v9096_v49, 0.0  ;;  %vm2629_vm14 = vcmp.eq.s32.totalorder %v11586_v37, %v9099_v8  ;;  %vm3429_vm15 = vcmp.eq.s32.totalorder %v11586_v37, %v9109_v25 }
 0x45d   : > { %v5558_v46 = vadd.f32 %v5302_v57, %v4758_v52  ;;  %v3829_v51 = vadd.f32 %v3573_v32, %v3029_v60  ;;  %v2357_v35 = vadd.f32 %v2101_v6, %v1301_v28  ;;  %v2901_v56 = vsel %vm2629_vm14, %v9102_v17, 0.0 }
 0x45e   : > { %v5173_v5 = vsel %vm4901_vm13, %v9132_v18, 0.0  ;;  %v3701_v13 = vsel %vm3429_vm15, %v9116_v9, 0.0  ;;  %vm4229_vm5 = vcmp.eq.s32.totalorder %v11586_v37, %v9123_v54  ;;  %vm898_vm6 = vcmp.eq.s32.totalorder %v11587_v61, %v9015_v7 }
 0x45f   : > { %5866 = vmatprep.subr.mxu1 %v5558_v46  ;;  %v4629_v53 = vadd.f32 %v4373_v24, %v3829_v51  ;;  %v3157_v63 = vadd.f32 %v2901_v56, %v2357_v35  ;;  %v4501_v30 = vsel %vm4229_vm5, %v9126_v50, 0.0  ;;  %vm5029_vm0 = vcmp.eq.s32.totalorder %v11586_v37, %v9129_v20 }
 0x460   : > { %v1170_v59 = vsel %vm898_vm6, %v9018_v22, 0.0  ;;  %vm1698_vm1 = vcmp.eq.s32.totalorder %v11587_v61, %v9021_v11  ;;  %vm2498_vm2 = vcmp.eq.s32.totalorder %v11587_v61, %v9029_v0  ;;  %vm3298_vm3 = vcmp.eq.s32.totalorder %v11587_v61, %v9038_v12 }
 0x461   : > { %v5429_v15 = vadd.f32 %v5173_v5, %v4629_v53  ;;  %v3957_v4 = vadd.f32 %v3701_v13, %v3157_v63  ;;  %v1970_v47 = vsel %vm1698_vm1, %v9024_v31, 0.0  ;;  %v2770_v21 = vsel %vm2498_vm2, %v9032_v2, 0.0 }
 0x462   : > { %v5301_v34 = vsel %vm5029_vm0, %v9132_v18, 0.0  ;;  %v2226_v37 = vadd.f32 %v1970_v47, %v1170_v59  ;;  %v3570_v14 = vsel %vm3298_vm3, %v9041_v16, 0.0  ;;  %vm4098_vm4 = vcmp.eq.s32.totalorder %v11587_v61, %v9047_v19 }
 0x463   : > { %5796 = vmatpush2.msra.mxu0 %v5429_v15  ;;  %v4757_v29 = vadd.f32 %v4501_v30, %v3957_v4  ;;  %v4370_v44 = vsel %vm4098_vm4, %v9053_v33, 0.0  ;;  %vm4898_vm7 = vcmp.eq.s32.totalorder %v11587_v61, %v9059_v62  ;;  %vm1026_vm8 = vcmp.eq.s32.totalorder %v11588_v1, %v9015_v7 }
 0x464   : > { %v3026_v26 = vadd.f32 %v2770_v21, %v2226_v37  ;;  %v1298_v10 = vsel %vm1026_vm8, %v9018_v22, 0.0  ;;  %vm1826_vm9 = vcmp.eq.s32.totalorder %v11588_v1, %v9021_v11  ;;  %vm2626_vm10 = vcmp.eq.s32.totalorder %v11588_v1, %v9029_v0 }
 0x465   : > { %v5557_v48 = vadd.f32 %v5301_v34, %v4757_v29  ;;  %v2098_v42 = vsel %vm1826_vm9, %v9024_v31, 0.0  ;;  %v2898_v40 = vsel %vm2626_vm10, %v9032_v2, 0.0  ;;  %vm3426_vm11 = vcmp.eq.s32.totalorder %v11588_v1, %v9038_v12  ;;  %v11589_v29 = vld [vmem:[#allocation46_spill] sm:$0xff] }
 0x466   : > { %v3826_v41 = vadd.f32 %v3570_v14, %v3026_v26  ;;  %v5170_v57 = vsel %vm4898_vm7, %v9063_v55, 0.0  ;;  %v2354_v23 = vadd.f32 %v2098_v42, %v1298_v10  ;;  %vm4226_vm12 = vcmp.eq.s32.totalorder %v11588_v1, %v9047_v19 }
 0x467   : > { %5867 = vmatpush2.msra.mxu1 %v5557_v48  ;;  %v3698_v38 = vsel %vm3426_vm11, %v9041_v16, 0.0  ;;  %v4498_v32 = vsel %vm4226_vm12, %v9053_v33, 0.0  ;;  %vm897_vm13 = vcmp.eq.s32.totalorder %v11587_v61, %v9087_v45  ;;  %vm1697_vm14 = vcmp.eq.s32.totalorder %v11587_v61, %v9093_v36 }
 0x468   : > { %v4626_v52 = vadd.f32 %v4370_v44, %v3826_v41  ;;  %v3154_v60 = vadd.f32 %v2898_v40, %v2354_v23  ;;  %vm5026_vm15 = vcmp.eq.s32.totalorder %v11588_v1, %v9059_v62  ;;  %v1169_v24 = vsel %vm897_vm13, %v9090_v58, 0.0 }
 0x469   : > { %v1969_v28 = vsel %vm1697_vm14, %v9096_v49, 0.0  ;;  %vm2497_vm5 = vcmp.eq.s32.totalorder %v11587_v61, %v9099_v8  ;;  %vm3297_vm6 = vcmp.eq.s32.totalorder %v11587_v61, %v9109_v25  ;;  %vm4097_vm0 = vcmp.eq.s32.totalorder %v11587_v61, %v9123_v54 }
 0x46a   : > { %v5426_v6 = vadd.f32 %v5170_v57, %v4626_v52  ;;  %v3954_v46 = vadd.f32 %v3698_v38, %v3154_v60  ;;  %v2225_v51 = vadd.f32 %v1969_v28, %v1169_v24  ;;  %v2769_v35 = vsel %vm2497_vm5, %v9102_v17, 0.0 }
 0x46b   : > { %v5298_v56 = vsel %vm5026_vm15, %v9063_v55, 0.0  ;;  %v3569_v5 = vsel %vm3297_vm6, %v9116_v9, 0.0  ;;  %v4369_v13 = vsel %vm4097_vm0, %v9126_v50, 0.0  ;;  %vm1025_vm1 = vcmp.eq.s32.totalorder %v11588_v1, %v9087_v45 }
 0x46c   : > { %5797 = vmatprep.subr.mxu0 %v5426_v6  ;;  %v4754_v53 = vadd.f32 %v4498_v32, %v3954_v46  ;;  %v3025_v63 = vadd.f32 %v2769_v35, %v2225_v51  ;;  %vm4897_vm2 = vcmp.eq.s32.totalorder %v11587_v61, %v9129_v20  ;;  %v1297_v30 = vsel %vm1025_vm1, %v9090_v58, 0.0  ;;  %v11590_v32 = vld [vmem:[#allocation47_spill] sm:$0xff] }
 0x46d   : > { %vm1825_vm3 = vcmp.eq.s32.totalorder %v11588_v1, %v9093_v36  ;;  %vm2625_vm4 = vcmp.eq.s32.totalorder %v11588_v1, %v9099_v8  ;;  %vm3425_vm7 = vcmp.eq.s32.totalorder %v11588_v1, %v9109_v25  ;;  %vm4225_vm8 = vcmp.eq.s32.totalorder %v11588_v1, %v9123_v54 }
 0x46e   : > { %v5554_v59 = vadd.f32 %v5298_v56, %v4754_v53  ;;  %v3825_v15 = vadd.f32 %v3569_v5, %v3025_v63  ;;  %v2097_v4 = vsel %vm1825_vm3, %v9096_v49, 0.0  ;;  %v2897_v61 = vsel %vm2625_vm4, %v9102_v17, 0.0 }
 0x46f   : > { %v5169_v47 = vsel %vm4897_vm2, %v9132_v18, 0.0  ;;  %v2353_v21 = vadd.f32 %v2097_v4, %v1297_v30  ;;  %v3697_v34 = vsel %vm3425_vm7, %v9116_v9, 0.0  ;;  %v4497_v37 = vsel %vm4225_vm8, %v9126_v50, 0.0 }
 0x470   : > { %5868 = vmatprep.subr.mxu1 %v5554_v59  ;;  %v4625_v14 = vadd.f32 %v4369_v13, %v3825_v15  ;;  %vm5025_vm9 = vcmp.eq.s32.totalorder %v11588_v1, %v9129_v20  ;;  %vm894_vm10 = vcmp.eq.s32.totalorder %v11589_v29, %v9015_v7  ;;  %vm1694_vm11 = vcmp.eq.s32.totalorder %v11589_v29, %v9021_v11 }
 0x471   : > { %v3153_v44 = vadd.f32 %v2897_v61, %v2353_v21  ;;  %v1166_v26 = vsel %vm894_vm10, %v9018_v22, 0.0  ;;  %v1966_v10 = vsel %vm1694_vm11, %v9024_v31, 0.0  ;;  %vm2494_vm12 = vcmp.eq.s32.totalorder %v11589_v29, %v9029_v0 }
 0x472   : > { %v5425_v48 = vadd.f32 %v5169_v47, %v4625_v14  ;;  %v2222_v42 = vadd.f32 %v1966_v10, %v1166_v26  ;;  %v2766_v40 = vsel %vm2494_vm12, %v9032_v2, 0.0  ;;  %vm3294_vm13 = vcmp.eq.s32.totalorder %v11589_v29, %v9038_v12 }
 0x473   : > { %v3953_v1 = vadd.f32 %v3697_v34, %v3153_v44  ;;  %v5297_v41 = vsel %vm5025_vm9, %v9132_v18, 0.0  ;;  %v3566_v57 = vsel %vm3294_vm13, %v9041_v16, 0.0  ;;  %vm4094_vm14 = vcmp.eq.s32.totalorder %v11589_v29, %v9047_v19 }
 0x474   : > { %5798 = vmatpush2.msra.mxu0 %v5425_v48  ;;  %v3022_v23 = vadd.f32 %v2766_v40, %v2222_v42  ;;  %v4366_v38 = vsel %vm4094_vm14, %v9053_v33, 0.0  ;;  %vm4894_vm15 = vcmp.eq.s32.totalorder %v11589_v29, %v9059_v62  ;;  %vm1022_vm5 = vcmp.eq.s32.totalorder %v11590_v32, %v9015_v7 }
 0x475   : > { %v4753_v52 = vadd.f32 %v4497_v37, %v3953_v1  ;;  %v1294_v60 = vsel %vm1022_vm5, %v9018_v22, 0.0  ;;  %vm1822_vm6 = vcmp.eq.s32.totalorder %v11590_v32, %v9021_v11  ;;  %vm2622_vm0 = vcmp.eq.s32.totalorder %v11590_v32, %v9029_v0 }
 0x476   : > { %v3822_v24 = vadd.f32 %v3566_v57, %v3022_v23  ;;  %v2094_v28 = vsel %vm1822_vm6, %v9024_v31, 0.0  ;;  %v2894_v6 = vsel %vm2622_vm0, %v9032_v2, 0.0  ;;  %vm3422_vm1 = vcmp.eq.s32.totalorder %v11590_v32, %v9038_v12 }
 0x477   : > { %v5553_v46 = vadd.f32 %v5297_v41, %v4753_v52  ;;  %v5166_v51 = vsel %vm4894_vm15, %v9063_v55, 0.0  ;;  %v2350_v35 = vadd.f32 %v2094_v28, %v1294_v60  ;;  %vm4222_vm2 = vcmp.eq.s32.totalorder %v11590_v32, %v9047_v19 }
 0x478   : > { %v4622_v56 = vadd.f32 %v4366_v38, %v3822_v24  ;;  %v3694_v5 = vsel %vm3422_vm1, %v9041_v16, 0.0  ;;  %vm5022_vm3 = vcmp.eq.s32.totalorder %v11590_v32, %v9059_v62  ;;  %vm893_vm4 = vcmp.eq.s32.totalorder %v11589_v29, %v9087_v45 }
 0x479   : > { %5869 = vmatpush2.msra.mxu1 %v5553_v46  ;;  %v3150_v13 = vadd.f32 %v2894_v6, %v2350_v35  ;;  %v4494_v53 = vsel %vm4222_vm2, %v9053_v33, 0.0  ;;  %v1165_v63 = vsel %vm893_vm4, %v9090_v58, 0.0  ;;  %vm1693_vm7 = vcmp.eq.s32.totalorder %v11589_v29, %v9093_v36 }
 0x47a   : > { %v5422_v30 = vadd.f32 %v5166_v51, %v4622_v56  ;;  %v1965_v59 = vsel %vm1693_vm7, %v9096_v49, 0.0  ;;  %vm2493_vm8 = vcmp.eq.s32.totalorder %v11589_v29, %v9099_v8  ;;  %vm3293_vm9 = vcmp.eq.s32.totalorder %v11589_v29, %v9109_v25 }
 0x47b   : > { %v3950_v15 = vadd.f32 %v3694_v5, %v3150_v13  ;;  %v5294_v4 = vsel %vm5022_vm3, %v9063_v55, 0.0  ;;  %v2221_v61 = vadd.f32 %v1965_v59, %v1165_v63  ;;  %v2765_v47 = vsel %vm2493_vm8, %v9102_v17, 0.0  ;;  %v11592_v5 = vld [vmem:[#allocation49_spill] sm:$0xff] }
 0x47c   : > { %5799 = vmatprep.subr.mxu0 %v5422_v30  ;;  %v3565_v21 = vsel %vm3293_vm9, %v9116_v9, 0.0  ;;  %vm4093_vm10 = vcmp.eq.s32.totalorder %v11589_v29, %v9123_v54  ;;  %vm1021_vm11 = vcmp.eq.s32.totalorder %v11590_v32, %v9087_v45  ;;  %vm1821_vm12 = vcmp.eq.s32.totalorder %v11590_v32, %v9093_v36 }
 0x47d   : > { %v4750_v34 = vadd.f32 %v4494_v53, %v3950_v15  ;;  %v3021_v37 = vadd.f32 %v2765_v47, %v2221_v61  ;;  %v4365_v14 = vsel %vm4093_vm10, %v9126_v50, 0.0  ;;  %vm4893_vm13 = vcmp.eq.s32.totalorder %v11589_v29, %v9129_v20  ;;  %v11591_v29 = vld [vmem:[#allocation48_spill] sm:$0xff] }
 0x47e   : > { %v1293_v44 = vsel %vm1021_vm11, %v9090_v58, 0.0  ;;  %v2093_v26 = vsel %vm1821_vm12, %v9096_v49, 0.0  ;;  %vm2621_vm14 = vcmp.eq.s32.totalorder %v11590_v32, %v9099_v8  ;;  %vm3421_vm15 = vcmp.eq.s32.totalorder %v11590_v32, %v9109_v25 }
 0x47f   : > { %v5550_v10 = vadd.f32 %v5294_v4, %v4750_v34  ;;  %v3821_v48 = vadd.f32 %v3565_v21, %v3021_v37  ;;  %v2349_v42 = vadd.f32 %v2093_v26, %v1293_v44  ;;  %v2893_v40 = vsel %vm2621_vm14, %v9102_v17, 0.0 }
 0x480   : > { %v5165_v1 = vsel %vm4893_vm13, %v9132_v18, 0.0  ;;  %v3693_v41 = vsel %vm3421_vm15, %v9116_v9, 0.0  ;;  %vm4221_vm5 = vcmp.eq.s32.totalorder %v11590_v32, %v9123_v54  ;;  %vm890_vm6 = vcmp.eq.s32.totalorder %v11591_v29, %v9015_v7 }
 0x481   : > { %5870 = vmatprep.subr.mxu1 %v5550_v10  ;;  %v4621_v57 = vadd.f32 %v4365_v14, %v3821_v48  ;;  %v3149_v23 = vadd.f32 %v2893_v40, %v2349_v42  ;;  %v4493_v38 = vsel %vm4221_vm5, %v9126_v50, 0.0  ;;  %vm5021_vm0 = vcmp.eq.s32.totalorder %v11590_v32, %v9129_v20 }
 0x482   : > { %v1162_v52 = vsel %vm890_vm6, %v9018_v22, 0.0  ;;  %vm1690_vm1 = vcmp.eq.s32.totalorder %v11591_v29, %v9021_v11  ;;  %vm2490_vm2 = vcmp.eq.s32.totalorder %v11591_v29, %v9029_v0  ;;  %vm3290_vm3 = vcmp.eq.s32.totalorder %v11591_v29, %v9038_v12 }
 0x483   : > { %v5421_v60 = vadd.f32 %v5165_v1, %v4621_v57  ;;  %v3949_v24 = vadd.f32 %v3693_v41, %v3149_v23  ;;  %v1962_v28 = vsel %vm1690_vm1, %v9024_v31, 0.0  ;;  %v2762_v6 = vsel %vm2490_vm2, %v9032_v2, 0.0 }
 0x484   : > { %v5293_v46 = vsel %vm5021_vm0, %v9132_v18, 0.0  ;;  %v2218_v32 = vadd.f32 %v1962_v28, %v1162_v52  ;;  %v3562_v51 = vsel %vm3290_vm3, %v9041_v16, 0.0  ;;  %vm4090_vm4 = vcmp.eq.s32.totalorder %v11591_v29, %v9047_v19 }
 0x485   : > { %5800 = vmatpush2.msra.mxu0 %v5421_v60  ;;  %v4749_v35 = vadd.f32 %v4493_v38, %v3949_v24  ;;  %v4362_v56 = vsel %vm4090_vm4, %v9053_v33, 0.0  ;;  %vm4890_vm7 = vcmp.eq.s32.totalorder %v11591_v29, %v9059_v62  ;;  %vm1018_vm8 = vcmp.eq.s32.totalorder %v11592_v5, %v9015_v7 }
 0x486   : > { %v3018_v13 = vadd.f32 %v2762_v6, %v2218_v32  ;;  %v1290_v53 = vsel %vm1018_vm8, %v9018_v22, 0.0  ;;  %vm1818_vm9 = vcmp.eq.s32.totalorder %v11592_v5, %v9021_v11  ;;  %vm2618_vm10 = vcmp.eq.s32.totalorder %v11592_v5, %v9029_v0 }
 0x487   : > { %v5549_v63 = vadd.f32 %v5293_v46, %v4749_v35  ;;  %v2090_v30 = vsel %vm1818_vm9, %v9024_v31, 0.0  ;;  %v2890_v59 = vsel %vm2618_vm10, %v9032_v2, 0.0  ;;  %vm3418_vm11 = vcmp.eq.s32.totalorder %v11592_v5, %v9038_v12  ;;  %v11593_v35 = vld [vmem:[#allocation50_spill] sm:$0xff] }
 0x488   : > { %v3818_v15 = vadd.f32 %v3562_v51, %v3018_v13  ;;  %v5162_v4 = vsel %vm4890_vm7, %v9063_v55, 0.0  ;;  %v2346_v61 = vadd.f32 %v2090_v30, %v1290_v53  ;;  %vm4218_vm12 = vcmp.eq.s32.totalorder %v11592_v5, %v9047_v19 }
 0x489   : > { %5871 = vmatpush2.msra.mxu1 %v5549_v63  ;;  %v3690_v47 = vsel %vm3418_vm11, %v9041_v16, 0.0  ;;  %v4490_v21 = vsel %vm4218_vm12, %v9053_v33, 0.0  ;;  %vm889_vm13 = vcmp.eq.s32.totalorder %v11591_v29, %v9087_v45  ;;  %vm1689_vm14 = vcmp.eq.s32.totalorder %v11591_v29, %v9093_v36 }
 0x48a   : > { %v4618_v34 = vadd.f32 %v4362_v56, %v3818_v15  ;;  %v3146_v37 = vadd.f32 %v2890_v59, %v2346_v61  ;;  %vm5018_vm15 = vcmp.eq.s32.totalorder %v11592_v5, %v9059_v62  ;;  %v1161_v14 = vsel %vm889_vm13, %v9090_v58, 0.0 }
 0x48b   : > { %v1961_v44 = vsel %vm1689_vm14, %v9096_v49, 0.0  ;;  %vm2489_vm5 = vcmp.eq.s32.totalorder %v11591_v29, %v9099_v8  ;;  %vm3289_vm6 = vcmp.eq.s32.totalorder %v11591_v29, %v9109_v25  ;;  %vm4089_vm0 = vcmp.eq.s32.totalorder %v11591_v29, %v9123_v54 }
 0x48c   : > { %v5418_v26 = vadd.f32 %v5162_v4, %v4618_v34  ;;  %v3946_v10 = vadd.f32 %v3690_v47, %v3146_v37  ;;  %v2217_v48 = vadd.f32 %v1961_v44, %v1161_v14  ;;  %v2761_v42 = vsel %vm2489_vm5, %v9102_v17, 0.0 }
 0x48d   : > { %v5290_v40 = vsel %vm5018_vm15, %v9063_v55, 0.0  ;;  %v3561_v1 = vsel %vm3289_vm6, %v9116_v9, 0.0  ;;  %v4361_v41 = vsel %vm4089_vm0, %v9126_v50, 0.0  ;;  %vm1017_vm1 = vcmp.eq.s32.totalorder %v11592_v5, %v9087_v45 }
 0x48e   : > { %5801 = vmatprep.subr.mxu0 %v5418_v26  ;;  %v4746_v57 = vadd.f32 %v4490_v21, %v3946_v10  ;;  %v3017_v23 = vadd.f32 %v2761_v42, %v2217_v48  ;;  %vm4889_vm2 = vcmp.eq.s32.totalorder %v11591_v29, %v9129_v20  ;;  %v1289_v38 = vsel %vm1017_vm1, %v9090_v58, 0.0  ;;  %v11594_v21 = vld [vmem:[#allocation51_spill] sm:$0xff] }
 0x48f   : > { %vm1817_vm3 = vcmp.eq.s32.totalorder %v11592_v5, %v9093_v36  ;;  %vm2617_vm4 = vcmp.eq.s32.totalorder %v11592_v5, %v9099_v8  ;;  %vm3417_vm7 = vcmp.eq.s32.totalorder %v11592_v5, %v9109_v25  ;;  %vm4217_vm8 = vcmp.eq.s32.totalorder %v11592_v5, %v9123_v54 }
 0x490   : > { %v5546_v52 = vadd.f32 %v5290_v40, %v4746_v57  ;;  %v3817_v60 = vadd.f32 %v3561_v1, %v3017_v23  ;;  %v2089_v24 = vsel %vm1817_vm3, %v9096_v49, 0.0  ;;  %v2889_v29 = vsel %vm2617_vm4, %v9102_v17, 0.0 }
 0x491   : > { %v5161_v28 = vsel %vm4889_vm2, %v9132_v18, 0.0  ;;  %v2345_v6 = vadd.f32 %v2089_v24, %v1289_v38  ;;  %v3689_v46 = vsel %vm3417_vm7, %v9116_v9, 0.0  ;;  %v4489_v32 = vsel %vm4217_vm8, %v9126_v50, 0.0 }
 0x492   : > { %5872 = vmatprep.subr.mxu1 %v5546_v52  ;;  %v4617_v51 = vadd.f32 %v4361_v41, %v3817_v60  ;;  %vm5017_vm9 = vcmp.eq.s32.totalorder %v11592_v5, %v9129_v20  ;;  %vm886_vm10 = vcmp.eq.s32.totalorder %v11593_v35, %v9015_v7  ;;  %vm1686_vm11 = vcmp.eq.s32.totalorder %v11593_v35, %v9021_v11 }
 0x493   : > { %v3145_v56 = vadd.f32 %v2889_v29, %v2345_v6  ;;  %v1158_v13 = vsel %vm886_vm10, %v9018_v22, 0.0  ;;  %v1958_v53 = vsel %vm1686_vm11, %v9024_v31, 0.0  ;;  %vm2486_vm12 = vcmp.eq.s32.totalorder %v11593_v35, %v9029_v0 }
 0x494   : > { %v5417_v63 = vadd.f32 %v5161_v28, %v4617_v51  ;;  %v2214_v30 = vadd.f32 %v1958_v53, %v1158_v13  ;;  %v2758_v59 = vsel %vm2486_vm12, %v9032_v2, 0.0  ;;  %vm3286_vm13 = vcmp.eq.s32.totalorder %v11593_v35, %v9038_v12 }
 0x495   : > { %v3945_v5 = vadd.f32 %v3689_v46, %v3145_v56  ;;  %v5289_v15 = vsel %vm5017_vm9, %v9132_v18, 0.0  ;;  %v3558_v4 = vsel %vm3286_vm13, %v9041_v16, 0.0  ;;  %vm4086_vm14 = vcmp.eq.s32.totalorder %v11593_v35, %v9047_v19 }
 0x496   : > { %5802 = vmatpush2.msra.mxu0 %v5417_v63  ;;  %v3014_v61 = vadd.f32 %v2758_v59, %v2214_v30  ;;  %v4358_v47 = vsel %vm4086_vm14, %v9053_v33, 0.0  ;;  %vm4886_vm15 = vcmp.eq.s32.totalorder %v11593_v35, %v9059_v62  ;;  %vm1014_vm5 = vcmp.eq.s32.totalorder %v11594_v21, %v9015_v7 }
 0x497   : > { %v4745_v34 = vadd.f32 %v4489_v32, %v3945_v5  ;;  %v1286_v37 = vsel %vm1014_vm5, %v9018_v22, 0.0  ;;  %vm1814_vm6 = vcmp.eq.s32.totalorder %v11594_v21, %v9021_v11  ;;  %vm2614_vm0 = vcmp.eq.s32.totalorder %v11594_v21, %v9029_v0 }
 0x498   : > { %v3814_v14 = vadd.f32 %v3558_v4, %v3014_v61  ;;  %v2086_v44 = vsel %vm1814_vm6, %v9024_v31, 0.0  ;;  %v2886_v26 = vsel %vm2614_vm0, %v9032_v2, 0.0  ;;  %vm3414_vm1 = vcmp.eq.s32.totalorder %v11594_v21, %v9038_v12 }
 0x499   : > { %v5545_v10 = vadd.f32 %v5289_v15, %v4745_v34  ;;  %v5158_v48 = vsel %vm4886_vm15, %v9063_v55, 0.0  ;;  %v2342_v42 = vadd.f32 %v2086_v44, %v1286_v37  ;;  %vm4214_vm2 = vcmp.eq.s32.totalorder %v11594_v21, %v9047_v19 }
 0x49a   : > { %v4614_v40 = vadd.f32 %v4358_v47, %v3814_v14  ;;  %v3686_v1 = vsel %vm3414_vm1, %v9041_v16, 0.0  ;;  %vm5014_vm3 = vcmp.eq.s32.totalorder %v11594_v21, %v9059_v62  ;;  %vm885_vm4 = vcmp.eq.s32.totalorder %v11593_v35, %v9087_v45 }
 0x49b   : > { %5873 = vmatpush2.msra.mxu1 %v5545_v10  ;;  %v3142_v41 = vadd.f32 %v2886_v26, %v2342_v42  ;;  %v4486_v57 = vsel %vm4214_vm2, %v9053_v33, 0.0  ;;  %v1157_v23 = vsel %vm885_vm4, %v9090_v58, 0.0  ;;  %vm1685_vm7 = vcmp.eq.s32.totalorder %v11593_v35, %v9093_v36 }
 0x49c   : > { %v5414_v38 = vadd.f32 %v5158_v48, %v4614_v40  ;;  %v1957_v52 = vsel %vm1685_vm7, %v9096_v49, 0.0  ;;  %vm2485_vm8 = vcmp.eq.s32.totalorder %v11593_v35, %v9099_v8  ;;  %vm3285_vm9 = vcmp.eq.s32.totalorder %v11593_v35, %v9109_v25 }
 0x49d   : > { %v3942_v60 = vadd.f32 %v3686_v1, %v3142_v41  ;;  %v5286_v24 = vsel %vm5014_vm3, %v9063_v55, 0.0  ;;  %v2213_v29 = vadd.f32 %v1957_v52, %v1157_v23  ;;  %v2757_v28 = vsel %vm2485_vm8, %v9102_v17, 0.0 }
 0x49e   : > { %5803 = vmatprep.subr.mxu0 %v5414_v38  ;;  %v3557_v6 = vsel %vm3285_vm9, %v9116_v9, 0.0  ;;  %vm4085_vm10 = vcmp.eq.s32.totalorder %v11593_v35, %v9123_v54  ;;  %vm1013_vm11 = vcmp.eq.s32.totalorder %v11594_v21, %v9087_v45  ;;  %vm1813_vm12 = vcmp.eq.s32.totalorder %v11594_v21, %v9093_v36 }
 0x49f   : > { %v4742_v46 = vadd.f32 %v4486_v57, %v3942_v60  ;;  %v3013_v32 = vadd.f32 %v2757_v28, %v2213_v29  ;;  %v4357_v51 = vsel %vm4085_vm10, %v9126_v50, 0.0  ;;  %vm4885_vm13 = vcmp.eq.s32.totalorder %v11593_v35, %v9129_v20 }
 0x4a0   : > { %v1285_v56 = vsel %vm1013_vm11, %v9090_v58, 0.0  ;;  %v2085_v13 = vsel %vm1813_vm12, %v9096_v49, 0.0  ;;  %vm2613_vm14 = vcmp.eq.s32.totalorder %v11594_v21, %v9099_v8  ;;  %vm3413_vm15 = vcmp.eq.s32.totalorder %v11594_v21, %v9109_v25 }
 0x4a1   : > { %v5542_v53 = vadd.f32 %v5286_v24, %v4742_v46  ;;  %v3813_v63 = vadd.f32 %v3557_v6, %v3013_v32  ;;  %v2341_v30 = vadd.f32 %v2085_v13, %v1285_v56  ;;  %v2885_v59 = vsel %vm2613_vm14, %v9102_v17, 0.0 }
 0x4a2   : > { %v5157_v5 = vsel %vm4885_vm13, %v9132_v18, 0.0  ;;  %v3685_v15 = vsel %vm3413_vm15, %v9116_v9, 0.0  ;;  %vm4213_vm5 = vcmp.eq.s32.totalorder %v11594_v21, %v9123_v54  ;;  %vm882_vm6 = vcmp.eq.s32.totalorder %v8850_v27, %v9015_v7 }
 0x4a3   : > { %5874 = vmatprep.subr.mxu1 %v5542_v53  ;;  %v4613_v35 = vadd.f32 %v4357_v51, %v3813_v63  ;;  %v3141_v4 = vadd.f32 %v2885_v59, %v2341_v30  ;;  %v4485_v61 = vsel %vm4213_vm5, %v9126_v50, 0.0  ;;  %vm5013_vm0 = vcmp.eq.s32.totalorder %v11594_v21, %v9129_v20 }
 0x4a4   : > { %v1154_v47 = vsel %vm882_vm6, %v9018_v22, 0.0  ;;  %vm1682_vm1 = vcmp.eq.s32.totalorder %v8850_v27, %v9021_v11  ;;  %vm2482_vm2 = vcmp.eq.s32.totalorder %v8850_v27, %v9029_v0  ;;  %vm3282_vm3 = vcmp.eq.s32.totalorder %v8850_v27, %v9038_v12 }
 0x4a5   : > { %v5413_v34 = vadd.f32 %v5157_v5, %v4613_v35  ;;  %v3941_v37 = vadd.f32 %v3685_v15, %v3141_v4  ;;  %v1954_v14 = vsel %vm1682_vm1, %v9024_v31, 0.0  ;;  %v2754_v44 = vsel %vm2482_vm2, %v9032_v2, 0.0 }
 0x4a6   : > { %v5285_v26 = vsel %vm5013_vm0, %v9132_v18, 0.0  ;;  %v2210_v21 = vadd.f32 %v1954_v14, %v1154_v47  ;;  %v3554_v10 = vsel %vm3282_vm3, %v9041_v16, 0.0  ;;  %vm4082_vm4 = vcmp.eq.s32.totalorder %v8850_v27, %v9047_v19 }
 0x4a7   : > { %5804 = vmatpush2.msra.mxu0 %v5413_v34  ;;  %v4741_v48 = vadd.f32 %v4485_v61, %v3941_v37  ;;  %v4354_v42 = vsel %vm4082_vm4, %v9053_v33, 0.0  ;;  %vm4882_vm7 = vcmp.eq.s32.totalorder %v8850_v27, %v9059_v62  ;;  %vm1010_vm8 = vcmp.eq.s32.totalorder %v8854_v39, %v9015_v7 }
 0x4a8   : > { %v3010_v40 = vadd.f32 %v2754_v44, %v2210_v21  ;;  %v1282_v1 = vsel %vm1010_vm8, %v9018_v22, 0.0  ;;  %vm1810_vm9 = vcmp.eq.s32.totalorder %v8854_v39, %v9021_v11  ;;  %vm2610_vm10 = vcmp.eq.s32.totalorder %v8854_v39, %v9029_v0 }
 0x4a9   : > { %v5541_v41 = vadd.f32 %v5285_v26, %v4741_v48  ;;  %v2082_v57 = vsel %vm1810_vm9, %v9024_v31, 0.0  ;;  %v2882_v23 = vsel %vm2610_vm10, %v9032_v2, 0.0  ;;  %vm3410_vm11 = vcmp.eq.s32.totalorder %v8854_v39, %v9038_v12 }
 0x4aa   : > { %v3810_v38 = vadd.f32 %v3554_v10, %v3010_v40  ;;  %v5154_v52 = vsel %vm4882_vm7, %v9063_v55, 0.0  ;;  %v2338_v60 = vadd.f32 %v2082_v57, %v1282_v1  ;;  %vm4210_vm12 = vcmp.eq.s32.totalorder %v8854_v39, %v9047_v19 }
 0x4ab   : > { %5875 = vmatpush2.msra.mxu1 %v5541_v41  ;;  %v3682_v24 = vsel %vm3410_vm11, %v9041_v16, 0.0  ;;  %v4482_v29 = vsel %vm4210_vm12, %v9053_v33, 0.0  ;;  %vm881_vm13 = vcmp.eq.s32.totalorder %v8850_v27, %v9087_v45  ;;  %vm1681_vm14 = vcmp.eq.s32.totalorder %v8850_v27, %v9093_v36 }
 0x4ac   : > { %v4610_v28 = vadd.f32 %v4354_v42, %v3810_v38  ;;  %v3138_v6 = vadd.f32 %v2882_v23, %v2338_v60  ;;  %vm5010_vm15 = vcmp.eq.s32.totalorder %v8854_v39, %v9059_v62  ;;  %v1153_v46 = vsel %vm881_vm13, %v9090_v58, 0.0 }
 0x4ad   : > { %v1953_v32 = vsel %vm1681_vm14, %v9096_v49, 0.0  ;;  %vm2481_vm5 = vcmp.eq.s32.totalorder %v8850_v27, %v9099_v8  ;;  %vm3281_vm6 = vcmp.eq.s32.totalorder %v8850_v27, %v9109_v25  ;;  %vm4081_vm0 = vcmp.eq.s32.totalorder %v8850_v27, %v9123_v54 }
 0x4ae   : > { %v5410_v51 = vadd.f32 %v5154_v52, %v4610_v28  ;;  %v3938_v56 = vadd.f32 %v3682_v24, %v3138_v6  ;;  %v2209_v13 = vadd.f32 %v1953_v32, %v1153_v46  ;;  %v2753_v53 = vsel %vm2481_vm5, %v9102_v17, 0.0 }
 0x4af   : > { %v5282_v63 = vsel %vm5010_vm15, %v9063_v55, 0.0  ;;  %v3553_v30 = vsel %vm3281_vm6, %v9116_v9, 0.0  ;;  %v4353_v59 = vsel %vm4081_vm0, %v9126_v50, 0.0  ;;  %vm1009_vm1 = vcmp.eq.s32.totalorder %v8854_v39, %v9087_v45 }
 0x4b0   : > { %5805 = vmatprep.subr.mxu0 %v5410_v51  ;;  %v4738_v5 = vadd.f32 %v4482_v29, %v3938_v56  ;;  %v3009_v15 = vadd.f32 %v2753_v53, %v2209_v13  ;;  %vm4881_vm2 = vcmp.eq.s32.totalorder %v8850_v27, %v9129_v20  ;;  %v1281_v35 = vsel %vm1009_vm1, %v9090_v58, 0.0  ;;  %v5669_v51 = vpop.f32.mrf.mxu0  ;;  %v5740_v56 = vpop.f32.mrf.mxu1 }
 0x4b1   : > { %vm1809_vm3 = vcmp.eq.s32.totalorder %v8854_v39, %v9093_v36  ;;  %vm2609_vm4 = vcmp.eq.s32.totalorder %v8854_v39, %v9099_v8  ;;  %vm3409_vm7 = vcmp.eq.s32.totalorder %v8854_v39, %v9109_v25  ;;  %vm4209_vm8 = vcmp.eq.s32.totalorder %v8854_v39, %v9123_v54 }
 0x4b2   : > { %v5538_v4 = vadd.f32 %v5282_v63, %v4738_v5  ;;  %v3809_v61 = vadd.f32 %v3553_v30, %v3009_v15  ;;  %v2081_v47 = vsel %vm1809_vm3, %v9096_v49, 0.0  ;;  %v2881_v27 = vsel %vm2609_vm4, %v9102_v17, 0.0 }
 0x4b3   : > { %v5153_v34 = vsel %vm4881_vm2, %v9132_v18, 0.0  ;;  %v2337_v37 = vadd.f32 %v2081_v47, %v1281_v35  ;;  %v3681_v14 = vsel %vm3409_vm7, %v9116_v9, 0.0  ;;  %v4481_v44 = vsel %vm4209_vm8, %v9126_v50, 0.0  ;;  %v5671_v35 = vpop.f32.mrf.mxu0 }
 0x4b4   : > { %5876 = vmatprep.subr.mxu1 %v5538_v4  ;;  %v4609_v26 = vadd.f32 %v4353_v59, %v3809_v61  ;;  %vm5009_vm9 = vcmp.eq.s32.totalorder %v8854_v39, %v9129_v20  ;;  %vm878_vm10 = vcmp.eq.s32.totalorder %v8857_v43, %v9015_v7  ;;  %vm1678_vm11 = vcmp.eq.s32.totalorder %v8857_v43, %v9021_v11  ;;  %v5742_v4 = vpop.f32.mrf.mxu1 }
 0x4b5   : > { %v3137_v21 = vadd.f32 %v2881_v27, %v2337_v37  ;;  %v1150_v10 = vsel %vm878_vm10, %v9018_v22, 0.0  ;;  %v1950_v48 = vsel %vm1678_vm11, %v9024_v31, 0.0  ;;  %vm2478_vm12 = vcmp.eq.s32.totalorder %v8857_v43, %v9029_v0 }
 0x4b6   : > { %v5409_v42 = vadd.f32 %v5153_v34, %v4609_v26  ;;  %v2206_v40 = vadd.f32 %v1950_v48, %v1150_v10  ;;  %v2750_v1 = vsel %vm2478_vm12, %v9032_v2, 0.0  ;;  %vm3278_vm13 = vcmp.eq.s32.totalorder %v8857_v43, %v9038_v12  ;;  %v5595_v34 = vld [vmem:[%s6205_s11] sm:$0xff] }
 0x4b7   : > { %v3937_v39 = vadd.f32 %v3681_v14, %v3137_v21  ;;  %v5281_v41 = vsel %vm5009_vm9, %v9132_v18, 0.0  ;;  %v3550_v57 = vsel %vm3278_vm13, %v9041_v16, 0.0  ;;  %vm4078_vm14 = vcmp.eq.s32.totalorder %v8857_v43, %v9047_v19  ;;  %v6083_v14 = vld [vmem:[%s6197_s29] sm:$0xff] }
 0x4b8   : > { %5806 = vmatpush2.msra.mxu0 %v5409_v42  ;;  %v3006_v23 = vadd.f32 %v2750_v1, %v2206_v40  ;;  %v4350_v38 = vsel %vm4078_vm14, %v9053_v33, 0.0  ;;  %vm4878_vm15 = vcmp.eq.s32.totalorder %v8857_v43, %v9059_v62  ;;  %vm1006_vm5 = vcmp.eq.s32.totalorder %v8949_v3, %v9015_v7 }
 0x4b9   : > { %v4737_v52 = vadd.f32 %v4481_v44, %v3937_v39  ;;  %v1278_v60 = vsel %vm1006_vm5, %v9018_v22, 0.0  ;;  %vm1806_vm6 = vcmp.eq.s32.totalorder %v8949_v3, %v9021_v11  ;;  %vm2606_vm0 = vcmp.eq.s32.totalorder %v8949_v3, %v9029_v0 }
 0x4ba   : > { %v3806_v24 = vadd.f32 %v3550_v57, %v3006_v23  ;;  %v2078_v29 = vsel %vm1806_vm6, %v9024_v31, 0.0  ;;  %v2878_v28 = vsel %vm2606_vm0, %v9032_v2, 0.0  ;;  %vm3406_vm1 = vcmp.eq.s32.totalorder %v8949_v3, %v9038_v12 }
 0x4bb   : > { %v5537_v6 = vadd.f32 %v5281_v41, %v4737_v52  ;;  %v5150_v7 = vsel %vm4878_vm15, %v9063_v55, 0.0  ;;  %v2334_v46 = vadd.f32 %v2078_v29, %v1278_v60  ;;  %vm4206_vm2 = vcmp.eq.s32.totalorder %v8949_v3, %v9047_v19 }
 0x4bc   : > { %v4606_v22 = vadd.f32 %v4350_v38, %v3806_v24  ;;  %v3678_v11 = vsel %vm3406_vm1, %v9041_v16, 0.0  ;;  %vm5006_vm3 = vcmp.eq.s32.totalorder %v8949_v3, %v9059_v62  ;;  %vm877_vm4 = vcmp.eq.s32.totalorder %v8857_v43, %v9087_v45 }
 0x4bd   : > { %5877 = vmatpush2.msra.mxu1 %v5537_v6  ;;  %v3134_v31 = vadd.f32 %v2878_v28, %v2334_v46  ;;  %v4478_v0 = vsel %vm4206_vm2, %v9053_v33, 0.0  ;;  %v1149_v2 = vsel %vm877_vm4, %v9090_v58, 0.0  ;;  %vm1677_vm7 = vcmp.eq.s32.totalorder %v8857_v43, %v9093_v36 }
 0x4be   : > { %v5406_v12 = vadd.f32 %v5150_v7, %v4606_v22  ;;  %v1949_v19 = vsel %vm1677_vm7, %v9096_v49, 0.0  ;;  %vm2477_vm8 = vcmp.eq.s32.totalorder %v8857_v43, %v9099_v8  ;;  %vm3277_vm9 = vcmp.eq.s32.totalorder %v8857_v43, %v9109_v25 }
 0x4bf   : > { %v3934_v16 = vadd.f32 %v3678_v11, %v3134_v31  ;;  %v5278_v62 = vsel %vm5006_vm3, %v9063_v55, 0.0  ;;  %v2205_v32 = vadd.f32 %v1949_v19, %v1149_v2  ;;  %v2749_v33 = vsel %vm2477_vm8, %v9102_v17, 0.0 }
 0x4c0   : > { %5807 = vmatprep.subr.mxu0 %v5406_v12  ;;  %v3549_v13 = vsel %vm3277_vm9, %v9116_v9, 0.0  ;;  %vm4077_vm10 = vcmp.eq.s32.totalorder %v8857_v43, %v9123_v54  ;;  %vm1005_vm11 = vcmp.eq.s32.totalorder %v8949_v3, %v9087_v45  ;;  %vm1805_vm12 = vcmp.eq.s32.totalorder %v8949_v3, %v9093_v36 }
 0x4c1   : > { %v4734_v53 = vadd.f32 %v4478_v0, %v3934_v16  ;;  %v3005_v63 = vadd.f32 %v2749_v33, %v2205_v32  ;;  %v4349_v55 = vsel %vm4077_vm10, %v9126_v50, 0.0  ;;  %vm4877_vm13 = vcmp.eq.s32.totalorder %v8857_v43, %v9129_v20 }
 0x4c2   : > { %v1277_v30 = vsel %vm1005_vm11, %v9090_v58, 0.0  ;;  %v2077_v59 = vsel %vm1805_vm12, %v9096_v49, 0.0  ;;  %vm2605_vm14 = vcmp.eq.s32.totalorder %v8949_v3, %v9099_v8  ;;  %vm3405_vm15 = vcmp.eq.s32.totalorder %v8949_v3, %v9109_v25 }
 0x4c3   : > { %v5534_v45 = vadd.f32 %v5278_v62, %v4734_v53  ;;  %v3805_v5 = vadd.f32 %v3549_v13, %v3005_v63  ;;  %v2333_v36 = vadd.f32 %v2077_v59, %v1277_v30  ;;  %v2877_v15 = vsel %vm2605_vm14, %v9102_v17, 0.0 }
 0x4c4   : > { %v5149_v43 = vsel %vm4877_vm13, %v9132_v18, 0.0  ;;  %v3677_v58 = vsel %vm3405_vm15, %v9116_v9, 0.0  ;;  %vm4205_vm5 = vcmp.eq.s32.totalorder %v8949_v3, %v9123_v54  ;;  %v5741_v49 = vadd.f32 %v5740_v56, %v5669_v51 }
 0x4c5   : > { %5878 = vmatprep.subr.mxu1 %v5534_v45  ;;  %v4605_v8 = vadd.f32 %v4349_v55, %v3805_v5  ;;  %v3133_v25 = vadd.f32 %v2877_v15, %v2333_v36  ;;  %vm5005_vm6 = vcmp.eq.s32.totalorder %v8949_v3, %v9129_v20  ;;  %v4477_v17 = vsel %vm4205_vm5, %v9126_v50, 0.0  ;;  %v6084_v3 = vld [vmem:[%s6197_s29 + $0x8] sm:$0xff] }
 0x4c6   : > { %v5743_v61 = vadd.f32 %v5742_v4, %v5671_v35  ;;  %v5277_v9 = vsel %vm5005_vm6, %v9132_v18, 0.0  ;;  %v5596_v18 = vld [vmem:[%s6205_s11 + $0x8] sm:$0xff] }
 0x4c7   : > { %v5405_v47 = vadd.f32 %v5149_v43, %v4605_v8  ;;  %v3933_v27 = vadd.f32 %v3677_v58, %v3133_v25 }
 0x4c8   : > { %v5891_v37 = vcombine.low %v5741_v49, %v5743_v61 }
 0x4c9   : > { %5808 = vmatpush2.msra.mxu0 %v5405_v47  ;;  %v4733_v54 = vadd.f32 %v4477_v17, %v3933_v27 }
 0x4ca   : > { %5810 = vmatmul.mubr.f32.vlgmr.msra.gmra.mxu0 %v6083_v14  ;;  %v5895_v44 = vadd.f32 %v5891_v37, %v5595_v34 }
 0x4cb   : > { %v5533_v26 = vadd.f32 %v5277_v9, %v4733_v54 }
 0x4cc   : > { %5897 = vst [vmem:[%s6205_s11] sm:$0xff] %v5895_v44 }
 0x4cd   : > { %5879 = vmatpush2.msra.mxu1 %v5533_v26 }
 0x4ce   : > { %5881 = vmatmul.mubr.f32.vlgmr.msra.gmra.mxu1 %v6084_v3 }
 0x58a   : > { %v5811_v50 = vpop.f32.mrf.mxu0 }
 0x58c   : > { %v5813_v21 = vpop.f32.mrf.mxu0 }
 0x58e   : > { %v5882_v20 = vpop.f32.mrf.mxu1 }
 0x58f   : > { %v5883_v48 = vadd.f32 %v5882_v20, %v5811_v50 }
 0x590   : > { %v5884_v10 = vpop.f32.mrf.mxu1 }
 0x591   : > { %v5885_v42 = vadd.f32 %v5884_v10, %v5813_v21 }
 0x593   : > { %v5892_v40 = vcombine.low %v5883_v48, %v5885_v42 }
 0x595   : > { %v5896_v1 = vadd.f32 %v5892_v40, %v5596_v18 }
 0x597   : > { %5898 = vst [vmem:[%s6205_s11 + $0x8] sm:$0xff] %v5896_v1 }
 0x598 PF: > { %s19_s20 = sadd.s32 1, %s6137_s20   ;;  %s11595_s17 = smov %s6129_s19 }
 0x599   : > { %p16_p13 = scmp.ge.s32.totalorder %s19_s20, 18   ;;  %s11596_s18 = smov %s6133_s0 }
 0x59a   : > { %s11597_s19 = smov %s11600_s21  ;;  %s11598_s0 = smov %s11604_s22 }
 0x59b   :  { %18 = sbr.rel (!%p16_p13) target bundleno = 18 (0x12), region = 69 }

// kernel: akconv_forward.6
= control target key start
LH: loop header
LB: loop body
LE: loop exit
PB: predicated region body
PF: predicated region fallthrough
CT: control target
= control target key end

     0   :  { %s1274_s18 = smov 0   ;;  %s1276_s19 = smov 0   ;;  %s1457_s0 = inlined_call_operand.vmem [shape: bf16[16,108], index: 0, kind: input, shape index: {}]   ;;  %s1458_s1 = inlined_call_operand.vmem [shape: bf16[108,1024], index: 1, kind: input, shape index: {}]   ;;  %s1459_s2 = inlined_call_operand.vmem [shape: f32[16,1], index: 2, kind: input, shape index: {}]   ;;  %s1460_s3 = inlined_call_operand.vmem [shape: f32[16,1024], index: 3, kind: output, shape index: {0}]   ;;  %s1461_s4 = inlined_call_operand.vmem [shape: f32[2,16,1], index: 4, kind: output, shape index: {1}]   ;;  %s1462_s5 = inlined_call_operand.vmem [shape: f32[2,16,1], index: 5, kind: output, shape index: {2}]  }
   0x1   :  { %s1278_s20 = smov 0   ;;  %s1280_s21 = smov 0  }
   0x2   :  { %s1282_s22 = smov 0  }
   0x3 LB: > { %s31_s23 = sadd.s32 1, %s1237_s21  ;;  %s1059_s24 = sadd.s32 4294967295, %s1241_s22   ;;  %s1241_s22 = sphi %s1282_s22, %s16_s22   ;;  %s1237_s21 = sphi %s1280_s21, %s1467_s21   ;;  %s1233_s20 = sphi %s1278_s20, %s1466_s20   ;;  %s1229_s19 = sphi %s1276_s19, %s1465_s19   ;;  %s1225_s18 = sphi %s1274_s18, %s1464_s18  }
   0x4   : > { %p33_p0 = scmp.ge.s32.totalorder %s31_s23, 2  ;;  %p79_p1 = scmp.ne.s32.totalorder %s1229_s19, %s1225_s18 }
   0x5   : > { %p80_p2 = scmp.eq.s32.totalorder %s1241_s22, 0  ;;  %p137_p4 = scmp.eq.s32.totalorder %s1059_s24, 1 }
   0x6   : > { %s1469_s23 = smov (%p33_p0, %s31_s23), 0  ;;  %s72_s26 = sadd.s32 1, %s1229_s19 }
   0x7   : > { %p81_p3 = por %p80_p2, %p79_p1  ;;  %s68_s25 = ssub.s32 %s1237_s21, %s1469_s23 }
   0x8   : > { %p70_p5 = scmp.eq.s32.totalorder %s68_s25, 0  ;;  %p1309_p6 = por %p137_p4, %p79_p1 }
   0x9   : > { %p1064_p7 = scmp.ge.s32.totalorder %s1241_s22, 2 }
   0xa   : > { %s1314_s28 = scalar_select %p70_p5, %s1229_s19, %s72_s26  }
   0xb   : > { %236 = sbr.rel (%p1064_p7) target bundleno = 34 (0x22), region = 24 }
  0x10   : > { %239 = sbr.rel (!%p81_p3) target bundleno = 34 (0x22), region = 28  ;;  %s241_s29 = sand.u32 (%p81_p3), 1, %s1229_s19  }
  0x11   : > { %s1111_s30 = sshll.u32 (%p81_p3), %s1237_s21, 4  ;;  %s1115_s6 = smul.u32 (%p81_p3), 224, %s241_s29 }
  0x12   : > { %s1322_s9 = scalar_lea.vmem (%p81_p3), %s1458_s1, %s1111_s30 }
  0x13   : > { %v262_v0 = vld [vmem:[%s1322_s9] sm:$0xff] (%p81_p3)  ;;  %v264_v1 = vld [vmem:[%s1322_s9 + $0x8] sm:$0xff] (%p81_p3)  ;;  %s1330_s10 = scalar_lea.vmem (%p81_p3), [#allocation3], %s1115_s6 }
  0x14   : > { %v266_v2 = vld [vmem:[%s1322_s9 + $0x20] sm:$0xff] (%p81_p3)  ;;  %v268_v3 = vld [vmem:[%s1322_s9 + $0x28] sm:$0xff] (%p81_p3)  ;;  %263 = vst [vmem:[%s1330_s10] sm:$0xff] (%p81_p3), %v262_v0  ;;  %265 = vst [vmem:[%s1330_s10 + $0x8] sm:$0xff] (%p81_p3), %v264_v1 }
  0x15   : > { %v270_v4 = vld [vmem:[%s1322_s9 + $0x40] sm:$0xff]  ;;  %v272_v5 = vld [vmem:[%s1322_s9 + $0x48] sm:$0xff]  ;;  %267 = vst [vmem:[%s1330_s10 + $0x10] sm:$0xff] %v266_v2  ;;  %269 = vst [vmem:[%s1330_s10 + $0x18] sm:$0xff] %v268_v3 }
  0x16   : > { %271 = vst [vmem:[%s1330_s10 + $0x20] sm:$0xff] %v270_v4  ;;  %273 = vst [vmem:[%s1330_s10 + $0x28] sm:$0xff] %v272_v5  ;;  %v274_v6 = vld [vmem:[%s1322_s9 + $0x60] sm:$0xff]  ;;  %v276_v7 = vld [vmem:[%s1322_s9 + $0x68] sm:$0xff] }
  0x17   : > { %v278_v8 = vld [vmem:[%s1322_s9 + $0x80] sm:$0xff]  ;;  %275 = vst [vmem:[%s1330_s10 + $0x30] sm:$0xff] %v274_v6  ;;  %277 = vst [vmem:[%s1330_s10 + $0x38] sm:$0xff] %v276_v7  ;;  %v280_v9 = vld [vmem:[%s1322_s9 + $0x88] sm:$0xff] }
  0x18   : > { %279 = vst [vmem:[%s1330_s10 + $0x40] sm:$0xff] %v278_v8  ;;  %v282_v10 = vld [vmem:[%s1322_s9 + $0xa0] sm:$0xff]  ;;  %v284_v11 = vld [vmem:[%s1322_s9 + $0xa8] sm:$0xff]  ;;  %281 = vst [vmem:[%s1330_s10 + $0x48] sm:$0xff] %v280_v9 }
  0x19   : > { %283 = vst [vmem:[%s1330_s10 + $0x50] sm:$0xff] %v282_v10  ;;  %285 = vst [vmem:[%s1330_s10 + $0x58] sm:$0xff] %v284_v11  ;;  %v286_v12 = vld [vmem:[%s1322_s9 + $0xc0] sm:$0xff]  ;;  %v288_v13 = vld [vmem:[%s1322_s9 + $0xc8] sm:$0xff] }
  0x1a   : > { %v290_v14 = vld [vmem:[%s1322_s9 + $0xe0] sm:$0xff]  ;;  %287 = vst [vmem:[%s1330_s10 + $0x60] sm:$0xff] %v286_v12  ;;  %289 = vst [vmem:[%s1330_s10 + $0x68] sm:$0xff] %v288_v13  ;;  %v292_v15 = vld [vmem:[%s1322_s9 + $0xe8] sm:$0xff] }
  0x1b   : > { %291 = vst [vmem:[%s1330_s10 + $0x70] sm:$0xff] %v290_v14  ;;  %v294_v16 = vld [vmem:[%s1322_s9 + $0x100] sm:$0xff]  ;;  %v296_v17 = vld [vmem:[%s1322_s9 + $0x108] sm:$0xff]  ;;  %293 = vst [vmem:[%s1330_s10 + $0x78] sm:$0xff] %v292_v15 }
  0x1c   : > { %295 = vst [vmem:[%s1330_s10 + $0x80] sm:$0xff] %v294_v16  ;;  %297 = vst [vmem:[%s1330_s10 + $0x88] sm:$0xff] %v296_v17  ;;  %v298_v18 = vld [vmem:[%s1322_s9 + $0x120] sm:$0xff]  ;;  %v300_v19 = vld [vmem:[%s1322_s9 + $0x128] sm:$0xff] }
  0x1d   : > { %v302_v20 = vld [vmem:[%s1322_s9 + $0x140] sm:$0xff]  ;;  %299 = vst [vmem:[%s1330_s10 + $0x90] sm:$0xff] %v298_v18  ;;  %301 = vst [vmem:[%s1330_s10 + $0x98] sm:$0xff] %v300_v19  ;;  %v304_v21 = vld [vmem:[%s1322_s9 + $0x148] sm:$0xff] }
  0x1e   : > { %303 = vst [vmem:[%s1330_s10 + $0xa0] sm:$0xff] %v302_v20  ;;  %v306_v22 = vld [vmem:[%s1322_s9 + $0x160] sm:$0xff]  ;;  %v308_v23 = vld [vmem:[%s1322_s9 + $0x168] sm:$0xff]  ;;  %305 = vst [vmem:[%s1330_s10 + $0xa8] sm:$0xff] %v304_v21 }
  0x1f   : > { %307 = vst [vmem:[%s1330_s10 + $0xb0] sm:$0xff] %v306_v22  ;;  %309 = vst [vmem:[%s1330_s10 + $0xb8] sm:$0xff] %v308_v23  ;;  %v310_v24 = vld [vmem:[%s1322_s9 + $0x180] sm:$0xff]  ;;  %v312_v25 = vld [vmem:[%s1322_s9 + $0x188] sm:$0xff] }
  0x20   : > { %v314_v26 = vld [vmem:[%s1322_s9 + $0x1a0] sm:$0xff]  ;;  %311 = vst [vmem:[%s1330_s10 + $0xc0] sm:$0xff] %v310_v24  ;;  %313 = vst [vmem:[%s1330_s10 + $0xc8] sm:$0xff] %v312_v25  ;;  %v316_v27 = vld [vmem:[%s1322_s9 + $0x1a8] sm:$0xff] }
  0x21   : > { %315 = vst [vmem:[%s1330_s10 + $0xd0] sm:$0xff] %v314_v26  ;;  %317 = vst [vmem:[%s1330_s10 + $0xd8] sm:$0xff] %v316_v27 }
  0x22 PF: > { %p1067_p8 = scmp.ge.s32.totalorder %s1241_s22, 1  ;;  %p322_p9 = scmp.lt.s32.totalorder %s1241_s22, 3 }
  0x24   : > { %p323_p10 = pnand %p1067_p8, %p322_p9 }
  0x25   : > { %s329_s11 = sand.u32 (!%p323_p10), 1, %s1225_s18   ;;  %p406_p11 = scmp.lt.s32.totalorder (!%p323_p10), %s1233_s20, 1 }
  0x26   : > { %326 = sbr.rel (%p323_p10) target bundleno = 438 (0x1b6), region = 51 }
  0x27   : > { %s1116_s12 = smul.u32 (!%p323_p10), 224, %s329_s11 }
  0x29   : > { %s1387_s13 = scalar_lea.vmem (!%p323_p10), [#allocation3], %s1116_s12  ;;  %s1068_s12 = sshll.u32 (!%p323_p10), %s329_s11, 6 }
  0x2b   : > { %v1243_v28 = vmov 0   ;;  %vm621_vm0 = vcmask 1045504   ;;  %v1160_v29 = vld [vmem:[%s1387_s13 + $0xc4] ss:$16 sps:$4 sm:$0x3f]   ;;  %vm617_vm1 = vcmask 883712  }
  0x2c   : > { %666 = vmatprep.mubr.bf16.mxu0 %v1243_v28  ;;  %709 = vmatprep.mubr.bf16.mxu1 %v1243_v28  ;;  %v1162_v30 = vld [vmem:[%s1387_s13 + $0xcc] ss:$16 sps:$4 sm:$0x3f]   ;;  %v1164_v31 = vld [vmem:[%s1387_s13 + $0xc0] ss:$16 sps:$4 sm:$0x3f]  }
  0x2d   : > { %1159 = vset.pattern.permute.xlu1 %v1243_v28  ;;  %1158 = vset.pattern.permute.xlu0 %v1243_v28  ;;  %v1165_v32 = vld [vmem:[%s1387_s13 + $0xc8] ss:$16 sps:$4 sm:$0x3f]   ;;  %v1166_v33 = vld [vmem:[%s1387_s13 + $0xa4] ss:$16 sps:$4 sm:$0xff]   ;;  %v623_v34 = vsel %vm621_vm0, %v1164_v31, 0 }
  0x2e   : > { %1102 = vmatprep.subr.msk.bf16.mxu0 %vm621_vm0, %v1160_v29  ;;  %1104 = vmatprep.subr.msk.bf16.mxu1 %vm621_vm0, %v1162_v30  ;;  %v629_v35 = vsel %vm621_vm0, %v1165_v32, 0  ;;  %v1168_v36 = vld [vmem:[%s1387_s13 + $0xac] ss:$16 sps:$4 sm:$0xff]   ;;  %v1170_v37 = vld [vmem:[%s1387_s13 + $0xa0] ss:$16 sps:$4 sm:$0xff]   ;;  %s407_s26 = scalar_select %p406_p11, %s1233_s20, 1 }
  0x2f   : > { %637 = vmatpush1.bf16.msra.mxu0 %v623_v34  ;;  %680 = vmatpush1.bf16.msra.mxu1 %v629_v35  ;;  %v1171_v38 = vld [vmem:[%s1387_s13 + $0xa8] ss:$16 sps:$4 sm:$0xff]   ;;  %v1172_v39 = vld [vmem:[%s1387_s13 + $0x84] ss:$16 sps:$4 sm:$0xff]   ;;  %v1174_v40 = vld [vmem:[%s1387_s13 + $0x8c] ss:$16 sps:$4 sm:$0xff]  }
  0x30   : > { %638 = vmatprep.subr.bf16.mxu0 %v1166_v33  ;;  %681 = vmatprep.subr.bf16.mxu1 %v1168_v36  ;;  %v1176_v41 = vld [vmem:[%s1387_s13 + $0x80] ss:$16 sps:$4 sm:$0xff]   ;;  %v1177_v42 = vld [vmem:[%s1387_s13 + $0x88] ss:$16 sps:$4 sm:$0xff]   ;;  %v1178_v43 = vld [vmem:[%s1387_s13 + $0x64] ss:$16 sps:$4 sm:$0xff]  }
  0x31   : > { %v1180_v44 = vld [vmem:[%s1387_s13 + $0x6c] ss:$16 sps:$4 sm:$0xff]   ;;  %v1182_v45 = vld [vmem:[%s1387_s13 + $0x60] ss:$16 sps:$4 sm:$0xff]   ;;  %v1183_v46 = vld [vmem:[%s1387_s13 + $0x68] ss:$16 sps:$4 sm:$0xff]  }
  0x32   : > { %v1184_v47 = vld [vmem:[%s1387_s13 + $0x44] ss:$16 sps:$4 sm:$0xff]   ;;  %v1186_v48 = vld [vmem:[%s1387_s13 + $0x4c] ss:$16 sps:$4 sm:$0xff]   ;;  %v1188_v49 = vld [vmem:[%s1387_s13 + $0x40] ss:$16 sps:$4 sm:$0xff]  }
  0x33   : > { %639 = vmatpush1.bf16.msra.mxu0 %v1170_v37  ;;  %682 = vmatpush1.bf16.msra.mxu1 %v1171_v38  ;;  %v1189_v50 = vld [vmem:[%s1387_s13 + $0x48] ss:$16 sps:$4 sm:$0xff]   ;;  %v1190_v51 = vld [vmem:[%s1387_s13 + $0x24] ss:$16 sps:$4 sm:$0xff]   ;;  %v1192_v52 = vld [vmem:[%s1387_s13 + $0x2c] ss:$16 sps:$4 sm:$0xff]  }
  0x34   : > { %640 = vmatprep.subr.bf16.mxu0 %v1172_v39  ;;  %683 = vmatprep.subr.bf16.mxu1 %v1174_v40  ;;  %v1194_v53 = vld [vmem:[%s1387_s13 + $0x20] ss:$16 sps:$4 sm:$0xff]   ;;  %v1195_v54 = vld [vmem:[%s1387_s13 + $0x28] ss:$16 sps:$4 sm:$0xff]   ;;  %v1196_v55 = vld [vmem:[%s1387_s13 + $0x4] ss:$16 sps:$4 sm:$0xff]  }
  0x35   : > { %v1198_v56 = vld [vmem:[%s1387_s13 + $0xc] ss:$16 sps:$4 sm:$0xff]   ;;  %v1200_v57 = vld [vmem:[%s1387_s13] ss:$16 sps:$4 sm:$0xff]   ;;  %v1201_v58 = vld [vmem:[%s1387_s13 + $0x8] ss:$16 sps:$4 sm:$0xff]  }
  0x36   : > { %v1202_v59 = vld [vmem:[%s1457_s0] sm:$0xff]   ;;  %v748_v24 = vld [vmem:[%s1459_s2 + $0x8] sm:$0xff]  ;;  %s1112_s29 = sshll.u32 %s407_s26, 4  ;;  %vm785_vm2 = vcmask 7168   ;;  %s363_s13 = scalar_lea.vmem [#allocation4], %s1068_s12 }
  0x37   : > { %641 = vmatpush1.bf16.msra.mxu0 %v1176_v41  ;;  %684 = vmatpush1.bf16.msra.mxu1 %v1177_v42  ;;  %v747_v25 = vld [vmem:[%s1459_s2] sm:$0xff]  ;;  %s413_s7 = scalar_lea.vmem %s1461_s4, %s1112_s29  ;;  %s423_s10 = scalar_lea.vmem %s1462_s5, %s1112_s29 }
  0x38   : > { %642 = vmatprep.subr.bf16.mxu0 %v1178_v43  ;;  %685 = vmatprep.subr.bf16.mxu1 %v1180_v44  ;;  %s1114_s18 = sshll.u32 (%p1309_p6), %s1233_s20, 5 }
  0x39   : > { %s838_s15 = scalar_lea.vmem (%p1309_p6), %s1460_s3, %s1114_s18 }
  0x3b   : > { %643 = vmatpush1.bf16.msra.mxu0 %v1182_v45  ;;  %686 = vmatpush1.bf16.msra.mxu1 %v1183_v46 }
  0x3c   : > { %644 = vmatprep.subr.bf16.mxu0 %v1184_v47  ;;  %687 = vmatprep.subr.bf16.mxu1 %v1186_v48 }
  0x3f   : > { %645 = vmatpush1.bf16.msra.mxu0 %v1188_v49  ;;  %688 = vmatpush1.bf16.msra.mxu1 %v1189_v50 }
  0x40   : > { %646 = vmatprep.subr.bf16.mxu0 %v1190_v51  ;;  %689 = vmatprep.subr.bf16.mxu1 %v1192_v52 }
  0x43   : > { %647 = vmatpush1.bf16.msra.mxu0 %v1194_v53  ;;  %690 = vmatpush1.bf16.msra.mxu1 %v1195_v54 }
  0x44   : > { %648 = vmatprep.subr.bf16.mxu0 %v1196_v55  ;;  %691 = vmatprep.subr.bf16.mxu1 %v1198_v56 }
  0x47   : > { %649 = vmatpush1.bf16.msra.mxu0 %v1200_v57  ;;  %692 = vmatpush1.bf16.msra.mxu1 %v1201_v58 }
  0x4a   : > { %1103 = vmatmul.mubr.msk.bf16.vlgmr.msra.gmra.mxu0 %vm617_vm1, %v1202_v59  ;;  %1105 = vmatmul.mubr.msk.bf16.vlgmr.msra.gmra.mxu1 %vm617_vm1, %v1202_v59 }
 0x10a   : > { %v668_v60 = vpop.f32.mrf.mxu0  ;;  %v711_v61 = vpop.f32.mrf.mxu1 }
 0x10b   : > { %v788_v0 = vmul.f32 %v668_v60, %v668_v60  ;;  %v790_v3 = vmul.f32 %v711_v61, %v711_v61 }
 0x10c   : > { %v670_v62 = vpop.f32.mrf.mxu0  ;;  %v713_v63 = vpop.f32.mrf.mxu1 }
 0x10d   : > { %v775_v1 = vadd.f32 %v670_v62, %v668_v60  ;;  %v789_v2 = vmul.f32 %v670_v62, %v670_v62  ;;  %v791_v14 = vmul.f32 %v713_v63, %v713_v63 }
 0x10e   : > { %v672_v4 = vpop.f32.mrf.mxu0  ;;  %v715_v5 = vpop.f32.mrf.mxu1 }
 0x10f   : > { %v776_v6 = vadd.f32 %v775_v1, %v711_v61  ;;  %v796_v7 = vadd.f32 %v789_v2, %v788_v0  ;;  %v792_v9 = vmul.f32 %v672_v4, %v672_v4  ;;  %v794_v16 = vmul.f32 %v715_v5, %v715_v5 }
 0x110   : > { %v674_v8 = vpop.f32.mrf.mxu0  ;;  %v717_v13 = vpop.f32.mrf.mxu1 }
 0x111   : > { %v780_v10 = vadd.f32 %v674_v8, %v672_v4  ;;  %v793_v11 = vmul.f32 %v674_v8, %v674_v8  ;;  %v777_v12 = vadd.f32 %v776_v6, %v713_v63  ;;  %v797_v15 = vadd.f32 %v796_v7, %v790_v3 }
 0x112   : > { %v795_v20 = vmul.f32 %v717_v13, %v717_v13 }
 0x113   : > { %v801_v17 = vadd.f32 %v793_v11, %v792_v9  ;;  %778 = vadd.xlane.f32.xlu0 %v777_v12  ;;  %v781_v18 = vadd.f32 %v780_v10, %v715_v5  ;;  %v798_v19 = vadd.f32 %v797_v15, %v791_v14 }
 0x115   : > { %v782_v21 = vadd.f32 %v781_v18, %v717_v13  ;;  %v802_v22 = vadd.f32 %v801_v17, %v794_v16  ;;  %799 = vadd.xlane.f32.xlu1 %v798_v19 }
 0x117   : > { %783 = vadd.xlane.f32.xlu0 %v782_v21  ;;  %v803_v23 = vadd.f32 %v802_v22, %v795_v20 }
 0x119   : > { %804 = vadd.xlane.f32.xlu1 %v803_v23 }
 0x12a   : > { %756 = vperm.xlu1 %1159, %v748_v24  }
 0x12d   : > { %751 = vperm.xlu0 %1158, %v747_v25  }
 0x19c   : > { %v779_v26 = vpop.xlane.xlu0 %778 }
 0x19d   : > { %786 = vst.msk [vmem:[%s413_s7] sm:$0xff] %vm785_vm2, %v779_v26 }
 0x19e   : > { %v800_v27 = vpop.xlane.xlu1 %799 }
 0x19f   : > { %806 = vst.msk [vmem:[%s423_s10] sm:$0xff] %vm785_vm2, %v800_v27 }
 0x1a0   : > { %v784_v28 = vpop.xlane.xlu0 %783 }
 0x1a1   : > { %787 = vst.msk [vmem:[%s413_s7 + $0x8] sm:$0xff] %vm785_vm2, %v784_v28 }
 0x1a2   : > { %v805_v29 = vpop.xlane.xlu1 %804 }
 0x1a3   : > { %807 = vst.msk [vmem:[%s423_s10 + $0x8] sm:$0xff] %vm785_vm2, %v805_v29 }
 0x1a6   : > { %v757_v30 = vpop.permute.xlu1 %756 }
 0x1a7   : > { %v763_v31 = vadd.f32 %v757_v30, %v672_v4  ;;  %v764_v32 = vadd.f32 %v757_v30, %v674_v8  ;;  %v765_v33 = vadd.f32 %v757_v30, %v715_v5  ;;  %v766_v34 = vadd.f32 %v757_v30, %v717_v13 }
 0x1a8   : > { %v752_v35 = vpop.permute.xlu0 %751 }
 0x1a9   : > { %v759_v36 = vadd.f32 %v752_v35, %v668_v60  ;;  %v760_v37 = vadd.f32 %v752_v35, %v670_v62  ;;  %v761_v38 = vadd.f32 %v752_v35, %v711_v61  ;;  %v762_v39 = vadd.f32 %v752_v35, %v713_v63  ;;  %771 = vst [vmem:[%s363_s13 + $0x20] sm:$0xff] %v763_v31  ;;  %832 = sbr.rel (!%p1309_p6) target bundleno = 438 (0x1b6), region = 67 }
 0x1aa   : > { %772 = vst [vmem:[%s363_s13 + $0x28] sm:$0xff] %v764_v32  ;;  %773 = vst [vmem:[%s363_s13 + $0x30] sm:$0xff] %v765_v33 }
 0x1ab   : > { %774 = vst [vmem:[%s363_s13 + $0x38] sm:$0xff] %v766_v34  ;;  %767 = vst [vmem:[%s363_s13] sm:$0xff] %v759_v36 }
 0x1ac   : > { %768 = vst [vmem:[%s363_s13 + $0x8] sm:$0xff] %v760_v37  ;;  %769 = vst [vmem:[%s363_s13 + $0x10] sm:$0xff] %v761_v38 }
 0x1ad   : > { %770 = vst [vmem:[%s363_s13 + $0x18] sm:$0xff] %v762_v39 }
 0x1b0   : > { %v859_v44 = vld [vmem:[%s363_s13 + $0x20] sm:$0xff] }
 0x1b1   : > { %v861_v45 = vld [vmem:[%s363_s13 + $0x28] sm:$0xff]  ;;  %860 = vst [vmem:[%s838_s15 + $0x40] sm:$0xff] %v859_v44  ;;  %v863_v46 = vld [vmem:[%s363_s13 + $0x30] sm:$0xff] }
 0x1b2   : > { %v851_v40 = vld [vmem:[%s363_s13] sm:$0xff]  ;;  %862 = vst [vmem:[%s838_s15 + $0x48] sm:$0xff] %v861_v45  ;;  %v865_v47 = vld [vmem:[%s363_s13 + $0x38] sm:$0xff]  ;;  %864 = vst [vmem:[%s838_s15 + $0x50] sm:$0xff] %v863_v46 }
 0x1b3   : > { %v853_v41 = vld [vmem:[%s363_s13 + $0x8] sm:$0xff]  ;;  %v855_v42 = vld [vmem:[%s363_s13 + $0x10] sm:$0xff]  ;;  %852 = vst [vmem:[%s838_s15] sm:$0xff] %v851_v40  ;;  %866 = vst [vmem:[%s838_s15 + $0x58] sm:$0xff] %v865_v47 }
 0x1b4   : > { %v857_v43 = vld [vmem:[%s363_s13 + $0x18] sm:$0xff]  ;;  %854 = vst [vmem:[%s838_s15 + $0x8] sm:$0xff] %v853_v41  ;;  %856 = vst [vmem:[%s838_s15 + $0x10] sm:$0xff] %v855_v42 }
 0x1b5   : > { %858 = vst [vmem:[%s838_s15 + $0x18] sm:$0xff] %v857_v43 }
 0x1b6 PF: > { %s16_s22 = sadd.s32 1, %s1241_s22   ;;  %s1464_s18 = smov %s1229_s19 }
 0x1b7   : > { %p13_p12 = scmp.ge.s32.totalorder %s16_s22, 4   ;;  %s1465_s19 = smov %s1314_s28 }
 0x1b8   : > { %s1466_s20 = smov %s1237_s21  ;;  %s1467_s21 = smov %s1469_s23 }
 0x1b9   :  { %15 = sbr.rel (!%p13_p12) target bundleno = 3 (0x3), region = 151 }

// kernel: akconv_forward.7
= control target key start
LH: loop header
LB: loop body
LE: loop exit
PB: predicated region body
PF: predicated region fallthrough
CT: control target
= control target key end

     0   :  { %s348_s12 = smov 0   ;;  %s378_s0 = inlined_call_operand.vmem [shape: f32[8,1024], index: 0, kind: input, shape index: {}]   ;;  %s379_s1 = inlined_call_operand.vmem [shape: f32[8,1], index: 1, kind: input, shape index: {}]   ;;  %s380_s2 = inlined_call_operand.vmem [shape: f32[8,1], index: 2, kind: input, shape index: {}]   ;;  %s381_s3 = inlined_call_operand.vmem [shape: f32[8,1024], index: 3, kind: output, shape index: {}]  }
   0x1 LB: > { %s282_s13 = sadd.s32 4294967295, %s325_s12   ;;  %p286_p0 = scmp.ge.s32.totalorder %s325_s12, 1  ;;  %s325_s12 = sphi %s348_s12, %s13_s12  }
   0x2   : > { %p138_p1 = scmp.lt.s32.totalorder %s325_s12, 3 }
   0x4   : > { %p139_p2 = pnand %p286_p0, %p138_p1 }
   0x5   : > { %s287_s18 = sshll.u32 (!%p139_p2), %s282_s13, 2 }
   0x6   : > { %142 = sbr.rel (%p139_p2) target bundleno = 183 (0xb7), region = 32  ;;  %p163_p3 = scmp.lt.s32.totalorder (!%p139_p2), %s287_s18, 7 }
   0xb   : > { %v178_v0 = vld [vmem:[%s379_s1] sm:$0xff]  ;;  %v327_v1 = vmov 0   ;;  %s383_s18 = smov (!%p163_p3, %s287_s18), 7 }
   0xc   : > { %302 = vset.pattern.permute.xlu0 %v327_v1  ;;  %v188_v2 = vld [vmem:[%s380_s2] sm:$0xff]  ;;  %s288_s19 = sshll.u32 %s383_s18, 3 }
   0xd   : > { %181 = vperm.xlu0 %302, %v178_v0   ;;  %s166_s22 = scalar_lea.vmem %s378_s0, %s288_s19  ;;  %s172_s25 = scalar_lea.vmem %s381_s3, %s288_s19 }
   0xe   : > { %v174_v3 = vld [vmem:[%s166_s22] sm:$0xff]  ;;  %v175_v5 = vld [vmem:[%s166_s22 + $0x8] sm:$0xff]  ;;  %v176_v6 = vld [vmem:[%s166_s22 + $0x10] sm:$0xff] }
   0xf   : > { %v177_v7 = vld [vmem:[%s166_s22 + $0x18] sm:$0xff] }
  0x11   : > { %191 = vperm.xlu0 %302, %v188_v2  }
  0x88   : > { %v182_v4 = vpop.permute.xlu0 %181 }
  0x89   : > { %v184_v8 = vmul.f32 %v182_v4, %v174_v3  ;;  %v185_v9 = vmul.f32 %v182_v4, %v175_v5  ;;  %v186_v10 = vmul.f32 %v182_v4, %v176_v6  ;;  %v187_v11 = vmul.f32 %v182_v4, %v177_v7 }
  0x8c   : > { %v192_v12 = vpop.permute.xlu0 %191 }
  0x8d   : > { %v194_v13 = vadd.f32 %v192_v12, %v184_v8  ;;  %v195_v14 = vadd.f32 %v192_v12, %v185_v9  ;;  %v196_v15 = vadd.f32 %v192_v12, %v186_v10  ;;  %v197_v16 = vadd.f32 %v192_v12, %v187_v11 }
  0x8f   : > { %v198_v17 = vsub.f32 0.0, %v194_v13  ;;  %v199_v18 = vsub.f32 0.0, %v195_v14  ;;  %v200_v19 = vsub.f32 0.0, %v196_v15  ;;  %v201_v20 = vsub.f32 0.0, %v197_v16 }
  0x91   : > { %v202_v21 = vmul.f32 1.442695, %v198_v17  ;;  %v204_v22 = vmul.f32 1.442695, %v199_v18  ;;  %v206_v23 = vmul.f32 1.442695, %v200_v19 }
  0x92   : > { %v208_v24 = vmul.f32 1.442695, %v201_v20 }
  0x93   : > { %303 = vpow2.f32 %v202_v21 }
  0x94   : > { %305 = vpow2.f32 %v204_v22 }
  0x95   : > { %307 = vpow2.f32 %v206_v23 }
  0x96   : > { %309 = vpow2.f32 %v208_v24 }
  0xa0   : > { %v304_v25 = vpop.eup %303 }
  0xa1   : > { %v306_v26 = vpop.eup %305  ;;  %v210_v27 = vadd.f32 1.0, %v304_v25 }
  0xa2   : > { %v308_v28 = vpop.eup %307  ;;  %v211_v29 = vadd.f32 1.0, %v306_v26 }
  0xa3   : > { %v310_v30 = vpop.eup %309  ;;  %v212_v31 = vadd.f32 1.0, %v308_v28  ;;  %311 = vrcp.f32 %v210_v27 }
  0xa4   : > { %v213_v32 = vadd.f32 1.0, %v310_v30  ;;  %313 = vrcp.f32 %v211_v29 }
  0xa5   : > { %315 = vrcp.f32 %v212_v31 }
  0xa6   : > { %317 = vrcp.f32 %v213_v32 }
  0xb0   : > { %v312_v33 = vpop.eup %311 }
  0xb1   : > { %v314_v34 = vpop.eup %313  ;;  %v218_v35 = vmul.f32 %v312_v33, %v194_v13 }
  0xb2   : > { %v316_v36 = vpop.eup %315  ;;  %v219_v37 = vmul.f32 %v314_v34, %v195_v14 }
  0xb3   : > { %v318_v38 = vpop.eup %317  ;;  %v220_v39 = vmul.f32 %v316_v36, %v196_v15  ;;  %222 = vst [vmem:[%s172_s25] sm:$0xff] %v218_v35 }
  0xb4   : > { %v221_v40 = vmul.f32 %v318_v38, %v197_v16  ;;  %223 = vst [vmem:[%s172_s25 + $0x8] sm:$0xff] %v219_v37 }
  0xb5   : > { %224 = vst [vmem:[%s172_s25 + $0x10] sm:$0xff] %v220_v39 }
  0xb6   : > { %225 = vst [vmem:[%s172_s25 + $0x18] sm:$0xff] %v221_v40 }
  0xb7 PF: > { %s13_s12 = sadd.s32 1, %s325_s12  }
  0xb8   : > { %p10_p4 = scmp.ge.s32.totalorder %s13_s12, 4  }
  0xba   :  { %12 = sbr.rel (!%p10_p4) target bundleno = 1 (0x1), region = 62 }

</bundles_post_ra>
